<compile_context>
chip_gen: v7x
topology: tpu7x:2x2x1
jax: 0.10.0
libtpu: 0.0.40
codegen_flags: <defaults>
</compile_context>

<pallas_src>
import functools
import math
import numpy as np
import jax
import jax.numpy as jnp
from jax import lax
from jax.experimental import pallas as pl
from jax.experimental.pallas import tpu as pltpu

# ---- ModelArgs defaults ----
N_LAYERS = 8
N_HEADS = 2
KERNEL_SIZE = 7
FILTER_SIZE = 256
BINS = 128
LN_EPS = 1e-5
PAD = (KERNEL_SIZE - 1) // 2
HEAD_OUT = 3 * BINS       # lane-dense fused head output: [pitch(128) | energy(128) | vad(1)+pad]
VEC_ROWS = 16             # packed per-layer (1,C) vectors, padded to a sublane multiple


# ---------------------------------------------------------------------------
# Kernel
# ---------------------------------------------------------------------------
def _layernorm(h, w, b):
    mu = jnp.mean(h, axis=-1, keepdims=True)
    var = jnp.mean(jnp.square(h - mu), axis=-1, keepdims=True)
    return (h - mu) * lax.rsqrt(var + LN_EPS) * w + b


def fused_conformer_kernel(x_ref, wqkv_ref, wo_ref, w1_ref, w2_ref, vec_ref,
                           whead_ref, bhead_ref, o_ref, h_ref, *, batch, seq):
    """One grid step == one post-norm conformer layer; heads fused at last step."""
    l = pl.program_id(0)
    C = FILTER_SIZE
    Dh = C // N_HEADS
    M = batch * seq
    scale = 1.0 / math.sqrt(Dh)

    @pl.when(l == 0)
    def _():
        h_ref[...] = x_ref[...]

    x = h_ref[...]                               # [M, C] f32 (resident activation)
    xb = x.astype(jnp.bfloat16)
    vec = vec_ref[0]                             # [16, C] f32 packed biases / LN params
    # rows: 0 bq, 1 bk, 2 bv, 3 bo, 4 b1, 5 b2, 6 ln1w, 7 ln1b, 8 ln2w, 9 ln2b

    # --- self attention (fused QKV matmul, bf16 in / f32 acc) ---
    qkv = jnp.dot(xb, wqkv_ref[0], preferred_element_type=jnp.float32)   # [M, 3C]
    q = qkv[:, 0:C] + vec[0:1]
    k = qkv[:, C:2 * C] + vec[1:2]
    v = qkv[:, 2 * C:3 * C] + vec[2:3]

    head_outs = []
    for hd in range(N_HEADS):
        qh = (q[:, hd * Dh:(hd + 1) * Dh] * scale).reshape(batch, seq, Dh)
        kh = k[:, hd * Dh:(hd + 1) * Dh].reshape(batch, seq, Dh)
        vh = v[:, hd * Dh:(hd + 1) * Dh].reshape(batch, seq, Dh)
        s = jnp.einsum('bqd,bkd->bqk', qh.astype(jnp.bfloat16),
                       kh.astype(jnp.bfloat16),
                       preferred_element_type=jnp.float32)               # [B, T, T]
        s = s - jnp.max(s, axis=-1, keepdims=True)
        p = jnp.exp(s)
        p = p * pl.reciprocal(jnp.sum(p, axis=-1, keepdims=True), approx=True)
        oh = jnp.einsum('bqk,bkd->bqd', p.astype(jnp.bfloat16),
                        vh.astype(jnp.bfloat16),
                        preferred_element_type=jnp.float32)              # [B, T, Dh]
        head_outs.append(oh.reshape(M, Dh))
    attn = jnp.concatenate(head_outs, axis=-1)                           # [M, C] f32
    attn = jnp.dot(attn.astype(jnp.bfloat16), wo_ref[0],
                   preferred_element_type=jnp.float32) + vec[3:4]

    h1 = _layernorm(x + attn, vec[6:7], vec[7:8])                        # post-norm 1

    # --- conv feed-forward: im2col (7 rolls + masks) -> one K=7*C matmul -> ReLU -> 1x1 ---
    t_idx = lax.broadcasted_iota(jnp.int32, (M, C), 0) % seq
    cols = []
    for kk in range(KERNEL_SIZE):
        d = kk - PAD
        if d == 0:
            shifted = h1
        else:
            shifted = pltpu.roll(h1, (PAD - kk) % M, axis=0)   # shifted[r] = h1[r + d]
        valid = jnp.logical_and(t_idx + d >= 0, t_idx + d < seq)
        cols.append(jnp.where(valid, shifted, 0.0).astype(jnp.bfloat16))
    xcol = jnp.concatenate(cols, axis=-1)                                # [M, K*C] bf16
    ff = jnp.dot(xcol, w1_ref[0], preferred_element_type=jnp.float32) + vec[4:5]
    ff = jnp.maximum(ff, 0.0)
    ff = jnp.dot(ff.astype(jnp.bfloat16), w2_ref[0],
                 preferred_element_type=jnp.float32) + vec[5:6]

    h2 = _layernorm(h1 + ff, vec[8:9], vec[9:10])                        # post-norm 2
    h_ref[...] = h2

    # --- fused output heads (pitch | energy | vad+pad) at the final layer step ---
    @pl.when(l == N_LAYERS - 1)
    def _():
        o_ref[...] = jnp.dot(h2.astype(jnp.bfloat16), whead_ref[...],
                             preferred_element_type=jnp.float32) + bhead_ref[...]


# ---------------------------------------------------------------------------
# Wrappers
# ---------------------------------------------------------------------------
def fused_forward_pallas(x_flat, packed, batch, seq):
    C = FILTER_SIZE
    M = batch * seq
    kernel = functools.partial(fused_conformer_kernel, batch=batch, seq=seq)
    return pl.pallas_call(
        kernel,
        out_shape=jax.ShapeDtypeStruct((M, HEAD_OUT), jnp.float32),
        grid=(N_LAYERS,),
        in_specs=[
            pl.BlockSpec((M, C), lambda l: (0, 0)),                      # x (loaded once)
            pl.BlockSpec((1, C, 3 * C), lambda l: (l, 0, 0)),            # wqkv [L,C,3C]
            pl.BlockSpec((1, C, C), lambda l: (l, 0, 0)),                # wo   [L,C,C]
            pl.BlockSpec((1, KERNEL_SIZE * C, C), lambda l: (l, 0, 0)),  # w1   [L,K*C,C]
            pl.BlockSpec((1, C, C), lambda l: (l, 0, 0)),                # w2   [L,C,C]
            pl.BlockSpec((1, VEC_ROWS, C), lambda l: (l, 0, 0)),         # packed vectors
            pl.BlockSpec((C, HEAD_OUT), lambda l: (0, 0)),               # fused head weight
            pl.BlockSpec((1, HEAD_OUT), lambda l: (0, 0)),               # fused head bias
        ],
        out_specs=pl.BlockSpec((M, HEAD_OUT), lambda l: (0, 0)),
        scratch_shapes=[pltpu.VMEM((M, C), jnp.float32)],                # resident activation
        compiler_params=pltpu.CompilerParams(
            dimension_semantics=("arbitrary",),
            vmem_limit_bytes=32 * 1024 * 1024,
        ),
    )(x_flat, packed["wqkv"], packed["wo"], packed["w1"], packed["w2"],
      packed["vec"], packed["whead"], packed["bhead"])


def sinusoidal_pe(T, d):
    pos = np.arange(T, dtype=np.float32)[:, None]
    div = np.exp(np.arange(0, d, 2, dtype=np.float32) * (-np.log(10000.0) / d))
    pe = np.zeros((T, d), dtype=np.float32)
    pe[:, 0::2] = np.sin(pos * div)
    pe[:, 1::2] = np.cos(pos * div)
    return jnp.asarray(pe)


def init_params(key):
    C, K = FILTER_SIZE, KERNEL_SIZE
    n_keys = 3 + N_LAYERS * 6 + 3
    keys = iter(jax.random.split(key, n_keys))

    def nrm(k, shape, std=0.02):
        return jax.random.normal(k, shape, dtype=jnp.float32) * std

    zrow = jnp.zeros((1, C), jnp.float32)
    params = {
        "pitch_emb": jax.random.normal(next(keys), (BINS + 2, C), jnp.float32),
        "energy_emb": jax.random.normal(next(keys), (BINS + 2, C), jnp.float32),
        "vad_emb": jax.random.normal(next(keys), (2 + 2, C), jnp.float32),
        "layers": [],
    }
    for _ in range(N_LAYERS):
        params["layers"].append({
            "wq": nrm(next(keys), (C, C)), "wk": nrm(next(keys), (C, C)),
            "wv": nrm(next(keys), (C, C)), "wo": nrm(next(keys), (C, C)),
            "bq": zrow, "bk": zrow, "bv": zrow, "bo": zrow,
            "ln1w": jnp.ones((1, C), jnp.float32), "ln1b": zrow,
            "ln2w": jnp.ones((1, C), jnp.float32), "ln2b": zrow,
            "w1": nrm(next(keys), (K, C, C)), "b1": zrow,   # conv7 weight [K, Cin, Cout]
            "w2": nrm(next(keys), (C, C)), "b2": zrow,      # conv1 weight
        })
    params["wp"] = nrm(next(keys), (C, BINS))
    params["bp"] = jnp.zeros((1, BINS), jnp.float32)
    params["we"] = nrm(next(keys), (C, BINS))
    params["be"] = jnp.zeros((1, BINS), jnp.float32)
    params["wv_head"] = nrm(next(keys), (C, 1))
    params["bv_head"] = jnp.zeros((1, 1), jnp.float32)
    return params


def pack_params(params):
    """One-time host-side packing: stack per-layer weights, cast matmul weights to bf16."""
    C = FILTER_SIZE
    ls = params["layers"]
    wqkv = jnp.stack([jnp.concatenate([lp["wq"], lp["wk"], lp["wv"]], axis=1) for lp in ls])
    wo = jnp.stack([lp["wo"] for lp in ls])
    w1 = jnp.stack([lp["w1"].reshape(KERNEL_SIZE * C, C) for lp in ls])   # im2col layout
    w2 = jnp.stack([lp["w2"] for lp in ls])
    vecs = []
    for lp in ls:
        rows = jnp.concatenate(
            [lp["bq"], lp["bk"], lp["bv"], lp["bo"], lp["b1"], lp["b2"],
             lp["ln1w"], lp["ln1b"], lp["ln2w"], lp["ln2b"]], axis=0)      # [10, C]
        rows = jnp.concatenate([rows, jnp.zeros((VEC_ROWS - 10, C), jnp.float32)], axis=0)
        vecs.append(rows)
    vec = jnp.stack(vecs)                                                  # [L, 16, C]
    whead = jnp.concatenate(
        [params["wp"], params["we"],
         jnp.pad(params["wv_head"], ((0, 0), (0, BINS - 1)))], axis=1)     # [C, 384]
    bhead = jnp.concatenate(
        [params["bp"], params["be"],
         jnp.pad(params["bv_head"], ((0, 0), (0, BINS - 1)))], axis=1)     # [1, 384]
    return {
        "wqkv": wqkv.astype(jnp.bfloat16),
        "wo": wo.astype(jnp.bfloat16),
        "w1": w1.astype(jnp.bfloat16),
        "w2": w2.astype(jnp.bfloat16),
        "vec": vec,
        "whead": whead.astype(jnp.bfloat16),
        "bhead": bhead,
        "pitch_emb": params["pitch_emb"],
        "energy_emb": params["energy_emb"],
        "vad_emb": params["vad_emb"],
    }


@jax.jit
def masked_prosody_forward(x_tokens, packed):
    # x_tokens: [B, 3, T] int32  (pitch bins, energy bins, vad bins)
    pitch_ids = x_tokens[:, 0]
    energy_ids = x_tokens[:, 1]
    vad_ids = x_tokens[:, 2]
    h = (jnp.take(packed["pitch_emb"], pitch_ids, axis=0)
         + jnp.take(packed["energy_emb"], energy_ids, axis=0)
         + jnp.take(packed["vad_emb"], vad_ids, axis=0))                  # [B, T, C]
    B, T, C = h.shape
    h = h + sinusoidal_pe(T, C)[None]                                     # positional encoding
    out = fused_forward_pallas(h.reshape(B * T, C), packed, B, T)         # [B*T, 384]
    out = out.reshape(B, T, HEAD_OUT)
    pitch_out = out[..., :BINS]
    energy_out = out[..., BINS:2 * BINS]
    vad_out = out[..., 2 * BINS:2 * BINS + 1]
    return [pitch_out, energy_out, vad_out]


if __name__ == "__main__":
    key = jax.random.PRNGKey(0)
    pkey, kp, ke, kv = jax.random.split(key, 4)
    B, T = 2, 64
    params = init_params(pkey)
    packed = pack_params(params)
    pitch = jax.random.randint(kp, (B, T), 0, BINS)
    energy = jax.random.randint(ke, (B, T), 0, BINS)
    vad = jax.random.randint(kv, (B, T), 0, 2)
    x = jnp.stack([pitch, energy, vad], axis=1).astype(jnp.int32)         # [B, 3, T]

    outs = masked_prosody_forward(x, packed)
    outs = jax.block_until_ready(outs)
    assert outs[0].shape == (B, T, BINS)
    assert outs[1].shape == (B, T, BINS)
    assert outs[2].shape == (B, T, 1)
    print("KERNEL_OK")
</pallas_src>

<mosaic_0001>
module attributes {stable_mosaic.version = 11 : i64} {
  func.func @fused_conformer_kernel(%arg0: i32, %arg1: memref<128x256xf32, #tpu.memory_space<vmem>>, %arg2: memref<1x256x768xbf16, #tpu.memory_space<vmem>>, %arg3: memref<1x256x256xbf16, #tpu.memory_space<vmem>>, %arg4: memref<1x1792x256xbf16, #tpu.memory_space<vmem>>, %arg5: memref<1x256x256xbf16, #tpu.memory_space<vmem>>, %arg6: memref<1x16x256xf32, #tpu.memory_space<vmem>>, %arg7: memref<256x384xbf16, #tpu.memory_space<vmem>>, %arg8: memref<1x384xf32, #tpu.memory_space<vmem>>, %arg9: memref<128x384xf32, #tpu.memory_space<vmem>>, %arg10: memref<128x256xf32, #tpu.memory_space<vmem>>) attributes {dimension_semantics = [#tpu.dimension_semantics<arbitrary>], iteration_bounds = array<i64: 8>, scalar_prefetch = 0 : i64, scratch_operands = 1 : i64, tpu.core_type = #tpu.core_type<tc>, window_params = [{pipeline_mode = #tpu.pipeline_mode<synchronous>, transform_indices = @transform_0, window_bounds = array<i64: 128, 256>}, {transform_indices = @transform_1, window_bounds = array<i64: 1, 256, 768>}, {transform_indices = @transform_2, window_bounds = array<i64: 1, 256, 256>}, {transform_indices = @transform_3, window_bounds = array<i64: 1, 1792, 256>}, {transform_indices = @transform_4, window_bounds = array<i64: 1, 256, 256>}, {transform_indices = @transform_5, window_bounds = array<i64: 1, 16, 256>}, {pipeline_mode = #tpu.pipeline_mode<synchronous>, transform_indices = @transform_6, window_bounds = array<i64: 256, 384>}, {pipeline_mode = #tpu.pipeline_mode<synchronous>, transform_indices = @transform_7, window_bounds = array<i64: 1, 384>}, {pipeline_mode = #tpu.pipeline_mode<synchronous>, transform_indices = @transform_8, window_bounds = array<i64: 128, 384>}]} {
    %c0_i32 = arith.constant 0 : i32
    %0 = arith.cmpi eq, %arg0, %c0_i32 : i32
    %1 = arith.extui %0 : i1 to i32
    %c0_i32_0 = arith.constant 0 : i32
    %2 = arith.cmpi ne, %1, %c0_i32_0 : i32
    scf.if %2 {
      %c0_81 = arith.constant 0 : index
      %c0_82 = arith.constant 0 : index
      %257 = vector.load %arg1[%c0_81, %c0_82] : memref<128x256xf32, #tpu.memory_space<vmem>>, vector<128x256xf32>
      %c0_83 = arith.constant 0 : index
      %c0_84 = arith.constant 0 : index
      %258 = vector.load %arg10[%c0_83, %c0_84] : memref<128x256xf32, #tpu.memory_space<vmem>>, vector<128x256xf32>
      tpu.vector_store %arg10[%c0_83, %c0_84], %257 {strides = array<i32>} : memref<128x256xf32, #tpu.memory_space<vmem>>, vector<128x256xf32>,
    } else {
    }
    %c0 = arith.constant 0 : index
    %c0_1 = arith.constant 0 : index
    %3 = vector.load %arg10[%c0, %c0_1] : memref<128x256xf32, #tpu.memory_space<vmem>>, vector<128x256xf32>
    %4 = arith.truncf %3 : vector<128x256xf32> to vector<128x256xbf16>
    %c0_2 = arith.constant 0 : index
    %c0_3 = arith.constant 0 : index
    %c0_4 = arith.constant 0 : index
    %5 = vector.load %arg6[%c0_2, %c0_3, %c0_4] : memref<1x16x256xf32, #tpu.memory_space<vmem>>, vector<1x16x256xf32>
    %6 = vector.shape_cast %5 : vector<1x16x256xf32> to vector<16x256xf32>
    %c0_5 = arith.constant 0 : index
    %c0_6 = arith.constant 0 : index
    %c0_7 = arith.constant 0 : index
    %7 = vector.load %arg2[%c0_5, %c0_6, %c0_7] : memref<1x256x768xbf16, #tpu.memory_space<vmem>>, vector<1x256x768xbf16>
    %8 = vector.shape_cast %7 : vector<1x256x768xbf16> to vector<256x768xbf16>
    %cst = arith.constant dense<0.000000e+00> : vector<128x768xf32>
    %9 = tpu.matmul %4, %8, %cst {dimension_numbers = #tpu.dot_dimension_numbers<[1], [0], [0], [1], [0, 0, 1, 1], [], []>} : vector<128x256xbf16>, vector<256x768xbf16>, vector<128x768xf32> -> vector<128x768xf32>
    %10 = vector.extract_strided_slice %9 {offsets = [0, 0], sizes = [128, 256], strides = [1, 1]} : vector<128x768xf32> to vector<128x256xf32>
    %11 = vector.extract_strided_slice %6 {offsets = [0, 0], sizes = [1, 256], strides = [1, 1]} : vector<16x256xf32> to vector<1x256xf32>
    %12 = vector.broadcast %11 : vector<1x256xf32> to vector<128x256xf32>
    %13 = arith.addf %10, %12 : vector<128x256xf32>
    %14 = vector.extract_strided_slice %9 {offsets = [0, 256], sizes = [128, 256], strides = [1, 1]} : vector<128x768xf32> to vector<128x256xf32>
    %15 = vector.extract_strided_slice %6 {offsets = [1, 0], sizes = [1, 256], strides = [1, 1]} : vector<16x256xf32> to vector<1x256xf32>
    %16 = vector.broadcast %15 : vector<1x256xf32> to vector<128x256xf32>
    %17 = arith.addf %14, %16 : vector<128x256xf32>
    %18 = vector.extract_strided_slice %9 {offsets = [0, 512], sizes = [128, 256], strides = [1, 1]} : vector<128x768xf32> to vector<128x256xf32>
    %19 = vector.extract_strided_slice %6 {offsets = [2, 0], sizes = [1, 256], strides = [1, 1]} : vector<16x256xf32> to vector<1x256xf32>
    %20 = vector.broadcast %19 : vector<1x256xf32> to vector<128x256xf32>
    %21 = arith.addf %18, %20 : vector<128x256xf32>
    %22 = vector.extract_strided_slice %13 {offsets = [0, 0], sizes = [128, 128], strides = [1, 1]} : vector<128x256xf32> to vector<128x128xf32>
    %cst_8 = arith.constant 0.0883883461 : f32
    %23 = vector.broadcast %cst_8 : f32 to vector<128x128xf32>
    %24 = arith.mulf %22, %23 : vector<128x128xf32>
    %25 = vector.shape_cast %24 : vector<128x128xf32> to vector<2x64x128xf32>
    %26 = vector.extract_strided_slice %17 {offsets = [0, 0], sizes = [128, 128], strides = [1, 1]} : vector<128x256xf32> to vector<128x128xf32>
    %27 = vector.shape_cast %26 : vector<128x128xf32> to vector<2x64x128xf32>
    %28 = vector.extract_strided_slice %21 {offsets = [0, 0], sizes = [128, 128], strides = [1, 1]} : vector<128x256xf32> to vector<128x128xf32>
    %29 = vector.shape_cast %28 : vector<128x128xf32> to vector<2x64x128xf32>
    %30 = arith.truncf %25 : vector<2x64x128xf32> to vector<2x64x128xbf16>
    %31 = arith.truncf %27 : vector<2x64x128xf32> to vector<2x64x128xbf16>
    "tpu.trace_start"() <{level = 10 : i32, message = "bqd,bkd->bqk"}> : () -> ()
    %cst_9 = arith.constant dense<0.000000e+00> : vector<2x64x64xf32>
    %32 = tpu.matmul %30, %31, %cst_9 {dimension_numbers = #tpu.dot_dimension_numbers<[2], [2], [1], [1], [0, 0, 0, 1, 1, 1], [0], [0]>} : vector<2x64x128xbf16>, vector<2x64x128xbf16>, vector<2x64x64xf32> -> vector<2x64x64xf32>
    "tpu.trace_stop"() : () -> ()
    %cst_10 = arith.constant dense<0xFF800000> : vector<2x64xf32>
    %33 = vector.multi_reduction <maximumf>, %32, %cst_10 [2] : vector<2x64x64xf32> to vector<2x64xf32>
    %34 = vector.shape_cast %33 : vector<2x64xf32> to vector<2x64x1xf32>
    %35 = vector.broadcast %34 : vector<2x64x1xf32> to vector<2x64x64xf32>
    %36 = arith.subf %32, %35 : vector<2x64x64xf32>
    %37 = math.exp %36 : vector<2x64x64xf32>
    %cst_11 = arith.constant dense<0.000000e+00> : vector<2x64xf32>
    %38 = vector.multi_reduction <add>, %37, %cst_11 [2] : vector<2x64x64xf32> to vector<2x64xf32>
    %39 = vector.shape_cast %38 : vector<2x64xf32> to vector<2x64x1xf32>
    %40 = tpu.reciprocal %39 {approx = true} : vector<2x64x1xf32> -> vector<2x64x1xf32>
    %41 = vector.broadcast %40 : vector<2x64x1xf32> to vector<2x64x64xf32>
    %42 = arith.mulf %37, %41 : vector<2x64x64xf32>
    %43 = arith.truncf %42 : vector<2x64x64xf32> to vector<2x64x64xbf16>
    %44 = arith.truncf %29 : vector<2x64x128xf32> to vector<2x64x128xbf16>
    "tpu.trace_start"() <{level = 10 : i32, message = "bqk,bkd->bqd"}> : () -> ()
    %cst_12 = arith.constant dense<0.000000e+00> : vector<2x64x128xf32>
    %45 = tpu.matmul %43, %44, %cst_12 {dimension_numbers = #tpu.dot_dimension_numbers<[2], [1], [1], [2], [0, 0, 0, 1, 1, 2], [0], [0]>} : vector<2x64x64xbf16>, vector<2x64x128xbf16>, vector<2x64x128xf32> -> vector<2x64x128xf32>
    "tpu.trace_stop"() : () -> ()
    %46 = vector.shape_cast %45 : vector<2x64x128xf32> to vector<128x128xf32>
    %47 = vector.extract_strided_slice %13 {offsets = [0, 128], sizes = [128, 128], strides = [1, 1]} : vector<128x256xf32> to vector<128x128xf32>
    %cst_13 = arith.constant 0.0883883461 : f32
    %48 = vector.broadcast %cst_13 : f32 to vector<128x128xf32>
    %49 = arith.mulf %47, %48 : vector<128x128xf32>
    %50 = vector.shape_cast %49 : vector<128x128xf32> to vector<2x64x128xf32>
    %51 = vector.extract_strided_slice %17 {offsets = [0, 128], sizes = [128, 128], strides = [1, 1]} : vector<128x256xf32> to vector<128x128xf32>
    %52 = vector.shape_cast %51 : vector<128x128xf32> to vector<2x64x128xf32>
    %53 = vector.extract_strided_slice %21 {offsets = [0, 128], sizes = [128, 128], strides = [1, 1]} : vector<128x256xf32> to vector<128x128xf32>
    %54 = vector.shape_cast %53 : vector<128x128xf32> to vector<2x64x128xf32>
    %55 = arith.truncf %50 : vector<2x64x128xf32> to vector<2x64x128xbf16>
    %56 = arith.truncf %52 : vector<2x64x128xf32> to vector<2x64x128xbf16>
    "tpu.trace_start"() <{level = 10 : i32, message = "bqd,bkd->bqk"}> : () -> ()
    %cst_14 = arith.constant dense<0.000000e+00> : vector<2x64x64xf32>
    %57 = tpu.matmul %55, %56, %cst_14 {dimension_numbers = #tpu.dot_dimension_numbers<[2], [2], [1], [1], [0, 0, 0, 1, 1, 1], [0], [0]>} : vector<2x64x128xbf16>, vector<2x64x128xbf16>, vector<2x64x64xf32> -> vector<2x64x64xf32>
    "tpu.trace_stop"() : () -> ()
    %cst_15 = arith.constant dense<0xFF800000> : vector<2x64xf32>
    %58 = vector.multi_reduction <maximumf>, %57, %cst_15 [2] : vector<2x64x64xf32> to vector<2x64xf32>
    %59 = vector.shape_cast %58 : vector<2x64xf32> to vector<2x64x1xf32>
    %60 = vector.broadcast %59 : vector<2x64x1xf32> to vector<2x64x64xf32>
    %61 = arith.subf %57, %60 : vector<2x64x64xf32>
    %62 = math.exp %61 : vector<2x64x64xf32>
    %cst_16 = arith.constant dense<0.000000e+00> : vector<2x64xf32>
    %63 = vector.multi_reduction <add>, %62, %cst_16 [2] : vector<2x64x64xf32> to vector<2x64xf32>
    %64 = vector.shape_cast %63 : vector<2x64xf32> to vector<2x64x1xf32>
    %65 = tpu.reciprocal %64 {approx = true} : vector<2x64x1xf32> -> vector<2x64x1xf32>
    %66 = vector.broadcast %65 : vector<2x64x1xf32> to vector<2x64x64xf32>
    %67 = arith.mulf %62, %66 : vector<2x64x64xf32>
    %68 = arith.truncf %67 : vector<2x64x64xf32> to vector<2x64x64xbf16>
    %69 = arith.truncf %54 : vector<2x64x128xf32> to vector<2x64x128xbf16>
    "tpu.trace_start"() <{level = 10 : i32, message = "bqk,bkd->bqd"}> : () -> ()
    %cst_17 = arith.constant dense<0.000000e+00> : vector<2x64x128xf32>
    %70 = tpu.matmul %68, %69, %cst_17 {dimension_numbers = #tpu.dot_dimension_numbers<[2], [1], [1], [2], [0, 0, 0, 1, 1, 2], [0], [0]>} : vector<2x64x64xbf16>, vector<2x64x128xbf16>, vector<2x64x128xf32> -> vector<2x64x128xf32>
    "tpu.trace_stop"() : () -> ()
    %71 = vector.shape_cast %70 : vector<2x64x128xf32> to vector<128x128xf32>
    %72 = tpu.concatenate %46, %71 in 1 : vector<128x128xf32>, vector<128x128xf32> -> vector<128x256xf32>
    %73 = arith.truncf %72 : vector<128x256xf32> to vector<128x256xbf16>
    %c0_18 = arith.constant 0 : index
    %c0_19 = arith.constant 0 : index
    %c0_20 = arith.constant 0 : index
    %74 = vector.load %arg3[%c0_18, %c0_19, %c0_20] : memref<1x256x256xbf16, #tpu.memory_space<vmem>>, vector<1x256x256xbf16>
    %75 = vector.shape_cast %74 : vector<1x256x256xbf16> to vector<256x256xbf16>
    %cst_21 = arith.constant dense<0.000000e+00> : vector<128x256xf32>
    %76 = tpu.matmul %73, %75, %cst_21 {dimension_numbers = #tpu.dot_dimension_numbers<[1], [0], [0], [1], [0, 0, 1, 1], [], []>} : vector<128x256xbf16>, vector<256x256xbf16>, vector<128x256xf32> -> vector<128x256xf32>
    %77 = vector.extract_strided_slice %6 {offsets = [3, 0], sizes = [1, 256], strides = [1, 1]} : vector<16x256xf32> to vector<1x256xf32>
    %78 = vector.broadcast %77 : vector<1x256xf32> to vector<128x256xf32>
    %79 = arith.addf %76, %78 : vector<128x256xf32>
    %80 = arith.addf %3, %79 : vector<128x256xf32>
    %81 = vector.extract_strided_slice %6 {offsets = [6, 0], sizes = [1, 256], strides = [1, 1]} : vector<16x256xf32> to vector<1x256xf32>
    %82 = vector.extract_strided_slice %6 {offsets = [7, 0], sizes = [1, 256], strides = [1, 1]} : vector<16x256xf32> to vector<1x256xf32>
    %cst_22 = arith.constant dense<0.000000e+00> : vector<128xf32>
    %83 = vector.multi_reduction <add>, %80, %cst_22 [1] : vector<128x256xf32> to vector<128xf32>
    %84 = vector.shape_cast %83 : vector<128xf32> to vector<128x1xf32>
    %cst_23 = arith.constant 2.560000e+02 : f32
    %85 = vector.broadcast %cst_23 : f32 to vector<128x1xf32>
    %86 = arith.divf %84, %85 : vector<128x1xf32>
    %87 = vector.broadcast %86 : vector<128x1xf32> to vector<128x256xf32>
    %88 = arith.subf %80, %87 : vector<128x256xf32>
    %89 = arith.mulf %88, %88 : vector<128x256xf32>
    %cst_24 = arith.constant dense<0.000000e+00> : vector<128xf32>
    %90 = vector.multi_reduction <add>, %89, %cst_24 [1] : vector<128x256xf32> to vector<128xf32>
    %91 = vector.shape_cast %90 : vector<128xf32> to vector<128x1xf32>
    %cst_25 = arith.constant 2.560000e+02 : f32
    %92 = vector.broadcast %cst_25 : f32 to vector<128x1xf32>
    %93 = arith.divf %91, %92 : vector<128x1xf32>
    %94 = vector.broadcast %86 : vector<128x1xf32> to vector<128x256xf32>
    %95 = arith.subf %80, %94 : vector<128x256xf32>
    %cst_26 = arith.constant 9.99999974E-6 : f32
    %96 = vector.broadcast %cst_26 : f32 to vector<128x1xf32>
    %97 = arith.addf %93, %96 : vector<128x1xf32>
    %98 = math.rsqrt %97 : vector<128x1xf32>
    %99 = vector.broadcast %98 : vector<128x1xf32> to vector<128x256xf32>
    %100 = arith.mulf %95, %99 : vector<128x256xf32>
    %101 = vector.broadcast %81 : vector<1x256xf32> to vector<128x256xf32>
    %102 = arith.mulf %100, %101 : vector<128x256xf32>
    %103 = vector.broadcast %82 : vector<1x256xf32> to vector<128x256xf32>
    %104 = arith.addf %102, %103 : vector<128x256xf32>
    %105 = tpu.iota {dimensions = array<i32: 0>} : vector<128x256xi32>
    %c64_i32 = arith.constant 64 : i32
    %c0_i32_27 = arith.constant 0 : i32
    %106 = arith.cmpi eq, %c64_i32, %c0_i32_27 : i32
    %c1_i32 = arith.constant 1 : i32
    %107 = arith.select %106, %c1_i32, %c64_i32 : i32
    %108 = vector.broadcast %107 : i32 to vector<128x256xi32>
    %109 = arith.remsi %105, %108 : vector<128x256xi32>
    %c0_i32_28 = arith.constant 0 : i32
    %110 = vector.broadcast %c0_i32_28 : i32 to vector<128x256xi32>
    %111 = arith.cmpi ne, %109, %110 : vector<128x256xi32>
    %c0_i32_29 = arith.constant 0 : i32
    %112 = vector.broadcast %c0_i32_29 : i32 to vector<128x256xi32>
    %113 = arith.cmpi slt, %109, %112 : vector<128x256xi32>
    %c0_i32_30 = arith.constant 0 : i32
    %114 = arith.cmpi slt, %107, %c0_i32_30 : i32
    %115 = vector.broadcast %114 : i1 to vector<128x256xi1>
    %116 = vector.broadcast %115 : vector<128x256xi1> to vector<128x256xi1>
    %117 = arith.xori %113, %116 : vector<128x256xi1>
    %118 = arith.andi %117, %111 : vector<128x256xi1>
    %119 = vector.broadcast %107 : i32 to vector<128x256xi32>
    %120 = arith.addi %109, %119 : vector<128x256xi32>
    %121 = arith.select %118, %120, %109 : vector<128x256xi1>, vector<128x256xi32>
    %c3_i32 = arith.constant 3 : i32
    %122 = tpu.dynamic_rotate %104 by %c3_i32 dim 0 : vector<128x256xf32>, i32 -> vector<128x256xf32>
    %c-3_i32 = arith.constant -3 : i32
    %123 = vector.broadcast %c-3_i32 : i32 to vector<128x256xi32>
    %124 = arith.addi %121, %123 : vector<128x256xi32>
    %c0_i32_31 = arith.constant 0 : i32
    %125 = vector.broadcast %c0_i32_31 : i32 to vector<128x256xi32>
    %126 = arith.cmpi sge, %124, %125 : vector<128x256xi32>
    %c-3_i32_32 = arith.constant -3 : i32
    %127 = vector.broadcast %c-3_i32_32 : i32 to vector<128x256xi32>
    %128 = arith.addi %121, %127 : vector<128x256xi32>
    %c64_i32_33 = arith.constant 64 : i32
    %129 = vector.broadcast %c64_i32_33 : i32 to vector<128x256xi32>
    %130 = arith.cmpi slt, %128, %129 : vector<128x256xi32>
    %131 = arith.andi %126, %130 : vector<128x256xi1>
    %cst_34 = arith.constant 0.000000e+00 : f32
    %132 = vector.broadcast %cst_34 : f32 to vector<128x256xf32>
    %133 = arith.select %131, %122, %132 : vector<128x256xi1>, vector<128x256xf32>
    %134 = arith.truncf %133 : vector<128x256xf32> to vector<128x256xbf16>
    %c2_i32 = arith.constant 2 : i32
    %135 = tpu.dynamic_rotate %104 by %c2_i32 dim 0 : vector<128x256xf32>, i32 -> vector<128x256xf32>
    %c-2_i32 = arith.constant -2 : i32
    %136 = vector.broadcast %c-2_i32 : i32 to vector<128x256xi32>
    %137 = arith.addi %121, %136 : vector<128x256xi32>
    %c0_i32_35 = arith.constant 0 : i32
    %138 = vector.broadcast %c0_i32_35 : i32 to vector<128x256xi32>
    %139 = arith.cmpi sge, %137, %138 : vector<128x256xi32>
    %c-2_i32_36 = arith.constant -2 : i32
    %140 = vector.broadcast %c-2_i32_36 : i32 to vector<128x256xi32>
    %141 = arith.addi %121, %140 : vector<128x256xi32>
    %c64_i32_37 = arith.constant 64 : i32
    %142 = vector.broadcast %c64_i32_37 : i32 to vector<128x256xi32>
    %143 = arith.cmpi slt, %141, %142 : vector<128x256xi32>
    %144 = arith.andi %139, %143 : vector<128x256xi1>
    %cst_38 = arith.constant 0.000000e+00 : f32
    %145 = vector.broadcast %cst_38 : f32 to vector<128x256xf32>
    %146 = arith.select %144, %135, %145 : vector<128x256xi1>, vector<128x256xf32>
    %147 = arith.truncf %146 : vector<128x256xf32> to vector<128x256xbf16>
    %c1_i32_39 = arith.constant 1 : i32
    %148 = tpu.dynamic_rotate %104 by %c1_i32_39 dim 0 : vector<128x256xf32>, i32 -> vector<128x256xf32>
    %c-1_i32 = arith.constant -1 : i32
    %149 = vector.broadcast %c-1_i32 : i32 to vector<128x256xi32>
    %150 = arith.addi %121, %149 : vector<128x256xi32>
    %c0_i32_40 = arith.constant 0 : i32
    %151 = vector.broadcast %c0_i32_40 : i32 to vector<128x256xi32>
    %152 = arith.cmpi sge, %150, %151 : vector<128x256xi32>
    %c-1_i32_41 = arith.constant -1 : i32
    %153 = vector.broadcast %c-1_i32_41 : i32 to vector<128x256xi32>
    %154 = arith.addi %121, %153 : vector<128x256xi32>
    %c64_i32_42 = arith.constant 64 : i32
    %155 = vector.broadcast %c64_i32_42 : i32 to vector<128x256xi32>
    %156 = arith.cmpi slt, %154, %155 : vector<128x256xi32>
    %157 = arith.andi %152, %156 : vector<128x256xi1>
    %cst_43 = arith.constant 0.000000e+00 : f32
    %158 = vector.broadcast %cst_43 : f32 to vector<128x256xf32>
    %159 = arith.select %157, %148, %158 : vector<128x256xi1>, vector<128x256xf32>
    %160 = arith.truncf %159 : vector<128x256xf32> to vector<128x256xbf16>
    %c0_i32_44 = arith.constant 0 : i32
    %161 = vector.broadcast %c0_i32_44 : i32 to vector<128x256xi32>
    %162 = arith.addi %121, %161 : vector<128x256xi32>
    %c0_i32_45 = arith.constant 0 : i32
    %163 = vector.broadcast %c0_i32_45 : i32 to vector<128x256xi32>
    %164 = arith.cmpi sge, %162, %163 : vector<128x256xi32>
    %c0_i32_46 = arith.constant 0 : i32
    %165 = vector.broadcast %c0_i32_46 : i32 to vector<128x256xi32>
    %166 = arith.addi %121, %165 : vector<128x256xi32>
    %c64_i32_47 = arith.constant 64 : i32
    %167 = vector.broadcast %c64_i32_47 : i32 to vector<128x256xi32>
    %168 = arith.cmpi slt, %166, %167 : vector<128x256xi32>
    %169 = arith.andi %164, %168 : vector<128x256xi1>
    %cst_48 = arith.constant 0.000000e+00 : f32
    %170 = vector.broadcast %cst_48 : f32 to vector<128x256xf32>
    %171 = arith.select %169, %104, %170 : vector<128x256xi1>, vector<128x256xf32>
    %172 = arith.truncf %171 : vector<128x256xf32> to vector<128x256xbf16>
    %c127_i32 = arith.constant 127 : i32
    %173 = tpu.dynamic_rotate %104 by %c127_i32 dim 0 : vector<128x256xf32>, i32 -> vector<128x256xf32>
    %c1_i32_49 = arith.constant 1 : i32
    %174 = vector.broadcast %c1_i32_49 : i32 to vector<128x256xi32>
    %175 = arith.addi %121, %174 : vector<128x256xi32>
    %c0_i32_50 = arith.constant 0 : i32
    %176 = vector.broadcast %c0_i32_50 : i32 to vector<128x256xi32>
    %177 = arith.cmpi sge, %175, %176 : vector<128x256xi32>
    %c1_i32_51 = arith.constant 1 : i32
    %178 = vector.broadcast %c1_i32_51 : i32 to vector<128x256xi32>
    %179 = arith.addi %121, %178 : vector<128x256xi32>
    %c64_i32_52 = arith.constant 64 : i32
    %180 = vector.broadcast %c64_i32_52 : i32 to vector<128x256xi32>
    %181 = arith.cmpi slt, %179, %180 : vector<128x256xi32>
    %182 = arith.andi %177, %181 : vector<128x256xi1>
    %cst_53 = arith.constant 0.000000e+00 : f32
    %183 = vector.broadcast %cst_53 : f32 to vector<128x256xf32>
    %184 = arith.select %182, %173, %183 : vector<128x256xi1>, vector<128x256xf32>
    %185 = arith.truncf %184 : vector<128x256xf32> to vector<128x256xbf16>
    %c126_i32 = arith.constant 126 : i32
    %186 = tpu.dynamic_rotate %104 by %c126_i32 dim 0 : vector<128x256xf32>, i32 -> vector<128x256xf32>
    %c2_i32_54 = arith.constant 2 : i32
    %187 = vector.broadcast %c2_i32_54 : i32 to vector<128x256xi32>
    %188 = arith.addi %121, %187 : vector<128x256xi32>
    %c0_i32_55 = arith.constant 0 : i32
    %189 = vector.broadcast %c0_i32_55 : i32 to vector<128x256xi32>
    %190 = arith.cmpi sge, %188, %189 : vector<128x256xi32>
    %c2_i32_56 = arith.constant 2 : i32
    %191 = vector.broadcast %c2_i32_56 : i32 to vector<128x256xi32>
    %192 = arith.addi %121, %191 : vector<128x256xi32>
    %c64_i32_57 = arith.constant 64 : i32
    %193 = vector.broadcast %c64_i32_57 : i32 to vector<128x256xi32>
    %194 = arith.cmpi slt, %192, %193 : vector<128x256xi32>
    %195 = arith.andi %190, %194 : vector<128x256xi1>
    %cst_58 = arith.constant 0.000000e+00 : f32
    %196 = vector.broadcast %cst_58 : f32 to vector<128x256xf32>
    %197 = arith.select %195, %186, %196 : vector<128x256xi1>, vector<128x256xf32>
    %198 = arith.truncf %197 : vector<128x256xf32> to vector<128x256xbf16>
    %c125_i32 = arith.constant 125 : i32
    %199 = tpu.dynamic_rotate %104 by %c125_i32 dim 0 : vector<128x256xf32>, i32 -> vector<128x256xf32>
    %c3_i32_59 = arith.constant 3 : i32
    %200 = vector.broadcast %c3_i32_59 : i32 to vector<128x256xi32>
    %201 = arith.addi %121, %200 : vector<128x256xi32>
    %c0_i32_60 = arith.constant 0 : i32
    %202 = vector.broadcast %c0_i32_60 : i32 to vector<128x256xi32>
    %203 = arith.cmpi sge, %201, %202 : vector<128x256xi32>
    %c3_i32_61 = arith.constant 3 : i32
    %204 = vector.broadcast %c3_i32_61 : i32 to vector<128x256xi32>
    %205 = arith.addi %121, %204 : vector<128x256xi32>
    %c64_i32_62 = arith.constant 64 : i32
    %206 = vector.broadcast %c64_i32_62 : i32 to vector<128x256xi32>
    %207 = arith.cmpi slt, %205, %206 : vector<128x256xi32>
    %208 = arith.andi %203, %207 : vector<128x256xi1>
    %cst_63 = arith.constant 0.000000e+00 : f32
    %209 = vector.broadcast %cst_63 : f32 to vector<128x256xf32>
    %210 = arith.select %208, %199, %209 : vector<128x256xi1>, vector<128x256xf32>
    %211 = arith.truncf %210 : vector<128x256xf32> to vector<128x256xbf16>
    %212 = tpu.concatenate %134, %147, %160, %172, %185, %198, %211 in 1 : vector<128x256xbf16>, vector<128x256xbf16>, vector<128x256xbf16>, vector<128x256xbf16>, vector<128x256xbf16>, vector<128x256xbf16>, vector<128x256xbf16> -> vector<128x1792xbf16>
    %c0_64 = arith.constant 0 : index
    %c0_65 = arith.constant 0 : index
    %c0_66 = arith.constant 0 : index
    %213 = vector.load %arg4[%c0_64, %c0_65, %c0_66] : memref<1x1792x256xbf16, #tpu.memory_space<vmem>>, vector<1x1792x256xbf16>
    %214 = vector.shape_cast %213 : vector<1x1792x256xbf16> to vector<1792x256xbf16>
    %cst_67 = arith.constant dense<0.000000e+00> : vector<128x256xf32>
    %215 = tpu.matmul %212, %214, %cst_67 {dimension_numbers = #tpu.dot_dimension_numbers<[1], [0], [0], [1], [0, 0, 1, 1], [], []>} : vector<128x1792xbf16>, vector<1792x256xbf16>, vector<128x256xf32> -> vector<128x256xf32>
    %216 = vector.extract_strided_slice %6 {offsets = [4, 0], sizes = [1, 256], strides = [1, 1]} : vector<16x256xf32> to vector<1x256xf32>
    %217 = vector.broadcast %216 : vector<1x256xf32> to vector<128x256xf32>
    %218 = arith.addf %215, %217 : vector<128x256xf32>
    %cst_68 = arith.constant 0.000000e+00 : f32
    %219 = vector.broadcast %cst_68 : f32 to vector<128x256xf32>
    %220 = arith.maximumf %218, %219 : vector<128x256xf32>
    %221 = arith.truncf %220 : vector<128x256xf32> to vector<128x256xbf16>
    %c0_69 = arith.constant 0 : index
    %c0_70 = arith.constant 0 : index
    %c0_71 = arith.constant 0 : index
    %222 = vector.load %arg5[%c0_69, %c0_70, %c0_71] : memref<1x256x256xbf16, #tpu.memory_space<vmem>>, vector<1x256x256xbf16>
    %223 = vector.shape_cast %222 : vector<1x256x256xbf16> to vector<256x256xbf16>
    %cst_72 = arith.constant dense<0.000000e+00> : vector<128x256xf32>
    %224 = tpu.matmul %221, %223, %cst_72 {dimension_numbers = #tpu.dot_dimension_numbers<[1], [0], [0], [1], [0, 0, 1, 1], [], []>} : vector<128x256xbf16>, vector<256x256xbf16>, vector<128x256xf32> -> vector<128x256xf32>
    %225 = vector.extract_strided_slice %6 {offsets = [5, 0], sizes = [1, 256], strides = [1, 1]} : vector<16x256xf32> to vector<1x256xf32>
    %226 = vector.broadcast %225 : vector<1x256xf32> to vector<128x256xf32>
    %227 = arith.addf %224, %226 : vector<128x256xf32>
    %228 = arith.addf %104, %227 : vector<128x256xf32>
    %229 = vector.extract_strided_slice %6 {offsets = [8, 0], sizes = [1, 256], strides = [1, 1]} : vector<16x256xf32> to vector<1x256xf32>
    %230 = vector.extract_strided_slice %6 {offsets = [9, 0], sizes = [1, 256], strides = [1, 1]} : vector<16x256xf32> to vector<1x256xf32>
    %cst_73 = arith.constant dense<0.000000e+00> : vector<128xf32>
    %231 = vector.multi_reduction <add>, %228, %cst_73 [1] : vector<128x256xf32> to vector<128xf32>
    %232 = vector.shape_cast %231 : vector<128xf32> to vector<128x1xf32>
    %cst_74 = arith.constant 2.560000e+02 : f32
    %233 = vector.broadcast %cst_74 : f32 to vector<128x1xf32>
    %234 = arith.divf %232, %233 : vector<128x1xf32>
    %235 = vector.broadcast %234 : vector<128x1xf32> to vector<128x256xf32>
    %236 = arith.subf %228, %235 : vector<128x256xf32>
    %237 = arith.mulf %236, %236 : vector<128x256xf32>
    %cst_75 = arith.constant dense<0.000000e+00> : vector<128xf32>
    %238 = vector.multi_reduction <add>, %237, %cst_75 [1] : vector<128x256xf32> to vector<128xf32>
    %239 = vector.shape_cast %238 : vector<128xf32> to vector<128x1xf32>
    %cst_76 = arith.constant 2.560000e+02 : f32
    %240 = vector.broadcast %cst_76 : f32 to vector<128x1xf32>
    %241 = arith.divf %239, %240 : vector<128x1xf32>
    %242 = vector.broadcast %234 : vector<128x1xf32> to vector<128x256xf32>
    %243 = arith.subf %228, %242 : vector<128x256xf32>
    %cst_77 = arith.constant 9.99999974E-6 : f32
    %244 = vector.broadcast %cst_77 : f32 to vector<128x1xf32>
    %245 = arith.addf %241, %244 : vector<128x1xf32>
    %246 = math.rsqrt %245 : vector<128x1xf32>
    %247 = vector.broadcast %246 : vector<128x1xf32> to vector<128x256xf32>
    %248 = arith.mulf %243, %247 : vector<128x256xf32>
    %249 = vector.broadcast %229 : vector<1x256xf32> to vector<128x256xf32>
    %250 = arith.mulf %248, %249 : vector<128x256xf32>
    %251 = vector.broadcast %230 : vector<1x256xf32> to vector<128x256xf32>
    %252 = arith.addf %250, %251 : vector<128x256xf32>
    %c0_78 = arith.constant 0 : index
    %c0_79 = arith.constant 0 : index
    %253 = vector.load %arg10[%c0_78, %c0_79] : memref<128x256xf32, #tpu.memory_space<vmem>>, vector<128x256xf32>
    tpu.vector_store %arg10[%c0_78, %c0_79], %252 {strides = array<i32>} : memref<128x256xf32, #tpu.memory_space<vmem>>, vector<128x256xf32>,
    %c7_i32 = arith.constant 7 : i32
    %254 = arith.cmpi eq, %arg0, %c7_i32 : i32
    %255 = arith.extui %254 : i1 to i32
    %c0_i32_80 = arith.constant 0 : i32
    %256 = arith.cmpi ne, %255, %c0_i32_80 : i32
    scf.if %256 {
      %257 = arith.truncf %252 : vector<128x256xf32> to vector<128x256xbf16>
      %c0_81 = arith.constant 0 : index
      %c0_82 = arith.constant 0 : index
      %258 = vector.load %arg7[%c0_81, %c0_82] : memref<256x384xbf16, #tpu.memory_space<vmem>>, vector<256x384xbf16>
      %cst_83 = arith.constant dense<0.000000e+00> : vector<128x384xf32>
      %259 = tpu.matmul %257, %258, %cst_83 {dimension_numbers = #tpu.dot_dimension_numbers<[1], [0], [0], [1], [0, 0, 1, 1], [], []>} : vector<128x256xbf16>, vector<256x384xbf16>, vector<128x384xf32> -> vector<128x384xf32>
      %c0_84 = arith.constant 0 : index
      %c0_85 = arith.constant 0 : index
      %260 = vector.load %arg8[%c0_84, %c0_85] : memref<1x384xf32, #tpu.memory_space<vmem>>, vector<1x384xf32>
      %261 = vector.broadcast %260 : vector<1x384xf32> to vector<128x384xf32>
      %262 = arith.addf %259, %261 : vector<128x384xf32>
      %c0_86 = arith.constant 0 : index
      %c0_87 = arith.constant 0 : index
      %263 = vector.load %arg9[%c0_86, %c0_87] : memref<128x384xf32, #tpu.memory_space<vmem>>, vector<128x384xf32>
      tpu.vector_store %arg9[%c0_86, %c0_87], %262 {strides = array<i32>} : memref<128x384xf32, #tpu.memory_space<vmem>>, vector<128x384xf32>,
    } else {
    }
    return
  }
  func.func @transform_0(%arg0: i32) -> (i32, i32) {
    %c0_i32 = arith.constant 0 : i32
    %c0_i32_0 = arith.constant 0 : i32
    %c0_i32_1 = arith.constant 0 : i32
    return %c0_i32, %c0_i32_0 : i32, i32
  }
  func.func @transform_1(%arg0: i32) -> (i32, i32, i32) {
    %c0_i32 = arith.constant 0 : i32
    %c0_i32_0 = arith.constant 0 : i32
    %c0_i32_1 = arith.constant 0 : i32
    return %arg0, %c0_i32, %c0_i32_0 : i32, i32, i32
  }
  func.func @transform_2(%arg0: i32) -> (i32, i32, i32) {
    %c0_i32 = arith.constant 0 : i32
    %c0_i32_0 = arith.constant 0 : i32
    %c0_i32_1 = arith.constant 0 : i32
    return %arg0, %c0_i32, %c0_i32_0 : i32, i32, i32
  }
  func.func @transform_3(%arg0: i32) -> (i32, i32, i32) {
    %c0_i32 = arith.constant 0 : i32
    %c0_i32_0 = arith.constant 0 : i32
    %c0_i32_1 = arith.constant 0 : i32
    return %arg0, %c0_i32, %c0_i32_0 : i32, i32, i32
  }
  func.func @transform_4(%arg0: i32) -> (i32, i32, i32) {
    %c0_i32 = arith.constant 0 : i32
    %c0_i32_0 = arith.constant 0 : i32
    %c0_i32_1 = arith.constant 0 : i32
    return %arg0, %c0_i32, %c0_i32_0 : i32, i32, i32
  }
  func.func @transform_5(%arg0: i32) -> (i32, i32, i32) {
    %c0_i32 = arith.constant 0 : i32
    %c0_i32_0 = arith.constant 0 : i32
    %c0_i32_1 = arith.constant 0 : i32
    return %arg0, %c0_i32, %c0_i32_0 : i32, i32, i32
  }
  func.func @transform_6(%arg0: i32) -> (i32, i32) {
    %c0_i32 = arith.constant 0 : i32
    %c0_i32_0 = arith.constant 0 : i32
    %c0_i32_1 = arith.constant 0 : i32
    return %c0_i32, %c0_i32_0 : i32, i32
  }
  func.func @transform_7(%arg0: i32) -> (i32, i32) {
    %c0_i32 = arith.constant 0 : i32
    %c0_i32_0 = arith.constant 0 : i32
    %c0_i32_1 = arith.constant 0 : i32
    return %c0_i32, %c0_i32_0 : i32, i32
  }
  func.func @transform_8(%arg0: i32) -> (i32, i32) {
    %c0_i32 = arith.constant 0 : i32
    %c0_i32_0 = arith.constant 0 : i32
    %c0_i32_1 = arith.constant 0 : i32
    return %c0_i32, %c0_i32_0 : i32, i32
  }
}

</mosaic_0001>

<bundles_post_ra>
// kernel: masked_prosody_forward.1
= control target key start
LH: loop header
LB: loop body
LE: loop exit
PB: predicated region body
PF: predicated region fallthrough
CT: control target
= control target key end

     0   :  { %s14403_s0 = inlined_call_operand.vmem [shape: f32[128,256], index: 0, kind: input, shape index: {}]   ;;  %s14404_s1 = inlined_call_operand.hbm [shape: bf16[8,256,768], index: 1, kind: input, shape index: {}]   ;;  %s14405_s2 = inlined_call_operand.hbm [shape: bf16[8,256,256], index: 2, kind: input, shape index: {}]   ;;  %s14406_s3 = inlined_call_operand.hbm [shape: bf16[8,1792,256], index: 3, kind: input, shape index: {}]   ;;  %s14407_s4 = inlined_call_operand.hbm [shape: bf16[8,256,256], index: 4, kind: input, shape index: {}]   ;;  %s14408_s5 = inlined_call_operand.hbm [shape: f32[8,16,256], index: 5, kind: input, shape index: {}]   ;;  %s14409_s6 = inlined_call_operand.hbm [shape: bf16[256,384], index: 6, kind: input, shape index: {}]   ;;  %s14410_s7 = inlined_call_operand.hbm [shape: f32[1,384], index: 7, kind: input, shape index: {}]   ;;  %s14411_s8 = inlined_call_operand.vmem [shape: f32[128,384], index: 8, kind: output, shape index: {}]  }
   0x1   :  { %14432 = sst [smem:[#allocation22_spill]] %s14405_s2 }
   0x2   :  { %14433 = sst [smem:[#allocation23_spill]] %s14407_s4 }
   0x3   :  { %14434 = sst [smem:[#allocation24_spill]] %s14409_s6 }
   0x4   :  { %13 = vsyncpa [#allocation4], 0 }
   0x5   :  { %15 = vsyncpa [#allocation4 + $0x1], 0 }
   0x6   :  { %16 = vsyncpa [#allocation6], 0 }
   0x7   :  { %18 = vsyncpa [#allocation6 + $0x1], 0 }
   0x8   :  { %19 = vsyncpa [#allocation9], 0 }
   0x9   :  { %21 = vsyncpa [#allocation9 + $0x1], 0 }
   0xa   :  { %22 = vsyncpa [#allocation12], 0  ;;  %s10700_s27 = smov 0   ;;  %s10702_s28 = smov 0  }
   0xb   :  { %s10704_s29 = smov 0   ;;  %s10706_s30 = smov 0  }
   0xc LB: > { %14435 = sst [smem:[#allocation18_spill]] %s10633_s29  ;;  %s10719_s9 = sadd.s32 4294967295, %s10637_s30   ;;  %s10637_s30 = sphi %s10706_s30, %s14493_s30   ;;  %s10633_s29 = sphi %s10704_s29, %s14495_s29   ;;  %s10629_s28 = sphi %s10702_s28, %s14497_s28   ;;  %s10625_s27 = sphi %s10700_s27, %s14496_s27  }
   0xd   : > { %s10722_s10 = sadd.s32 1, %s10637_s30   ;;  %s56_s12 = sadd.s32 1, %s10633_s29 }
   0xe   : > { %14436 = sst [smem:[#allocation19_spill]] %s10722_s10  ;;  %s53_s11 = ssub.s32 %s10637_s30, %s10722_s10 }
   0xf   : > { %p54_p0 = scmp.eq.s32.totalorder %s53_s11, 0  ;;  %p63_p1 = scmp.ne.s32.totalorder %s10633_s29, %s10629_s28 }
  0x10   : > { %p64_p2 = scmp.eq.s32.totalorder %s10637_s30, 0  ;;  %p69_p3 = scmp.ne.s32.totalorder %s10629_s28, %s10625_s27 }
  0x11   : > { %s10732_s13 = scalar_select %p54_p0, %s10633_s29, %s56_s12  }
  0x12   : > { %p10734_p4 = por %p64_p2, %p63_p1  ;;  %p14412_p5 = scmp.eq.s32.totalorder %s10719_s9, 0 }
  0x13   : > { %14437 = sst [smem:[#allocation20_spill]] %s10732_s13  ;;  %p8394_p6 = scmp.ge.s32.totalorder %s10637_s30, 1 }
  0x14   : > { %p247_p7 = scmp.lt.s32.totalorder %s10637_s30, 9  ;;  %p10743_p8 = por %p14412_p5, %p69_p3 }
  0x15   : > { %s10639_s17 = smov [#allocation11]   ;;  %p9471_p13 = scmp.lt.s32.totalorder %s10637_s30, 8 }
  0x16   : > { %s14439_s15 = scalar_select %p10743_p8, 1, 0 }
  0x17   : > { %p10748_p10 = pnand %p8394_p6, %p247_p7  ;;  %s262_s18 = sshll.u32 %s10639_s17, 4  ;;  %s263_s18 = int_to_ptr.vmem [resolvable:$true] %s262_s18 }
  0x18   : > { %s10762_s20 = sand.u32 1, %s10633_s29   ;;  %p10767_p0 = pnand %p9471_p13, %p10734_p4 }
  0x19   : > { %s14440_s16 = scalar_select %p10748_p10, 1, 0 }
  0x1a   : > { %p9446_p11 = pneg %p10748_p10  ;;  %s14443_s6 = sld [smem:[#allocation24_spill]] }
  0x1b   : > { %s14442_s22 = scalar_select %p10767_p0, 1, 0 }
  0x1c   : > { %p10756_p12 = pnand %p9446_p11, %p14412_p5 }
  0x1e   : > { %s14441_s19 = scalar_select %p10756_p12, 1, 0 }
  0x1f   : > { %p14417_p2 = pneg %p10756_p12 }
  0x20   : > { %s10385_s25 = scalar_lea.hbm %s14443_s6, 6144 }
  0x21   : > { %p10386_p1 = scmp.ne.s32.totalorder %s14443_s6, %s10385_s25  ;;  %p10392_p4 = scmp.lt.u32.totalorder %s10385_s25, %s14443_s6 }
  0x23   : > { %p10388_p3 = pnand %p14417_p2, %p10386_p1 }
  0x25   : > { %p10389_p6 = pneg %p10388_p3 }
  0x27   : > { %p10394_p7 = pnand %p10392_p4, %p10389_p6 }
  0x29   : > { %10397 = shalt.err (!%p10394_p7)
}
  0x2a   : > { %s10398_s14 = scalar_lea.vmem %s263_s18, 6144  ;;  %p10406_p5 = scmp.lt.s32.totalorder %s263_s18, %s263_s18 }
  0x2b   : > { %p10399_p11 = scmp.ne.s32.totalorder %s263_s18, %s10398_s14  ;;  %p10407_p8 = scmp.lt.s32.totalorder %s10398_s14, %s10398_s14 }
  0x2d   : > { %p10401_p13 = pnand %p10399_p11, %p14417_p2  ;;  %p10408_p10 = por %p10407_p8, %p10406_p5 }
  0x2f   : > { %p10402_p9 = pneg %p10401_p13 }
  0x31   : > { %p10409_p0 = pnand %p10408_p10, %p10402_p9 }
  0x33   : > { %10412 = shalt.err (!%p10409_p0)
}
  0x34   : > { %s10640_s17 = smov 192   ;;  %s10641_s23 = smov 12  }
  0x35   : > { %9449 = dma.hbm_to_vmem [thread:$0]  (!%p10756_p12), %s14443_s6, 6144, %s263_s18, [#allocation12], %s10640_s17, %s10640_s17, %s10641_s23  }
  0x36   : > { %s8399_s26 = sshll.u32 %s10762_s20, 8  ;;  %s8939_s27 = sshll.u32 %s10637_s30, 12 }
  0x37   : > { %s14444_s2 = sld [smem:[#allocation22_spill]]  ;;  %s312_s21 = scalar_lea.vmem [#allocation5], %s8399_s26 }
  0x38   : > { %s319_s13 = sshll.u32 %s312_s21, 4  ;;  %s14445_s29 = sand.u32 1, %s10637_s30   ;;  %s10804_s13 = int_to_ptr.vmem [resolvable:$true] %s319_s13 }
  0x39   : > { %s10808_s24 = scalar_lea.sflag [#allocation6], %s14445_s29  ;;  %p14446_p8 = scmp.ne.s32.totalorder %s14442_s22, 0 }
  0x3b   : > { %p10814_p9 = pneg %p14446_p8 }
  0x3d   : > { %s10800_s14 = scalar_lea.hbm %s14444_s2, %s8939_s27  ;;  %s10418_s21 = scalar_lea.hbm %s14444_s2, 32768 }
  0x3e   : > { %s10413_s18 = scalar_lea.hbm %s10800_s14, 4096  ;;  %p10419_p1 = scmp.lt.u32.totalorder %s10800_s14, %s14444_s2 }
  0x3f   : > { %p10414_p5 = scmp.ne.s32.totalorder %s10800_s14, %s10413_s18  ;;  %p10420_p3 = scmp.lt.u32.totalorder %s10418_s21, %s10413_s18 }
  0x40   : > { %s14447_s17 = scalar_select %p10814_p9, 1, 0 }
  0x41   : > { %p10416_p10 = pnand %p10814_p9, %p10414_p5  ;;  %p10421_p6 = por %p10420_p3, %p10419_p1 }
  0x42   : > { %p10422_p4 = scmp.lt.u32.totalorder %s10413_s18, %s10800_s14 }
  0x43   : > { %p10417_p0 = pneg %p10416_p10 }
  0x44   : > { %p10423_p7 = por %p10422_p4, %p10421_p6 }
  0x46   : > { %p10424_p11 = pnand %p10423_p7, %p10417_p0 }
  0x48   : > { %10427 = shalt.err (!%p10424_p11)
}
  0x49   : > { %s10428_s29 = scalar_lea.vmem %s10804_s13, 4096  ;;  %s10642_s23 = smov [#allocation5]  }
  0x4a   : > { %p10429_p13 = scmp.ne.s32.totalorder %s10804_s13, %s10428_s29  ;;  %s10433_s25 = sshll.u32 %s10642_s23, 4  ;;  %s10434_s25 = int_to_ptr.vmem [resolvable:$false] %s10433_s25 }
  0x4b   : > { %s10435_s11 = scalar_lea.vmem %s10434_s25, 8192  ;;  %p10436_p2 = scmp.lt.s32.totalorder %s10804_s13, %s10434_s25 }
  0x4c   : > { %p10431_p5 = pnand %p10429_p13, %p10814_p9  ;;  %p10437_p12 = scmp.lt.s32.totalorder %s10435_s11, %s10428_s29 }
  0x4e   : > { %p10432_p10 = pneg %p10431_p5  ;;  %p10438_p1 = por %p10437_p12, %p10436_p2 }
  0x50   : > { %p10439_p3 = pnand %p10438_p1, %p10432_p10 }
  0x52   : > { %10442 = shalt.err (!%p10439_p3)
}
  0x53   : > { %s14425_s18 = smov 128   ;;  %s10644_s21 = smov 8  }
  0x54   : > { %9459 = dma.hbm_to_vmem [thread:$0]  (!%p14446_p8), %s10800_s14, 4096, %s10804_s13, %s10808_s24, %s14425_s18, %s14425_s18, %s10644_s21  }
  0x55   : > { %s14448_s4 = sld [smem:[#allocation23_spill]]  ;;  %s354_s25 = scalar_lea.vmem [#allocation8], %s8399_s26 }
  0x56   : > { %s361_s11 = sshll.u32 %s354_s25, 4  ;;  %s14449_s2 = sand.u32 1, %s10637_s30   ;;  %s10850_s11 = int_to_ptr.vmem [resolvable:$true] %s361_s11 }
  0x57   : > { %s10854_s6 = scalar_lea.sflag [#allocation9], %s14449_s2 }
  0x5b   : > { %s10846_s23 = scalar_lea.hbm %s14448_s4, %s8939_s27  ;;  %s10448_s14 = scalar_lea.hbm %s14448_s4, 32768 }
  0x5c   : > { %s10443_s10 = scalar_lea.hbm %s10846_s23, 4096  ;;  %p10449_p6 = scmp.lt.u32.totalorder %s10846_s23, %s14448_s4 }
  0x5d   : > { %p10444_p12 = scmp.ne.s32.totalorder %s10846_s23, %s10443_s10  ;;  %p10450_p4 = scmp.lt.u32.totalorder %s10448_s14, %s10443_s10 }
  0x5e   : > { %p10452_p11 = scmp.lt.u32.totalorder %s10443_s10, %s10846_s23 }
  0x5f   : > { %p10446_p2 = pnand %p10444_p12, %p10814_p9  ;;  %p10451_p7 = por %p10450_p4, %p10449_p6 }
  0x61   : > { %p10447_p0 = pneg %p10446_p2  ;;  %p10453_p13 = por %p10452_p11, %p10451_p7 }
  0x63   : > { %p10454_p5 = pnand %p10453_p13, %p10447_p0 }
  0x65   : > { %10457 = shalt.err (!%p10454_p5)
}
  0x66   : > { %s10458_s2 = scalar_lea.vmem %s10850_s11, 4096  ;;  %s10645_s26 = smov [#allocation8]  }
  0x67   : > { %p10459_p10 = scmp.ne.s32.totalorder %s10850_s11, %s10458_s2  ;;  %s10463_s25 = sshll.u32 %s10645_s26, 4  ;;  %s10464_s25 = int_to_ptr.vmem [resolvable:$false] %s10463_s25 }
  0x68   : > { %s10465_s13 = scalar_lea.vmem %s10464_s25, 8192  ;;  %p10466_p12 = scmp.lt.s32.totalorder %s10850_s11, %s10464_s25 }
  0x69   : > { %p10461_p1 = pnand %p10459_p10, %p10814_p9  ;;  %p10467_p2 = scmp.lt.s32.totalorder %s10465_s13, %s10458_s2 }
  0x6b   : > { %p10462_p3 = pneg %p10461_p1  ;;  %p10468_p6 = por %p10467_p2, %p10466_p12 }
  0x6d   : > { %p10469_p4 = pnand %p10468_p6, %p10462_p3 }
  0x6f   : > { %10472 = shalt.err (!%p10469_p4)
}
  0x70   : > { %9465 = dma.hbm_to_vmem [thread:$0]  (!%p14446_p8), %s10846_s23, 4096, %s10850_s11, %s10854_s6, %s14425_s18, %s14425_s18, %s10644_s21  }
  0x71   : > { %s10646_s10 = smov [#allocation13]   ;;  %s9422_s14 = smul.u32 768, %s10762_s20 }
  0x72   : > { %s276_s27 = sshll.u32 %s10646_s10, 4  ;;  %s10473_s2 = scalar_lea.hbm %s14410_s7, 48  ;;  %s277_s27 = int_to_ptr.vmem [resolvable:$true] %s276_s27 }
  0x73   : > { %p10474_p0 = scmp.ne.s32.totalorder %s14410_s7, %s10473_s2  ;;  %p14450_p7 = scmp.ne.s32.totalorder %s14441_s19, 0 }
  0x74   : > { %p10480_p10 = scmp.lt.u32.totalorder %s10473_s2, %s14410_s7 }
  0x75   : > { %p14451_p11 = pneg %p14450_p7 }
  0x77   : > { %p10476_p13 = pnand %p10474_p0, %p14451_p11 }
  0x79   : > { %p10477_p5 = pneg %p10476_p13 }
  0x7b   : > { %p10482_p1 = pnand %p10480_p10, %p10477_p5 }
  0x7d   : > { %10485 = shalt.err (!%p10482_p1)
}
  0x7e   : > { %s10486_s23 = scalar_lea.vmem %s277_s27, 48  ;;  %p14452_p12 = pmov %p14451_p11 }
  0x7f   : > { %p10487_p3 = scmp.ne.s32.totalorder %s277_s27, %s10486_s23  ;;  %s10493_s11 = scalar_lea.vmem %s277_s27, 64 }
  0x80   : > { %p10494_p4 = scmp.lt.s32.totalorder %s277_s27, %s277_s27  ;;  %p10495_p8 = scmp.lt.s32.totalorder %s10493_s11, %s10486_s23 }
  0x81   : > { %p10489_p2 = pnand %p10487_p3, %p14452_p12 }
  0x82   : > { %p10496_p9 = por %p10495_p8, %p10494_p4 }
  0x83   : > { %p10490_p6 = pneg %p10489_p2 }
  0x85   : > { %p10497_p0 = pnand %p10496_p9, %p10490_p6 }
  0x87   : > { %10500 = shalt.err (!%p10497_p0)
}
  0x88   : > { %9452 = dma.hbm_to_vmem [thread:$0]  (!%p14450_p7), %s14410_s7, 48, %s277_s27, [#allocation12]  }
  0x89   : > { %s9423_s12 = smul.u32 12288, %s10637_s30  ;;  %s291_s29 = scalar_lea.vmem [#allocation3], %s9422_s14 }
  0x8a   : > { %s298_s2 = sshll.u32 %s291_s29, 4  ;;  %s9424_s19 = smul.u32 1792, %s10762_s20  ;;  %s10908_s2 = int_to_ptr.vmem [resolvable:$true] %s298_s2 }
  0x8b   : > { %s10906_s13 = scalar_lea.hbm %s14404_s1, %s9423_s12  ;;  %s288_s23 = scalar_lea.sflag [#allocation4], %s10762_s20 }
  0x8c   : > { %s10501_s11 = scalar_lea.hbm %s10906_s13, 12288  ;;  %p14453_p9 = scmp.ne.s32.totalorder %s14447_s17, 0 }
  0x8d   : > { %p10502_p8 = scmp.ne.s32.totalorder %s10906_s13, %s10501_s11  ;;  %s10506_s10 = scalar_lea.hbm %s14404_s1, 98304 }
  0x8e   : > { %p10507_p13 = scmp.lt.u32.totalorder %s10906_s13, %s14404_s1  ;;  %p10508_p5 = scmp.lt.u32.totalorder %s10506_s10, %s10501_s11 }
  0x8f   : > { %p10504_p7 = pnand %p10502_p8, %p14453_p9  ;;  %p10510_p1 = scmp.lt.u32.totalorder %s10501_s11, %s10906_s13 }
  0x90   : > { %p10509_p10 = por %p10508_p5, %p10507_p13 }
  0x91   : > { %p10505_p11 = pneg %p10504_p7 }
  0x92   : > { %p10511_p3 = por %p10510_p1, %p10509_p10 }
  0x94   : > { %p10512_p12 = pnand %p10511_p3, %p10505_p11 }
  0x96   : > { %10515 = shalt.err (!%p10512_p12)
}
  0x97   : > { %s10516_s29 = scalar_lea.vmem %s10908_s2, 12288  ;;  %s10647_s26 = smov [#allocation3]  }
  0x98   : > { %p10517_p2 = scmp.ne.s32.totalorder %s10908_s2, %s10516_s29  ;;  %s10521_s25 = sshll.u32 %s10647_s26, 4  ;;  %s10522_s25 = int_to_ptr.vmem [resolvable:$false] %s10521_s25 }
  0x99   : > { %s10523_s27 = scalar_lea.vmem %s10522_s25, 24576  ;;  %p10524_p0 = scmp.lt.s32.totalorder %s10908_s2, %s10522_s25 }
  0x9a   : > { %p10519_p6 = pnand %p10517_p2, %p14453_p9  ;;  %p10525_p8 = scmp.lt.s32.totalorder %s10523_s27, %s10516_s29 }
  0x9c   : > { %p10520_p4 = pneg %p10519_p6  ;;  %p10526_p7 = por %p10525_p8, %p10524_p0 }
  0x9e   : > { %p10527_p13 = pnand %p10526_p7, %p10520_p4 }
  0xa0   : > { %10530 = shalt.err (!%p10527_p13)
}
  0xa1   : > { %s10648_s11 = smov 384   ;;  %s10649_s14 = smov 24  }
  0xa2   : > { %p14454_p11 = scmp.ne.s32.totalorder %s14442_s22, 0  ;;  %s9425_s10 = smul.u32 28672, %s10637_s30 }
  0xa3   : > { %s333_s4 = scalar_lea.vmem [#allocation7], %s9424_s19  ;;  %s8406_s29 = sshll.u32 %s10762_s20, 5 }
  0xa4   : > { %9456 = dma.hbm_to_vmem [thread:$0]  (!%p14454_p11), %s10906_s13, 12288, %s10908_s2, %s288_s23, %s10648_s11, %s10648_s11, %s10649_s14  }
  0xa5   : > { %s340_s12 = sshll.u32 %s333_s4, 4  ;;  %s10942_s27 = scalar_lea.hbm %s14406_s3, %s9425_s10  ;;  %s10944_s12 = int_to_ptr.vmem [resolvable:$true] %s340_s12 }
  0xa6   : > { %s10531_s18 = scalar_lea.hbm %s10942_s27, 28672  ;;  %s10536_s19 = scalar_lea.hbm %s14406_s3, 229376 }
  0xa7   : > { %p10532_p5 = scmp.ne.s32.totalorder %s10942_s27, %s10531_s18  ;;  %p10537_p3 = scmp.lt.u32.totalorder %s10942_s27, %s14406_s3 }
  0xa8   : > { %p10538_p12 = scmp.lt.u32.totalorder %s10536_s19, %s10531_s18  ;;  %p10540_p6 = scmp.lt.u32.totalorder %s10531_s18, %s10942_s27 }
  0xa9   : > { %p10534_p10 = pnand %p10532_p5, %p14453_p9 }
  0xaa   : > { %p10539_p2 = por %p10538_p12, %p10537_p3 }
  0xab   : > { %p10535_p1 = pneg %p10534_p10 }
  0xac   : > { %p10541_p4 = por %p10540_p6, %p10539_p2 }
  0xae   : > { %p10542_p0 = pnand %p10541_p4, %p10535_p1 }
  0xb0   : > { %10545 = shalt.err (!%p10542_p0)
}
  0xb1   : > { %s10546_s14 = scalar_lea.vmem %s10944_s12, 28672  ;;  %s10650_s10 = smov [#allocation7]  }
  0xb2   : > { %p10547_p8 = scmp.ne.s32.totalorder %s10944_s12, %s10546_s14  ;;  %s10551_s4 = sshll.u32 %s10650_s10, 4  ;;  %s10552_s4 = int_to_ptr.vmem [resolvable:$false] %s10551_s4 }
  0xb3   : > { %s10553_s26 = scalar_lea.vmem %s10552_s4, 57344  ;;  %p10554_p5 = scmp.lt.s32.totalorder %s10944_s12, %s10552_s4 }
  0xb4   : > { %p10549_p7 = pnand %p10547_p8, %p14453_p9  ;;  %p10555_p10 = scmp.lt.s32.totalorder %s10553_s26, %s10546_s14 }
  0xb6   : > { %p10550_p13 = pneg %p10549_p7  ;;  %p10556_p3 = por %p10555_p10, %p10554_p5 }
  0xb8   : > { %p10557_p12 = pnand %p10556_p3, %p10550_p13 }
  0xba   : > { %10560 = shalt.err (!%p10557_p12)
}
  0xbb   : > { %s14455_s18 = smov 128   ;;  %s8941_s25 = sshll.u32 %s10637_s30, 9 }
  0xbc   : > { %9462 = dma.hbm_to_vmem [thread:$0]  (!%p14454_p11), %s10942_s27, 28672, %s10944_s12, %s10808_s24, %s14455_s18, %s14455_s18, %s10644_s21  }
  0xbd   : > { %s10975_s19 = scalar_lea.hbm %s14408_s5, %s8941_s25  ;;  %s375_s23 = scalar_lea.vmem [#allocation10], %s8406_s29 }
  0xbe   : > { %s382_s11 = sshll.u32 %s375_s23, 4  ;;  %s10561_s14 = scalar_lea.hbm %s10975_s19, 512  ;;  %s10979_s11 = int_to_ptr.vmem [resolvable:$true] %s382_s11 }
  0xbf   : > { %p10562_p1 = scmp.ne.s32.totalorder %s10975_s19, %s10561_s14  ;;  %s10566_s21 = scalar_lea.hbm %s14408_s5, 4096 }
  0xc0   : > { %p10567_p4 = scmp.lt.u32.totalorder %s10975_s19, %s14408_s5  ;;  %p10568_p0 = scmp.lt.u32.totalorder %s10566_s21, %s10561_s14 }
  0xc1   : > { %p10564_p2 = pnand %p10562_p1, %p14453_p9  ;;  %p10570_p7 = scmp.lt.u32.totalorder %s10561_s14, %s10975_s19 }
  0xc2   : > { %p10569_p8 = por %p10568_p0, %p10567_p4 }
  0xc3   : > { %p10565_p6 = pneg %p10564_p2 }
  0xc4   : > { %p10571_p13 = por %p10570_p7, %p10569_p8 }
  0xc6   : > { %p10572_p5 = pnand %p10571_p13, %p10565_p6 }
  0xc8   : > { %10575 = shalt.err (!%p10572_p5)
}
  0xc9   : > { %s10576_s20 = scalar_lea.vmem %s10979_s11, 512  ;;  %s10651_s29 = smov [#allocation10]  }
  0xca   : > { %p10577_p10 = scmp.ne.s32.totalorder %s10979_s11, %s10576_s20  ;;  %s10581_s10 = sshll.u32 %s10651_s29, 4  ;;  %s10582_s10 = int_to_ptr.vmem [resolvable:$false] %s10581_s10 }
  0xcb   : > { %s10583_s4 = scalar_lea.vmem %s10582_s10, 1024  ;;  %p10584_p1 = scmp.lt.s32.totalorder %s10979_s11, %s10582_s10 }
  0xcc   : > { %p10579_p3 = pnand %p10577_p10, %p14453_p9  ;;  %p10585_p2 = scmp.lt.s32.totalorder %s10583_s4, %s10576_s20 }
  0xce   : > { %p10580_p12 = pneg %p10579_p3  ;;  %p10586_p4 = por %p10585_p2, %p10584_p1 }
  0xd0   : > { %p10587_p0 = pnand %p10586_p4, %p10580_p12 }
  0xd2   : > { %10590 = shalt.err (!%p10587_p0)
}
  0xd3   : > { %s10652_s26 = smov 256   ;;  %s10653_s18 = smov 16  }
  0xd4   : > { %9468 = dma.hbm_to_vmem [thread:$0]  (!%p14454_p11), %s10975_s19, 512, %s10979_s11, %s10854_s6, %s10652_s26, %s10652_s26, %s10653_s18  }
  0xd5   : > { %p14456_p9 = scmp.ne.s32.totalorder %s14440_s16, 0 }
  0xd7   : > { %394 = sbr.rel (%p14456_p9) target bundleno = 4115 (0x1013), region = 52 }
  0xde   : > { %s396_s17 = sand.u32 1, %s10629_s28   ;;  %p14457_p6 = scmp.ne.s32.totalorder %s14439_s15, 0 }
  0xdf   : > { %s9426_s25 = smul.u32 768, %s396_s17  ;;  %s397_s2 = scalar_lea.sflag [#allocation4], %s396_s17 }
  0xe1   : > { %s11006_s13 = scalar_lea.vmem [#allocation3], %s9426_s25 }
  0xe2   : > { %10608 = dma.done.wait (%p14457_p6), %s397_s2, 12288  }
  0xe3   : > { %10610 = vsyncadd (%p14457_p6), %s397_s2, 4294955008  ;;  %s405_s23 = sand.u32 1, %s10719_s9   ;;  %s8410_s22 = sshll.u32 %s396_s17, 8 }
  0xe4   : > { %s406_s6 = scalar_lea.sflag [#allocation6], %s405_s23  ;;  %s11013_s19 = scalar_lea.vmem [#allocation5], %s8410_s22 }
  0xe5   : > { %10612 = dma.done.wait (%p14457_p6), %s406_s6, 32768  }
  0xe6   : > { %10614 = vsyncadd (%p14457_p6), %s406_s6, 4294934528  ;;  %s9427_s16 = smul.u32 1792, %s396_s17  ;;  %s424_s14 = scalar_lea.sflag [#allocation9], %s405_s23 }
  0xe7   : > { %s11021_s30 = scalar_lea.vmem [#allocation8], %s8410_s22 }
  0xe8   : > { %s11019_s11 = scalar_lea.vmem [#allocation7], %s9427_s16 }
  0xe9   : > { %10616 = dma.done.wait (%p14457_p6), %s424_s14, 4608  }
  0xea   : > { %10618 = vsyncadd (%p14457_p6), %s424_s14, 4294962688  ;;  %s8412_s24 = sshll.u32 %s396_s17, 5  ;;  %p14458_p11 = scmp.eq.s32.totalorder %s10719_s9, 0 }
  0xeb   : > { %s11027_s21 = scalar_lea.vmem [#allocation10], %s8412_s24 }
  0xec   : > { %10620 = dma.done.wait (%p14458_p11), [#allocation12], 6192   ;;  %p14459_p8 = pmov %p14458_p11 }
  0xed   : > { %p14460_p7 = scmp.ne.s32.totalorder %s10719_s9, 0 }
  0xee   : > { %10622 = vsyncadd (%p14459_p8), [#allocation12], 4294961104  ;;  %v497_v0 = vld [vmem:[%s14403_s0] sm:$0xff] (!%p14460_p7)  ;;  %v498_v1 = vld [vmem:[%s14403_s0 + $0x8] sm:$0xff] (!%p14460_p7) }
  0xef   : > { %496 = sbr.rel (%p14460_p7) target bundleno = 255 (0xff), region = 84  ;;  %v499_v2 = vld [vmem:[%s14403_s0 + $0x10] sm:$0xff] (!%p14460_p7)  ;;  %529 = vst [vmem:[#allocation2] sm:$0xff] (!%p14460_p7), %v497_v0  ;;  %530 = vst [vmem:[#allocation2 + $0x8] sm:$0xff] (!%p14460_p7), %v498_v1  ;;  %v500_v3 = vld [vmem:[%s14403_s0 + $0x18] sm:$0xff] (!%p14460_p7) }
  0xf0   : > { %531 = vst [vmem:[#allocation2 + $0x10] sm:$0xff] (!%p14460_p7), %v499_v2  ;;  %v501_v4 = vld [vmem:[%s14403_s0 + $0x20] sm:$0xff] (!%p14460_p7)  ;;  %v502_v5 = vld [vmem:[%s14403_s0 + $0x28] sm:$0xff] (!%p14460_p7)  ;;  %532 = vst [vmem:[#allocation2 + $0x18] sm:$0xff] (!%p14460_p7), %v500_v3 }
  0xf1   : > { %533 = vst [vmem:[#allocation2 + $0x20] sm:$0xff] (!%p14460_p7), %v501_v4  ;;  %534 = vst [vmem:[#allocation2 + $0x28] sm:$0xff] (!%p14460_p7), %v502_v5  ;;  %v503_v6 = vld [vmem:[%s14403_s0 + $0x30] sm:$0xff] (!%p14460_p7)  ;;  %v504_v7 = vld [vmem:[%s14403_s0 + $0x38] sm:$0xff] (!%p14460_p7) }
  0xf2   : > { %v505_v8 = vld [vmem:[%s14403_s0 + $0x40] sm:$0xff] (!%p14460_p7)  ;;  %535 = vst [vmem:[#allocation2 + $0x30] sm:$0xff] (!%p14460_p7), %v503_v6  ;;  %536 = vst [vmem:[#allocation2 + $0x38] sm:$0xff] (!%p14460_p7), %v504_v7  ;;  %v506_v9 = vld [vmem:[%s14403_s0 + $0x48] sm:$0xff] (!%p14460_p7) }
  0xf3   : > { %537 = vst [vmem:[#allocation2 + $0x40] sm:$0xff] (!%p14460_p7), %v505_v8  ;;  %v507_v10 = vld [vmem:[%s14403_s0 + $0x50] sm:$0xff] (!%p14460_p7)  ;;  %v508_v11 = vld [vmem:[%s14403_s0 + $0x58] sm:$0xff] (!%p14460_p7)  ;;  %538 = vst [vmem:[#allocation2 + $0x48] sm:$0xff] (!%p14460_p7), %v506_v9 }
  0xf4   : > { %539 = vst [vmem:[#allocation2 + $0x50] sm:$0xff] (!%p14460_p7), %v507_v10  ;;  %540 = vst [vmem:[#allocation2 + $0x58] sm:$0xff] (!%p14460_p7), %v508_v11  ;;  %v509_v12 = vld [vmem:[%s14403_s0 + $0x60] sm:$0xff] (!%p14460_p7)  ;;  %v510_v13 = vld [vmem:[%s14403_s0 + $0x68] sm:$0xff] (!%p14460_p7) }
  0xf5   : > { %v511_v14 = vld [vmem:[%s14403_s0 + $0x70] sm:$0xff] (!%p14460_p7)  ;;  %541 = vst [vmem:[#allocation2 + $0x60] sm:$0xff] (!%p14460_p7), %v509_v12  ;;  %542 = vst [vmem:[#allocation2 + $0x68] sm:$0xff] (!%p14460_p7), %v510_v13  ;;  %v512_v15 = vld [vmem:[%s14403_s0 + $0x78] sm:$0xff] (!%p14460_p7) }
  0xf6   : > { %543 = vst [vmem:[#allocation2 + $0x70] sm:$0xff] %v511_v14  ;;  %v513_v16 = vld [vmem:[%s14403_s0 + $0x80] sm:$0xff]  ;;  %v514_v17 = vld [vmem:[%s14403_s0 + $0x88] sm:$0xff]  ;;  %544 = vst [vmem:[#allocation2 + $0x78] sm:$0xff] %v512_v15 }
  0xf7   : > { %545 = vst [vmem:[#allocation2 + $0x80] sm:$0xff] %v513_v16  ;;  %546 = vst [vmem:[#allocation2 + $0x88] sm:$0xff] %v514_v17  ;;  %v515_v18 = vld [vmem:[%s14403_s0 + $0x90] sm:$0xff]  ;;  %v516_v19 = vld [vmem:[%s14403_s0 + $0x98] sm:$0xff] }
  0xf8   : > { %v517_v20 = vld [vmem:[%s14403_s0 + $0xa0] sm:$0xff]  ;;  %547 = vst [vmem:[#allocation2 + $0x90] sm:$0xff] %v515_v18  ;;  %548 = vst [vmem:[#allocation2 + $0x98] sm:$0xff] %v516_v19  ;;  %v518_v21 = vld [vmem:[%s14403_s0 + $0xa8] sm:$0xff] }
  0xf9   : > { %549 = vst [vmem:[#allocation2 + $0xa0] sm:$0xff] %v517_v20  ;;  %v519_v22 = vld [vmem:[%s14403_s0 + $0xb0] sm:$0xff]  ;;  %v520_v23 = vld [vmem:[%s14403_s0 + $0xb8] sm:$0xff]  ;;  %550 = vst [vmem:[#allocation2 + $0xa8] sm:$0xff] %v518_v21 }
  0xfa   : > { %551 = vst [vmem:[#allocation2 + $0xb0] sm:$0xff] %v519_v22  ;;  %552 = vst [vmem:[#allocation2 + $0xb8] sm:$0xff] %v520_v23  ;;  %v521_v24 = vld [vmem:[%s14403_s0 + $0xc0] sm:$0xff]  ;;  %v522_v25 = vld [vmem:[%s14403_s0 + $0xc8] sm:$0xff] }
  0xfb   : > { %v523_v26 = vld [vmem:[%s14403_s0 + $0xd0] sm:$0xff]  ;;  %553 = vst [vmem:[#allocation2 + $0xc0] sm:$0xff] %v521_v24  ;;  %554 = vst [vmem:[#allocation2 + $0xc8] sm:$0xff] %v522_v25  ;;  %v524_v27 = vld [vmem:[%s14403_s0 + $0xd8] sm:$0xff] }
  0xfc   : > { %555 = vst [vmem:[#allocation2 + $0xd0] sm:$0xff] %v523_v26  ;;  %v525_v28 = vld [vmem:[%s14403_s0 + $0xe0] sm:$0xff]  ;;  %v526_v29 = vld [vmem:[%s14403_s0 + $0xe8] sm:$0xff]  ;;  %556 = vst [vmem:[#allocation2 + $0xd8] sm:$0xff] %v524_v27 }
  0xfd   : > { %557 = vst [vmem:[#allocation2 + $0xe0] sm:$0xff] %v525_v28  ;;  %558 = vst [vmem:[#allocation2 + $0xe8] sm:$0xff] %v526_v29  ;;  %v527_v30 = vld [vmem:[%s14403_s0 + $0xf0] sm:$0xff]  ;;  %v528_v31 = vld [vmem:[%s14403_s0 + $0xf8] sm:$0xff] }
  0xfe   : > { %559 = vst [vmem:[#allocation2 + $0xf0] sm:$0xff] %v527_v30  ;;  %560 = vst [vmem:[#allocation2 + $0xf8] sm:$0xff] %v528_v31 }
  0xff PF: > { %v9517_v32 = vld [vmem:[%s11006_s13 + $0x4] ss:$24 sps:$4 sm:$0xff]   ;;  %v9519_v33 = vld [vmem:[%s11006_s13] ss:$24 sps:$4 sm:$0xff]   ;;  %v9520_v34 = vld [vmem:[%s11006_s13 + $0x34] ss:$24 sps:$4 sm:$0xff]  }
 0x100   : > { %1189 = vmatprep.subr.bf16.mxu1 %v9517_v32  ;;  %v9522_v35 = vld [vmem:[%s11006_s13 + $0x30] ss:$24 sps:$4 sm:$0xff]   ;;  %v9523_v36 = vld [vmem:[%s11006_s13 + $0x64] ss:$24 sps:$4 sm:$0xff]   ;;  %v9525_v37 = vld [vmem:[%s11006_s13 + $0x60] ss:$24 sps:$4 sm:$0xff]  }
 0x101   : > { %1190 = vmatpush1.bf16.msra.mxu1 %v9519_v33  ;;  %v9526_v38 = vld [vmem:[%s11006_s13 + $0x94] ss:$24 sps:$4 sm:$0xff]   ;;  %v9528_v39 = vld [vmem:[%s11006_s13 + $0x90] ss:$24 sps:$4 sm:$0xff]   ;;  %v9529_v40 = vld [vmem:[%s11006_s13 + $0xc4] ss:$24 sps:$4 sm:$0xff]  }
 0x102   : > { %1191 = vmatprep.subr.bf16.mxu1 %v9520_v34  ;;  %v9531_v41 = vld [vmem:[%s11006_s13 + $0xc0] ss:$24 sps:$4 sm:$0xff]   ;;  %v9532_v42 = vld [vmem:[%s11006_s13 + $0xf4] ss:$24 sps:$4 sm:$0xff]   ;;  %v9534_v43 = vld [vmem:[%s11006_s13 + $0xf0] ss:$24 sps:$4 sm:$0xff]  }
 0x103   : > { %v9535_v44 = vld [vmem:[%s11006_s13 + $0x124] ss:$24 sps:$4 sm:$0xff]   ;;  %v562_v45 = vld [vmem:[#allocation2 + $0x8] sm:$0xff]  ;;  %v9537_v48 = vld [vmem:[%s11006_s13 + $0x120] ss:$24 sps:$4 sm:$0xff]   ;;  %vm1810_vm0 = vcmask 523264  }
 0x104   : > { %v564_v46 = vld [vmem:[#allocation2 + $0x18] sm:$0xff]  ;;  %v9538_v49 = vld [vmem:[%s11006_s13 + $0x154] ss:$24 sps:$4 sm:$0xff]   ;;  %v9540_v50 = vld [vmem:[%s11006_s13 + $0x150] ss:$24 sps:$4 sm:$0xff]   ;;  %vm10654_vm3 = vmmov 1  }
 0x105   : > { %1192 = vmatpush1.bf16.msra.mxu1 %v9522_v35  ;;  %v11144_v47 = vpack.c.bf16 %v564_v46, %v562_v45  ;;  %v9541_v51 = vld [vmem:[%s11006_s13 + $0x184] ss:$24 sps:$4 sm:$0xff]   ;;  %v9543_v52 = vld [vmem:[%s11006_s13 + $0x180] ss:$24 sps:$4 sm:$0xff]   ;;  %v9544_v53 = vld [vmem:[%s11006_s13 + $0x1b4] ss:$24 sps:$4 sm:$0xff]  }
 0x106   : > { %1193 = vmatprep.subr.bf16.mxu1 %v9523_v36  ;;  %v9546_v54 = vld [vmem:[%s11006_s13 + $0x1b0] ss:$24 sps:$4 sm:$0xff]   ;;  %v9547_v55 = vld [vmem:[%s11006_s13 + $0x1e4] ss:$24 sps:$4 sm:$0xff]   ;;  %v9549_v56 = vld [vmem:[%s11006_s13 + $0x1e0] ss:$24 sps:$4 sm:$0xff]  }
 0x107   : > { %1221 = vmatprep.mubr.bf16.mxu1 %v11144_v47  ;;  %v9550_v57 = vld [vmem:[%s11006_s13 + $0x214] ss:$24 sps:$4 sm:$0xff]   ;;  %v9552_v58 = vld [vmem:[%s11006_s13 + $0x210] ss:$24 sps:$4 sm:$0xff]   ;;  %v9553_v59 = vld [vmem:[%s11006_s13 + $0x244] ss:$24 sps:$4 sm:$0xff]  }
 0x108   : > { %v9555_v60 = vld [vmem:[%s11006_s13 + $0x240] ss:$24 sps:$4 sm:$0xff]   ;;  %v9556_v61 = vld [vmem:[%s11006_s13 + $0x274] ss:$24 sps:$4 sm:$0xff]   ;;  %v9558_v62 = vld [vmem:[%s11006_s13 + $0x270] ss:$24 sps:$4 sm:$0xff]  }
 0x109   : > { %1194 = vmatpush1.bf16.msra.mxu1 %v9525_v37  ;;  %v9559_v63 = vld [vmem:[%s11006_s13 + $0x2a4] ss:$24 sps:$4 sm:$0xff]   ;;  %v9561_v0 = vld [vmem:[%s11006_s13 + $0x2a0] ss:$24 sps:$4 sm:$0xff]   ;;  %v9562_v1 = vld [vmem:[%s11006_s13 + $0x2d4] ss:$24 sps:$4 sm:$0xff]  }
 0x10a   : > { %1195 = vmatprep.subr.bf16.mxu1 %v9526_v38  ;;  %v9564_v2 = vld [vmem:[%s11006_s13 + $0x2d0] ss:$24 sps:$4 sm:$0xff]   ;;  %v561_v3 = vld [vmem:[#allocation2] sm:$0xff]  ;;  %v568_v7 = vld [vmem:[#allocation2 + $0x38] sm:$0xff]  ;;  %p8888_p13 = scmp.ne.s32.totalorder %s10719_s9, 7 }
 0x10b   : > { %v563_v4 = vld [vmem:[#allocation2 + $0x10] sm:$0xff]  ;;  %v9567_v5 = vld [vmem:[%s11006_s13 + $0xc] ss:$24 sps:$4 sm:$0xff]   ;;  %v9565_v9 = vld [vmem:[%s11006_s13 + $0x8] ss:$24 sps:$4 sm:$0xff]  }
 0x10c   : > { %v566_v6 = vld [vmem:[#allocation2 + $0x28] sm:$0xff]  ;;  %v11167_v8 = vpack.c.bf16 %v563_v4, %v561_v3  ;;  %v9570_v11 = vld [vmem:[%s11006_s13 + $0x3c] ss:$24 sps:$4 sm:$0xff]   ;;  %v9568_v12 = vld [vmem:[%s11006_s13 + $0x38] ss:$24 sps:$4 sm:$0xff]  }
 0x10d   : > { %1196 = vmatpush1.bf16.msra.mxu1 %v9528_v39  ;;  %v11170_v10 = vpack.c.bf16 %v568_v7, %v566_v6  ;;  %v565_v13 = vld [vmem:[#allocation2 + $0x20] sm:$0xff]  ;;  %v567_v14 = vld [vmem:[#allocation2 + $0x30] sm:$0xff]  ;;  %v570_v16 = vld [vmem:[#allocation2 + $0x48] sm:$0xff] }
 0x10e   : > { %1197 = vmatprep.subr.bf16.mxu1 %v9529_v40  ;;  %v9573_v15 = vld [vmem:[%s11006_s13 + $0x6c] ss:$24 sps:$4 sm:$0xff]   ;;  %v572_v17 = vld [vmem:[#allocation2 + $0x58] sm:$0xff]  ;;  %v11177_v18 = vpack.c.bf16 %v567_v14, %v565_v13  ;;  %v9571_v19 = vld [vmem:[%s11006_s13 + $0x68] ss:$24 sps:$4 sm:$0xff]  }
 0x10f   : > { %v11180_v20 = vpack.c.bf16 %v572_v17, %v570_v16  ;;  %v9576_v21 = vld [vmem:[%s11006_s13 + $0x9c] ss:$24 sps:$4 sm:$0xff]   ;;  %v9574_v22 = vld [vmem:[%s11006_s13 + $0x98] ss:$24 sps:$4 sm:$0xff]   ;;  %v569_v23 = vld [vmem:[#allocation2 + $0x40] sm:$0xff] }
 0x110   : > { %v571_v24 = vld [vmem:[#allocation2 + $0x50] sm:$0xff]  ;;  %v9579_v25 = vld [vmem:[%s11006_s13 + $0xcc] ss:$24 sps:$4 sm:$0xff]   ;;  %v576_v27 = vld [vmem:[#allocation2 + $0x78] sm:$0xff] }
 0x111   : > { %1198 = vmatpush1.bf16.msra.mxu1 %v9531_v41  ;;  %v574_v26 = vld [vmem:[#allocation2 + $0x68] sm:$0xff]  ;;  %v11188_v29 = vpack.c.bf16 %v571_v24, %v569_v23  ;;  %v9582_v30 = vld [vmem:[%s11006_s13 + $0xfc] ss:$24 sps:$4 sm:$0xff]   ;;  %v9580_v32 = vld [vmem:[%s11006_s13 + $0xf8] ss:$24 sps:$4 sm:$0xff]  }
 0x112   : > { %1199 = vmatprep.subr.bf16.mxu1 %v9532_v42  ;;  %v9577_v28 = vld [vmem:[%s11006_s13 + $0xc8] ss:$24 sps:$4 sm:$0xff]   ;;  %v11191_v31 = vpack.c.bf16 %v576_v27, %v574_v26  ;;  %v575_v34 = vld [vmem:[#allocation2 + $0x70] sm:$0xff]  ;;  %v9585_v35 = vld [vmem:[%s11006_s13 + $0x12c] ss:$24 sps:$4 sm:$0xff]  }
 0x113   : > { %v573_v33 = vld [vmem:[#allocation2 + $0x60] sm:$0xff]  ;;  %v578_v36 = vld [vmem:[#allocation2 + $0x88] sm:$0xff]  ;;  %v580_v37 = vld [vmem:[#allocation2 + $0x98] sm:$0xff] }
 0x114   : > { %v9583_v38 = vld [vmem:[%s11006_s13 + $0x128] ss:$24 sps:$4 sm:$0xff]   ;;  %v11198_v39 = vpack.c.bf16 %v575_v34, %v573_v33  ;;  %v9588_v40 = vld [vmem:[%s11006_s13 + $0x15c] ss:$24 sps:$4 sm:$0xff]   ;;  %v11201_v41 = vpack.c.bf16 %v580_v37, %v578_v36  ;;  %v9586_v42 = vld [vmem:[%s11006_s13 + $0x158] ss:$24 sps:$4 sm:$0xff]  }
 0x115   : > { %1200 = vmatpush1.bf16.msra.mxu1 %v9534_v43  ;;  %v577_v43 = vld [vmem:[#allocation2 + $0x80] sm:$0xff]  ;;  %v582_v46 = vld [vmem:[#allocation2 + $0xa8] sm:$0xff]  ;;  %v592_v4 = vld [vmem:[#allocation2 + $0xf8] sm:$0xff] }
 0x116   : > { %1201 = vmatprep.subr.bf16.mxu1 %v9535_v44  ;;  %v579_v44 = vld [vmem:[#allocation2 + $0x90] sm:$0xff]  ;;  %v9591_v45 = vld [vmem:[%s11006_s13 + $0x18c] ss:$24 sps:$4 sm:$0xff]   ;;  %v9616_v24 = vld [vmem:[%s11006_s13 + $0x40] ss:$24 sps:$4 sm:$0xff]  }
 0x117   : > { %v590_v3 = vld [vmem:[#allocation2 + $0xe8] sm:$0xff]  ;;  %v9606_v7 = vld [vmem:[%s11006_s13 + $0x27c] ss:$24 sps:$4 sm:$0xff]   ;;  %v9628_v34 = vld [vmem:[%s11006_s13 + $0x100] ss:$24 sps:$4 sm:$0xff]  }
 0x118   : > { %v591_v13 = vld [vmem:[#allocation2 + $0xf0] sm:$0xff]  ;;  %v9609_v14 = vld [vmem:[%s11006_s13 + $0x2ac] ss:$24 sps:$4 sm:$0xff]  }
 0x119   : > { %1202 = vmatpush1.bf16.msra.mxu1 %v9537_v48  ;;  %v584_v48 = vld [vmem:[#allocation2 + $0xb8] sm:$0xff]  ;;  %v9619_v26 = vld [vmem:[%s11006_s13 + $0x70] ss:$24 sps:$4 sm:$0xff]  }
 0x11a   : > { %1203 = vmatprep.subr.bf16.mxu1 %v9538_v49  ;;  %v9589_v49 = vld [vmem:[%s11006_s13 + $0x188] ss:$24 sps:$4 sm:$0xff]   ;;  %v9612_v17 = vld [vmem:[%s11006_s13 + $0x2dc] ss:$24 sps:$4 sm:$0xff]  }
 0x11b   : > { %v9618_v23 = vld [vmem:[%s11006_s13 + $0x44] ss:$24 sps:$4 sm:$0xff]   ;;  %v9631_v36 = vld [vmem:[%s11006_s13 + $0x130] ss:$24 sps:$4 sm:$0xff]  }
 0x11c   : > { %v9624_v27 = vld [vmem:[%s11006_s13 + $0xa4] ss:$24 sps:$4 sm:$0xff]  }
 0x11d   : > { %1204 = vmatpush1.bf16.msra.mxu1 %v9540_v50  ;;  %v11208_v50 = vpack.c.bf16 %v579_v44, %v577_v43  ;;  %v9630_v33 = vld [vmem:[%s11006_s13 + $0x104] ss:$24 sps:$4 sm:$0xff]   ;;  %v9640_v44 = vld [vmem:[%s11006_s13 + $0x1c0] ss:$24 sps:$4 sm:$0xff]  }
 0x11e   : > { %1205 = vmatprep.subr.bf16.mxu1 %v9541_v51  ;;  %v9594_v51 = vld [vmem:[%s11006_s13 + $0x1bc] ss:$24 sps:$4 sm:$0xff]  }
 0x11f   : > { %v9636_v37 = vld [vmem:[%s11006_s13 + $0x164] ss:$24 sps:$4 sm:$0xff]  }
 0x120   : > { %v9642_v43 = vld [vmem:[%s11006_s13 + $0x1c4] ss:$24 sps:$4 sm:$0xff]  }
 0x121   : > { %1206 = vmatpush1.bf16.msra.mxu1 %v9543_v52  ;;  %v11211_v52 = vpack.c.bf16 %v584_v48, %v582_v46  ;;  %v9643_v46 = vld [vmem:[%s11006_s13 + $0x1f0] ss:$24 sps:$4 sm:$0xff]   ;;  %v9648_v48 = vld [vmem:[%s11006_s13 + $0x224] ss:$24 sps:$4 sm:$0xff]  }
 0x122   : > { %1207 = vmatprep.subr.bf16.mxu1 %v9544_v53  ;;  %v9592_v53 = vld [vmem:[%s11006_s13 + $0x1b8] ss:$24 sps:$4 sm:$0xff]  }
 0x125   : > { %1208 = vmatpush1.bf16.msra.mxu1 %v9546_v54  ;;  %v581_v54 = vld [vmem:[#allocation2 + $0xa0] sm:$0xff] }
 0x126   : > { %1209 = vmatprep.subr.bf16.mxu1 %v9547_v55  ;;  %v583_v55 = vld [vmem:[#allocation2 + $0xb0] sm:$0xff] }
 0x129   : > { %1210 = vmatpush1.bf16.msra.mxu1 %v9549_v56  ;;  %v9597_v56 = vld [vmem:[%s11006_s13 + $0x1ec] ss:$24 sps:$4 sm:$0xff]  }
 0x12a   : > { %1211 = vmatprep.subr.bf16.mxu1 %v9550_v57  ;;  %v586_v57 = vld [vmem:[#allocation2 + $0xc8] sm:$0xff] }
 0x12d   : > { %1212 = vmatpush1.bf16.msra.mxu1 %v9552_v58  ;;  %v588_v58 = vld [vmem:[#allocation2 + $0xd8] sm:$0xff] }
 0x12e   : > { %1213 = vmatprep.subr.bf16.mxu1 %v9553_v59  ;;  %v9595_v59 = vld [vmem:[%s11006_s13 + $0x1e8] ss:$24 sps:$4 sm:$0xff]  }
 0x131   : > { %1214 = vmatpush1.bf16.msra.mxu1 %v9555_v60  ;;  %v11218_v60 = vpack.c.bf16 %v583_v55, %v581_v54  ;;  %v9654_v54 = vld [vmem:[%s11006_s13 + $0x284] ss:$24 sps:$4 sm:$0xff]   ;;  %v9652_v55 = vld [vmem:[%s11006_s13 + $0x280] ss:$24 sps:$4 sm:$0xff]  }
 0x132   : > { %1215 = vmatprep.subr.bf16.mxu1 %v9556_v61  ;;  %v9600_v61 = vld [vmem:[%s11006_s13 + $0x21c] ss:$24 sps:$4 sm:$0xff]  }
 0x135   : > { %1216 = vmatpush1.bf16.msra.mxu1 %v9558_v62  ;;  %v11221_v62 = vpack.c.bf16 %v588_v58, %v586_v57  ;;  %v9655_v57 = vld [vmem:[%s11006_s13 + $0x2b0] ss:$24 sps:$4 sm:$0xff]   ;;  %v9660_v58 = vld [vmem:[%s11006_s13 + $0x2e4] ss:$24 sps:$4 sm:$0xff]  }
 0x136   : > { %1217 = vmatprep.subr.bf16.mxu1 %v9559_v63  ;;  %v9598_v63 = vld [vmem:[%s11006_s13 + $0x218] ss:$24 sps:$4 sm:$0xff]  }
 0x139   : > { %1218 = vmatpush1.bf16.msra.mxu1 %v9561_v0  ;;  %v585_v0 = vld [vmem:[#allocation2 + $0xc0] sm:$0xff] }
 0x13a   : > { %1219 = vmatprep.subr.bf16.mxu1 %v9562_v1  ;;  %v587_v1 = vld [vmem:[#allocation2 + $0xd0] sm:$0xff] }
 0x13b   : > { %v11228_v6 = vpack.c.bf16 %v587_v1, %v585_v0 }
 0x13d   : > { %1220 = vmatpush1.bf16.msra.mxu1 %v9564_v2  ;;  %v9603_v2 = vld [vmem:[%s11006_s13 + $0x24c] ss:$24 sps:$4 sm:$0xff]  }
 0x13e   : > { %1302 = vmatprep.subr.bf16.mxu1 %v9567_v5  ;;  %v9601_v5 = vld [vmem:[%s11006_s13 + $0x248] ss:$24 sps:$4 sm:$0xff]  }
 0x140   : > { %1222 = vmatmul.mubr.bf16.vlgmr.msra.gmra.mrb[0].mxu1 %v11167_v8 }
 0x141   : > { %1303 = vmatpush1.bf16.msra.mxu1 %v9565_v9  ;;  %1231 = vmatprep.mubr.bf16.mxu1 %v11170_v10  ;;  %v11231_v9 = vpack.c.bf16 %v592_v4, %v590_v3 }
 0x142   : > { %1304 = vmatprep.subr.bf16.mxu1 %v9570_v11  ;;  %v9604_v11 = vld [vmem:[%s11006_s13 + $0x278] ss:$24 sps:$4 sm:$0xff]  }
 0x145   : > { %1305 = vmatpush1.bf16.msra.mxu1 %v9568_v12  ;;  %v589_v12 = vld [vmem:[#allocation2 + $0xe0] sm:$0xff] }
 0x146   : > { %1306 = vmatprep.subr.bf16.mxu1 %v9573_v15  ;;  %v9607_v15 = vld [vmem:[%s11006_s13 + $0x2a8] ss:$24 sps:$4 sm:$0xff]   ;;  %v11238_v16 = vpack.c.bf16 %v591_v13, %v589_v12 }
 0x148   : > { %1232 = vmatmul.mubr.bf16.gmra.mrb[4].mxu1 %v11177_v18 }
 0x149   : > { %1307 = vmatpush1.bf16.msra.mxu1 %v9571_v19  ;;  %1241 = vmatprep.mubr.bf16.mxu1 %v11180_v20  ;;  %v9610_v19 = vld [vmem:[%s11006_s13 + $0x2d8] ss:$24 sps:$4 sm:$0xff]  }
 0x14a   : > { %1308 = vmatprep.subr.bf16.mxu1 %v9576_v21  ;;  %v9615_v21 = vld [vmem:[%s11006_s13 + $0x14] ss:$24 sps:$4 sm:$0xff]  }
 0x14d   : > { %1309 = vmatpush1.bf16.msra.mxu1 %v9574_v22  ;;  %v9613_v22 = vld [vmem:[%s11006_s13 + $0x10] ss:$24 sps:$4 sm:$0xff]  }
 0x14e   : > { %1310 = vmatprep.subr.bf16.mxu1 %v9579_v25  ;;  %v9621_v25 = vld [vmem:[%s11006_s13 + $0x74] ss:$24 sps:$4 sm:$0xff]  }
 0x150   : > { %1242 = vmatmul.mubr.bf16.gmra.mrb[8].mxu1 %v11188_v29 }
 0x151   : > { %1311 = vmatpush1.bf16.msra.mxu1 %v9577_v28  ;;  %1251 = vmatprep.mubr.bf16.mxu1 %v11191_v31  ;;  %v9622_v28 = vld [vmem:[%s11006_s13 + $0xa0] ss:$24 sps:$4 sm:$0xff]  }
 0x152   : > { %1312 = vmatprep.subr.bf16.mxu1 %v9582_v30  ;;  %v9627_v30 = vld [vmem:[%s11006_s13 + $0xd4] ss:$24 sps:$4 sm:$0xff]  }
 0x155   : > { %1313 = vmatpush1.bf16.msra.mxu1 %v9580_v32  ;;  %v9625_v32 = vld [vmem:[%s11006_s13 + $0xd0] ss:$24 sps:$4 sm:$0xff]  }
 0x156   : > { %1314 = vmatprep.subr.bf16.mxu1 %v9585_v35  ;;  %v9633_v35 = vld [vmem:[%s11006_s13 + $0x134] ss:$24 sps:$4 sm:$0xff]  }
 0x158   : > { %1252 = vmatmul.mubr.bf16.gmra.mrb[12].mxu1 %v11198_v39 }
 0x159   : > { %1315 = vmatpush1.bf16.msra.mxu1 %v9583_v38  ;;  %1261 = vmatprep.mubr.bf16.mxu1 %v11201_v41  ;;  %v9634_v38 = vld [vmem:[%s11006_s13 + $0x160] ss:$24 sps:$4 sm:$0xff]  }
 0x15a   : > { %1316 = vmatprep.subr.bf16.mxu1 %v9588_v40  ;;  %v9639_v40 = vld [vmem:[%s11006_s13 + $0x194] ss:$24 sps:$4 sm:$0xff]  }
 0x15d   : > { %1317 = vmatpush1.bf16.msra.mxu1 %v9586_v42  ;;  %v9637_v42 = vld [vmem:[%s11006_s13 + $0x190] ss:$24 sps:$4 sm:$0xff]  }
 0x15e   : > { %1318 = vmatprep.subr.bf16.mxu1 %v9591_v45  ;;  %v9645_v45 = vld [vmem:[%s11006_s13 + $0x1f4] ss:$24 sps:$4 sm:$0xff]  }
 0x160   : > { %1262 = vmatmul.mubr.bf16.gmra.mrb[16].mxu1 %v11208_v50 }
 0x161   : > { %1319 = vmatpush1.bf16.msra.mxu1 %v9589_v49  ;;  %1271 = vmatprep.mubr.bf16.mxu1 %v11211_v52  ;;  %v9646_v49 = vld [vmem:[%s11006_s13 + $0x220] ss:$24 sps:$4 sm:$0xff]  }
 0x162   : > { %1320 = vmatprep.subr.bf16.mxu1 %v9594_v51  ;;  %v9651_v51 = vld [vmem:[%s11006_s13 + $0x254] ss:$24 sps:$4 sm:$0xff]  }
 0x165   : > { %1321 = vmatpush1.bf16.msra.mxu1 %v9592_v53  ;;  %v9649_v53 = vld [vmem:[%s11006_s13 + $0x250] ss:$24 sps:$4 sm:$0xff]  }
 0x166   : > { %1322 = vmatprep.subr.bf16.mxu1 %v9597_v56  ;;  %v9657_v56 = vld [vmem:[%s11006_s13 + $0x2b4] ss:$24 sps:$4 sm:$0xff]  }
 0x168   : > { %1272 = vmatmul.mubr.bf16.gmra.mrb[20].mxu1 %v11218_v60 }
 0x169   : > { %1323 = vmatpush1.bf16.msra.mxu1 %v9595_v59  ;;  %1281 = vmatprep.mubr.bf16.mxu1 %v11221_v62  ;;  %v9658_v59 = vld [vmem:[%s11006_s13 + $0x2e0] ss:$24 sps:$4 sm:$0xff]  }
 0x16a   : > { %1324 = vmatprep.subr.bf16.mxu1 %v9600_v61 }
 0x16d   : > { %1325 = vmatpush1.bf16.msra.mxu1 %v9598_v63 }
 0x16e   : > { %1326 = vmatprep.subr.bf16.mxu1 %v9603_v2 }
 0x170   : > { %1282 = vmatmul.mubr.bf16.gmra.mrb[24].mxu1 %v11228_v6 }
 0x171   : > { %1327 = vmatpush1.bf16.msra.mxu1 %v9601_v5  ;;  %1291 = vmatprep.mubr.bf16.mxu1 %v11231_v9 }
 0x172   : > { %1328 = vmatprep.subr.bf16.mxu1 %v9606_v7 }
 0x175   : > { %1329 = vmatpush1.bf16.msra.mxu1 %v9604_v11 }
 0x176   : > { %1330 = vmatprep.subr.bf16.mxu1 %v9609_v14 }
 0x178   : > { %1292 = vmatmul.mubr.bf16.gmra.mrb[28].mxu1 %v11238_v16 }
 0x179   : > { %1331 = vmatpush1.bf16.msra.mxu1 %v9607_v15  ;;  %1334 = vmatprep.mubr.bf16.mxu1 %v11144_v47 }
 0x17a   : > { %1332 = vmatprep.subr.bf16.mxu1 %v9612_v17 }
 0x17d   : > { %1333 = vmatpush1.bf16.msra.mxu1 %v9610_v19 }
 0x17e   : > { %1415 = vmatprep.subr.bf16.mxu1 %v9615_v21 }
 0x180   : > { %1335 = vmatmul.mubr.bf16.vlgmr.msra.gmra.mrb[32].mxu1 %v11167_v8 }
 0x181   : > { %1344 = vmatprep.mubr.bf16.mxu1 %v11170_v10  ;;  %1416 = vmatpush1.bf16.msra.mxu1 %v9613_v22 }
 0x182   : > { %1417 = vmatprep.subr.bf16.mxu1 %v9618_v23 }
 0x185   : > { %1418 = vmatpush1.bf16.msra.mxu1 %v9616_v24 }
 0x186   : > { %1419 = vmatprep.subr.bf16.mxu1 %v9621_v25 }
 0x188   : > { %1345 = vmatmul.mubr.bf16.gmra.mrb[36].mxu1 %v11177_v18 }
 0x189   : > { %1354 = vmatprep.mubr.bf16.mxu1 %v11180_v20  ;;  %1420 = vmatpush1.bf16.msra.mxu1 %v9619_v26 }
 0x18a   : > { %1421 = vmatprep.subr.bf16.mxu1 %v9624_v27 }
 0x18d   : > { %1422 = vmatpush1.bf16.msra.mxu1 %v9622_v28 }
 0x18e   : > { %1423 = vmatprep.subr.bf16.mxu1 %v9627_v30 }
 0x190   : > { %1355 = vmatmul.mubr.bf16.gmra.mrb[40].mxu1 %v11188_v29 }
 0x191   : > { %1364 = vmatprep.mubr.bf16.mxu1 %v11191_v31  ;;  %1424 = vmatpush1.bf16.msra.mxu1 %v9625_v32 }
 0x192   : > { %1425 = vmatprep.subr.bf16.mxu1 %v9630_v33 }
 0x195   : > { %1426 = vmatpush1.bf16.msra.mxu1 %v9628_v34 }
 0x196   : > { %1427 = vmatprep.subr.bf16.mxu1 %v9633_v35 }
 0x198   : > { %1365 = vmatmul.mubr.bf16.gmra.mrb[44].mxu1 %v11198_v39 }
 0x199   : > { %1374 = vmatprep.mubr.bf16.mxu1 %v11201_v41  ;;  %1428 = vmatpush1.bf16.msra.mxu1 %v9631_v36 }
 0x19a   : > { %1429 = vmatprep.subr.bf16.mxu1 %v9636_v37 }
 0x19d   : > { %1430 = vmatpush1.bf16.msra.mxu1 %v9634_v38 }
 0x19e   : > { %1431 = vmatprep.subr.bf16.mxu1 %v9639_v40 }
 0x1a0   : > { %1375 = vmatmul.mubr.bf16.gmra.mrb[48].mxu1 %v11208_v50 }
 0x1a1   : > { %1384 = vmatprep.mubr.bf16.mxu1 %v11211_v52  ;;  %1432 = vmatpush1.bf16.msra.mxu1 %v9637_v42 }
 0x1a2   : > { %1433 = vmatprep.subr.bf16.mxu1 %v9642_v43 }
 0x1a5   : > { %1434 = vmatpush1.bf16.msra.mxu1 %v9640_v44 }
 0x1a6   : > { %1435 = vmatprep.subr.bf16.mxu1 %v9645_v45 }
 0x1a8   : > { %1385 = vmatmul.mubr.bf16.gmra.mrb[52].mxu1 %v11218_v60 }
 0x1a9   : > { %1394 = vmatprep.mubr.bf16.mxu1 %v11221_v62  ;;  %1436 = vmatpush1.bf16.msra.mxu1 %v9643_v46 }
 0x1aa   : > { %1437 = vmatprep.subr.bf16.mxu1 %v9648_v48 }
 0x1ad   : > { %1438 = vmatpush1.bf16.msra.mxu1 %v9646_v49 }
 0x1ae   : > { %1439 = vmatprep.subr.bf16.mxu1 %v9651_v51 }
 0x1b0   : > { %1395 = vmatmul.mubr.bf16.gmra.mrb[56].mxu1 %v11228_v6 }
 0x1b1   : > { %1404 = vmatprep.mubr.bf16.mxu1 %v11231_v9  ;;  %1440 = vmatpush1.bf16.msra.mxu1 %v9649_v53 }
 0x1b2   : > { %1441 = vmatprep.subr.bf16.mxu1 %v9654_v54 }
 0x1b5   : > { %1442 = vmatpush1.bf16.msra.mxu1 %v9652_v55 }
 0x1b6   : > { %1443 = vmatprep.subr.bf16.mxu1 %v9657_v56 }
 0x1b8   : > { %1405 = vmatmul.mubr.bf16.gmra.mrb[60].mxu1 %v11238_v16 }
 0x1b9   : > { %1444 = vmatpush1.bf16.msra.mxu1 %v9655_v57  ;;  %1447 = vmatprep.mubr.bf16.mxu1 %v11144_v47  ;;  %v1528_v47 = vlaneseq }
 0x1ba   : > { %1445 = vmatprep.subr.bf16.mxu1 %v9660_v58 }
 0x1bd   : > { %1446 = vmatpush1.bf16.msra.mxu1 %v9658_v59 }
 0x1c0   : > { %1448 = vmatmul.mubr.bf16.vlgmr.msra.gmra.mrb[64].mxu1 %v11167_v8  ;;  %v11307_v8 = vshrl.u32 %v1528_v47, 7 }
 0x1c1   : > { %1457 = vmatprep.mubr.bf16.mxu1 %v11170_v10 }
 0x1c2   : > { %v11310_v10 = vsub.s32 0, %v11307_v8  ;;  %vm3604_vm1 = vcmp.lt.s32.totalorder %v11307_v8, 3  ;;  %vm3781_vm7 = vcmp.lt.s32.totalorder %v11307_v8, 2  ;;  %vm3958_vm12 = vcmp.lt.s32.totalorder %v11307_v8, 1 }
 0x1c8   : > { %1458 = vmatmul.mubr.bf16.gmra.mrb[68].mxu1 %v11177_v18  ;;  %v11313_v18 = vld [vmem:[%s11027_s21] sm:$0xff] }
 0x1c9   : > { %1467 = vmatprep.mubr.bf16.mxu1 %v11180_v20  ;;  %v11316_v20 = vld [vmem:[%s11027_s21 + $0x8] sm:$0xff] }
 0x1d0   : > { %1468 = vmatmul.mubr.bf16.gmra.mrb[72].mxu1 %v11188_v29  ;;  %v11320_v29 = vrot.slane %v11313_v18, %v11310_v10 }
 0x1d1   : > { %1477 = vmatprep.mubr.bf16.mxu1 %v11191_v31  ;;  %v11324_v31 = vrot.slane %v11316_v20, %v11310_v10 }
 0x1d8   : > { %1478 = vmatmul.mubr.bf16.gmra.mrb[76].mxu1 %v11198_v39 }
 0x1d9   : > { %1487 = vmatprep.mubr.bf16.mxu1 %v11201_v41 }
 0x1e0   : > { %1488 = vmatmul.mubr.bf16.gmra.mrb[80].mxu1 %v11208_v50 }
 0x1e1   : > { %1497 = vmatprep.mubr.bf16.mxu1 %v11211_v52 }
 0x1e8   : > { %1498 = vmatmul.mubr.bf16.gmra.mrb[84].mxu1 %v11218_v60 }
 0x1e9   : > { %1507 = vmatprep.mubr.bf16.mxu1 %v11221_v62 }
 0x1f0   : > { %1508 = vmatmul.mubr.bf16.gmra.mrb[88].mxu1 %v11228_v6 }
 0x1f1   : > { %1517 = vmatprep.mubr.bf16.mxu1 %v11231_v9 }
 0x1f8   : > { %1518 = vmatmul.mubr.bf16.gmra.mrb[92].mxu1 %v11238_v16 }
 0x213   : > { %v1223_v39 = vpop.f32.mrb[0].mxu1 }
 0x214   : > { %v1536_v41 = vadd.f32 %v11320_v29, %v1223_v39  ;;  %v1225_v50 = vpop.f32.mrb[1].mxu1 }
 0x215   : > { %v1537_v52 = vadd.f32 %v11324_v31, %v1225_v50  ;;  %v1227_v60 = vpop.f32.mrb[2].mxu1 }
 0x216   : > { %v1538_v61 = vadd.f32 %v11320_v29, %v1227_v60  ;;  %v1229_v62 = vpop.f32.mrb[3].mxu1  ;;  %v1648_v0 = vmul.f32 0.088388346, %v1536_v41 }
 0x217   : > { %v1539_v63 = vadd.f32 %v11324_v31, %v1229_v62  ;;  %v11330_v2 = vmul.f32 0.088388346, %v1537_v52 }
 0x218   : > { %v1649_v1 = vmul.f32 0.088388346, %v1538_v61 }
 0x219   : > { %v11332_v3 = vmul.f32 0.088388346, %v1539_v63 }
 0x21a   : > { %v1664_v4 = vpack.c.bf16 %v1649_v1, %v1648_v0 }
 0x21b   : > { %v1233_v6 = vpop.f32.mrb[4].mxu1 }
 0x21c   : > { %v1540_v7 = vadd.f32 %v11320_v29, %v1233_v6  ;;  %v1235_v9 = vpop.f32.mrb[5].mxu1  ;;  %9078 = vmatprep.mubr.bf16.mxu1 %v1664_v4 }
 0x21d   : > { %v1541_v11 = vadd.f32 %v11324_v31, %v1235_v9  ;;  %v1237_v12 = vpop.f32.mrb[6].mxu1 }
 0x21e   : > { %v1542_v13 = vadd.f32 %v11320_v29, %v1237_v12  ;;  %v1239_v14 = vpop.f32.mrb[7].mxu1  ;;  %v11340_v16 = vmul.f32 0.088388346, %v1540_v7 }
 0x21f   : > { %v1543_v15 = vadd.f32 %v11324_v31, %v1239_v14  ;;  %v11344_v19 = vmul.f32 0.088388346, %v1541_v11 }
 0x220   : > { %v11342_v17 = vmul.f32 0.088388346, %v1542_v13 }
 0x221   : > { %v11346_v21 = vmul.f32 0.088388346, %v1543_v15 }
 0x222   : > { %v1665_v22 = vpack.c.bf16 %v11342_v17, %v11340_v16 }
 0x223   : > { %v1243_v24 = vpop.f32.mrb[8].mxu1 }
 0x224   : > { %v1544_v25 = vadd.f32 %v11320_v29, %v1243_v24  ;;  %v1245_v26 = vpop.f32.mrb[9].mxu1 }
 0x225   : > { %v1545_v27 = vadd.f32 %v11324_v31, %v1245_v26  ;;  %v1247_v28 = vpop.f32.mrb[10].mxu1 }
 0x226   : > { %v1546_v30 = vadd.f32 %v11320_v29, %v1247_v28  ;;  %v1249_v32 = vpop.f32.mrb[11].mxu1  ;;  %v11356_v34 = vmul.f32 0.088388346, %v1544_v25 }
 0x227   : > { %v1547_v33 = vadd.f32 %v11324_v31, %v1249_v32  ;;  %v11360_v36 = vmul.f32 0.088388346, %v1545_v27 }
 0x228   : > { %v11358_v35 = vmul.f32 0.088388346, %v1546_v30 }
 0x229   : > { %v11362_v37 = vmul.f32 0.088388346, %v1547_v33 }
 0x22a   : > { %v1666_v38 = vpack.c.bf16 %v11358_v35, %v11356_v34 }
 0x22b   : > { %v1253_v42 = vpop.f32.mrb[12].mxu1 }
 0x22c   : > { %v1548_v43 = vadd.f32 %v11320_v29, %v1253_v42  ;;  %v1255_v44 = vpop.f32.mrb[13].mxu1 }
 0x22d   : > { %v1549_v45 = vadd.f32 %v11324_v31, %v1255_v44  ;;  %v1257_v46 = vpop.f32.mrb[14].mxu1 }
 0x22e   : > { %v1550_v48 = vadd.f32 %v11320_v29, %v1257_v46  ;;  %v1259_v49 = vpop.f32.mrb[15].mxu1  ;;  %v11372_v53 = vmul.f32 0.088388346, %v1548_v43 }
 0x22f   : > { %v1551_v51 = vadd.f32 %v11324_v31, %v1259_v49  ;;  %v11376_v55 = vmul.f32 0.088388346, %v1549_v45 }
 0x230   : > { %v11374_v54 = vmul.f32 0.088388346, %v1550_v48 }
 0x231   : > { %v11378_v56 = vmul.f32 0.088388346, %v1551_v51 }
 0x232   : > { %v1667_v57 = vpack.c.bf16 %v11374_v54, %v11372_v53 }
 0x233   : > { %v1263_v59 = vpop.f32.mrb[16].mxu1 }
 0x234   : > { %v1552_v47 = vadd.f32 %v11320_v29, %v1263_v59  ;;  %v1265_v39 = vpop.f32.mrb[17].mxu1 }
 0x235   : > { %v1553_v41 = vadd.f32 %v11324_v31, %v1265_v39  ;;  %v1267_v50 = vpop.f32.mrb[18].mxu1 }
 0x236   : > { %v1554_v52 = vadd.f32 %v11320_v29, %v1267_v50  ;;  %v1269_v60 = vpop.f32.mrb[19].mxu1  ;;  %v11388_v62 = vmul.f32 0.088388346, %v1552_v47 }
 0x237   : > { %v1555_v61 = vadd.f32 %v11324_v31, %v1269_v60  ;;  %v2165_v0 = vmul.f32 0.088388346, %v1553_v41 }
 0x238   : > { %v11390_v63 = vmul.f32 0.088388346, %v1554_v52 }
 0x239   : > { %v2166_v1 = vmul.f32 0.088388346, %v1555_v61 }
 0x23a   : > { %v1668_v4 = vpack.c.bf16 %v11390_v63, %v11388_v62  ;;  %v11502_v63 = vsub.s32 2, %v11307_v8 }
 0x23b   : > { %v1273_v6 = vpop.f32.mrb[20].mxu1  ;;  %v2177_v7 = vpack.c.bf16 %v2166_v1, %v2165_v0 }
 0x23c   : > { %v1556_v9 = vadd.f32 %v11320_v29, %v1273_v6  ;;  %v1275_v11 = vpop.f32.mrb[21].mxu1  ;;  %v11429_v6 = vsub.s32 1, %v11307_v8  ;;  %14461 = vst [vmem:[#allocation21_spill] sm:$0xff] %v11502_v63 }
 0x23d   : > { %v1557_v12 = vadd.f32 %v11324_v31, %v1275_v11  ;;  %v1277_v13 = vpop.f32.mrb[22].mxu1  ;;  %9158 = vmatprep.mubr.bf16.mxu0 %v2177_v7 }
 0x23e   : > { %v1558_v14 = vadd.f32 %v11320_v29, %v1277_v13  ;;  %v1279_v15 = vpop.f32.mrb[23].mxu1  ;;  %v11398_v25 = vmul.f32 0.088388346, %v1556_v9 }
 0x23f   : > { %v1559_v24 = vadd.f32 %v11324_v31, %v1279_v15  ;;  %v11402_v27 = vmul.f32 0.088388346, %v1557_v12 }
 0x240   : > { %v11400_v26 = vmul.f32 0.088388346, %v1558_v14 }
 0x241   : > { %v11404_v28 = vmul.f32 0.088388346, %v1559_v24  ;;  %v11443_v24 = vrot.slane %v11316_v20, %v11429_v6 }
 0x242   : > { %v1669_v30 = vpack.c.bf16 %v11400_v26, %v11398_v25 }
 0x243   : > { %v2178_v32 = vpack.c.bf16 %v11404_v28, %v11402_v27  ;;  %v1283_v33 = vpop.f32.mrb[24].mxu1 }
 0x244   : > { %v1560_v42 = vadd.f32 %v11320_v29, %v1283_v33  ;;  %v1285_v43 = vpop.f32.mrb[25].mxu1 }
 0x245   : > { %v1561_v44 = vadd.f32 %v11324_v31, %v1285_v43  ;;  %v1287_v45 = vpop.f32.mrb[26].mxu1 }
 0x246   : > { %v1562_v46 = vadd.f32 %v11320_v29, %v1287_v45  ;;  %v1289_v48 = vpop.f32.mrb[27].mxu1  ;;  %v11414_v51 = vmul.f32 0.088388346, %v1560_v42 }
 0x247   : > { %v1563_v49 = vadd.f32 %v11324_v31, %v1289_v48  ;;  %v11418_v47 = vmul.f32 0.088388346, %v1561_v44 }
 0x248   : > { %v11416_v59 = vmul.f32 0.088388346, %v1562_v46 }
 0x249   : > { %v11420_v39 = vmul.f32 0.088388346, %v1563_v49 }
 0x24a   : > { %v1670_v41 = vpack.c.bf16 %v11416_v59, %v11414_v51 }
 0x24b   : > { %v2179_v50 = vpack.c.bf16 %v11420_v39, %v11418_v47  ;;  %v1293_v52 = vpop.f32.mrb[28].mxu1 }
 0x24c   : > { %v1564_v60 = vadd.f32 %v11320_v29, %v1293_v52  ;;  %v1295_v61 = vpop.f32.mrb[29].mxu1 }
 0x24d   : > { %v1565_v0 = vadd.f32 %v11324_v31, %v1295_v61  ;;  %v1297_v1 = vpop.f32.mrb[30].mxu1 }
 0x24e   : > { %v1566_v7 = vadd.f32 %v11320_v29, %v1297_v1  ;;  %v1299_v9 = vpop.f32.mrb[31].mxu1  ;;  %v11433_v12 = vmul.f32 0.088388346, %v1564_v60  ;;  %v11449_v29 = vrot.slane %v11313_v18, %v11429_v6 }
 0x24f   : > { %v1567_v11 = vadd.f32 %v11324_v31, %v1299_v9  ;;  %v11437_v14 = vmul.f32 0.088388346, %v1565_v0 }
 0x250   : > { %v11435_v13 = vmul.f32 0.088388346, %v1566_v7 }
 0x251   : > { %v11439_v15 = vmul.f32 0.088388346, %v1567_v11 }
 0x252   : > { %v1671_v33 = vpack.c.bf16 %v11435_v13, %v11433_v12 }
 0x253   : > { %v1336_v42 = vpop.f32.mrb[32].mxu1  ;;  %v14462_v28 = vpack.c.bf16 %v11439_v15, %v11437_v14 }
 0x254   : > { %v1338_v43 = vpop.f32.mrb[33].mxu1  ;;  %v1576_v46 = vadd.f32 %v11449_v29, %v1336_v42 }
 0x255   : > { %v1577_v44 = vadd.f32 %v11443_v24, %v1338_v43  ;;  %v1340_v45 = vpop.f32.mrb[34].mxu1 }
 0x256   : > { %v1578_v48 = vadd.f32 %v11449_v29, %v1340_v45  ;;  %v1342_v49 = vpop.f32.mrb[35].mxu1 }
 0x257   : > { %v1579_v52 = vadd.f32 %v11443_v24, %v1342_v49 }
 0x258   : > { %v1672_v60 = vpack.c.bf16 %v1578_v48, %v1576_v46 }
 0x259   : > { %v11457_v61 = vpack.c.bf16 %v1579_v52, %v1577_v44 }
 0x25a   : > { %9070 = vmatprep.subr.bf16.mxu1 %v1672_v60 }
 0x25b   : > { %v1346_v0 = vpop.f32.mrb[36].mxu1  ;;  %9071 = vmatpush3.bf16.xpose.msra.mxu1 %v1672_v60 }
 0x25c   : > { %v1348_v1 = vpop.f32.mrb[37].mxu1  ;;  %v1580_v11 = vadd.f32 %v11449_v29, %v1346_v0 }
 0x25d   : > { %v1581_v7 = vadd.f32 %v11443_v24, %v1348_v1  ;;  %v1350_v9 = vpop.f32.mrb[38].mxu1 }
 0x25e   : > { %v1582_v43 = vadd.f32 %v11449_v29, %v1350_v9  ;;  %v1352_v42 = vpop.f32.mrb[39].mxu1 }
 0x25f   : > { %v1583_v45 = vadd.f32 %v11443_v24, %v1352_v42 }
 0x260   : > { %v1673_v58 = vpack.c.bf16 %v1582_v43, %v1580_v11 }
 0x261   : > { %v11463_v40 = vpack.c.bf16 %v1583_v45, %v1581_v7 }
 0x262   : > { %9072 = vmatprep.subr.bf16.mxu1 %v1673_v58 }
 0x263   : > { %v1356_v44 = vpop.f32.mrb[40].mxu1  ;;  %9073 = vmatpush3.bf16.xpose.msra.mxu1 %v1673_v58 }
 0x264   : > { %v1358_v46 = vpop.f32.mrb[41].mxu1  ;;  %v1584_v52 = vadd.f32 %v11449_v29, %v1356_v44 }
 0x265   : > { %v1585_v48 = vadd.f32 %v11443_v24, %v1358_v46  ;;  %v1360_v49 = vpop.f32.mrb[42].mxu1 }
 0x266   : > { %v1586_v60 = vadd.f32 %v11449_v29, %v1360_v49  ;;  %v1362_v0 = vpop.f32.mrb[43].mxu1 }
 0x267   : > { %v1587_v1 = vadd.f32 %v11443_v24, %v1362_v0 }
 0x268   : > { %v1674_v9 = vpack.c.bf16 %v1586_v60, %v1584_v52 }
 0x269   : > { %v11469_v23 = vpack.c.bf16 %v1587_v1, %v1585_v48 }
 0x26a   : > { %9074 = vmatprep.subr.bf16.mxu1 %v1674_v9 }
 0x26b   : > { %v1366_v7 = vpop.f32.mrb[44].mxu1  ;;  %9075 = vmatpush3.bf16.xpose.msra.mxu1 %v1674_v9 }
 0x26c   : > { %v1368_v11 = vpop.f32.mrb[45].mxu1  ;;  %v1588_v42 = vadd.f32 %v11449_v29, %v1366_v7 }
 0x26d   : > { %v1589_v58 = vadd.f32 %v11443_v24, %v1368_v11  ;;  %v1370_v43 = vpop.f32.mrb[46].mxu1 }
 0x26e   : > { %v1590_v45 = vadd.f32 %v11449_v29, %v1370_v43  ;;  %v1372_v44 = vpop.f32.mrb[47].mxu1 }
 0x26f   : > { %v1591_v46 = vadd.f32 %v11443_v24, %v1372_v44 }
 0x270   : > { %v1675_v49 = vpack.c.bf16 %v1590_v45, %v1588_v42 }
 0x271   : > { %v11475_v5 = vpack.c.bf16 %v1591_v46, %v1589_v58 }
 0x272   : > { %9076 = vmatprep.subr.bf16.mxu1 %v1675_v49 }
 0x273   : > { %v1376_v48 = vpop.f32.mrb[48].mxu1  ;;  %9077 = vmatpush3.bf16.xpose.msra.mxu1 %v1675_v49 }
 0x274   : > { %v1378_v52 = vpop.f32.mrb[49].mxu1  ;;  %v1592_v0 = vadd.f32 %v11449_v29, %v1376_v48 }
 0x275   : > { %v1380_v60 = vpop.f32.mrb[50].mxu1  ;;  %v1593_v7 = vadd.f32 %v11443_v24, %v1378_v52 }
 0x276   : > { %v1594_v1 = vadd.f32 %v11449_v29, %v1380_v60  ;;  %v1382_v9 = vpop.f32.mrb[51].mxu1 }
 0x277   : > { %v1595_v11 = vadd.f32 %v11443_v24, %v1382_v9 }
 0x278   : > { %v1676_v43 = vpack.c.bf16 %v1594_v1, %v1592_v0 }
 0x279   : > { %v2185_v31 = vpack.c.bf16 %v1595_v11, %v1593_v7 }
 0x27a   : > { %9079 = vmatmul.mubr.bf16.vlgmr.msra.gmra.mrb[96].mxu1 %v1665_v22  ;;  %9086 = vmatprep.subr.bf16.mxu1 %v1676_v43 }
 0x27b   : > { %v1386_v58 = vpop.f32.mrb[52].mxu1  ;;  %9082 = vmatprep.mubr.bf16.mxu1 %v1666_v38  ;;  %9087 = vmatpush3.bf16.xpose.msra.mxu1 %v1676_v43 }
 0x27c   : > { %9150 = vmatprep.subr.bf16.mxu0 %v2185_v31  ;;  %v1388_v42 = vpop.f32.mrb[53].mxu1  ;;  %v1596_v44 = vadd.f32 %v11449_v29, %v1386_v58 }
 0x27d   : > { %9151 = vmatpush3.bf16.xpose.msra.mxu0 %v2185_v31  ;;  %v1390_v45 = vpop.f32.mrb[54].mxu1  ;;  %v1597_v48 = vadd.f32 %v11443_v24, %v1388_v42 }
 0x27e   : > { %v1598_v46 = vadd.f32 %v11449_v29, %v1390_v45  ;;  %v1392_v49 = vpop.f32.mrb[55].mxu1  ;;  %v11510_v45 = vrot.slane %v11313_v18, %v11502_v63 }
 0x27f   : > { %v1599_v16 = vadd.f32 %v11443_v24, %v1392_v49 }
 0x280   : > { %v1677_v17 = vpack.c.bf16 %v1598_v46, %v1596_v44  ;;  %v11514_v46 = vrot.slane %v11316_v20, %v11502_v63 }
 0x281   : > { %v2186_v22 = vpack.c.bf16 %v1599_v16, %v1597_v48 }
 0x282   : > { %9083 = vmatmul.mubr.bf16.gmra.mrb[100].mxu1 %v1667_v57  ;;  %9088 = vmatprep.subr.bf16.mxu1 %v1677_v17 }
 0x283   : > { %v1396_v34 = vpop.f32.mrb[56].mxu1  ;;  %9089 = vmatpush3.bf16.xpose.msra.mxu1 %v1677_v17  ;;  %9094 = vmatprep.mubr.bf16.mxu1 %v1668_v4 }
 0x284   : > { %9152 = vmatprep.subr.bf16.mxu0 %v2186_v22  ;;  %v1398_v35 = vpop.f32.mrb[57].mxu1  ;;  %v1600_v31 = vadd.f32 %v11449_v29, %v1396_v34 }
 0x285   : > { %9153 = vmatpush3.bf16.xpose.msra.mxu0 %v2186_v22  ;;  %v1400_v38 = vpop.f32.mrb[58].mxu1  ;;  %v1601_v0 = vadd.f32 %v11443_v24, %v1398_v35 }
 0x286   : > { %v1602_v52 = vadd.f32 %v11449_v29, %v1400_v38  ;;  %v1402_v60 = vpop.f32.mrb[59].mxu1 }
 0x287   : > { %v1603_v53 = vadd.f32 %v11443_v24, %v1402_v60 }
 0x288   : > { %v1678_v54 = vpack.c.bf16 %v1602_v52, %v1600_v31 }
 0x289   : > { %v2187_v57 = vpack.c.bf16 %v1603_v53, %v1601_v0 }
 0x28a   : > { %9090 = vmatprep.subr.bf16.mxu1 %v1678_v54 }
 0x28b   : > { %v1406_v1 = vpop.f32.mrb[60].mxu1  ;;  %9091 = vmatpush3.bf16.xpose.msra.mxu1 %v1678_v54  ;;  %9154 = vmatprep.subr.bf16.mxu0 %v2187_v57 }
 0x28c   : > { %v1408_v62 = vpop.f32.mrb[61].mxu1  ;;  %v1604_v9 = vadd.f32 %v11449_v29, %v1406_v1 }
 0x28d   : > { %9155 = vmatpush3.bf16.xpose.msra.mxu0 %v2187_v57  ;;  %v1410_v4 = vpop.f32.mrb[62].mxu1  ;;  %v1605_v43 = vadd.f32 %v11443_v24, %v1408_v62 }
 0x28e   : > { %v1606_v7 = vadd.f32 %v11449_v29, %v1410_v4  ;;  %v1412_v11 = vpop.f32.mrb[63].mxu1 }
 0x28f   : > { %v1607_v58 = vadd.f32 %v11443_v24, %v1412_v11 }
 0x290   : > { %v1679_v42 = vpack.c.bf16 %v1606_v7, %v1604_v9 }
 0x291   : > { %v2188_v44 = vpack.c.bf16 %v1607_v58, %v1605_v43 }
 0x292   : > { %9092 = vmatprep.subr.bf16.mxu1 %v1679_v42 }
 0x293   : > { %9093 = vmatpush3.bf16.xpose.msra.mxu1 %v1679_v42  ;;  %9156 = vmatprep.subr.bf16.mxu0 %v2188_v44  ;;  %v1449_v49 = vpop.f32.mrb[64].mxu1 }
 0x294   : > { %v1616_v29 = vadd.f32 %v11510_v45, %v1449_v49  ;;  %v1451_v48 = vpop.f32.mrb[65].mxu1 }
 0x295   : > { %9157 = vmatpush3.bf16.xpose.msra.mxu0 %v2188_v44  ;;  %v1617_v24 = vadd.f32 %v11514_v46, %v1451_v48  ;;  %v1453_v16 = vpop.f32.mrb[66].mxu1 }
 0x296   : > { %v1618_v17 = vadd.f32 %v11510_v45, %v1453_v16  ;;  %v1455_v18 = vpop.f32.mrb[67].mxu1 }
 0x297   : > { %v1619_v22 = vadd.f32 %v11514_v46, %v1455_v18 }
 0x298   : > { %v1995_v34 = vpack.c.bf16 %v1618_v17, %v1616_v29 }
 0x299   : > { %v11520_v35 = vpack.c.bf16 %v1619_v22, %v1617_v24 }
 0x29a   : > { %9095 = vmatmul.mubr.bf16.vlgmr.msra.gmra.mrb[104].mxu1 %v1669_v30  ;;  %9102 = vmatprep.subr.bf16.mxu1 %v1995_v34 }
 0x29b   : > { %9098 = vmatprep.mubr.bf16.mxu1 %v1670_v41  ;;  %v1459_v20 = vpop.f32.mrb[68].mxu1  ;;  %9103 = vmatpush3.bf16.msra.mxu1 %v1995_v34 }
 0x29c   : > { %9159 = vmatmul.mubr.bf16.vlgmr.msra.gmra.mrb[0].mxu0 %v2178_v32  ;;  %v1620_v38 = vadd.f32 %v11510_v45, %v1459_v20  ;;  %v1461_v31 = vpop.f32.mrb[69].mxu1 }
 0x29d   : > { %9162 = vmatprep.mubr.bf16.mxu0 %v2179_v50  ;;  %v1621_v25 = vadd.f32 %v11514_v46, %v1461_v31  ;;  %v1463_v26 = vpop.f32.mrb[70].mxu1 }
 0x29e   : > { %v1622_v30 = vadd.f32 %v11510_v45, %v1463_v26  ;;  %v1465_v51 = vpop.f32.mrb[71].mxu1 }
 0x29f   : > { %v1623_v59 = vadd.f32 %v11514_v46, %v1465_v51 }
 0x2a0   : > { %v1996_v41 = vpack.c.bf16 %v1622_v30, %v1620_v38 }
 0x2a1   : > { %v11538_v52 = vpack.c.bf16 %v1623_v59, %v1621_v25 }
 0x2a2   : > { %9099 = vmatmul.mubr.bf16.gmra.mrb[108].mxu1 %v1671_v33  ;;  %9104 = vmatprep.subr.bf16.mxu1 %v1996_v41 }
 0x2a3   : > { %v1469_v27 = vpop.f32.mrb[72].mxu1  ;;  %9105 = vmatpush3.bf16.msra.mxu1 %v1996_v41 }
 0x2a4   : > { %9163 = vmatmul.mubr.bf16.gmra.mrb[4].mxu0 %v14462_v28  ;;  %v1624_v32 = vadd.f32 %v11510_v45, %v1469_v27  ;;  %v1471_v47 = vpop.f32.mrb[73].mxu1 }
 0x2a5   : > { %v1625_v39 = vadd.f32 %v11514_v46, %v1471_v47  ;;  %v1473_v50 = vpop.f32.mrb[74].mxu1 }
 0x2a6   : > { %v1626_v60 = vadd.f32 %v11510_v45, %v1473_v50  ;;  %v1475_v0 = vpop.f32.mrb[75].mxu1 }
 0x2a7   : > { %v1627_v53 = vadd.f32 %v11514_v46, %v1475_v0 }
 0x2a8   : > { %v1997_v12 = vpack.c.bf16 %v1626_v60, %v1624_v32 }
 0x2a9   : > { %v11550_v13 = vpack.c.bf16 %v1627_v53, %v1625_v39 }
 0x2aa   : > { %9106 = vmatprep.subr.bf16.mxu1 %v1997_v12 }
 0x2ab   : > { %v1479_v33 = vpop.f32.mrb[76].mxu1  ;;  %9107 = vmatpush3.bf16.msra.mxu1 %v1997_v12 }
 0x2ac   : > { %v1628_v14 = vadd.f32 %v11510_v45, %v1479_v33  ;;  %v1481_v15 = vpop.f32.mrb[77].mxu1 }
 0x2ad   : > { %v1629_v54 = vadd.f32 %v11514_v46, %v1481_v15  ;;  %v1483_v57 = vpop.f32.mrb[78].mxu1 }
 0x2ae   : > { %v1630_v1 = vadd.f32 %v11510_v45, %v1483_v57  ;;  %v1485_v62 = vpop.f32.mrb[79].mxu1 }
 0x2af   : > { %v1631_v4 = vadd.f32 %v11514_v46, %v1485_v62 }
 0x2b0   : > { %v1998_v9 = vpack.c.bf16 %v1630_v1, %v1628_v14 }
 0x2b1   : > { %v11556_v7 = vpack.c.bf16 %v1631_v4, %v1629_v54 }
 0x2b2   : > { %9108 = vmatprep.subr.bf16.mxu1 %v1998_v9 }
 0x2b3   : > { %v1489_v11 = vpop.f32.mrb[80].mxu1  ;;  %9109 = vmatpush3.bf16.msra.mxu1 %v1998_v9 }
 0x2b4   : > { %v1632_v43 = vadd.f32 %v11510_v45, %v1489_v11  ;;  %v1491_v58 = vpop.f32.mrb[81].mxu1 }
 0x2b5   : > { %v1633_v42 = vadd.f32 %v11514_v46, %v1491_v58  ;;  %v1493_v44 = vpop.f32.mrb[82].mxu1 }
 0x2b6   : > { %v1634_v49 = vadd.f32 %v11510_v45, %v1493_v44  ;;  %v1495_v29 = vpop.f32.mrb[83].mxu1 }
 0x2b7   : > { %v1635_v48 = vadd.f32 %v11514_v46, %v1495_v29 }
 0x2b8   : > { %v11562_v24 = vpack.c.bf16 %v1634_v49, %v1632_v43 }
 0x2b9   : > { %v2507_v16 = vpack.c.bf16 %v1635_v48, %v1633_v42 }
 0x2ba   : > { %9118 = vmatprep.subr.bf16.mxu1 %v11562_v24 }
 0x2bb   : > { %v1499_v17 = vpop.f32.mrb[84].mxu1  ;;  %9182 = vmatprep.subr.bf16.mxu0 %v2507_v16 }
 0x2bc   : > { %v1636_v18 = vadd.f32 %v11510_v45, %v1499_v17  ;;  %v1501_v22 = vpop.f32.mrb[85].mxu1  ;;  %9183 = vmatpush3.bf16.msra.mxu0 %v2507_v16 }
 0x2bd   : > { %v1637_v34 = vadd.f32 %v11514_v46, %v1501_v22  ;;  %v1503_v20 = vpop.f32.mrb[86].mxu1 }
 0x2be   : > { %v1638_v38 = vadd.f32 %v11510_v45, %v1503_v20  ;;  %v1505_v31 = vpop.f32.mrb[87].mxu1 }
 0x2bf   : > { %v1639_v25 = vadd.f32 %v11514_v46, %v1505_v31 }
 0x2c0   : > { %v11569_v26 = vpack.c.bf16 %v1638_v38, %v1636_v18 }
 0x2c1   : > { %v2508_v30 = vpack.c.bf16 %v1639_v25, %v1637_v34 }
 0x2c3   : > { %v1509_v51 = vpop.f32.mrb[88].mxu1  ;;  %9184 = vmatprep.subr.bf16.mxu0 %v2508_v30 }
 0x2c4   : > { %v1640_v59 = vadd.f32 %v11510_v45, %v1509_v51  ;;  %v1511_v41 = vpop.f32.mrb[89].mxu1  ;;  %9185 = vmatpush3.bf16.msra.mxu0 %v2508_v30 }
 0x2c5   : > { %v1641_v27 = vadd.f32 %v11514_v46, %v1511_v41  ;;  %v1513_v28 = vpop.f32.mrb[90].mxu1 }
 0x2c6   : > { %v1642_v32 = vadd.f32 %v11510_v45, %v1513_v28  ;;  %v1515_v47 = vpop.f32.mrb[91].mxu1 }
 0x2c7   : > { %v1643_v39 = vadd.f32 %v11514_v46, %v1515_v47 }
 0x2c8   : > { %v11575_v50 = vpack.c.bf16 %v1642_v32, %v1640_v59 }
 0x2c9   : > { %v2509_v60 = vpack.c.bf16 %v1643_v39, %v1641_v27 }
 0x2cb   : > { %v1519_v0 = vpop.f32.mrb[92].mxu1  ;;  %9186 = vmatprep.subr.bf16.mxu0 %v2509_v60 }
 0x2cc   : > { %v1644_v53 = vadd.f32 %v11510_v45, %v1519_v0  ;;  %v1521_v12 = vpop.f32.mrb[93].mxu1  ;;  %9187 = vmatpush3.bf16.msra.mxu0 %v2509_v60 }
 0x2cd   : > { %v1645_v33 = vadd.f32 %v11514_v46, %v1521_v12  ;;  %v1523_v14 = vpop.f32.mrb[94].mxu1 }
 0x2ce   : > { %v1646_v15 = vadd.f32 %v11510_v45, %v1523_v14  ;;  %v1525_v54 = vpop.f32.mrb[95].mxu1 }
 0x2cf   : > { %v1647_v57 = vadd.f32 %v11514_v46, %v1525_v54 }
 0x2d0   : > { %v11581_v1 = vpack.c.bf16 %v1646_v15, %v1644_v53 }
 0x2d1   : > { %v2510_v62 = vpack.c.bf16 %v1647_v57, %v1645_v33 }
 0x2d3   : > { %9188 = vmatprep.subr.bf16.mxu0 %v2510_v62 }
 0x2d4   : > { %9189 = vmatpush3.bf16.msra.mxu0 %v2510_v62 }
 0x34d   : > { %v9080_v4 = vpop.f32.mrb[96].mxu1 }
 0x34e   : > { %v1714_v9 = vpop.f32.mrb[97].mxu1  ;;  %v1817_v11 = vsel %vm1810_vm0, %v9080_v4, -inf }
 0x34f   : > { %1818 = vmax.xlane.f32.xlu1 %v1817_v11  ;;  %v11584_v43 = vpop.f32.mrb[98].mxu1  ;;  %v1811_v58 = vsel %vm1810_vm0, %v1714_v9, -inf }
 0x350   : > { %1812 = vmax.xlane.f32.xlu0 %v1811_v58  ;;  %v1717_v45 = vpop.f32.mrb[99].mxu1  ;;  %v1820_v46 = vsel %vm1810_vm0, %v11584_v43, -inf }
 0x351   : > { %v1814_v42 = vsel %vm1810_vm0, %v1717_v45, -inf }
 0x353   : > { %1821 = vmax.xlane.f32.xlu1 %v1820_v46 }
 0x354   : > { %1815 = vmax.xlane.f32.xlu0 %v1814_v42 }
 0x355   : > { %v11590_v44 = vpop.f32.mrb[100].mxu1 }
 0x356   : > { %v1730_v49 = vpop.f32.mrb[101].mxu1  ;;  %v1829_v18 = vsel %vm1810_vm0, %v11590_v44, -inf }
 0x357   : > { %v11592_v29 = vpop.f32.mrb[102].mxu1  ;;  %v1823_v48 = vsel %vm1810_vm0, %v1730_v49, -inf }
 0x358   : > { %1824 = vmax.xlane.f32.xlu0 %v1823_v48  ;;  %v1733_v16 = vpop.f32.mrb[103].mxu1  ;;  %v1832_v22 = vsel %vm1810_vm0, %v11592_v29, -inf }
 0x359   : > { %v1826_v17 = vsel %vm1810_vm0, %v1733_v16, -inf }
 0x35a   : > { %1827 = vmax.xlane.f32.xlu1 %v1826_v17 }
 0x35c   : > { %1830 = vmax.xlane.f32.xlu0 %v1829_v18 }
 0x35e   : > { %1833 = vmax.xlane.f32.xlu1 %v1832_v22 }
 0x36d   : > { %v11600_v34 = vpop.f32.mrb[104].mxu1 }
 0x36e   : > { %v11602_v20 = vpop.f32.mrb[105].mxu1  ;;  %v1841_v28 = vsel %vm1810_vm0, %v11600_v34, -inf }
 0x36f   : > { %v11604_v38 = vpop.f32.mrb[0].mxu0  ;;  %v11606_v31 = vpop.f32.mrb[106].mxu1  ;;  %v1835_v25 = vsel %vm1810_vm0, %v11602_v20, -inf }
 0x370   : > { %v11610_v30 = vpop.f32.mrb[1].mxu0  ;;  %1836 = vmax.xlane.f32.xlu0 %v1835_v25  ;;  %v11612_v51 = vpop.f32.mrb[107].mxu1  ;;  %v1844_v47 = vsel %vm1810_vm0, %v11606_v31, -inf }
 0x371   : > { %v11614_v59 = vpop.f32.mrb[2].mxu0  ;;  %v1838_v41 = vsel %vm1810_vm0, %v11612_v51, -inf }
 0x372   : > { %v11618_v27 = vpop.f32.mrb[3].mxu0  ;;  %1839 = vmax.xlane.f32.xlu1 %v1838_v41 }
 0x374   : > { %1842 = vmax.xlane.f32.xlu0 %v1841_v28 }
 0x375   : > { %v11622_v32 = vpop.f32.mrb[108].mxu1 }
 0x376   : > { %1845 = vmax.xlane.f32.xlu1 %v1844_v47  ;;  %v11626_v39 = vpop.f32.mrb[109].mxu1  ;;  %v1853_v57 = vsel %vm1810_vm0, %v11622_v32, -inf }
 0x377   : > { %v11628_v60 = vpop.f32.mrb[4].mxu0  ;;  %v11630_v0 = vpop.f32.mrb[110].mxu1  ;;  %v1847_v53 = vsel %vm1810_vm0, %v11626_v39, -inf }
 0x378   : > { %v11634_v12 = vpop.f32.mrb[5].mxu0  ;;  %1848 = vmax.xlane.f32.xlu0 %v1847_v53  ;;  %v11636_v33 = vpop.f32.mrb[111].mxu1  ;;  %v1856_v62 = vsel %vm1810_vm0, %v11630_v0, -inf }
 0x379   : > { %v11638_v14 = vpop.f32.mrb[6].mxu0  ;;  %v1850_v15 = vsel %vm1810_vm0, %v11636_v33, -inf }
 0x37a   : > { %v11642_v54 = vpop.f32.mrb[7].mxu0  ;;  %1851 = vmax.xlane.f32.xlu1 %v1850_v15 }
 0x37c   : > { %1854 = vmax.xlane.f32.xlu0 %v1853_v57 }
 0x37e   : > { %1857 = vmax.xlane.f32.xlu1 %v1856_v62 }
 0x3dc   : > { %v1819_v11 = vpop.xlane.xlu1 %1818 }
 0x3dd   : > { %v1861_v58 = vsub.f32 %v9080_v4, %v1819_v11  ;;  %v1813_v46 = vpop.xlane.xlu0 %1812 }
 0x3de   : > { %v1859_v42 = vsub.f32 %v1714_v9, %v1813_v46 }
 0x3df   : > { %v1879_v48 = vmul.f32 1.442695, %v1861_v58 }
 0x3e0   : > { %v1875_v17 = vmul.f32 1.442695, %v1859_v42  ;;  %v1822_v18 = vpop.xlane.xlu1 %1821 }
 0x3e1   : > { %v1862_v22 = vsub.f32 %v11584_v43, %v1822_v18  ;;  %v1816_v25 = vpop.xlane.xlu0 %1815 }
 0x3e2   : > { %10093 = vpow2.f32 %v1875_v17  ;;  %v1860_v41 = vsub.f32 %v1717_v45, %v1816_v25 }
 0x3e3   : > { %10095 = vpow2.f32 %v1879_v48  ;;  %v1881_v28 = vmul.f32 1.442695, %v1862_v22 }
 0x3e4   : > { %v1877_v47 = vmul.f32 1.442695, %v1860_v41 }
 0x3e5   : > { %v1825_v53 = vpop.xlane.xlu0 %1824 }
 0x3e6   : > { %10097 = vpow2.f32 %v1877_v47  ;;  %v1863_v15 = vsub.f32 %v1730_v49, %v1825_v53 }
 0x3e7   : > { %v1828_v57 = vpop.xlane.xlu1 %1827  ;;  %10099 = vpow2.f32 %v1881_v28 }
 0x3e8   : > { %v1883_v62 = vmul.f32 1.442695, %v1863_v15  ;;  %v1864_v4 = vsub.f32 %v1733_v16, %v1828_v57 }
 0x3e9   : > { %v1831_v11 = vpop.xlane.xlu0 %1830 }
 0x3ea   : > { %10101 = vpow2.f32 %v1883_v62  ;;  %v1885_v9 = vmul.f32 1.442695, %v1864_v4  ;;  %v1865_v58 = vsub.f32 %v11590_v44, %v1831_v11 }
 0x3eb   : > { %v1834_v46 = vpop.xlane.xlu1 %1833 }
 0x3ec   : > { %v11650_v43 = vpop.eup %10093  ;;  %10103 = vpow2.f32 %v1885_v9  ;;  %v1887_v45 = vmul.f32 1.442695, %v1865_v58  ;;  %v1866_v42 = vsub.f32 %v11592_v29, %v1834_v46 }
 0x3ed   : > { %v1907_v48 = vsel %vm1810_vm0, %v11650_v43, 0.0  ;;  %v11655_v49 = vpop.eup %10095 }
 0x3ee   : > { %10105 = vpow2.f32 %v1887_v45  ;;  %v1889_v17 = vmul.f32 1.442695, %v1866_v42  ;;  %1908 = vadd.xlane.f32.xlu0 %v1907_v48  ;;  %v1913_v44 = vsel %vm1810_vm0, %v11655_v49, 0.0 }
 0x3f0   : > { %v11657_v16 = vpop.eup %10097  ;;  %10107 = vpow2.f32 %v1889_v17 }
 0x3f1   : > { %v1910_v18 = vsel %vm1810_vm0, %v11657_v16, 0.0  ;;  %v11663_v22 = vpop.eup %10099 }
 0x3f2   : > { %1914 = vadd.xlane.f32.xlu0 %v1913_v44  ;;  %1911 = vadd.xlane.f32.xlu1 %v1910_v18  ;;  %v1916_v41 = vsel %vm1810_vm0, %v11663_v22, 0.0 }
 0x3f4   : > { %v11665_v29 = vpop.eup %10101 }
 0x3f5   : > { %v1919_v25 = vsel %vm1810_vm0, %v11665_v29, 0.0 }
 0x3f6   : > { %v11671_v28 = vpop.eup %10103  ;;  %1920 = vadd.xlane.f32.xlu0 %v1919_v25  ;;  %1917 = vadd.xlane.f32.xlu1 %v1916_v41 }
 0x3f7   : > { %v1922_v15 = vsel %vm1810_vm0, %v11671_v28, 0.0 }
 0x3f8   : > { %v11673_v47 = vpop.eup %10105 }
 0x3f9   : > { %v1925_v53 = vsel %vm1810_vm0, %v11673_v47, 0.0 }
 0x3fa   : > { %v11679_v57 = vpop.eup %10107  ;;  %1926 = vadd.xlane.f32.xlu0 %v1925_v53  ;;  %1923 = vadd.xlane.f32.xlu1 %v1922_v15 }
 0x3fb   : > { %v1928_v4 = vsel %vm1810_vm0, %v11679_v57, 0.0 }
 0x3fd   : > { %v1837_v62 = vpop.xlane.xlu0 %1836 }
 0x3fe   : > { %v1867_v11 = vsub.f32 %v11602_v20, %v1837_v62  ;;  %1929 = vadd.xlane.f32.xlu1 %v1928_v4 }
 0x3ff   : > { %v1840_v9 = vpop.xlane.xlu1 %1839 }
 0x400   : > { %v1891_v58 = vmul.f32 1.442695, %v1867_v11  ;;  %v1868_v46 = vsub.f32 %v11612_v51, %v1840_v9 }
 0x401   : > { %v1843_v45 = vpop.xlane.xlu0 %1842 }
 0x402   : > { %10109 = vpow2.f32 %v1891_v58  ;;  %v1893_v42 = vmul.f32 1.442695, %v1868_v46  ;;  %v1869_v48 = vsub.f32 %v11600_v34, %v1843_v45 }
 0x403   : > { %v1846_v17 = vpop.xlane.xlu1 %1845 }
 0x404   : > { %10111 = vpow2.f32 %v1893_v42  ;;  %v1895_v44 = vmul.f32 1.442695, %v1869_v48  ;;  %v1870_v18 = vsub.f32 %v11606_v31, %v1846_v17 }
 0x405   : > { %v1849_v25 = vpop.xlane.xlu0 %1848 }
 0x406   : > { %10113 = vpow2.f32 %v1895_v44  ;;  %v1897_v41 = vmul.f32 1.442695, %v1870_v18  ;;  %v1871_v20 = vsub.f32 %v11626_v39, %v1849_v25 }
 0x407   : > { %v1852_v53 = vpop.xlane.xlu1 %1851 }
 0x408   : > { %10115 = vpow2.f32 %v1897_v41  ;;  %v1899_v15 = vmul.f32 1.442695, %v1871_v20  ;;  %v1872_v51 = vsub.f32 %v11636_v33, %v1852_v53 }
 0x409   : > { %v1855_v62 = vpop.xlane.xlu0 %1854 }
 0x40a   : > { %10117 = vpow2.f32 %v1899_v15  ;;  %v1901_v4 = vmul.f32 1.442695, %v1872_v51  ;;  %v1873_v34 = vsub.f32 %v11622_v32, %v1855_v62 }
 0x40b   : > { %v1858_v11 = vpop.xlane.xlu1 %1857 }
 0x40c   : > { %v11690_v9 = vpop.eup %10109  ;;  %10119 = vpow2.f32 %v1901_v4  ;;  %v1903_v31 = vmul.f32 1.442695, %v1873_v34  ;;  %v1874_v58 = vsub.f32 %v11630_v0, %v1858_v11 }
 0x40d   : > { %v1931_v39 = vsel %vm1810_vm0, %v11690_v9, 0.0 }
 0x40e   : > { %v11695_v46 = vpop.eup %10111  ;;  %10121 = vpow2.f32 %v1903_v31  ;;  %v1905_v45 = vmul.f32 1.442695, %v1874_v58  ;;  %1932 = vadd.xlane.f32.xlu0 %v1931_v39 }
 0x40f   : > { %v1934_v33 = vsel %vm1810_vm0, %v11695_v46, 0.0 }
 0x410   : > { %v11699_v42 = vpop.eup %10113  ;;  %10123 = vpow2.f32 %v1905_v45  ;;  %1935 = vadd.xlane.f32.xlu1 %v1934_v33 }
 0x411   : > { %v1937_v32 = vsel %vm1810_vm0, %v11699_v42, 0.0 }
 0x412   : > { %v11703_v48 = vpop.eup %10115  ;;  %1938 = vadd.xlane.f32.xlu0 %v1937_v32 }
 0x413   : > { %v1940_v0 = vsel %vm1810_vm0, %v11703_v48, 0.0 }
 0x414   : > { %v11707_v17 = vpop.eup %10117  ;;  %1941 = vadd.xlane.f32.xlu1 %v1940_v0 }
 0x415   : > { %v1943_v44 = vsel %vm1810_vm0, %v11707_v17, 0.0 }
 0x416   : > { %v11711_v18 = vpop.eup %10119  ;;  %1944 = vadd.xlane.f32.xlu0 %v1943_v44 }
 0x417   : > { %v1946_v25 = vsel %vm1810_vm0, %v11711_v18, 0.0 }
 0x418   : > { %v11715_v41 = vpop.eup %10121  ;;  %1947 = vadd.xlane.f32.xlu1 %v1946_v25 }
 0x419   : > { %v1949_v20 = vsel %vm1810_vm0, %v11715_v41, 0.0 }
 0x41a   : > { %v11719_v53 = vpop.eup %10123  ;;  %1950 = vadd.xlane.f32.xlu0 %v1949_v20 }
 0x41b   : > { %v1952_v15 = vsel %vm1810_vm0, %v11719_v53, 0.0 }
 0x41c   : > { %1953 = vadd.xlane.f32.xlu1 %v1952_v15 }
 0x47b   : > { %v1909_v51 = vpop.xlane.xlu0 %1908 }
 0x47c   : > { %10125 = vrcp.f32 %v1909_v51 }
 0x47f   : > { %v1915_v62 = vpop.xlane.xlu0 %1914  ;;  %v1912_v4 = vpop.xlane.xlu1 %1911 }
 0x480   : > { %10127 = vrcp.f32 %v1912_v4 }
 0x481   : > { %10129 = vrcp.f32 %v1915_v62 }
 0x483   : > { %v1921_v34 = vpop.xlane.xlu0 %1920  ;;  %v1918_v11 = vpop.xlane.xlu1 %1917 }
 0x484   : > { %10131 = vrcp.f32 %v1918_v11 }
 0x485   : > { %10133 = vrcp.f32 %v1921_v34 }
 0x486   : > { %v10126_v39 = vpop.eup %10125 }
 0x487   : > { %v1927_v31 = vpop.xlane.xlu0 %1926  ;;  %v1924_v58 = vpop.xlane.xlu1 %1923  ;;  %v1971_v32 = vmul.f32 %v10126_v39, %v11650_v43 }
 0x488   : > { %10135 = vrcp.f32 %v1924_v58 }
 0x489   : > { %10137 = vrcp.f32 %v1927_v31 }
 0x48a   : > { %v10128_v45 = vpop.eup %10127 }
 0x48b   : > { %v1930_v33 = vpop.xlane.xlu1 %1929  ;;  %v1972_v0 = vmul.f32 %v10128_v45, %v11657_v16  ;;  %v10130_v44 = vpop.eup %10129 }
 0x48c   : > { %10139 = vrcp.f32 %v1930_v33  ;;  %v1973_v15 = vmul.f32 %v10130_v44, %v11655_v49 }
 0x48d   : > { %v1987_v25 = vpack.c.bf16 %v1972_v0, %v1971_v32 }
 0x48e   : > { %v10132_v20 = vpop.eup %10131 }
 0x48f   : > { %v1974_v51 = vmul.f32 %v10132_v20, %v11663_v22  ;;  %9110 = vmatprep.mubr.msk.bf16.mxu1 %vm1810_vm0, %v1987_v25  ;;  %v10134_v62 = vpop.eup %10133 }
 0x490   : > { %v1975_v31 = vmul.f32 %v10134_v62, %v11665_v29 }
 0x491   : > { %v1988_v4 = vpack.c.bf16 %v1974_v51, %v1973_v15 }
 0x492   : > { %v10136_v34 = vpop.eup %10135 }
 0x493   : > { %v10138_v11 = vpop.eup %10137  ;;  %9111 = vmatmul.mubr.msk.bf16.vlgmr.msra.gmra.mrb[112].mxu1 %vm1810_vm0, %v1988_v4  ;;  %v1976_v43 = vmul.f32 %v10136_v34, %v11671_v28 }
 0x494   : > { %9119 = vmatpush3.bf16.msra.mxu1 %v11562_v24  ;;  %v1977_v22 = vmul.f32 %v10138_v11, %v11673_v47 }
 0x495   : > { %9120 = vmatprep.subr.bf16.mxu1 %v11569_v26  ;;  %v1989_v49 = vpack.c.bf16 %v1976_v43, %v1975_v31 }
 0x496   : > { %v10140_v16 = vpop.eup %10139 }
 0x497   : > { %v1978_v58 = vmul.f32 %v10140_v16, %v11679_v57  ;;  %9114 = vmatprep.mubr.msk.bf16.mxu1 %vm1810_vm0, %v1989_v49 }
 0x498   : > { %9121 = vmatpush3.bf16.msra.mxu1 %v11569_v26 }
 0x499   : > { %v1990_v39 = vpack.c.bf16 %v1978_v58, %v1977_v22  ;;  %9122 = vmatprep.subr.bf16.mxu1 %v11575_v50 }
 0x49b   : > { %v1933_v29 = vpop.xlane.xlu0 %1932  ;;  %9115 = vmatmul.mubr.msk.bf16.gmra.mrb[116].mxu1 %vm1810_vm0, %v1990_v39 }
 0x49c   : > { %10141 = vrcp.f32 %v1933_v29  ;;  %9123 = vmatpush3.bf16.msra.mxu1 %v11575_v50 }
 0x49d   : > { %v1936_v24 = vpop.xlane.xlu1 %1935  ;;  %9124 = vmatprep.subr.bf16.mxu1 %v11581_v1 }
 0x49e   : > { %10143 = vrcp.f32 %v1936_v24 }
 0x49f   : > { %v1939_v28 = vpop.xlane.xlu0 %1938 }
 0x4a0   : > { %10145 = vrcp.f32 %v1939_v28  ;;  %9125 = vmatpush3.bf16.msra.mxu1 %v11581_v1 }
 0x4a1   : > { %v1942_v47 = vpop.xlane.xlu1 %1941  ;;  %9134 = vmatprep.subr.bf16.mxu1 %v11457_v61 }
 0x4a2   : > { %10147 = vrcp.f32 %v1942_v47 }
 0x4a3   : > { %v1945_v26 = vpop.xlane.xlu0 %1944 }
 0x4a4   : > { %10149 = vrcp.f32 %v1945_v26 }
 0x4a5   : > { %v1948_v57 = vpop.xlane.xlu1 %1947 }
 0x4a6   : > { %v10142_v45 = vpop.eup %10141  ;;  %10151 = vrcp.f32 %v1948_v57 }
 0x4a7   : > { %v1951_v33 = vpop.xlane.xlu0 %1950  ;;  %v1979_v0 = vmul.f32 %v10142_v45, %v11690_v9 }
 0x4a8   : > { %v10144_v32 = vpop.eup %10143  ;;  %10153 = vrcp.f32 %v1951_v33 }
 0x4a9   : > { %v1954_v50 = vpop.xlane.xlu1 %1953  ;;  %v1980_v44 = vmul.f32 %v10144_v32, %v11695_v46 }
 0x4aa   : > { %v10146_v25 = vpop.eup %10145  ;;  %10155 = vrcp.f32 %v1954_v50 }
 0x4ab   : > { %v1991_v1 = vpack.c.bf16 %v1980_v44, %v1979_v0  ;;  %v1981_v15 = vmul.f32 %v10146_v25, %v11699_v42 }
 0x4ac   : > { %v10148_v20 = vpop.eup %10147 }
 0x4ad   : > { %v1982_v51 = vmul.f32 %v10148_v20, %v11703_v48  ;;  %9126 = vmatprep.mubr.msk.bf16.mxu1 %vm1810_vm0, %v1991_v1 }
 0x4ae   : > { %v10150_v62 = vpop.eup %10149 }
 0x4af   : > { %v1992_v4 = vpack.c.bf16 %v1982_v51, %v1981_v15  ;;  %v1983_v11 = vmul.f32 %v10150_v62, %v11707_v17  ;;  %v14463_v17 = vpack.c.bf16 %v11332_v3, %v11330_v2  ;;  %v14466_v2 = vpack.c.bf16 %v11378_v56, %v11376_v55 }
 0x4b0   : > { %v10152_v34 = vpop.eup %10151 }
 0x4b1   : > { %9127 = vmatmul.mubr.msk.bf16.vlgmr.msra.gmra.mrb[120].mxu1 %vm1810_vm0, %v1992_v4  ;;  %v1984_v9 = vmul.f32 %v10152_v34, %v11711_v18 }
 0x4b2   : > { %v10154_v46 = vpop.eup %10153  ;;  %9135 = vmatpush3.bf16.xpose.msra.mxu1 %v11457_v61  ;;  %v14464_v61 = vpack.c.bf16 %v11346_v21, %v11344_v19 }
 0x4b3   : > { %9136 = vmatprep.subr.bf16.mxu1 %v11463_v40  ;;  %v1993_v31 = vpack.c.bf16 %v1984_v9, %v1983_v11  ;;  %v1985_v48 = vmul.f32 %v10154_v46, %v11715_v41  ;;  %v2343_v11 = vsel %vm1810_vm0, %v11610_v30, -inf  ;;  %v2346_v9 = vsel %vm1810_vm0, %v11618_v27, -inf }
 0x4b4   : > { %v10156_v42 = vpop.eup %10155  ;;  %v2349_v46 = vsel %vm1810_vm0, %v11604_v38, -inf }
 0x4b5   : > { %9130 = vmatprep.mubr.msk.bf16.mxu1 %vm1810_vm0, %v1993_v31  ;;  %v1986_v43 = vmul.f32 %v10156_v42, %v11719_v53  ;;  %v2352_v31 = vsel %vm1810_vm0, %v11614_v59, -inf  ;;  %v2355_v42 = vsel %vm1810_vm0, %v11634_v12, -inf }
 0x4b7   : > { %v1994_v16 = vpack.c.bf16 %v1986_v43, %v1985_v48  ;;  %v2358_v48 = vsel %vm1810_vm0, %v11642_v54, -inf  ;;  %v2361_v43 = vsel %vm1810_vm0, %v11628_v60, -inf }
 0x4b9   : > { %9131 = vmatmul.mubr.msk.bf16.gmra.mrb[124].mxu1 %vm1810_vm0, %v1994_v16  ;;  %v2364_v16 = vsel %vm1810_vm0, %v11638_v14, -inf }
 0x4ba   : > { %9137 = vmatpush3.bf16.xpose.msra.mxu1 %v11463_v40  ;;  %9142 = vmatprep.mubr.bf16.mxu1 %v14463_v17  ;;  %v14465_v40 = vpack.c.bf16 %v11362_v37, %v11360_v36 }
 0x4bb   : > { %9138 = vmatprep.subr.bf16.mxu1 %v11469_v23 }
 0x4c2   : > { %9139 = vmatpush3.bf16.xpose.msra.mxu1 %v11469_v23 }
 0x4c3   : > { %9140 = vmatprep.subr.bf16.mxu1 %v11475_v5 }
 0x4ca   : > { %9141 = vmatpush3.bf16.xpose.msra.mxu1 %v11475_v5 }
 0x4cb   : > { %9166 = vmatprep.subr.bf16.mxu1 %v11520_v35 }
 0x4d1   : > { %9143 = vmatmul.mubr.bf16.vlgmr.msra.gmra.mrb[128].mxu1 %v14464_v61 }
 0x4d2   : > { %9146 = vmatprep.mubr.bf16.mxu1 %v14465_v40  ;;  %9167 = vmatpush3.bf16.msra.mxu1 %v11520_v35 }
 0x4d3   : > { %9168 = vmatprep.subr.bf16.mxu1 %v11538_v52 }
 0x4d6   : > { %9169 = vmatpush3.bf16.msra.mxu1 %v11538_v52 }
 0x4d7   : > { %9170 = vmatprep.subr.bf16.mxu1 %v11550_v13 }
 0x4d9   : > { %9147 = vmatmul.mubr.bf16.gmra.mrb[132].mxu1 %v14466_v2 }
 0x4da   : > { %9171 = vmatpush3.bf16.msra.mxu1 %v11550_v13 }
 0x4db   : > { %9172 = vmatprep.subr.bf16.mxu1 %v11556_v7 }
 0x4de   : > { %9173 = vmatpush3.bf16.msra.mxu1 %v11556_v7 }
 0x566   : > { %v11782_v3 = vpop.f32.mrb[112].mxu1 }
 0x567   : > { %v11784_v5 = vpop.f32.mrb[113].mxu1 }
 0x568   : > { %v11786_v19 = vpop.f32.mrb[114].mxu1 }
 0x569   : > { %v2667_v21 = vpack.c.bf16 %v11786_v19, %v11782_v3  ;;  %v11790_v23 = vpop.f32.mrb[115].mxu1 }
 0x56a   : > { %v2665_v36 = vpack.c.bf16 %v11790_v23, %v11784_v5 }
 0x56e   : > { %v11794_v37 = vpop.f32.mrb[116].mxu1 }
 0x56f   : > { %v11796_v55 = vpop.f32.mrb[117].mxu1 }
 0x570   : > { %v11798_v56 = vpop.f32.mrb[118].mxu1 }
 0x571   : > { %v2671_v35 = vpack.c.bf16 %v11798_v56, %v11794_v37  ;;  %v11802_v52 = vpop.f32.mrb[119].mxu1  ;;  %v12008_v37 = vld [vmem:[%s11027_s21] sm:$0xff]  ;;  %v12014_v56 = vld [vmem:[%s11027_s21 + $0x8] sm:$0xff] }
 0x572   : > { %v2669_v13 = vpack.c.bf16 %v11802_v52, %v11796_v55 }
 0x584   : > { %v11806_v7 = vpop.f32.mrb[120].mxu1 }
 0x585   : > { %v11808_v18 = vpop.f32.mrb[121].mxu1 }
 0x586   : > { %v11810_v41 = vpop.f32.mrb[122].mxu1 }
 0x587   : > { %v2675_v53 = vpack.c.bf16 %v11810_v41, %v11806_v7  ;;  %v11814_v49 = vpop.f32.mrb[123].mxu1 }
 0x588   : > { %v2673_v22 = vpack.c.bf16 %v11814_v49, %v11808_v18 }
 0x58c   : > { %v11818_v58 = vpop.f32.mrb[124].mxu1 }
 0x58d   : > { %v11820_v39 = vpop.f32.mrb[125].mxu1 }
 0x58e   : > { %v11822_v29 = vpop.f32.mrb[126].mxu1 }
 0x58f   : > { %v2679_v24 = vpack.c.bf16 %v11822_v29, %v11818_v58  ;;  %v11826_v28 = vpop.f32.mrb[127].mxu1 }
 0x590   : > { %v2677_v47 = vpack.c.bf16 %v11826_v28, %v11820_v39  ;;  %v10288_v39 = vld [vmem:[#allocation2 + $0x8] sm:$0xff]  ;;  %v10289_v28 = vld [vmem:[#allocation2 + $0x10] sm:$0xff] }
 0x5a4   : > { %v9144_v26 = vpop.f32.mrb[128].mxu1 }
 0x5a5   : > { %v2223_v57 = vpop.f32.mrb[129].mxu1  ;;  %v2325_v0 = vsel %vm1810_vm0, %v9144_v26, -inf }
 0x5a6   : > { %v9145_v45 = vpop.f32.mrb[130].mxu1  ;;  %v2319_v33 = vsel %vm1810_vm0, %v2223_v57, -inf }
 0x5a7   : > { %2320 = vmax.xlane.f32.xlu0 %v2319_v33  ;;  %v2226_v32 = vpop.f32.mrb[131].mxu1  ;;  %v2328_v25 = vsel %vm1810_vm0, %v9145_v45, -inf }
 0x5a8   : > { %v2322_v50 = vsel %vm1810_vm0, %v2226_v32, -inf }
 0x5a9   : > { %2323 = vmax.xlane.f32.xlu1 %v2322_v50 }
 0x5ab   : > { %2326 = vmax.xlane.f32.xlu0 %v2325_v0 }
 0x5ac   : > { %v9148_v44 = vpop.f32.mrb[132].mxu1 }
 0x5ad   : > { %2329 = vmax.xlane.f32.xlu1 %v2328_v25  ;;  %v2239_v1 = vpop.f32.mrb[133].mxu1  ;;  %v2337_v4 = vsel %vm1810_vm0, %v9148_v44, -inf }
 0x5ae   : > { %v9149_v20 = vpop.f32.mrb[134].mxu1  ;;  %v2331_v15 = vsel %vm1810_vm0, %v2239_v1, -inf }
 0x5af   : > { %2332 = vmax.xlane.f32.xlu0 %v2331_v15  ;;  %v2242_v51 = vpop.f32.mrb[135].mxu1  ;;  %v2340_v34 = vsel %vm1810_vm0, %v9149_v20, -inf }
 0x5b0   : > { %v2334_v62 = vsel %vm1810_vm0, %v2242_v51, -inf }
 0x5b1   : > { %2335 = vmax.xlane.f32.xlu1 %v2334_v62 }
 0x5b3   : > { %2338 = vmax.xlane.f32.xlu0 %v2337_v4 }
 0x5b5   : > { %2341 = vmax.xlane.f32.xlu1 %v2340_v34 }
 0x5b7   : > { %2344 = vmax.xlane.f32.xlu0 %v2343_v11 }
 0x5b9   : > { %2347 = vmax.xlane.f32.xlu1 %v2346_v9 }
 0x5bb   : > { %2350 = vmax.xlane.f32.xlu0 %v2349_v46 }
 0x5bd   : > { %2353 = vmax.xlane.f32.xlu1 %v2352_v31 }
 0x5bf   : > { %2356 = vmax.xlane.f32.xlu0 %v2355_v42 }
 0x5c1   : > { %2359 = vmax.xlane.f32.xlu1 %v2358_v48 }
 0x5c3   : > { %2362 = vmax.xlane.f32.xlu0 %v2361_v43 }
 0x5c5   : > { %2365 = vmax.xlane.f32.xlu1 %v2364_v16 }
 0x634   : > { %v2321_v17 = vpop.xlane.xlu0 %2320 }
 0x635   : > { %v2367_v61 = vsub.f32 %v2223_v57, %v2321_v17 }
 0x636   : > { %v2324_v40 = vpop.xlane.xlu1 %2323 }
 0x637   : > { %v2383_v2 = vmul.f32 1.442695, %v2367_v61  ;;  %v2368_v33 = vsub.f32 %v2226_v32, %v2324_v40 }
 0x638   : > { %v2327_v50 = vpop.xlane.xlu0 %2326 }
 0x639   : > { %10157 = vpow2.f32 %v2383_v2  ;;  %v2385_v0 = vmul.f32 1.442695, %v2368_v33  ;;  %v2369_v25 = vsub.f32 %v9144_v26, %v2327_v50 }
 0x63a   : > { %v2330_v15 = vpop.xlane.xlu1 %2329 }
 0x63b   : > { %10159 = vpow2.f32 %v2385_v0  ;;  %v2387_v62 = vmul.f32 1.442695, %v2369_v25  ;;  %v2370_v4 = vsub.f32 %v9145_v45, %v2330_v15 }
 0x63c   : > { %v2333_v34 = vpop.xlane.xlu0 %2332 }
 0x63d   : > { %10161 = vpow2.f32 %v2387_v62  ;;  %v2389_v11 = vmul.f32 1.442695, %v2370_v4  ;;  %v2371_v9 = vsub.f32 %v2239_v1, %v2333_v34 }
 0x63e   : > { %v2336_v46 = vpop.xlane.xlu1 %2335 }
 0x63f   : > { %10163 = vpow2.f32 %v2389_v11  ;;  %v2391_v31 = vmul.f32 1.442695, %v2371_v9  ;;  %v2372_v42 = vsub.f32 %v2242_v51, %v2336_v46 }
 0x640   : > { %v2339_v57 = vpop.xlane.xlu0 %2338 }
 0x641   : > { %10165 = vpow2.f32 %v2391_v31  ;;  %v2393_v48 = vmul.f32 1.442695, %v2372_v42  ;;  %v2373_v32 = vsub.f32 %v9148_v44, %v2339_v57 }
 0x642   : > { %v2342_v43 = vpop.xlane.xlu1 %2341 }
 0x643   : > { %v11854_v16 = vpop.eup %10157  ;;  %10167 = vpow2.f32 %v2393_v48  ;;  %v2395_v26 = vmul.f32 1.442695, %v2373_v32  ;;  %v2374_v17 = vsub.f32 %v9149_v20, %v2342_v43 }
 0x644   : > { %v2345_v61 = vpop.xlane.xlu0 %2344  ;;  %v2415_v45 = vsel %vm1810_vm0, %v11854_v16, 0.0 }
 0x645   : > { %v11858_v40 = vpop.eup %10159  ;;  %10169 = vpow2.f32 %v2395_v26  ;;  %v2397_v1 = vmul.f32 1.442695, %v2374_v17  ;;  %v2375_v51 = vsub.f32 %v11610_v30, %v2345_v61  ;;  %2416 = vadd.xlane.f32.xlu0 %v2415_v45 }
 0x646   : > { %v2348_v2 = vpop.xlane.xlu1 %2347  ;;  %v2418_v44 = vsel %vm1810_vm0, %v11858_v40, 0.0 }
 0x647   : > { %v11863_v33 = vpop.eup %10161  ;;  %10171 = vpow2.f32 %v2397_v1  ;;  %v2399_v50 = vmul.f32 1.442695, %v2375_v51  ;;  %v2376_v20 = vsub.f32 %v11618_v27, %v2348_v2  ;;  %2419 = vadd.xlane.f32.xlu1 %v2418_v44 }
 0x648   : > { %v2351_v0 = vpop.xlane.xlu0 %2350  ;;  %v2421_v25 = vsel %vm1810_vm0, %v11863_v33, 0.0 }
 0x649   : > { %v11868_v15 = vpop.eup %10163  ;;  %10173 = vpow2.f32 %v2399_v50  ;;  %v2401_v30 = vmul.f32 1.442695, %v2376_v20  ;;  %v2377_v62 = vsub.f32 %v11604_v38, %v2351_v0  ;;  %2422 = vadd.xlane.f32.xlu0 %v2421_v25 }
 0x64a   : > { %v2354_v4 = vpop.xlane.xlu1 %2353  ;;  %v2424_v34 = vsel %vm1810_vm0, %v11868_v15, 0.0 }
 0x64b   : > { %v11873_v11 = vpop.eup %10165  ;;  %10175 = vpow2.f32 %v2401_v30  ;;  %v2403_v27 = vmul.f32 1.442695, %v2377_v62  ;;  %v2378_v9 = vsub.f32 %v11614_v59, %v2354_v4  ;;  %2425 = vadd.xlane.f32.xlu1 %v2424_v34 }
 0x64c   : > { %v2357_v46 = vpop.xlane.xlu0 %2356  ;;  %v2427_v31 = vsel %vm1810_vm0, %v11873_v11, 0.0 }
 0x64d   : > { %v11878_v42 = vpop.eup %10167  ;;  %10177 = vpow2.f32 %v2403_v27  ;;  %v2405_v38 = vmul.f32 1.442695, %v2378_v9  ;;  %v2379_v57 = vsub.f32 %v11634_v12, %v2357_v46  ;;  %2428 = vadd.xlane.f32.xlu0 %v2427_v31 }
 0x64e   : > { %v2360_v48 = vpop.xlane.xlu1 %2359  ;;  %v2430_v32 = vsel %vm1810_vm0, %v11878_v42, 0.0 }
 0x64f   : > { %v11883_v43 = vpop.eup %10169  ;;  %10179 = vpow2.f32 %v2405_v38  ;;  %v2407_v59 = vmul.f32 1.442695, %v2379_v57  ;;  %v2380_v26 = vsub.f32 %v11642_v54, %v2360_v48  ;;  %2431 = vadd.xlane.f32.xlu1 %v2430_v32  ;;  %v9663_v32 = vld [vmem:[%s11013_s19 + $0x4] ss:$8 sps:$4 sm:$0xff]  }
 0x650   : > { %v2363_v17 = vpop.xlane.xlu0 %2362  ;;  %v2433_v61 = vsel %vm1810_vm0, %v11883_v43, 0.0  ;;  %2881 = vmatprep.subr.bf16.mxu1 %v9663_v32 }
 0x651   : > { %v11888_v45 = vpop.eup %10171  ;;  %10181 = vpow2.f32 %v2407_v59  ;;  %v2409_v12 = vmul.f32 1.442695, %v2380_v26  ;;  %v2381_v1 = vsub.f32 %v11628_v60, %v2363_v17  ;;  %2434 = vadd.xlane.f32.xlu0 %v2433_v61 }
 0x652   : > { %v2366_v51 = vpop.xlane.xlu1 %2365  ;;  %v2436_v2 = vsel %vm1810_vm0, %v11888_v45, 0.0 }
 0x653   : > { %v11893_v44 = vpop.eup %10173  ;;  %10183 = vpow2.f32 %v2409_v12  ;;  %v2411_v54 = vmul.f32 1.442695, %v2381_v1  ;;  %v2382_v50 = vsub.f32 %v11638_v14, %v2366_v51  ;;  %2437 = vadd.xlane.f32.xlu1 %v2436_v2 }
 0x654   : > { %v2439_v20 = vsel %vm1810_vm0, %v11893_v44, 0.0 }
 0x655   : > { %v11898_v0 = vpop.eup %10175  ;;  %10185 = vpow2.f32 %v2411_v54  ;;  %v2413_v25 = vmul.f32 1.442695, %v2382_v50  ;;  %2440 = vadd.xlane.f32.xlu0 %v2439_v20 }
 0x656   : > { %v2442_v60 = vsel %vm1810_vm0, %v11898_v0, 0.0 }
 0x657   : > { %v11902_v30 = vpop.eup %10177  ;;  %10187 = vpow2.f32 %v2413_v25  ;;  %2443 = vadd.xlane.f32.xlu1 %v2442_v60 }
 0x658   : > { %v2445_v62 = vsel %vm1810_vm0, %v11902_v30, 0.0 }
 0x659   : > { %v11906_v14 = vpop.eup %10179  ;;  %2446 = vadd.xlane.f32.xlu0 %v2445_v62 }
 0x65a   : > { %v2448_v4 = vsel %vm1810_vm0, %v11906_v14, 0.0 }
 0x65b   : > { %v11910_v34 = vpop.eup %10181  ;;  %2449 = vadd.xlane.f32.xlu1 %v2448_v4 }
 0x65c   : > { %v2451_v27 = vsel %vm1810_vm0, %v11910_v34, 0.0 }
 0x65d   : > { %v11914_v9 = vpop.eup %10183  ;;  %2452 = vadd.xlane.f32.xlu0 %v2451_v27 }
 0x65e   : > { %v2454_v46 = vsel %vm1810_vm0, %v11914_v9, 0.0 }
 0x65f   : > { %v11918_v31 = vpop.eup %10185  ;;  %2455 = vadd.xlane.f32.xlu1 %v2454_v46 }
 0x660   : > { %v2457_v38 = vsel %vm1810_vm0, %v11918_v31, 0.0 }
 0x661   : > { %v11922_v57 = vpop.eup %10187  ;;  %2458 = vadd.xlane.f32.xlu0 %v2457_v38 }
 0x662   : > { %v2460_v48 = vsel %vm1810_vm0, %v11922_v57, 0.0 }
 0x663   : > { %2461 = vadd.xlane.f32.xlu1 %v2460_v48 }
 0x6d2   : > { %v2417_v59 = vpop.xlane.xlu0 %2416 }
 0x6d3   : > { %10189 = vrcp.f32 %v2417_v59 }
 0x6d4   : > { %v2420_v26 = vpop.xlane.xlu1 %2419 }
 0x6d5   : > { %10191 = vrcp.f32 %v2420_v26  ;;  %v9666_v26 = vld [vmem:[%s11013_s19 + $0x14] ss:$8 sps:$4 sm:$0xff]  }
 0x6d6   : > { %v2423_v17 = vpop.xlane.xlu0 %2422 }
 0x6d7   : > { %10193 = vrcp.f32 %v2423_v17 }
 0x6d8   : > { %v2426_v61 = vpop.xlane.xlu1 %2425 }
 0x6d9   : > { %10195 = vrcp.f32 %v2426_v61 }
 0x6da   : > { %v2429_v12 = vpop.xlane.xlu0 %2428 }
 0x6db   : > { %10197 = vrcp.f32 %v2429_v12 }
 0x6dc   : > { %v2432_v1 = vpop.xlane.xlu1 %2431 }
 0x6dd   : > { %v10190_v51 = vpop.eup %10189  ;;  %10199 = vrcp.f32 %v2432_v1  ;;  %v9664_v1 = vld [vmem:[%s11013_s19 + $0x10] ss:$8 sps:$4 sm:$0xff]  }
 0x6de   : > { %v2435_v2 = vpop.xlane.xlu0 %2434  ;;  %v2479_v20 = vmul.f32 %v10190_v51, %v11854_v16  ;;  %v9661_v16 = vld [vmem:[%s11013_s19] ss:$8 sps:$4 sm:$0xff]  }
 0x6df   : > { %v10192_v54 = vpop.eup %10191  ;;  %10201 = vrcp.f32 %v2435_v2 }
 0x6e0   : > { %v2438_v50 = vpop.xlane.xlu1 %2437  ;;  %v2480_v25 = vmul.f32 %v10192_v54, %v11858_v40  ;;  %v9669_v54 = vld [vmem:[%s11013_s19 + $0x24] ss:$8 sps:$4 sm:$0xff]  }
 0x6e1   : > { %v10194_v60 = vpop.eup %10193  ;;  %10203 = vrcp.f32 %v2438_v50 }
 0x6e2   : > { %v2441_v62 = vpop.xlane.xlu0 %2440  ;;  %v2495_v4 = vpack.c.bf16 %v2480_v25, %v2479_v20  ;;  %v2481_v46 = vmul.f32 %v10194_v60, %v11863_v33  ;;  %v9667_v60 = vld [vmem:[%s11013_s19 + $0x20] ss:$8 sps:$4 sm:$0xff]  }
 0x6e3   : > { %v10196_v27 = vpop.eup %10195  ;;  %10205 = vrcp.f32 %v2441_v62 }
 0x6e4   : > { %v2482_v38 = vmul.f32 %v10196_v27, %v11868_v15  ;;  %9174 = vmatprep.mubr.msk.bf16.mxu1 %vm1810_vm0, %v2495_v4  ;;  %v2444_v48 = vpop.xlane.xlu1 %2443  ;;  %v9672_v27 = vld [vmem:[%s11013_s19 + $0x34] ss:$8 sps:$4 sm:$0xff]  }
 0x6e5   : > { %v10198_v32 = vpop.eup %10197  ;;  %10207 = vrcp.f32 %v2444_v48 }
 0x6e6   : > { %v2496_v59 = vpack.c.bf16 %v2482_v38, %v2481_v46  ;;  %v2447_v40 = vpop.xlane.xlu0 %2446  ;;  %v2483_v33 = vmul.f32 %v10198_v32, %v11873_v11  ;;  %v9670_v32 = vld [vmem:[%s11013_s19 + $0x30] ss:$8 sps:$4 sm:$0xff]  }
 0x6e7   : > { %v10200_v17 = vpop.eup %10199  ;;  %10209 = vrcp.f32 %v2447_v40 }
 0x6e8   : > { %9175 = vmatmul.mubr.msk.bf16.vlgmr.msra.gmra.mrb[136].mxu1 %vm1810_vm0, %v2496_v59  ;;  %v2450_v61 = vpop.xlane.xlu1 %2449  ;;  %v2484_v15 = vmul.f32 %v10200_v17, %v11878_v42  ;;  %v9675_v59 = vld [vmem:[%s11013_s19 + $0x44] ss:$8 sps:$4 sm:$0xff]  }
 0x6e9   : > { %v10202_v12 = vpop.eup %10201  ;;  %10211 = vrcp.f32 %v2450_v61  ;;  %2882 = vmatpush1.bf16.msra.mxu1 %v9661_v16 }
 0x6ea   : > { %v2453_v51 = vpop.xlane.xlu0 %2452  ;;  %v2497_v2 = vpack.c.bf16 %v2484_v15, %v2483_v33  ;;  %2883 = vmatprep.subr.bf16.mxu1 %v9666_v26  ;;  %v2485_v25 = vmul.f32 %v10202_v12, %v11883_v43  ;;  %v9678_v33 = vld [vmem:[%s11013_s19 + $0x54] ss:$8 sps:$4 sm:$0xff]  }
 0x6eb   : > { %v10204_v50 = vpop.eup %10203  ;;  %10213 = vrcp.f32 %v2453_v51 }
 0x6ec   : > { %9178 = vmatprep.mubr.msk.bf16.mxu1 %vm1810_vm0, %v2497_v2  ;;  %v2456_v20 = vpop.xlane.xlu1 %2455  ;;  %v2486_v11 = vmul.f32 %v10204_v50, %v11888_v45  ;;  %v9681_v2 = vld [vmem:[%s11013_s19 + $0x64] ss:$8 sps:$4 sm:$0xff]  }
 0x6ed   : > { %v10206_v42 = vpop.eup %10205  ;;  %10215 = vrcp.f32 %v2456_v20  ;;  %2884 = vmatpush1.bf16.msra.mxu1 %v9664_v1 }
 0x6ee   : > { %v2459_v62 = vpop.xlane.xlu0 %2458  ;;  %v2498_v4 = vpack.c.bf16 %v2486_v11, %v2485_v25  ;;  %2885 = vmatprep.subr.bf16.mxu1 %v9669_v54  ;;  %v2487_v43 = vmul.f32 %v10206_v42, %v11893_v44  ;;  %v9684_v25 = vld [vmem:[%s11013_s19 + $0x74] ss:$8 sps:$4 sm:$0xff]   ;;  %v9682_v11 = vld [vmem:[%s11013_s19 + $0x70] ss:$8 sps:$4 sm:$0xff]   ;;  %v9687_v42 = vld [vmem:[%s11013_s19 + $0x84] ss:$8 sps:$4 sm:$0xff]  }
 0x6ef   : > { %v10208_v46 = vpop.eup %10207  ;;  %10217 = vrcp.f32 %v2459_v62  ;;  %v9693_v62 = vld [vmem:[%s11013_s19 + $0xa4] ss:$8 sps:$4 sm:$0xff]  }
 0x6f0   : > { %9179 = vmatmul.mubr.msk.bf16.gmra.mrb[140].mxu1 %vm1810_vm0, %v2498_v4  ;;  %v2462_v38 = vpop.xlane.xlu1 %2461  ;;  %v2488_v45 = vmul.f32 %v10208_v46, %v11898_v0  ;;  %v9673_v0 = vld [vmem:[%s11013_s19 + $0x40] ss:$8 sps:$4 sm:$0xff]   ;;  %v9694_v46 = vld [vmem:[%s11013_s19 + $0xb0] ss:$8 sps:$4 sm:$0xff]  }
 0x6f1   : > { %v10210_v48 = vpop.eup %10209  ;;  %10219 = vrcp.f32 %v2462_v38  ;;  %2886 = vmatpush1.bf16.msra.mxu1 %v9667_v60  ;;  %v9688_v60 = vld [vmem:[%s11013_s19 + $0x90] ss:$8 sps:$4 sm:$0xff]   ;;  %v9691_v4 = vld [vmem:[%s11013_s19 + $0xa0] ss:$8 sps:$4 sm:$0xff]   ;;  %v9699_v38 = vld [vmem:[%s11013_s19 + $0xc4] ss:$8 sps:$4 sm:$0xff]  }
 0x6f2   : > { %v2499_v16 = vpack.c.bf16 %v2488_v45, %v2487_v43  ;;  %2887 = vmatprep.subr.bf16.mxu1 %v9672_v27  ;;  %v2489_v26 = vmul.f32 %v10210_v48, %v11902_v30  ;;  %v9696_v27 = vld [vmem:[%s11013_s19 + $0xb4] ss:$8 sps:$4 sm:$0xff]   ;;  %v9697_v43 = vld [vmem:[%s11013_s19 + $0xc0] ss:$8 sps:$4 sm:$0xff]   ;;  %v9700_v48 = vld [vmem:[%s11013_s19 + $0xd0] ss:$8 sps:$4 sm:$0xff]  }
 0x6f3   : > { %v10212_v40 = vpop.eup %10211  ;;  %v9702_v45 = vld [vmem:[%s11013_s19 + $0xd4] ss:$8 sps:$4 sm:$0xff]  }
 0x6f4   : > { %v2490_v17 = vmul.f32 %v10212_v40, %v11906_v14  ;;  %9190 = vmatprep.mubr.msk.bf16.mxu0 %vm1810_vm0, %v2499_v16  ;;  %v9676_v14 = vld [vmem:[%s11013_s19 + $0x50] ss:$8 sps:$4 sm:$0xff]   ;;  %v9703_v16 = vld [vmem:[%s11013_s19 + $0xe0] ss:$8 sps:$4 sm:$0xff]  }
 0x6f5   : > { %v10214_v44 = vpop.eup %10213  ;;  %2888 = vmatpush1.bf16.msra.mxu1 %v9670_v32  ;;  %v9705_v32 = vld [vmem:[%s11013_s19 + $0xe4] ss:$8 sps:$4 sm:$0xff]   ;;  %v9706_v40 = vld [vmem:[%s11013_s19 + $0xf0] ss:$8 sps:$4 sm:$0xff]  }
 0x6f6   : > { %v2500_v61 = vpack.c.bf16 %v2490_v17, %v2489_v26  ;;  %2889 = vmatprep.subr.bf16.mxu1 %v9675_v59  ;;  %v2491_v12 = vmul.f32 %v10214_v44, %v11910_v34  ;;  %v9708_v59 = vld [vmem:[%s11013_s19 + $0xf4] ss:$8 sps:$4 sm:$0xff]  }
 0x6f7   : > { %v10216_v15 = vpop.eup %10215 }
 0x6f8   : > { %9191 = vmatmul.mubr.msk.bf16.vlgmr.msra.gmra.mrb[8].mxu0 %vm1810_vm0, %v2500_v61  ;;  %v2492_v30 = vmul.f32 %v10216_v15, %v11914_v9  ;;  %v9679_v9 = vld [vmem:[%s11013_s19 + $0x60] ss:$8 sps:$4 sm:$0xff]  }
 0x6f9   : > { %v10218_v1 = vpop.eup %10217  ;;  %2890 = vmatpush1.bf16.msra.mxu1 %v9673_v0 }
 0x6fa   : > { %v2501_v51 = vpack.c.bf16 %v2492_v30, %v2491_v12  ;;  %2891 = vmatprep.subr.bf16.mxu1 %v9678_v33  ;;  %v2493_v50 = vmul.f32 %v10218_v1, %v11918_v31  ;;  %v9685_v31 = vld [vmem:[%s11013_s19 + $0x80] ss:$8 sps:$4 sm:$0xff]  }
 0x6fb   : > { %v10220_v54 = vpop.eup %10219 }
 0x6fc   : > { %9194 = vmatprep.mubr.msk.bf16.mxu0 %vm1810_vm0, %v2501_v51  ;;  %v2494_v34 = vmul.f32 %v10220_v54, %v11922_v57  ;;  %v9690_v57 = vld [vmem:[%s11013_s19 + $0x94] ss:$8 sps:$4 sm:$0xff]  }
 0x6fd   : > { %2892 = vmatpush1.bf16.msra.mxu1 %v9676_v14 }
 0x6fe   : > { %v2502_v20 = vpack.c.bf16 %v2494_v34, %v2493_v50  ;;  %2893 = vmatprep.subr.bf16.mxu1 %v9681_v2 }
 0x700   : > { %9195 = vmatmul.mubr.msk.bf16.gmra.mrb[12].mxu0 %vm1810_vm0, %v2502_v20 }
 0x701   : > { %2894 = vmatpush1.bf16.msra.mxu1 %v9679_v9 }
 0x702   : > { %2895 = vmatprep.subr.bf16.mxu1 %v9684_v25 }
 0x705   : > { %2896 = vmatpush1.bf16.msra.mxu1 %v9682_v11  ;;  %v10290_v11 = vld [vmem:[#allocation2 + $0x18] sm:$0xff] }
 0x706   : > { %2897 = vmatprep.subr.bf16.mxu1 %v9687_v42 }
 0x709   : > { %2898 = vmatpush1.bf16.msra.mxu1 %v9685_v31 }
 0x70a   : > { %2899 = vmatprep.subr.bf16.mxu1 %v9690_v57 }
 0x70d   : > { %2900 = vmatpush1.bf16.msra.mxu1 %v9688_v60 }
 0x70e   : > { %2901 = vmatprep.subr.bf16.mxu1 %v9693_v62 }
 0x711   : > { %2902 = vmatpush1.bf16.msra.mxu1 %v9691_v4 }
 0x712   : > { %2903 = vmatprep.subr.bf16.mxu1 %v9696_v27 }
 0x715   : > { %2904 = vmatpush1.bf16.msra.mxu1 %v9694_v46 }
 0x716   : > { %2905 = vmatprep.subr.bf16.mxu1 %v9699_v38  ;;  %v10291_v38 = vld [vmem:[#allocation2 + $0x20] sm:$0xff] }
 0x719   : > { %2906 = vmatpush1.bf16.msra.mxu1 %v9697_v43 }
 0x71a   : > { %2907 = vmatprep.subr.bf16.mxu1 %v9702_v45 }
 0x71d   : > { %2908 = vmatpush1.bf16.msra.mxu1 %v9700_v48  ;;  %v10292_v48 = vld [vmem:[#allocation2 + $0x28] sm:$0xff] }
 0x71e   : > { %2909 = vmatprep.subr.bf16.mxu1 %v9705_v32 }
 0x721   : > { %2910 = vmatpush1.bf16.msra.mxu1 %v9703_v16 }
 0x722   : > { %2911 = vmatprep.subr.bf16.mxu1 %v9708_v59 }
 0x725   : > { %2912 = vmatpush1.bf16.msra.mxu1 %v9706_v40 }
 0x7bb   : > { %v9176_v26 = vpop.f32.mrb[136].mxu1 }
 0x7bc   : > { %v2557_v17 = vpop.f32.mrb[137].mxu1 }
 0x7bd   : > { %v9177_v44 = vpop.f32.mrb[138].mxu1 }
 0x7be   : > { %v2668_v0 = vpack.c.bf16 %v9177_v44, %v9176_v26  ;;  %v2560_v61 = vpop.f32.mrb[139].mxu1 }
 0x7bf   : > { %v2666_v33 = vpack.c.bf16 %v2560_v61, %v2557_v17 }
 0x7c1   : > { %2913 = vmatprep.mubr.bf16.mxu1 %v2666_v33 }
 0x7c2   : > { %2914 = vmatmul.mubr.bf16.vlgmr.msra.gmra.mrb[144].mxu1 %v2665_v36 }
 0x7c3   : > { %v9180_v15 = vpop.f32.mrb[140].mxu1  ;;  %2923 = vmatprep.mubr.bf16.mxu1 %v2668_v0  ;;  %v10293_v0 = vld [vmem:[#allocation2 + $0x40] sm:$0xff] }
 0x7c4   : > { %v2573_v12 = vpop.f32.mrb[141].mxu1 }
 0x7c5   : > { %v9181_v30 = vpop.f32.mrb[142].mxu1 }
 0x7c6   : > { %v2672_v1 = vpack.c.bf16 %v9181_v30, %v9180_v15  ;;  %v2576_v14 = vpop.f32.mrb[143].mxu1 }
 0x7c7   : > { %v2670_v51 = vpack.c.bf16 %v2576_v14, %v2573_v12  ;;  %v10294_v12 = vld [vmem:[#allocation2 + $0x48] sm:$0xff] }
 0x7ca   : > { %2924 = vmatmul.mubr.bf16.gmra.mrb[148].mxu1 %v2667_v21  ;;  %v2715_v21 = vsub.s32 3, %v11307_v8 }
 0x7cb   : > { %v9192_v2 = vpop.f32.mrb[8].mxu0  ;;  %2933 = vmatprep.mubr.bf16.mxu1 %v2670_v51 }
 0x7cc   : > { %v2634_v54 = vpop.f32.mrb[9].mxu0  ;;  %v12011_v55 = vrot.slane %v12008_v37, %v2715_v21 }
 0x7cd   : > { %v9193_v50 = vpop.f32.mrb[10].mxu0 }
 0x7ce   : > { %v2676_v34 = vpack.c.bf16 %v9193_v50, %v9192_v2  ;;  %v2637_v9 = vpop.f32.mrb[11].mxu0 }
 0x7cf   : > { %v2674_v20 = vpack.c.bf16 %v2637_v9, %v2634_v54  ;;  %v10295_v9 = vld [vmem:[#allocation2 + $0x60] sm:$0xff] }
 0x7d2   : > { %2934 = vmatmul.mubr.bf16.gmra.mrb[152].mxu1 %v2669_v13 }
 0x7d3   : > { %v9196_v5 = vpop.f32.mrb[12].mxu0  ;;  %2943 = vmatprep.mubr.bf16.mxu1 %v2672_v1 }
 0x7d4   : > { %v2650_v23 = vpop.f32.mrb[13].mxu0 }
 0x7d5   : > { %v9197_v36 = vpop.f32.mrb[14].mxu0 }
 0x7d6   : > { %v2680_v25 = vpack.c.bf16 %v9197_v36, %v9196_v5  ;;  %v2653_v3 = vpop.f32.mrb[15].mxu0  ;;  %v10296_v36 = vld [vmem:[#allocation2 + $0x68] sm:$0xff] }
 0x7d7   : > { %v2678_v19 = vpack.c.bf16 %v2653_v3, %v2650_v23 }
 0x7da   : > { %2944 = vmatmul.mubr.bf16.gmra.mrb[156].mxu1 %v2671_v35  ;;  %v12017_v35 = vrot.slane %v12014_v56, %v2715_v21 }
 0x7db   : > { %2953 = vmatprep.mubr.bf16.mxu1 %v2674_v20 }
 0x7e2   : > { %2954 = vmatmul.mubr.bf16.gmra.mrb[160].mxu1 %v2673_v22 }
 0x7e3   : > { %2963 = vmatprep.mubr.bf16.mxu1 %v2676_v34 }
 0x7ea   : > { %2964 = vmatmul.mubr.bf16.gmra.mrb[164].mxu1 %v2675_v53  ;;  %v10287_v53 = vld [vmem:[#allocation2] sm:$0xff] }
 0x7eb   : > { %2973 = vmatprep.mubr.bf16.mxu1 %v2678_v19 }
 0x7f2   : > { %2974 = vmatmul.mubr.bf16.gmra.mrb[168].mxu1 %v2677_v47 }
 0x7f3   : > { %2983 = vmatprep.mubr.bf16.mxu1 %v2680_v25 }
 0x7fa   : > { %2984 = vmatmul.mubr.bf16.gmra.mrb[172].mxu1 %v2679_v24 }
 0x895   : > { %v2915_v52 = vpop.f32.mrb[144].mxu1 }
 0x896   : > { %v2916_v13 = vadd.f32 %v2915_v52, %v12011_v55  ;;  %v2917_v7 = vpop.f32.mrb[145].mxu1 }
 0x897   : > { %v2918_v18 = vadd.f32 %v2917_v7, %v12017_v35  ;;  %v2919_v41 = vpop.f32.mrb[146].mxu1 }
 0x898   : > { %v12021_v49 = vadd.f32 %v10287_v53, %v2916_v13  ;;  %v2920_v22 = vadd.f32 %v2919_v41, %v12011_v55  ;;  %v2921_v58 = vpop.f32.mrb[147].mxu1  ;;  %v10297_v41 = vld [vmem:[#allocation2 + $0x80] sm:$0xff] }
 0x899   : > { %v12024_v29 = vadd.f32 %v10288_v39, %v2918_v18  ;;  %v2922_v24 = vadd.f32 %v2921_v58, %v12017_v35  ;;  %v10298_v39 = vld [vmem:[#allocation2 + $0x88] sm:$0xff] }
 0x89a   : > { %v12027_v47 = vadd.f32 %v10289_v28, %v2920_v22 }
 0x89b   : > { %v12029_v42 = vadd.f32 %v10290_v11, %v2922_v24  ;;  %v3026_v31 = vadd.f32 %v12024_v29, %v12021_v49 }
 0x89d   : > { %v2925_v57 = vpop.f32.mrb[148].mxu1  ;;  %3027 = vadd.xlane.f32.xlu0 %v3026_v31  ;;  %v3029_v60 = vadd.f32 %v12029_v42, %v12027_v47 }
 0x89e   : > { %v2926_v62 = vadd.f32 %v2925_v57, %v12011_v55  ;;  %v2927_v4 = vpop.f32.mrb[149].mxu1 }
 0x89f   : > { %v2928_v27 = vadd.f32 %v2927_v4, %v12017_v35  ;;  %v12037_v46 = vpop.f32.mrb[150].mxu1  ;;  %3030 = vadd.xlane.f32.xlu1 %v3029_v60 }
 0x8a0   : > { %v12039_v43 = vadd.f32 %v10291_v38, %v2926_v62  ;;  %v12041_v45 = vpop.f32.mrb[151].mxu1 }
 0x8a1   : > { %v12043_v32 = vadd.f32 %v10292_v48, %v2928_v27  ;;  %v10299_v27 = vld [vmem:[#allocation2 + $0xa0] sm:$0xff] }
 0x8a3   : > { %v3032_v16 = vadd.f32 %v12043_v32, %v12039_v43 }
 0x8a5   : > { %3033 = vadd.xlane.f32.xlu1 %v3032_v16  ;;  %v2935_v59 = vpop.f32.mrb[152].mxu1 }
 0x8a6   : > { %v2936_v40 = vadd.f32 %v2935_v59, %v12011_v55  ;;  %v2937_v26 = vpop.f32.mrb[153].mxu1  ;;  %v10300_v59 = vld [vmem:[#allocation2 + $0xa8] sm:$0xff] }
 0x8a7   : > { %v2938_v17 = vadd.f32 %v2937_v26, %v12017_v35  ;;  %v2939_v44 = vpop.f32.mrb[154].mxu1 }
 0x8a8   : > { %v12049_v61 = vadd.f32 %v10293_v0, %v2936_v40  ;;  %v12052_v33 = vadd.f32 %v2939_v44, %v12011_v55  ;;  %v2941_v15 = vpop.f32.mrb[155].mxu1 }
 0x8a9   : > { %v12054_v30 = vadd.f32 %v10294_v12, %v2938_v17  ;;  %v12057_v1 = vadd.f32 %v2941_v15, %v12017_v35 }
 0x8ab   : > { %v3038_v14 = vadd.f32 %v12054_v30, %v12049_v61 }
 0x8ad   : > { %v2945_v51 = vpop.f32.mrb[156].mxu1  ;;  %3039 = vadd.xlane.f32.xlu1 %v3038_v14 }
 0x8ae   : > { %v2946_v2 = vadd.f32 %v2945_v51, %v12011_v55  ;;  %v2947_v54 = vpop.f32.mrb[157].mxu1  ;;  %v10301_v51 = vld [vmem:[#allocation2 + $0xc0] sm:$0xff] }
 0x8af   : > { %v2948_v50 = vadd.f32 %v2947_v54, %v12017_v35  ;;  %v2949_v34 = vpop.f32.mrb[158].mxu1 }
 0x8b0   : > { %v12063_v20 = vadd.f32 %v10295_v9, %v2946_v2  ;;  %v12066_v5 = vadd.f32 %v2949_v34, %v12011_v55  ;;  %v2951_v23 = vpop.f32.mrb[159].mxu1  ;;  %v10302_v34 = vld [vmem:[#allocation2 + $0xc8] sm:$0xff] }
 0x8b1   : > { %v12068_v25 = vadd.f32 %v10296_v36, %v2948_v50  ;;  %v12071_v3 = vadd.f32 %v2951_v23, %v12017_v35 }
 0x8b3   : > { %v3044_v19 = vadd.f32 %v12068_v25, %v12063_v20 }
 0x8b5   : > { %3045 = vadd.xlane.f32.xlu1 %v3044_v19  ;;  %v2955_v21 = vpop.f32.mrb[160].mxu1 }
 0x8b6   : > { %v2956_v52 = vadd.f32 %v2955_v21, %v12011_v55  ;;  %v2957_v13 = vpop.f32.mrb[161].mxu1 }
 0x8b7   : > { %v2958_v7 = vadd.f32 %v2957_v13, %v12017_v35  ;;  %v2959_v18 = vpop.f32.mrb[162].mxu1 }
 0x8b8   : > { %v12077_v53 = vadd.f32 %v10297_v41, %v2956_v52  ;;  %v12080_v22 = vadd.f32 %v2959_v18, %v12011_v55  ;;  %v2961_v58 = vpop.f32.mrb[163].mxu1  ;;  %v10303_v18 = vld [vmem:[#allocation2 + $0xe0] sm:$0xff] }
 0x8b9   : > { %v12082_v24 = vadd.f32 %v10298_v39, %v2958_v7  ;;  %v12085_v28 = vadd.f32 %v2961_v58, %v12017_v35 }
 0x8bb   : > { %v3050_v11 = vadd.f32 %v12082_v24, %v12077_v53 }
 0x8bd   : > { %v2965_v31 = vpop.f32.mrb[164].mxu1  ;;  %3051 = vadd.xlane.f32.xlu1 %v3050_v11  ;;  %v2930_v11 = vadd.f32 %v12037_v46, %v12011_v55 }
 0x8be   : > { %v2966_v57 = vadd.f32 %v2965_v31, %v12011_v55  ;;  %v2967_v60 = vpop.f32.mrb[165].mxu1  ;;  %v2932_v31 = vadd.f32 %v12041_v45, %v12017_v35 }
 0x8bf   : > { %v2968_v62 = vadd.f32 %v2967_v60, %v12017_v35  ;;  %v2969_v4 = vpop.f32.mrb[166].mxu1 }
 0x8c0   : > { %v12091_v38 = vadd.f32 %v10299_v27, %v2966_v57  ;;  %v12094_v48 = vadd.f32 %v2969_v4, %v12011_v55  ;;  %v2971_v16 = vpop.f32.mrb[167].mxu1  ;;  %v10304_v57 = vld [vmem:[#allocation2 + $0xe8] sm:$0xff]  ;;  %v10305_v4 = vld [vmem:[#allocation2 + $0xf0] sm:$0xff] }
 0x8c1   : > { %v12096_v40 = vadd.f32 %v10300_v59, %v2968_v62  ;;  %v12099_v26 = vadd.f32 %v2971_v16, %v12017_v35  ;;  %v10306_v16 = vld [vmem:[#allocation2 + $0xf8] sm:$0xff] }
 0x8c3   : > { %v3056_v17 = vadd.f32 %v12096_v40, %v12091_v38 }
 0x8c5   : > { %3057 = vadd.xlane.f32.xlu1 %v3056_v17  ;;  %v2975_v44 = vpop.f32.mrb[168].mxu1 }
 0x8c6   : > { %v2976_v0 = vadd.f32 %v2975_v44, %v12011_v55  ;;  %v2977_v15 = vpop.f32.mrb[169].mxu1  ;;  %v10307_v44 = vld [vmem:[#allocation2 + $0x30] sm:$0xff] }
 0x8c7   : > { %v2978_v12 = vadd.f32 %v2977_v15, %v12017_v35  ;;  %v2979_v14 = vpop.f32.mrb[170].mxu1 }
 0x8c8   : > { %v12105_v2 = vadd.f32 %v10301_v51, %v2976_v0  ;;  %v2980_v54 = vadd.f32 %v2979_v14, %v12011_v55  ;;  %v2981_v50 = vpop.f32.mrb[171].mxu1  ;;  %v12131_v0 = vadd.f32 %v10307_v44, %v2930_v11 }
 0x8c9   : > { %v12108_v9 = vadd.f32 %v10302_v34, %v2978_v12  ;;  %v2982_v23 = vadd.f32 %v2981_v50, %v12017_v35  ;;  %v10310_v12 = vld [vmem:[#allocation2 + $0x58] sm:$0xff]  ;;  %v10311_v50 = vld [vmem:[#allocation2 + $0x70] sm:$0xff] }
 0x8ca   : > { %v12141_v14 = vadd.f32 %v10310_v12, %v12057_v1  ;;  %v12146_v34 = vadd.f32 %v10311_v50, %v12066_v5 }
 0x8cb   : > { %v3062_v36 = vadd.f32 %v12108_v9, %v12105_v2 }
 0x8cd   : > { %v2985_v19 = vpop.f32.mrb[172].mxu1  ;;  %3063 = vadd.xlane.f32.xlu1 %v3062_v36  ;;  %v10312_v36 = vld [vmem:[#allocation2 + $0x78] sm:$0xff] }
 0x8ce   : > { %v2986_v21 = vadd.f32 %v2985_v19, %v12011_v55  ;;  %v2987_v52 = vpop.f32.mrb[173].mxu1  ;;  %v12149_v19 = vadd.f32 %v10312_v36, %v12071_v3 }
 0x8cf   : > { %v2988_v13 = vadd.f32 %v2987_v52, %v12017_v35  ;;  %v2989_v7 = vpop.f32.mrb[174].mxu1  ;;  %v10314_v52 = vld [vmem:[#allocation2 + $0x98] sm:$0xff] }
 0x8d0   : > { %v12115_v41 = vadd.f32 %v10303_v18, %v2986_v21  ;;  %v2990_v58 = vadd.f32 %v2989_v7, %v12011_v55  ;;  %v2991_v39 = vpop.f32.mrb[175].mxu1  ;;  %v10308_v55 = vld [vmem:[#allocation2 + $0x38] sm:$0xff]  ;;  %v10313_v21 = vld [vmem:[#allocation2 + $0x90] sm:$0xff]  ;;  %v3047_v5 = vadd.f32 %v12149_v19, %v12146_v34 }
 0x8d1   : > { %v12122_v60 = vadd.f32 %v10304_v57, %v2988_v13  ;;  %v2992_v62 = vadd.f32 %v2991_v39, %v12017_v35  ;;  %v12133_v46 = vadd.f32 %v10308_v55, %v2932_v31  ;;  %v10309_v35 = vld [vmem:[#allocation2 + $0x50] sm:$0xff]  ;;  %v12154_v1 = vadd.f32 %v10313_v21, %v12080_v22  ;;  %v10316_v18 = vld [vmem:[#allocation2 + $0xb8] sm:$0xff] }
 0x8d2   : > { %v12125_v27 = vadd.f32 %v10305_v4, %v2990_v58  ;;  %v12138_v15 = vadd.f32 %v10309_v35, %v12052_v33  ;;  %v12157_v13 = vadd.f32 %v10314_v52, %v12085_v28  ;;  %v10315_v7 = vld [vmem:[#allocation2 + $0xb0] sm:$0xff]  ;;  %v12165_v58 = vadd.f32 %v10316_v18, %v12099_v26  ;;  %v10318_v28 = vld [vmem:[#allocation2 + $0xd8] sm:$0xff] }
 0x8d3   : > { %v12127_v59 = vadd.f32 %v10306_v16, %v2992_v62  ;;  %v3068_v17 = vadd.f32 %v12122_v60, %v12115_v41  ;;  %v3035_v51 = vadd.f32 %v12133_v46, %v12131_v0  ;;  %v12162_v3 = vadd.f32 %v10315_v7, %v12094_v48  ;;  %v10317_v39 = vld [vmem:[#allocation2 + $0xd0] sm:$0xff] }
 0x8d4   : > { %v3041_v33 = vadd.f32 %v12141_v14, %v12138_v15  ;;  %v3053_v22 = vadd.f32 %v12157_v13, %v12154_v1  ;;  %v12169_v11 = vadd.f32 %v10317_v39, %v2980_v54  ;;  %v12171_v31 = vadd.f32 %v10318_v28, %v2982_v23 }
 0x8d5   : > { %3069 = vadd.xlane.f32.xlu1 %v3068_v17  ;;  %v3071_v45 = vadd.f32 %v12127_v59, %v12125_v27  ;;  %v3059_v57 = vadd.f32 %v12165_v58, %v12162_v3 }
 0x8d6   : > { %v3065_v48 = vadd.f32 %v12171_v31, %v12169_v11 }
 0x8d7   : > { %3072 = vadd.xlane.f32.xlu0 %v3071_v45 }
 0x8db   : > { %3036 = vadd.xlane.f32.xlu0 %v3035_v51 }
 0x8df   : > { %3042 = vadd.xlane.f32.xlu0 %v3041_v33 }
 0x8e3   : > { %3048 = vadd.xlane.f32.xlu0 %v3047_v5 }
 0x8e7   : > { %3054 = vadd.xlane.f32.xlu0 %v3053_v22 }
 0x8eb   : > { %3060 = vadd.xlane.f32.xlu0 %v3059_v57 }
 0x8ef   : > { %3066 = vadd.xlane.f32.xlu0 %v3065_v48 }
 0x92a   : > { %v3028_v26 = vpop.xlane.xlu0 %3027 }
 0x92b   : > { %v3075_v62 = vmul.f32 0.00390625, %v3028_v26 }
 0x92c   : > { %v3031_v4 = vpop.xlane.xlu1 %3030 }
 0x92d   : > { %v12178_v16 = vsub.f32 %v12021_v49, %v3075_v62  ;;  %v12181_v54 = vsub.f32 %v12024_v29, %v3075_v62  ;;  %v3076_v17 = vmul.f32 0.00390625, %v3031_v4 }
 0x92f   : > { %v12184_v23 = vsub.f32 %v12027_v47, %v3076_v17  ;;  %v12187_v44 = vsub.f32 %v12029_v42, %v3076_v17  ;;  %v3123_v55 = vmul.f32 %v12178_v16, %v12178_v16  ;;  %v3124_v45 = vmul.f32 %v12181_v54, %v12181_v54 }
 0x931   : > { %v3155_v35 = vadd.f32 %v3124_v45, %v3123_v55  ;;  %v3125_v49 = vmul.f32 %v12184_v23, %v12184_v23  ;;  %v3126_v29 = vmul.f32 %v12187_v44, %v12187_v44 }
 0x932   : > { %v3034_v12 = vpop.xlane.xlu1 %3033 }
 0x933   : > { %v3077_v51 = vmul.f32 0.00390625, %v3034_v12  ;;  %3156 = vadd.xlane.f32.xlu0 %v3155_v35  ;;  %v3158_v47 = vadd.f32 %v3126_v29, %v3125_v49  ;;  %v9709_v12 = vld [vmem:[%s11019_s11] ss:$8 sps:$4 sm:$0xff]  }
 0x935   : > { %v12198_v42 = vsub.f32 %v12039_v43, %v3077_v51  ;;  %v12201_v50 = vsub.f32 %v12043_v32, %v3077_v51  ;;  %3159 = vadd.xlane.f32.xlu1 %v3158_v47 }
 0x937   : > { %v3127_v36 = vmul.f32 %v12198_v42, %v12198_v42  ;;  %v3128_v33 = vmul.f32 %v12201_v50, %v12201_v50 }
 0x939   : > { %v3161_v21 = vadd.f32 %v3128_v33, %v3127_v36  ;;  %v9714_v33 = vld [vmem:[%s11019_s11 + $0x14] ss:$8 sps:$4 sm:$0xff]  }
 0x93a   : > { %v3040_v52 = vpop.xlane.xlu1 %3039 }
 0x93b   : > { %v3079_v5 = vmul.f32 0.00390625, %v3040_v52  ;;  %3162 = vadd.xlane.f32.xlu1 %v3161_v21  ;;  %v9712_v21 = vld [vmem:[%s11019_s11 + $0x10] ss:$8 sps:$4 sm:$0xff]  }
 0x93d   : > { %v12208_v7 = vsub.f32 %v12049_v61, %v3079_v5  ;;  %v12211_v43 = vsub.f32 %v12054_v30, %v3079_v5 }
 0x93f   : > { %v3131_v32 = vmul.f32 %v12208_v7, %v12208_v7  ;;  %v3132_v18 = vmul.f32 %v12211_v43, %v12211_v43 }
 0x941   : > { %v3167_v22 = vadd.f32 %v3132_v18, %v3131_v32  ;;  %v9717_v32 = vld [vmem:[%s11019_s11 + $0x24] ss:$8 sps:$4 sm:$0xff]   ;;  %v9715_v18 = vld [vmem:[%s11019_s11 + $0x20] ss:$8 sps:$4 sm:$0xff]  }
 0x942   : > { %v3046_v39 = vpop.xlane.xlu1 %3045 }
 0x943   : > { %v3081_v28 = vmul.f32 0.00390625, %v3046_v39  ;;  %3168 = vadd.xlane.f32.xlu1 %v3167_v22 }
 0x945   : > { %v12218_v57 = vsub.f32 %v12063_v20, %v3081_v28  ;;  %v12221_v48 = vsub.f32 %v12068_v25, %v3081_v28 }
 0x947   : > { %v3135_v61 = vmul.f32 %v12218_v57, %v12218_v57  ;;  %v3136_v30 = vmul.f32 %v12221_v48, %v12221_v48 }
 0x949   : > { %v3173_v26 = vadd.f32 %v3136_v30, %v3135_v61  ;;  %v9720_v61 = vld [vmem:[%s11019_s11 + $0x34] ss:$8 sps:$4 sm:$0xff]  }
 0x94a   : > { %v3052_v62 = vpop.xlane.xlu1 %3051 }
 0x94b   : > { %v3083_v4 = vmul.f32 0.00390625, %v3052_v62  ;;  %3174 = vadd.xlane.f32.xlu1 %v3173_v26 }
 0x94d   : > { %v12228_v17 = vsub.f32 %v12077_v53, %v3083_v4  ;;  %v12231_v20 = vsub.f32 %v12082_v24, %v3083_v4  ;;  %v9711_v24 = vld [vmem:[%s11019_s11 + $0x4] ss:$8 sps:$4 sm:$0xff]  }
 0x94e   : > { %6082 = vmatprep.subr.bf16.mxu0 %v9711_v24 }
 0x94f   : > { %v3139_v25 = vmul.f32 %v12228_v17, %v12228_v17  ;;  %v3140_v55 = vmul.f32 %v12231_v20, %v12231_v20  ;;  %6083 = vmatpush1.bf16.msra.mxu0 %v9709_v12 }
 0x950   : > { %6084 = vmatprep.subr.bf16.mxu0 %v9714_v33 }
 0x951   : > { %v3179_v45 = vadd.f32 %v3140_v55, %v3139_v25  ;;  %v9723_v55 = vld [vmem:[%s11019_s11 + $0x44] ss:$8 sps:$4 sm:$0xff]  }
 0x952   : > { %v3058_v35 = vpop.xlane.xlu1 %3057 }
 0x953   : > { %v3085_v49 = vmul.f32 0.00390625, %v3058_v35  ;;  %3180 = vadd.xlane.f32.xlu1 %v3179_v45  ;;  %6085 = vmatpush1.bf16.msra.mxu0 %v9712_v21  ;;  %v9721_v45 = vld [vmem:[%s11019_s11 + $0x40] ss:$8 sps:$4 sm:$0xff]  }
 0x954   : > { %6086 = vmatprep.subr.bf16.mxu0 %v9717_v32 }
 0x955   : > { %v12238_v29 = vsub.f32 %v12091_v38, %v3085_v49  ;;  %v12241_v53 = vsub.f32 %v12096_v40, %v3085_v49 }
 0x957   : > { %v3143_v51 = vmul.f32 %v12238_v29, %v12238_v29  ;;  %v3144_v47 = vmul.f32 %v12241_v53, %v12241_v53  ;;  %6087 = vmatpush1.bf16.msra.mxu0 %v9715_v18 }
 0x958   : > { %6088 = vmatprep.subr.bf16.mxu0 %v9720_v61 }
 0x959   : > { %v3185_v36 = vadd.f32 %v3144_v47, %v3143_v51 }
 0x95a   : > { %v3064_v38 = vpop.xlane.xlu1 %3063 }
 0x95b   : > { %v3087_v40 = vmul.f32 0.00390625, %v3064_v38  ;;  %3186 = vadd.xlane.f32.xlu1 %v3185_v36  ;;  %v9724_v36 = vld [vmem:[%s11019_s11 + $0x50] ss:$8 sps:$4 sm:$0xff]  }
 0x95d   : > { %v12252_v52 = vsub.f32 %v12105_v2, %v3087_v40  ;;  %v12255_v5 = vsub.f32 %v12108_v9, %v3087_v40  ;;  %v9718_v2 = vld [vmem:[%s11019_s11 + $0x30] ss:$8 sps:$4 sm:$0xff]  }
 0x95e   : > { %6089 = vmatpush1.bf16.msra.mxu0 %v9718_v2 }
 0x95f   : > { %v3147_v22 = vmul.f32 %v12252_v52, %v12252_v52  ;;  %v3148_v39 = vmul.f32 %v12255_v5, %v12255_v5  ;;  %6090 = vmatprep.subr.bf16.mxu0 %v9723_v55 }
 0x961   : > { %v3191_v28 = vadd.f32 %v3148_v39, %v3147_v22  ;;  %v9727_v39 = vld [vmem:[%s11019_s11 + $0x60] ss:$8 sps:$4 sm:$0xff]  }
 0x962   : > { %v3070_v30 = vpop.xlane.xlu1 %3069  ;;  %6091 = vmatpush1.bf16.msra.mxu0 %v9721_v45 }
 0x963   : > { %v3089_v26 = vmul.f32 0.00390625, %v3070_v30  ;;  %3192 = vadd.xlane.f32.xlu1 %v3191_v28 }
 0x964   : > { %v3073_v9 = vpop.xlane.xlu0 %3072 }
 0x965   : > { %v12266_v62 = vsub.f32 %v12115_v41, %v3089_v26  ;;  %v12269_v4 = vsub.f32 %v12122_v60, %v3089_v26  ;;  %v3090_v25 = vmul.f32 0.00390625, %v3073_v9 }
 0x967   : > { %v12274_v35 = vsub.f32 %v12125_v27, %v3090_v25  ;;  %v12277_v49 = vsub.f32 %v12127_v59, %v3090_v25  ;;  %v3151_v24 = vmul.f32 %v12266_v62, %v12266_v62  ;;  %v3152_v41 = vmul.f32 %v12269_v4, %v12269_v4  ;;  %v9726_v59 = vld [vmem:[%s11019_s11 + $0x54] ss:$8 sps:$4 sm:$0xff]  }
 0x968   : > { %v3037_v12 = vpop.xlane.xlu0 %3036  ;;  %6092 = vmatprep.subr.bf16.mxu0 %v9726_v59  ;;  %v9732_v25 = vld [vmem:[%s11019_s11 + $0x74] ss:$8 sps:$4 sm:$0xff]  }
 0x969   : > { %v3078_v60 = vmul.f32 0.00390625, %v3037_v12  ;;  %v3197_v51 = vadd.f32 %v3152_v41, %v3151_v24  ;;  %v3153_v47 = vmul.f32 %v12274_v35, %v12274_v35  ;;  %v3154_v27 = vmul.f32 %v12277_v49, %v12277_v49  ;;  %6093 = vmatpush1.bf16.msra.mxu0 %v9724_v36 }
 0x96b   : > { %v12290_v33 = vsub.f32 %v12131_v0, %v3078_v60  ;;  %v12293_v38 = vsub.f32 %v12133_v46, %v3078_v60  ;;  %3198 = vadd.xlane.f32.xlu1 %v3197_v51  ;;  %v3200_v21 = vadd.f32 %v3154_v27, %v3153_v47  ;;  %v9729_v0 = vld [vmem:[%s11019_s11 + $0x64] ss:$8 sps:$4 sm:$0xff]  }
 0x96c   : > { %v3043_v40 = vpop.xlane.xlu0 %3042  ;;  %6094 = vmatprep.subr.bf16.mxu0 %v9729_v0  ;;  %v9735_v51 = vld [vmem:[%s11019_s11 + $0x84] ss:$8 sps:$4 sm:$0xff]  }
 0x96d   : > { %v3080_v32 = vmul.f32 0.00390625, %v3043_v40  ;;  %3201 = vadd.xlane.f32.xlu0 %v3200_v21  ;;  %v3129_v18 = vmul.f32 %v12290_v33, %v12290_v33  ;;  %v3130_v22 = vmul.f32 %v12293_v38, %v12293_v38  ;;  %6095 = vmatpush1.bf16.msra.mxu0 %v9727_v39 }
 0x96e   : > { %6096 = vmatprep.subr.bf16.mxu0 %v9732_v25 }
 0x96f   : > { %v12302_v46 = vsub.f32 %v12138_v15, %v3080_v32  ;;  %v12305_v28 = vsub.f32 %v12141_v14, %v3080_v32  ;;  %v3164_v61 = vadd.f32 %v3130_v22, %v3129_v18  ;;  %v9730_v15 = vld [vmem:[%s11019_s11 + $0x70] ss:$8 sps:$4 sm:$0xff]   ;;  %v9738_v32 = vld [vmem:[%s11019_s11 + $0x94] ss:$8 sps:$4 sm:$0xff]  }
 0x970   : > { %v3049_v30 = vpop.xlane.xlu0 %3048 }
 0x971   : > { %v3082_v2 = vmul.f32 0.00390625, %v3049_v30  ;;  %3165 = vadd.xlane.f32.xlu0 %v3164_v61  ;;  %v3133_v26 = vmul.f32 %v12302_v46, %v12302_v46  ;;  %v3134_v9 = vmul.f32 %v12305_v28, %v12305_v28  ;;  %6097 = vmatpush1.bf16.msra.mxu0 %v9730_v15 }
 0x972   : > { %6098 = vmatprep.subr.bf16.mxu0 %v9735_v51  ;;  %v9753_v51 = vld [vmem:[%s11019_s11 + $0xe4] ss:$8 sps:$4 sm:$0xff]  }
 0x973   : > { %v12314_v55 = vsub.f32 %v12146_v34, %v3082_v2  ;;  %v12317_v14 = vsub.f32 %v12149_v19, %v3082_v2  ;;  %v3170_v45 = vadd.f32 %v3134_v9, %v3133_v26  ;;  %v9733_v34 = vld [vmem:[%s11019_s11 + $0x80] ss:$8 sps:$4 sm:$0xff]   ;;  %v9741_v2 = vld [vmem:[%s11019_s11 + $0xa4] ss:$8 sps:$4 sm:$0xff]  }
 0x974   : > { %v3055_v24 = vpop.xlane.xlu0 %3054 }
 0x975   : > { %v3084_v41 = vmul.f32 0.00390625, %v3055_v24  ;;  %3171 = vadd.xlane.f32.xlu0 %v3170_v45  ;;  %v3137_v12 = vmul.f32 %v12314_v55, %v12314_v55  ;;  %v3138_v60 = vmul.f32 %v12317_v14, %v12317_v14  ;;  %6099 = vmatpush1.bf16.msra.mxu0 %v9733_v34  ;;  %v9744_v45 = vld [vmem:[%s11019_s11 + $0xb4] ss:$8 sps:$4 sm:$0xff]   ;;  %v9751_v34 = vld [vmem:[%s11019_s11 + $0xe0] ss:$8 sps:$4 sm:$0xff]  }
 0x976   : > { %6100 = vmatprep.subr.bf16.mxu0 %v9738_v32 }
 0x977   : > { %v12326_v47 = vsub.f32 %v12154_v1, %v3084_v41  ;;  %v12329_v19 = vsub.f32 %v12157_v13, %v3084_v41  ;;  %v3176_v27 = vadd.f32 %v3138_v60, %v3137_v12  ;;  %v9736_v1 = vld [vmem:[%s11019_s11 + $0x90] ss:$8 sps:$4 sm:$0xff]   ;;  %v9745_v41 = vld [vmem:[%s11019_s11 + $0xc0] ss:$8 sps:$4 sm:$0xff]   ;;  %v9750_v12 = vld [vmem:[%s11019_s11 + $0xd4] ss:$8 sps:$4 sm:$0xff]  }
 0x978   : > { %v3061_v59 = vpop.xlane.xlu0 %3060  ;;  %v9748_v60 = vld [vmem:[%s11019_s11 + $0xd0] ss:$8 sps:$4 sm:$0xff]  }
 0x979   : > { %v3086_v36 = vmul.f32 0.00390625, %v3061_v59  ;;  %3177 = vadd.xlane.f32.xlu0 %v3176_v27  ;;  %v3141_v21 = vmul.f32 %v12326_v47, %v12326_v47  ;;  %v3142_v40 = vmul.f32 %v12329_v19, %v12329_v19  ;;  %6101 = vmatpush1.bf16.msra.mxu0 %v9736_v1  ;;  %v9756_v27 = vld [vmem:[%s11019_s11 + $0xf4] ss:$8 sps:$4 sm:$0xff]   ;;  %v9754_v59 = vld [vmem:[%s11019_s11 + $0xf0] ss:$8 sps:$4 sm:$0xff]  }
 0x97a   : > { %6102 = vmatprep.subr.bf16.mxu0 %v9741_v2 }
 0x97b   : > { %v12338_v18 = vsub.f32 %v12162_v3, %v3086_v36  ;;  %v12341_v13 = vsub.f32 %v12165_v58, %v3086_v36  ;;  %v3182_v22 = vadd.f32 %v3142_v40, %v3141_v21  ;;  %v9739_v3 = vld [vmem:[%s11019_s11 + $0xa0] ss:$8 sps:$4 sm:$0xff]   ;;  %v9759_v36 = vld [vmem:[%s11019_s11 + $0x104] ss:$8 sps:$4 sm:$0xff]  }
 0x97c   : > { %v3067_v0 = vpop.xlane.xlu0 %3066 }
 0x97d   : > { %v3088_v39 = vmul.f32 0.00390625, %v3067_v0  ;;  %3183 = vadd.xlane.f32.xlu0 %v3182_v22  ;;  %v3145_v61 = vmul.f32 %v12338_v18, %v12338_v18  ;;  %v3146_v30 = vmul.f32 %v12341_v13, %v12341_v13  ;;  %6103 = vmatpush1.bf16.msra.mxu0 %v9739_v3 }
 0x97e   : > { %6104 = vmatprep.subr.bf16.mxu0 %v9744_v45 }
 0x97f   : > { %v12350_v58 = vsub.f32 %v12169_v11, %v3088_v39  ;;  %v12353_v26 = vsub.f32 %v12171_v31, %v3088_v39  ;;  %v3188_v9 = vadd.f32 %v3146_v30, %v3145_v61  ;;  %v9742_v11 = vld [vmem:[%s11019_s11 + $0xb0] ss:$8 sps:$4 sm:$0xff]   ;;  %v9747_v31 = vld [vmem:[%s11019_s11 + $0xc4] ss:$8 sps:$4 sm:$0xff]  }
 0x981   : > { %3189 = vadd.xlane.f32.xlu0 %v3188_v9  ;;  %v3149_v25 = vmul.f32 %v12350_v58, %v12350_v58  ;;  %v3150_v15 = vmul.f32 %v12353_v26, %v12353_v26  ;;  %6105 = vmatpush1.bf16.msra.mxu0 %v9742_v11 }
 0x982   : > { %6106 = vmatprep.subr.bf16.mxu0 %v9747_v31 }
 0x983   : > { %v3194_v24 = vadd.f32 %v3150_v15, %v3149_v25  ;;  %v3285_v25 = vsub.s32 6, %v11307_v8 }
 0x985   : > { %3195 = vadd.xlane.f32.xlu0 %v3194_v24  ;;  %6107 = vmatpush1.bf16.msra.mxu0 %v9745_v41 }
 0x986   : > { %6108 = vmatprep.subr.bf16.mxu0 %v9750_v12 }
 0x989   : > { %6109 = vmatpush1.bf16.msra.mxu0 %v9748_v60  ;;  %v12373_v60 = vrot.slane %v12014_v56, %v3285_v25 }
 0x98a   : > { %6110 = vmatprep.subr.bf16.mxu0 %v9753_v51  ;;  %v3325_v51 = vsub.s32 7, %v11307_v8 }
 0x98d   : > { %6111 = vmatpush1.bf16.msra.mxu0 %v9751_v34 }
 0x98e   : > { %6112 = vmatprep.subr.bf16.mxu0 %v9756_v27 }
 0x991   : > { %6113 = vmatpush1.bf16.msra.mxu0 %v9754_v59  ;;  %v12378_v59 = vrot.slane %v12008_v37, %v3285_v25 }
 0x992   : > { %6195 = vmatprep.subr.bf16.mxu0 %v9759_v36 }
 0x9c0   : > { %v3157_v40 = vpop.xlane.xlu0 %3156 }
 0x9c1   : > { %v3203_v1 = vmul.f32 0.00390625, %v3157_v40 }
 0x9c2   : > { %v3160_v21 = vpop.xlane.xlu1 %3159 }
 0x9c3   : > { %v3204_v32 = vmul.f32 0.00390625, %v3160_v21  ;;  %v3219_v0 = vadd.f32 1e-05, %v3203_v1 }
 0x9c5   : > { %v3220_v22 = vadd.f32 1e-05, %v3204_v32  ;;  %v12383_v32 = vand.u32 63, %v11307_v8 }
 0x9c7   : > { %10221 = vrsqrt.f32 %v3220_v22  ;;  %v12396_v25 = vadd.s32 4294967293, %v12383_v32 }
 0x9c8   : > { %v3163_v39 = vpop.xlane.xlu1 %3162  ;;  %10223 = vrsqrt.f32 %v3219_v0 }
 0x9c9   : > { %v3205_v61 = vmul.f32 0.00390625, %v3163_v39  ;;  %vm3653_vm2 = vcmp.ge.s32.totalorder %v12396_v25, 0 }
 0x9ca   : > { %vm12472_vm4 = vmpackc.low %vm10654_vm3, %vm3653_vm2 }
 0x9cb   : > { %v3221_v2 = vadd.f32 1e-05, %v3205_v61 }
 0x9cd   : > { %10225 = vrsqrt.f32 %v3221_v2 }
 0x9d0   : > { %v3169_v30 = vpop.xlane.xlu1 %3168 }
 0x9d1   : > { %v3207_v3 = vmul.f32 0.00390625, %v3169_v30  ;;  %v10222_v9 = vpop.eup %10221 }
 0x9d2   : > { %v10224_v11 = vpop.eup %10223  ;;  %v3254_v31 = vmul.f32 %v10222_v9, %v12187_v44  ;;  %v3253_v44 = vmul.f32 %v10222_v9, %v12184_v23 }
 0x9d3   : > { %v3223_v15 = vadd.f32 1e-05, %v3207_v3  ;;  %v3252_v34 = vmul.f32 %v10224_v11, %v12181_v54  ;;  %v3251_v36 = vmul.f32 %v10224_v11, %v12178_v16  ;;  %v12387_v54 = vrot.slane %v12014_v56, %v3325_v51 }
 0x9d4   : > { %v3294_v1 = vmul.f32 %v12373_v60, %v3254_v31  ;;  %v12391_v16 = vrot.slane %v12008_v37, %v3325_v51  ;;  %v3293_v3 = vmul.f32 %v12378_v59, %v3253_v44 }
 0x9d5   : > { %10227 = vrsqrt.f32 %v3223_v15  ;;  %v3292_v39 = vmul.f32 %v12373_v60, %v3252_v34  ;;  %v3291_v23 = vmul.f32 %v12378_v59, %v3251_v36 }
 0x9d6   : > { %v12399_v56 = vadd.f32 %v12387_v54, %v3294_v1  ;;  %v12410_v51 = vadd.f32 %v12391_v16, %v3293_v3 }
 0x9d7   : > { %v10226_v0 = vpop.eup %10225  ;;  %v12403_v37 = vadd.f32 %v12387_v54, %v3292_v39  ;;  %v12406_v31 = vadd.f32 %v12391_v16, %v3291_v23 }
 0x9d8   : > { %v3175_v41 = vpop.xlane.xlu1 %3174  ;;  %v3256_v15 = vmul.f32 %v10226_v0, %v12201_v50  ;;  %v3255_v34 = vmul.f32 %v10226_v0, %v12198_v42  ;;  %v14428_v44 = vrot.slane %v12399_v56, 5 }
 0x9d9   : > { %v3209_v40 = vmul.f32 0.00390625, %v3175_v41  ;;  %v3573_v39 = vrot.slane %v12403_v37, 5  ;;  %v3572_v0 = vrot.slane %v12406_v31, 5 }
 0x9db   : > { %v3225_v9 = vadd.f32 1e-05, %v3209_v40 }
 0x9e0   : > { %v3181_v61 = vpop.xlane.xlu1 %3180 }
 0x9e8   : > { %v3187_v23 = vpop.xlane.xlu1 %3186 }
 0x9f0   : > { %v3193_v25 = vpop.xlane.xlu1 %3192 }
 0x9fa   : > { %v3202_v45 = vpop.xlane.xlu0 %3201 }
 0x9fb   : > { %v3218_v24 = vmul.f32 0.00390625, %v3202_v45  ;;  %v3211_v45 = vmul.f32 0.00390625, %v3181_v61 }
 0x9fd   : > { %v3234_v12 = vadd.f32 1e-05, %v3218_v24  ;;  %v3227_v36 = vadd.f32 1e-05, %v3211_v45 }
 0x9fe   : > { %v3166_v27 = vpop.xlane.xlu0 %3165 }
 0x9ff   : > { %10229 = vrsqrt.f32 %v3234_v12  ;;  %v3206_v21 = vmul.f32 0.00390625, %v3166_v27  ;;  %v10228_v12 = vpop.eup %10227  ;;  %v3296_v27 = vmul.f32 %v12373_v60, %v3256_v15 }
 0xa00   : > { %v3260_v61 = vmul.f32 %v10228_v12, %v12211_v43  ;;  %v3634_v43 = vsel %vm3604_vm1, %v3573_v39, %v14428_v44  ;;  %v9762_v44 = vld [vmem:[%s11019_s11 + $0x114] ss:$8 sps:$4 sm:$0xff]  }
 0xa01   : > { %v3222_v22 = vadd.f32 1e-05, %v3206_v21 }
 0xa02   : > { %v3172_v30 = vpop.xlane.xlu0 %3171 }
 0xa03   : > { %10231 = vrsqrt.f32 %v3222_v22  ;;  %v3208_v2 = vmul.f32 0.00390625, %v3172_v30  ;;  %v3295_v30 = vmul.f32 %v12378_v59, %v3255_v34 }
 0xa05   : > { %v3224_v11 = vadd.f32 1e-05, %v3208_v2 }
 0xa06   : > { %v3178_v24 = vpop.xlane.xlu0 %3177 }
 0xa07   : > { %10233 = vrsqrt.f32 %v3224_v11  ;;  %v3210_v41 = vmul.f32 0.00390625, %v3178_v24 }
 0xa08   : > { %10235 = vrsqrt.f32 %v3225_v9 }
 0xa09   : > { %v10230_v50 = vpop.eup %10229  ;;  %v3226_v21 = vadd.f32 1e-05, %v3210_v41 }
 0xa0a   : > { %v3281_v40 = vmul.f32 %v10230_v50, %v12274_v35  ;;  %v3282_v1 = vmul.f32 %v10230_v50, %v12277_v49  ;;  %v3184_v22 = vpop.xlane.xlu0 %3183  ;;  %v14427_v35 = vrot.slane %v12410_v51, 5  ;;  %v12426_v49 = vadd.f32 %v12387_v54, %v3296_v27 }
 0xa0b   : > { %10237 = vrsqrt.f32 %v3226_v21  ;;  %v3212_v42 = vmul.f32 0.00390625, %v3184_v22  ;;  %v3300_v50 = vmul.f32 %v12373_v60, %v3260_v61  ;;  %v3213_v27 = vmul.f32 0.00390625, %v3187_v23 }
 0xa0c   : > { %v3321_v2 = vmul.f32 %v12378_v59, %v3281_v40  ;;  %v3322_v3 = vmul.f32 %v12373_v60, %v3282_v1  ;;  %10239 = vrsqrt.f32 %v3227_v36  ;;  %v3577_v61 = vrot.slane %v12426_v49, 5 }
 0xa0d   : > { %v10232_v9 = vpop.eup %10231  ;;  %v3228_v15 = vadd.f32 1e-05, %v3212_v42 }
 0xa0e   : > { %v12433_v45 = vadd.f32 %v12391_v16, %v3321_v2  ;;  %v12436_v11 = vadd.f32 %v12387_v54, %v3322_v3  ;;  %v3257_v24 = vmul.f32 %v10232_v9, %v12290_v33  ;;  %v3258_v41 = vmul.f32 %v10232_v9, %v12293_v38  ;;  %v3190_v34 = vpop.xlane.xlu0 %3189 }
 0xa0f   : > { %10241 = vrsqrt.f32 %v3228_v15  ;;  %v3214_v36 = vmul.f32 0.00390625, %v3190_v34  ;;  %v12446_v2 = vadd.f32 %v12391_v16, %v3295_v30  ;;  %v3633_v38 = vsel %vm3604_vm1, %v3572_v0, %v14427_v35 }
 0xa10   : > { %v3297_v21 = vmul.f32 %v12378_v59, %v3257_v24  ;;  %v3298_v40 = vmul.f32 %v12373_v60, %v3258_v41  ;;  %v14426_v1 = vrot.slane %v12436_v11, 5  ;;  %v14430_v22 = vrot.slane %v12433_v45, 5 }
 0xa11   : > { %v10234_v42 = vpop.eup %10233  ;;  %v3230_v33 = vadd.f32 1e-05, %v3214_v36  ;;  %v3259_v41 = vmul.f32 %v10228_v12, %v12208_v7  ;;  %v12463_v34 = vadd.f32 %v12387_v54, %v3300_v50 }
 0xa12   : > { %v10236_v23 = vpop.eup %10235  ;;  %v12454_v3 = vadd.f32 %v12391_v16, %v3297_v21  ;;  %v12457_v9 = vadd.f32 %v12387_v54, %v3298_v40  ;;  %v3261_v15 = vmul.f32 %v10234_v42, %v12302_v46  ;;  %v3262_v30 = vmul.f32 %v10234_v42, %v12305_v28  ;;  %v3196_v24 = vpop.xlane.xlu0 %3195  ;;  %v9757_v40 = vld [vmem:[%s11019_s11 + $0x100] ss:$8 sps:$4 sm:$0xff]  }
 0xa13   : > { %v3636_v36 = vsel %vm3604_vm1, %v14426_v1, %v3573_v39  ;;  %v3635_v7 = vsel %vm3604_vm1, %v14430_v22, %v3572_v0  ;;  %v3229_v28 = vadd.f32 1e-05, %v3213_v27  ;;  %v3264_v42 = vmul.f32 %v10236_v23, %v12221_v48 }
 0xa14   : > { %v3302_v12 = vmul.f32 %v12373_v60, %v3262_v30  ;;  %v8785_v50 = vpack.c.bf16 %v3634_v43, %v3636_v36  ;;  %v8788_v21 = vpack.c.bf16 %v3633_v38, %v3635_v7  ;;  %10243 = vrsqrt.f32 %v3230_v33 }
 0xa15   : > { %v10238_v39 = vpop.eup %10237  ;;  %v3216_v1 = vmul.f32 0.00390625, %v3196_v24  ;;  %v3579_v35 = vrot.slane %v12457_v9, 5  ;;  %v3301_v63 = vmul.f32 %v12378_v59, %v3261_v15  ;;  %v14431_v43 = vrot.slane %v12454_v3, 5 }
 0xa16   : > { %v12487_v0 = vadd.f32 %v12387_v54, %v3302_v12  ;;  %v3266_v27 = vmul.f32 %v10238_v39, %v12317_v14  ;;  %8786 = vmatprep.mubr.msk.bf16.mxu0 %vm12472_vm4, %v8785_v50  ;;  %v12493_v48 = vpop.eup %10239  ;;  %v3299_v33 = vmul.f32 %v12378_v59, %v3259_v41  ;;  %v14469_v15 = vrot.slane %v12399_v56, 5  ;;  %v9760_v41 = vld [vmem:[%s11019_s11 + $0x110] ss:$8 sps:$4 sm:$0xff]   ;;  %v9765_v50 = vld [vmem:[%s11019_s11 + $0x124] ss:$8 sps:$4 sm:$0xff]  }
 0xa17   : > { %8789 = vmatmul.mubr.msk.bf16.vlgmr.msra.gmra.mrb[16].mxu0 %vm12472_vm4, %v8788_v21  ;;  %v3630_v38 = vsel %vm3604_vm1, %v3577_v61, %v3579_v35  ;;  %v3576_v30 = vrot.slane %v12446_v2, 5  ;;  %10245 = vrsqrt.f32 %v3229_v28  ;;  %v3215_v24 = vmul.f32 0.00390625, %v3193_v25 }
 0xa18   : > { %v3632_v14 = vsel %vm3604_vm1, %v14469_v15, %v3577_v61  ;;  %v3306_v36 = vmul.f32 %v12373_v60, %v3266_v27  ;;  %6196 = vmatpush1.bf16.msra.mxu0 %v9757_v40  ;;  %v3304_v46 = vmul.f32 %v12373_v60, %v3264_v42  ;;  %v3581_v21 = vrot.slane %v12463_v34, 5 }
 0xa19   : > { %v3736_v7 = vpack.c.bf16 %v3630_v38, %v3632_v14  ;;  %v10242_v12 = vpop.eup %10241  ;;  %6197 = vmatprep.subr.bf16.mxu0 %v9762_v44  ;;  %v3583_v22 = vrot.slane %v12487_v0, 5  ;;  %v12512_v61 = vadd.f32 %v12391_v16, %v3301_v63  ;;  %v3265_v28 = vmul.f32 %v10238_v39, %v12314_v55  ;;  %v9763_v14 = vld [vmem:[%s11019_s11 + $0x120] ss:$8 sps:$4 sm:$0xff]  }
 0xa1a   : > { %v3232_v25 = vadd.f32 1e-05, %v3216_v1  ;;  %v3629_v40 = vsel %vm3604_vm1, %v3576_v30, %v14431_v43  ;;  %v12520_v44 = vadd.f32 %v12387_v54, %v3306_v36  ;;  %v3270_v42 = vmul.f32 %v10242_v12, %v12329_v19 }
 0xa1b   : > { %6124 = vmatprep.mubr.bf16.mxu0 %v3736_v7  ;;  %v3626_v27 = vsel %vm3604_vm1, %v3581_v21, %v3583_v22  ;;  %v3372_v63 = vadd.s32 64, %v11307_v8  ;;  %v12527_v55 = vadd.f32 %v12391_v16, %v3299_v33  ;;  %v3263_v1 = vmul.f32 %v10236_v23, %v12218_v57  ;;  %v3199_v7 = vpop.xlane.xlu1 %3198  ;;  %v9768_v23 = vld [vmem:[%s11019_s11 + $0x134] ss:$8 sps:$4 sm:$0xff]  }
 0xa1c   : > { %v3231_v39 = vadd.f32 1e-05, %v3215_v24  ;;  %6198 = vmatpush1.bf16.msra.mxu0 %v9760_v41  ;;  %v14470_v38 = vrot.slane %v12410_v51, 5  ;;  %v12536_v19 = vadd.f32 %v12387_v54, %v3304_v46  ;;  %v3268_v36 = vmul.f32 %v12493_v48, %v12231_v20 }
 0xa1d   : > { %6199 = vmatprep.subr.bf16.mxu0 %v9765_v50  ;;  %v3628_v57 = vsel %vm3604_vm1, %v3579_v35, %v3581_v21  ;;  %v3305_v33 = vmul.f32 %v12378_v59, %v3265_v28  ;;  %10247 = vrsqrt.f32 %v3232_v25  ;;  %v3582_v24 = vrot.slane %v12512_v61, 5  ;;  %v9766_v35 = vld [vmem:[%s11019_s11 + $0x130] ss:$8 sps:$4 sm:$0xff]   ;;  %v9771_v25 = vld [vmem:[%s11019_s11 + $0x144] ss:$8 sps:$4 sm:$0xff]  }
 0xa1e   : > { %v3631_v15 = vsel %vm3604_vm1, %v14470_v38, %v3576_v30  ;;  %v3738_v30 = vpack.c.bf16 %v3626_v27, %v3628_v57  ;;  %v10244_v41 = vpop.eup %10243  ;;  %v3310_v46 = vmul.f32 %v12373_v60, %v3270_v42  ;;  %v3587_v20 = vrot.slane %v12520_v44, 5 }
 0xa1f   : > { %v3735_v43 = vpack.c.bf16 %v3629_v40, %v3631_v15  ;;  %v3303_v50 = vmul.f32 %v12378_v59, %v3263_v1  ;;  %10249 = vrsqrt.f32 %v3231_v39  ;;  %v3217_v40 = vmul.f32 0.00390625, %v3199_v7 }
 0xa20   : > { %6200 = vmatpush1.bf16.msra.mxu0 %v9763_v14  ;;  %v3580_v21 = vrot.slane %v12527_v55, 5  ;;  %v3308_v28 = vmul.f32 %v12373_v60, %v3268_v36  ;;  %v3585_v27 = vrot.slane %v12536_v19, 5  ;;  %v3269_v1 = vmul.f32 %v10242_v12, %v12326_v47 }
 0xa21   : > { %6125 = vmatmul.mubr.bf16.gmra.mrb[20].mxu0 %v3735_v43  ;;  %6201 = vmatprep.subr.bf16.mxu0 %v9768_v23  ;;  %v10246_v42 = vpop.eup %10245  ;;  %v12554_v43 = vadd.f32 %v12391_v16, %v3305_v33  ;;  %v12561_v38 = vand.u32 63, %v3372_v63  ;;  %v12564_v15 = vadd.f32 %v12387_v54, %v3310_v46  ;;  %v3274_v14 = vmul.f32 %v10244_v41, %v12341_v13  ;;  %v9769_v23 = vld [vmem:[%s11019_s11 + $0x140] ss:$8 sps:$4 sm:$0xff]  }
 0xa22   : > { %6134 = vmatprep.mubr.bf16.mxu0 %v3738_v30  ;;  %v3625_v39 = vsel %vm3604_vm1, %v3580_v21, %v3582_v24  ;;  %v3622_v36 = vsel %vm3604_vm1, %v3585_v27, %v3587_v20  ;;  %v12572_v47 = vadd.f32 %v12391_v16, %v3303_v50  ;;  %v3267_v12 = vmul.f32 %v12493_v48, %v12228_v17  ;;  %v9774_v17 = vld [vmem:[%s11019_s11 + $0x154] ss:$8 sps:$4 sm:$0xff]  }
 0xa23   : > { %v3233_v7 = vadd.f32 1e-05, %v3217_v40  ;;  %v14471_v63 = vrot.slane %v12454_v3, 5  ;;  %v12582_v13 = vadd.f32 %v12387_v54, %v3308_v28  ;;  %v3272_v33 = vmul.f32 %v10246_v42, %v12241_v53 }
 0xa24   : > { %6202 = vmatpush1.bf16.msra.mxu0 %v9766_v35  ;;  %v3624_v46 = vsel %vm3604_vm1, %v3583_v22, %v3585_v27  ;;  %v3309_v48 = vmul.f32 %v12378_v59, %v3269_v1  ;;  %v3586_v40 = vrot.slane %v12554_v43, 5  ;;  %v3645_v35 = vadd.s32 4294967293, %v12561_v38  ;;  %v9772_v22 = vld [vmem:[%s11019_s11 + $0x150] ss:$8 sps:$4 sm:$0xff]  }
 0xa25   : > { %v3627_v57 = vsel %vm3604_vm1, %v14471_v63, %v3580_v21  ;;  %6203 = vmatprep.subr.bf16.mxu0 %v9771_v25  ;;  %v3740_v50 = vpack.c.bf16 %v3622_v36, %v3624_v46  ;;  %v3314_v21 = vmul.f32 %v12373_v60, %v3274_v14  ;;  %v3591_v53 = vrot.slane %v12564_v15, 5  ;;  %v9775_v46 = vld [vmem:[%s11019_s11 + $0x160] ss:$8 sps:$4 sm:$0xff]  }
 0xa26   : > { %v3737_v30 = vpack.c.bf16 %v3625_v39, %v3627_v57  ;;  %v3307_v25 = vmul.f32 %v12378_v59, %v3267_v12  ;;  %10251 = vrsqrt.f32 %v3233_v7  ;;  %v3584_v27 = vrot.slane %v12572_v47, 5  ;;  %v9777_v39 = vld [vmem:[%s11019_s11 + $0x164] ss:$8 sps:$4 sm:$0xff]  }
 0xa27   : > { %v10248_v28 = vpop.eup %10247  ;;  %v3312_v1 = vmul.f32 %v12373_v60, %v3272_v33  ;;  %v3589_v36 = vrot.slane %v12582_v13, 5  ;;  %v12600_v63 = vadd.f32 %v12391_v16, %v3309_v48  ;;  %v3273_v57 = vmul.f32 %v10244_v41, %v12338_v18 }
 0xa28   : > { %6204 = vmatpush1.bf16.msra.mxu0 %v9769_v23  ;;  %v3621_v12 = vsel %vm3604_vm1, %v3584_v27, %v3586_v40  ;;  %vm3661_vm5 = vcmp.ge.s32.totalorder %v3645_v35, 0  ;;  %v12606_v7 = vadd.f32 %v12387_v54, %v3314_v21  ;;  %v3278_v23 = vmul.f32 %v10248_v28, %v12353_v26 }
 0xa29   : > { %6135 = vmatmul.mubr.bf16.gmra.mrb[24].mxu0 %v3737_v30  ;;  %6205 = vmatprep.subr.bf16.mxu0 %v9774_v17  ;;  %v10250_v14 = vpop.eup %10249  ;;  %v3618_v33 = vsel %vm3604_vm1, %v3589_v36, %v3591_v53  ;;  %v12614_v30 = vadd.f32 %v12391_v16, %v3307_v25  ;;  %v3271_v18 = vmul.f32 %v10246_v42, %v12238_v29  ;;  %vm12631_vm6 = vmpackc.low %vm10654_vm3, %vm3661_vm5  ;;  %v3590_v21 = vrot.slane %v12600_v63, 5 }
 0xa2a   : > { %6144 = vmatprep.mubr.bf16.mxu0 %v3740_v50  ;;  %v3623_v41 = vsel %vm3604_vm1, %v3582_v24, %v3584_v27  ;;  %v12623_v17 = vadd.f32 %v12387_v54, %v3312_v1  ;;  %v3276_v26 = vmul.f32 %v10250_v14, %v12255_v5  ;;  %v3620_v29 = vsel %vm3604_vm1, %v3587_v20, %v3589_v36  ;;  %v9780_v24 = vld [vmem:[%s11019_s11 + $0x174] ss:$8 sps:$4 sm:$0xff]   ;;  %v9778_v20 = vld [vmem:[%s11019_s11 + $0x170] ss:$8 sps:$4 sm:$0xff]  }
 0xa2b   : > { %v3739_v48 = vpack.c.bf16 %v3621_v12, %v3623_v41  ;;  %v3313_v50 = vmul.f32 %v12378_v59, %v3273_v57  ;;  %v8791_v35 = vpack.c.bf16 %v3618_v33, %v3620_v29  ;;  %v3318_v5 = vmul.f32 %v12373_v60, %v3278_v23 }
 0xa2c   : > { %6206 = vmatpush1.bf16.msra.mxu0 %v9772_v22  ;;  %v3595_v25 = vrot.slane %v12606_v7, 5  ;;  %v3311_v22 = vmul.f32 %v12378_v59, %v3271_v18  ;;  %v3588_v27 = vrot.slane %v12614_v30, 5  ;;  %v3316_v1 = vmul.f32 %v12373_v60, %v3276_v26 }
 0xa2d   : > { %6207 = vmatprep.subr.bf16.mxu0 %v9777_v39  ;;  %v9783_v39 = vld [vmem:[%s11019_s11 + $0x184] ss:$8 sps:$4 sm:$0xff]   ;;  %v3593_v36 = vrot.slane %v12623_v17, 5  ;;  %v12649_v12 = vadd.f32 %v12391_v16, %v3313_v50  ;;  %v3277_v23 = vmul.f32 %v10248_v28, %v12350_v58  ;;  %v12655_v18 = vadd.f32 %v12387_v54, %v3318_v5  ;;  %v9781_v58 = vld [vmem:[%s11019_s11 + $0x180] ss:$8 sps:$4 sm:$0xff]  }
 0xa2e   : > { %v3617_v33 = vsel %vm3604_vm1, %v3588_v27, %v3590_v21  ;;  %v3275_v26 = vmul.f32 %v10250_v14, %v12252_v52  ;;  %v12667_v28 = vadd.f32 %v12387_v54, %v3316_v1  ;;  %v9786_v52 = vld [vmem:[%s11019_s11 + $0x194] ss:$8 sps:$4 sm:$0xff]  }
 0xa2f   : > { %v3614_v41 = vsel %vm3604_vm1, %v3593_v36, %v3595_v25  ;;  %v3616_v50 = vsel %vm3604_vm1, %v3591_v53, %v3593_v36  ;;  %v3317_v14 = vmul.f32 %v12378_v59, %v3277_v23  ;;  %v3599_v5 = vrot.slane %v12655_v18, 5 }
 0xa30   : > { %6208 = vmatpush1.bf16.msra.mxu0 %v9775_v46  ;;  %v10252_v57 = vpop.eup %10251  ;;  %v12660_v46 = vadd.f32 %v12391_v16, %v3311_v22  ;;  %v9784_v22 = vld [vmem:[%s11019_s11 + $0x190] ss:$8 sps:$4 sm:$0xff]   ;;  %v3597_v1 = vrot.slane %v12667_v28, 5 }
 0xa31   : > { %6145 = vmatmul.mubr.bf16.gmra.mrb[28].mxu0 %v3739_v48  ;;  %6209 = vmatprep.subr.bf16.mxu0 %v9780_v24  ;;  %v3619_v48 = vsel %vm3604_vm1, %v3586_v40, %v3588_v27  ;;  %v3280_v29 = vmul.f32 %v10252_v57, %v12269_v4  ;;  %v3594_v40 = vrot.slane %v12649_v12, 5  ;;  %v3315_v4 = vmul.f32 %v12378_v59, %v3275_v26  ;;  %v9789_v27 = vld [vmem:[%s11019_s11 + $0x1a4] ss:$8 sps:$4 sm:$0xff]  }
 0xa32   : > { %8792 = vmatprep.mubr.msk.bf16.mxu0 %vm12631_vm6, %v8791_v35  ;;  %v8794_v24 = vpack.c.bf16 %v3617_v33, %v3619_v48  ;;  %v3744_v35 = vpack.c.bf16 %v3614_v41, %v3616_v50  ;;  %v12687_v42 = vadd.f32 %v12391_v16, %v3317_v14  ;;  %v3610_v36 = vsel %vm3604_vm1, %v3597_v1, %v3599_v5  ;;  %v9787_v41 = vld [vmem:[%s11019_s11 + $0x1a0] ss:$8 sps:$4 sm:$0xff]  }
 0xa33   : > { %v3320_v53 = vmul.f32 %v12373_v60, %v3280_v29  ;;  %v12694_v23 = vadd.f32 %v12391_v16, %v3315_v4  ;;  %v3279_v60 = vmul.f32 %v10252_v57, %v12266_v62  ;;  %v9792_v29 = vld [vmem:[%s11019_s11 + $0x1b4] ss:$8 sps:$4 sm:$0xff]   ;;  %v9795_v57 = vld [vmem:[%s11019_s11 + $0x1c4] ss:$8 sps:$4 sm:$0xff]   ;;  %v9793_v4 = vld [vmem:[%s11019_s11 + $0x1c0] ss:$8 sps:$4 sm:$0xff]  }
 0xa34   : > { %6210 = vmatpush1.bf16.msra.mxu0 %v9778_v20  ;;  %v3592_v20 = vrot.slane %v12660_v46, 5  ;;  %v3598_v50 = vrot.slane %v12687_v42, 5 }
 0xa35   : > { %6211 = vmatprep.subr.bf16.mxu0 %v9783_v39  ;;  %v12701_v26 = vadd.f32 %v12387_v54, %v3320_v53  ;;  %v3319_v62 = vmul.f32 %v12378_v59, %v3279_v60  ;;  %v3596_v54 = vrot.slane %v12694_v23, 5  ;;  %v3750_v60 = vrot.slane %v12403_v37, 6 }
 0xa36   : > { %v3613_v39 = vsel %vm3604_vm1, %v3592_v20, %v3594_v40  ;;  %v3615_v33 = vsel %vm3604_vm1, %v3590_v21, %v3592_v20  ;;  %v9790_v21 = vld [vmem:[%s11019_s11 + $0x1b0] ss:$8 sps:$4 sm:$0xff]   ;;  %v14474_v20 = vrot.slane %v12436_v11, 5 }
 0xa37   : > { %v3743_v48 = vpack.c.bf16 %v3613_v39, %v3615_v33  ;;  %v3611_v59 = vsel %vm3604_vm1, %v3594_v40, %v3596_v54  ;;  %v9796_v39 = vld [vmem:[%s11019_s11 + $0x1d0] ss:$8 sps:$4 sm:$0xff]   ;;  %v3752_v33 = vrot.slane %v12399_v56, 6 }
 0xa38   : > { %6212 = vmatpush1.bf16.msra.mxu0 %v9781_v58  ;;  %v3612_v58 = vsel %vm3604_vm1, %v3595_v25, %v3597_v1  ;;  %v3609_v25 = vsel %vm3604_vm1, %v3596_v54, %v3598_v50  ;;  %v9804_v54 = vld [vmem:[%s11019_s11 + $0x1f4] ss:$8 sps:$4 sm:$0xff]  }
 0xa39   : > { %8795 = vmatmul.mubr.msk.bf16.gmra.mrb[32].mxu0 %vm12631_vm6, %v8794_v24  ;;  %6213 = vmatprep.subr.bf16.mxu0 %v9786_v52  ;;  %v3746_v24 = vpack.c.bf16 %v3610_v36, %v3612_v58  ;;  %v3601_v52 = vrot.slane %v12701_v26, 5  ;;  %v9801_v36 = vld [vmem:[%s11019_s11 + $0x1e4] ss:$8 sps:$4 sm:$0xff]   ;;  %v14475_v58 = vrot.slane %v12433_v45, 5 }
 0xa3a   : > { %6164 = vmatprep.mubr.bf16.mxu0 %v3744_v35  ;;  %v12717_v35 = vadd.f32 %v12391_v16, %v3319_v62  ;;  %v3780_v16 = vrot.slane %v12436_v11, 6 }
 0xa3b   : > { %v3608_v14 = vsel %vm3604_vm1, %v3599_v5, %v3601_v52  ;;  %v3606_v53 = vsel %vm3604_vm1, %v3601_v52, %v14474_v20  ;;  %v3814_v5 = vadd.s32 4294967294, %v12383_v32  ;;  %v3779_v52 = vrot.slane %v12433_v45, 6 }
 0xa3c   : > { %6214 = vmatpush1.bf16.msra.mxu0 %v9784_v22  ;;  %v3745_v22 = vpack.c.bf16 %v3609_v25, %v3611_v59  ;;  %v3748_v1 = vpack.c.bf16 %v3606_v53, %v3608_v14  ;;  %v3600_v40 = vrot.slane %v12717_v35, 5  ;;  %v3756_v25 = vrot.slane %v12457_v9, 6  ;;  %v9802_v14 = vld [vmem:[%s11019_s11 + $0x1f0] ss:$8 sps:$4 sm:$0xff]  }
 0xa3d   : > { %6215 = vmatprep.subr.bf16.mxu0 %v9789_v27  ;;  %v9798_v27 = vld [vmem:[%s11019_s11 + $0x1d4] ss:$8 sps:$4 sm:$0xff]   ;;  %vm3830_vm8 = vcmp.ge.s32.totalorder %v3814_v5, 0  ;;  %v3749_v59 = vrot.slane %v12406_v31, 6  ;;  %v3754_v20 = vrot.slane %v12426_v49, 6 }
 0xa3e   : > { %vm12749_vm9 = vmpackc.low %vm10654_vm3, %vm3830_vm8  ;;  %v9805_v5 = vld [vmem:[%s11019_s11 + $0x200] ss:$8 sps:$4 sm:$0xff]  }
 0xa3f   : > { %v3812_v53 = vsel %vm3781_vm7, %v3779_v52, %v3749_v59 }
 0xa40   : > { %6216 = vmatpush1.bf16.msra.mxu0 %v9787_v41  ;;  %v3607_v41 = vsel %vm3604_vm1, %v3598_v50, %v3600_v40  ;;  %v3811_v50 = vsel %vm3781_vm7, %v3750_v60, %v3752_v33 }
 0xa41   : > { %6165 = vmatmul.mubr.bf16.gmra.mrb[36].mxu0 %v3743_v48  ;;  %6217 = vmatprep.subr.bf16.mxu0 %v9792_v29  ;;  %v3813_v48 = vsel %vm3781_vm7, %v3780_v16, %v3750_v60  ;;  %v3605_v29 = vsel %vm3604_vm1, %v3600_v40, %v14475_v58  ;;  %v3809_v40 = vsel %vm3781_vm7, %v3752_v33, %v3754_v20  ;;  %v9808_v58 = vld [vmem:[%s11019_s11 + $0x210] ss:$8 sps:$4 sm:$0xff]   ;;  %v3758_v33 = vrot.slane %v12463_v34, 6 }
 0xa42   : > { %6174 = vmatprep.mubr.bf16.mxu0 %v3746_v24  ;;  %v9799_v24 = vld [vmem:[%s11019_s11 + $0x1e0] ss:$8 sps:$4 sm:$0xff]   ;;  %v3747_v62 = vpack.c.bf16 %v3605_v29, %v3607_v41  ;;  %v3755_v41 = vrot.slane %v12454_v3, 6  ;;  %v3753_v29 = vrot.slane %v12446_v2, 6  ;;  %vm4231_vm1 = vcmp.lt.s32.totalorder %v11307_v8, 7 }
 0xa44   : > { %6218 = vmatpush1.bf16.msra.mxu0 %v9790_v21 }
 0xa45   : > { %6219 = vmatprep.subr.bf16.mxu0 %v9795_v57  ;;  %v8797_v57 = vpack.c.bf16 %v3811_v50, %v3813_v48  ;;  %v3760_v48 = vrot.slane %v12487_v0, 6 }
 0xa47   : > { %v3803_v50 = vsel %vm3781_vm7, %v3758_v33, %v3760_v48 }
 0xa48   : > { %6220 = vmatpush1.bf16.msra.mxu0 %v9793_v4  ;;  %v3751_v4 = vrot.slane %v12410_v51, 6 }
 0xa49   : > { %6175 = vmatmul.mubr.bf16.gmra.mrb[40].mxu0 %v3745_v22  ;;  %6221 = vmatprep.subr.bf16.mxu0 %v9798_v27  ;;  %v9807_v22 = vld [vmem:[%s11019_s11 + $0x204] ss:$8 sps:$4 sm:$0xff]   ;;  %v3807_v27 = vsel %vm3781_vm7, %v3754_v20, %v3756_v25  ;;  %v3759_v20 = vrot.slane %v12512_v61, 6 }
 0xa4a   : > { %6184 = vmatprep.mubr.bf16.mxu0 %v3748_v1  ;;  %v3810_v1 = vsel %vm3781_vm7, %v3749_v59, %v3751_v4  ;;  %v3913_v60 = vpack.c.bf16 %v3807_v27, %v3809_v40  ;;  %v3808_v21 = vsel %vm3781_vm7, %v3751_v4, %v3753_v29  ;;  %v9816_v59 = vld [vmem:[%s11019_s11 + $0x234] ss:$8 sps:$4 sm:$0xff]   ;;  %v9814_v27 = vld [vmem:[%s11019_s11 + $0x230] ss:$8 sps:$4 sm:$0xff]   ;;  %v3757_v4 = vrot.slane %v12527_v55, 6 }
 0xa4c   : > { %6222 = vmatpush1.bf16.msra.mxu0 %v9796_v39  ;;  %v8800_v39 = vpack.c.bf16 %v3810_v1, %v3812_v53  ;;  %v3764_v53 = vrot.slane %v12520_v44, 6  ;;  %v9819_v1 = vld [vmem:[%s11019_s11 + $0x244] ss:$8 sps:$4 sm:$0xff]   ;;  %v3804_v40 = vsel %vm3781_vm7, %v3755_v41, %v3757_v4 }
 0xa4d   : > { %6223 = vmatprep.subr.bf16.mxu0 %v9801_v36  ;;  %v9810_v36 = vld [vmem:[%s11019_s11 + $0x214] ss:$8 sps:$4 sm:$0xff]  }
 0xa50   : > { %6224 = vmatpush1.bf16.msra.mxu0 %v9799_v24  ;;  %v9813_v24 = vld [vmem:[%s11019_s11 + $0x224] ss:$8 sps:$4 sm:$0xff]  }
 0xa51   : > { %6185 = vmatmul.mubr.bf16.gmra.mrb[44].mxu0 %v3747_v62  ;;  %6225 = vmatprep.subr.bf16.mxu0 %v9804_v54  ;;  %v3806_v62 = vsel %vm3781_vm7, %v3753_v29, %v3755_v41  ;;  %v9811_v54 = vld [vmem:[%s11019_s11 + $0x220] ss:$8 sps:$4 sm:$0xff]   ;;  %v9822_v29 = vld [vmem:[%s11019_s11 + $0x254] ss:$8 sps:$4 sm:$0xff]   ;;  %v9820_v41 = vld [vmem:[%s11019_s11 + $0x250] ss:$8 sps:$4 sm:$0xff]  }
 0xa52   : > { %8798 = vmatprep.mubr.msk.bf16.mxu0 %vm12749_vm9, %v8797_v57  ;;  %v3912_v57 = vpack.c.bf16 %v3806_v62, %v3808_v21  ;;  %v3822_v62 = vadd.s32 4294967294, %v12561_v38  ;;  %v3761_v21 = vrot.slane %v12572_v47, 6 }
 0xa54   : > { %6226 = vmatpush1.bf16.msra.mxu0 %v9802_v14  ;;  %v3805_v14 = vsel %vm3781_vm7, %v3756_v25, %v3758_v33  ;;  %v3802_v25 = vsel %vm3781_vm7, %v3757_v4, %v3759_v20  ;;  %v3763_v33 = vrot.slane %v12554_v43, 6  ;;  %vm3838_vm10 = vcmp.ge.s32.totalorder %v3822_v62, 0  ;;  %v9829_v62 = vld [vmem:[%s11019_s11 + $0x280] ss:$8 sps:$4 sm:$0xff]  }
 0xa55   : > { %6308 = vmatprep.subr.bf16.mxu0 %v9807_v22  ;;  %v3915_v22 = vpack.c.bf16 %v3803_v50, %v3805_v14  ;;  %v3768_v50 = vrot.slane %v12564_v15, 6  ;;  %vm12826_vm11 = vmpackc.low %vm10654_vm3, %vm3838_vm10 }
 0xa59   : > { %8801 = vmatmul.mubr.msk.bf16.vlgmr.msra.gmra.mrb[16].mxu0 %vm12749_vm9, %v8800_v39 }
 0xa5a   : > { %6237 = vmatprep.mubr.bf16.mxu0 %v3913_v60  ;;  %6309 = vmatpush1.bf16.msra.mxu0 %v9805_v5  ;;  %v3762_v5 = vrot.slane %v12536_v19, 6  ;;  %v3914_v60 = vpack.c.bf16 %v3802_v25, %v3804_v40  ;;  %v9826_v40 = vld [vmem:[%s11019_s11 + $0x270] ss:$8 sps:$4 sm:$0xff]  }
 0xa5b   : > { %6310 = vmatprep.subr.bf16.mxu0 %v9810_v36  ;;  %v9817_v36 = vld [vmem:[%s11019_s11 + $0x240] ss:$8 sps:$4 sm:$0xff]  }
 0xa5c   : > { %v3799_v39 = vsel %vm3781_vm7, %v3762_v5, %v3764_v53 }
 0xa5e   : > { %6311 = vmatpush1.bf16.msra.mxu0 %v9808_v58  ;;  %v3801_v58 = vsel %vm3781_vm7, %v3760_v48, %v3762_v5  ;;  %v3766_v48 = vrot.slane %v12582_v13, 6  ;;  %v9828_v5 = vld [vmem:[%s11019_s11 + $0x274] ss:$8 sps:$4 sm:$0xff]  }
 0xa5f   : > { %6312 = vmatprep.subr.bf16.mxu0 %v9813_v24  ;;  %v3917_v24 = vpack.c.bf16 %v3799_v39, %v3801_v58  ;;  %v3767_v39 = vrot.slane %v12600_v63, 6 }
 0xa60   : > { %v3795_v14 = vsel %vm3781_vm7, %v3766_v48, %v3768_v50  ;;  %v3797_v4 = vsel %vm3781_vm7, %v3764_v53, %v3766_v48  ;;  %v3765_v53 = vrot.slane %v12614_v30, 6 }
 0xa61   : > { %6238 = vmatmul.mubr.bf16.gmra.mrb[20].mxu0 %v3912_v57  ;;  %v3798_v57 = vsel %vm3781_vm7, %v3761_v21, %v3763_v33  ;;  %v8803_v25 = vpack.c.bf16 %v3795_v14, %v3797_v4  ;;  %v3776_v14 = vrot.slane %v12655_v18, 6 }
 0xa62   : > { %6247 = vmatprep.mubr.bf16.mxu0 %v3915_v22  ;;  %6313 = vmatpush1.bf16.msra.mxu0 %v9811_v54  ;;  %v9825_v54 = vld [vmem:[%s11019_s11 + $0x264] ss:$8 sps:$4 sm:$0xff]   ;;  %v9823_v22 = vld [vmem:[%s11019_s11 + $0x260] ss:$8 sps:$4 sm:$0xff]   ;;  %v3794_v58 = vsel %vm3781_vm7, %v3765_v53, %v3767_v39 }
 0xa63   : > { %6314 = vmatprep.subr.bf16.mxu0 %v9816_v59  ;;  %v3800_v59 = vsel %vm3781_vm7, %v3759_v20, %v3761_v21  ;;  %v3772_v20 = vrot.slane %v12606_v7, 6 }
 0xa66   : > { %6315 = vmatpush1.bf16.msra.mxu0 %v9814_v27  ;;  %v3916_v27 = vpack.c.bf16 %v3798_v57, %v3800_v59  ;;  %v3771_v57 = vrot.slane %v12649_v12, 6  ;;  %v3769_v59 = vrot.slane %v12660_v46, 6 }
 0xa67   : > { %6316 = vmatprep.subr.bf16.mxu0 %v9819_v1 }
 0xa68   : > { %v3792_v1 = vsel %vm3781_vm7, %v3767_v39, %v3769_v59  ;;  %v9843_v39 = vld [vmem:[%s11019_s11 + $0x2c4] ss:$8 sps:$4 sm:$0xff]  }
 0xa69   : > { %6248 = vmatmul.mubr.bf16.gmra.mrb[24].mxu0 %v3914_v60  ;;  %v3770_v60 = vrot.slane %v12623_v17, 6 }
 0xa6a   : > { %6257 = vmatprep.mubr.bf16.mxu0 %v3917_v24  ;;  %6317 = vmatpush1.bf16.msra.mxu0 %v9817_v36  ;;  %v9831_v36 = vld [vmem:[%s11019_s11 + $0x284] ss:$8 sps:$4 sm:$0xff]   ;;  %v3796_v24 = vsel %vm3781_vm7, %v3763_v33, %v3765_v53  ;;  %v9832_v33 = vld [vmem:[%s11019_s11 + $0x290] ss:$8 sps:$4 sm:$0xff]   ;;  %v9840_v53 = vld [vmem:[%s11019_s11 + $0x2b4] ss:$8 sps:$4 sm:$0xff]  }
 0xa6b   : > { %6318 = vmatprep.subr.bf16.mxu0 %v9822_v29  ;;  %v3791_v29 = vsel %vm3781_vm7, %v3770_v60, %v3772_v20  ;;  %v3793_v21 = vsel %vm3781_vm7, %v3768_v50, %v3770_v60  ;;  %v3774_v50 = vrot.slane %v12667_v28, 6  ;;  %v3775_v60 = vrot.slane %v12687_v42, 6 }
 0xa6c   : > { %v3921_v48 = vpack.c.bf16 %v3791_v29, %v3793_v21  ;;  %v3773_v29 = vrot.slane %v12694_v23, 6  ;;  %v9841_v21 = vld [vmem:[%s11019_s11 + $0x2c0] ss:$8 sps:$4 sm:$0xff]  }
 0xa6d   : > { %v3787_v4 = vsel %vm3781_vm7, %v3774_v50, %v3776_v14 }
 0xa6e   : > { %6319 = vmatpush1.bf16.msra.mxu0 %v9820_v41  ;;  %v8806_v41 = vpack.c.bf16 %v3794_v58, %v3796_v24  ;;  %v9838_v58 = vld [vmem:[%s11019_s11 + $0x2b0] ss:$8 sps:$4 sm:$0xff]   ;;  %v3778_v24 = vrot.slane %v12701_v26, 6 }
 0xa6f   : > { %6320 = vmatprep.subr.bf16.mxu0 %v9825_v54  ;;  %v9834_v54 = vld [vmem:[%s11019_s11 + $0x294] ss:$8 sps:$4 sm:$0xff]  }
 0xa71   : > { %6258 = vmatmul.mubr.bf16.gmra.mrb[28].mxu0 %v3916_v27  ;;  %v3790_v27 = vsel %vm3781_vm7, %v3769_v59, %v3771_v57 }
 0xa72   : > { %8804 = vmatprep.mubr.msk.bf16.mxu0 %vm12826_vm11, %v8803_v25  ;;  %6321 = vmatpush1.bf16.msra.mxu0 %v9823_v22  ;;  %v9837_v22 = vld [vmem:[%s11019_s11 + $0x2a4] ss:$8 sps:$4 sm:$0xff]   ;;  %v3920_v25 = vpack.c.bf16 %v3790_v27, %v3792_v1 }
 0xa73   : > { %6322 = vmatprep.subr.bf16.mxu0 %v9828_v5  ;;  %v9835_v5 = vld [vmem:[%s11019_s11 + $0x2a0] ss:$8 sps:$4 sm:$0xff]   ;;  %v9849_v27 = vld [vmem:[%s11019_s11 + $0x2e4] ss:$8 sps:$4 sm:$0xff]  }
 0xa76   : > { %6323 = vmatpush1.bf16.msra.mxu0 %v9826_v40  ;;  %v3789_v40 = vsel %vm3781_vm7, %v3772_v20, %v3774_v50  ;;  %v3786_v20 = vsel %vm3781_vm7, %v3773_v29, %v3775_v60  ;;  %v9844_v50 = vld [vmem:[%s11019_s11 + $0x2d0] ss:$8 sps:$4 sm:$0xff]  }
 0xa77   : > { %6324 = vmatprep.subr.bf16.mxu0 %v9831_v36  ;;  %v3923_v36 = vpack.c.bf16 %v3787_v4, %v3789_v40  ;;  %v3927_v4 = vrot.slane %v12403_v37, 7 }
 0xa79   : > { %8807 = vmatmul.mubr.msk.bf16.gmra.mrb[32].mxu0 %vm12826_vm11, %v8806_v41  ;;  %v3788_v41 = vsel %vm3781_vm7, %v3771_v57, %v3773_v29  ;;  %v3777_v57 = vrot.slane %v12717_v35, 6  ;;  %v3956_v29 = vrot.slane %v12433_v45, 7 }
 0xa7a   : > { %6277 = vmatprep.mubr.bf16.mxu0 %v3921_v48  ;;  %6325 = vmatpush1.bf16.msra.mxu0 %v9829_v62  ;;  %v3785_v62 = vsel %vm3781_vm7, %v3776_v14, %v3778_v24  ;;  %v3783_v48 = vsel %vm3781_vm7, %v3778_v24, %v3780_v16  ;;  %v3957_v14 = vrot.slane %v12436_v11, 7  ;;  %v3929_v16 = vrot.slane %v12399_v56, 7 }
 0xa7b   : > { %6326 = vmatprep.subr.bf16.mxu0 %v9834_v54  ;;  %v3922_v54 = vpack.c.bf16 %v3786_v20, %v3788_v41  ;;  %v3925_v59 = vpack.c.bf16 %v3783_v48, %v3785_v62  ;;  %v3784_v1 = vsel %vm3781_vm7, %v3775_v60, %v3777_v57  ;;  %v9852_v60 = vld [vmem:[%s11019_s11 + $0x2f4] ss:$8 sps:$4 sm:$0xff]   ;;  %v3926_v24 = vrot.slane %v12406_v31, 7  ;;  %v9855_v62 = vld [vmem:[%s11019_s11 + $0x304] ss:$8 sps:$4 sm:$0xff]  }
 0xa7c   : > { %v3928_v20 = vrot.slane %v12410_v51, 7  ;;  %v3931_v41 = vrot.slane %v12426_v49, 7 }
 0xa7e   : > { %6327 = vmatpush1.bf16.msra.mxu0 %v9832_v33  ;;  %v9846_v33 = vld [vmem:[%s11019_s11 + $0x2d4] ss:$8 sps:$4 sm:$0xff]   ;;  %v3987_v48 = vsel %vm3958_vm12, %v3926_v24, %v3928_v20 }
 0xa7f   : > { %6328 = vmatprep.subr.bf16.mxu0 %v9837_v22  ;;  %v3991_v22 = vadd.s32 4294967295, %v12383_v32  ;;  %v3990_v32 = vsel %vm3958_vm12, %v3957_v14, %v3927_v4 }
 0xa81   : > { %6278 = vmatmul.mubr.bf16.gmra.mrb[36].mxu0 %v3920_v25  ;;  %vm4007_vm13 = vcmp.ge.s32.totalorder %v3991_v22, 0  ;;  %v9847_v25 = vld [vmem:[%s11019_s11 + $0x2e0] ss:$8 sps:$4 sm:$0xff]   ;;  %v3986_v22 = vsel %vm3958_vm12, %v3929_v16, %v3931_v41 }
 0xa82   : > { %6287 = vmatprep.mubr.bf16.mxu0 %v3923_v36  ;;  %6329 = vmatpush1.bf16.msra.mxu0 %v9835_v5  ;;  %v3782_v5 = vsel %vm3781_vm7, %v3777_v57, %v3779_v52  ;;  %vm12906_vm14 = vmpackc.low %vm10654_vm3, %vm4007_vm13  ;;  %v3933_v52 = vrot.slane %v12457_v9, 7  ;;  %v9859_v36 = vld [vmem:[%s11019_s11 + $0x320] ss:$8 sps:$4 sm:$0xff]   ;;  %vm4408_vm7 = vcmp.lt.s32.totalorder %v11307_v8, 6 }
 0xa83   : > { %6330 = vmatprep.subr.bf16.mxu0 %v9840_v53  ;;  %v3924_v40 = vpack.c.bf16 %v3782_v5, %v3784_v1  ;;  %v3988_v53 = vsel %vm3958_vm12, %v3927_v4, %v3929_v16  ;;  %v3937_v4 = vrot.slane %v12487_v0, 7  ;;  %v9856_v1 = vld [vmem:[%s11019_s11 + $0x310] ss:$8 sps:$4 sm:$0xff]   ;;  %v9861_v5 = vld [vmem:[%s11019_s11 + $0x324] ss:$8 sps:$4 sm:$0xff]   ;;  %v3935_v16 = vrot.slane %v12463_v34, 7 }
 0xa86   : > { %6331 = vmatpush1.bf16.msra.mxu0 %v9838_v58  ;;  %v8809_v58 = vpack.c.bf16 %v3988_v53, %v3990_v32  ;;  %v3930_v32 = vrot.slane %v12446_v2, 7 }
 0xa87   : > { %6332 = vmatprep.subr.bf16.mxu0 %v9843_v39  ;;  %v9850_v39 = vld [vmem:[%s11019_s11 + $0x2f0] ss:$8 sps:$4 sm:$0xff]  }
 0xa88   : > { %v3985_v53 = vsel %vm3958_vm12, %v3928_v20, %v3930_v32  ;;  %v3934_v20 = vrot.slane %v12527_v55, 7 }
 0xa89   : > { %6288 = vmatmul.mubr.bf16.gmra.mrb[40].mxu0 %v3922_v54  ;;  %v3984_v54 = vsel %vm3958_vm12, %v3931_v41, %v3933_v52  ;;  %v3941_v41 = vrot.slane %v12520_v44, 7 }
 0xa8a   : > { %6297 = vmatprep.mubr.bf16.mxu0 %v3925_v59  ;;  %6333 = vmatpush1.bf16.msra.mxu0 %v9841_v21  ;;  %v3989_v21 = vsel %vm3958_vm12, %v3956_v29, %v3926_v24  ;;  %v4090_v57 = vpack.c.bf16 %v3984_v54, %v3986_v22  ;;  %v9867_v54 = vld [vmem:[%s11019_s11 + $0x344] ss:$8 sps:$4 sm:$0xff]   ;;  %v9865_v22 = vld [vmem:[%s11019_s11 + $0x340] ss:$8 sps:$4 sm:$0xff]  }
 0xa8b   : > { %6334 = vmatprep.subr.bf16.mxu0 %v9846_v33  ;;  %v9853_v33 = vld [vmem:[%s11019_s11 + $0x300] ss:$8 sps:$4 sm:$0xff]   ;;  %v8812_v59 = vpack.c.bf16 %v3987_v48, %v3989_v21  ;;  %v9862_v21 = vld [vmem:[%s11019_s11 + $0x330] ss:$8 sps:$4 sm:$0xff]   ;;  %v3939_v48 = vrot.slane %v12536_v19, 7 }
 0xa8e   : > { %6335 = vmatpush1.bf16.msra.mxu0 %v9844_v50  ;;  %v9858_v50 = vld [vmem:[%s11019_s11 + $0x314] ss:$8 sps:$4 sm:$0xff]  }
 0xa8f   : > { %6336 = vmatprep.subr.bf16.mxu0 %v9849_v27  ;;  %v3932_v27 = vrot.slane %v12454_v3, 7 }
 0xa91   : > { %6298 = vmatmul.mubr.bf16.gmra.mrb[44].mxu0 %v3924_v40  ;;  %v3980_v40 = vsel %vm3958_vm12, %v3935_v16, %v3937_v4 }
 0xa92   : > { %6337 = vmatpush1.bf16.msra.mxu0 %v9847_v25  ;;  %8810 = vmatprep.mubr.msk.bf16.mxu0 %vm12906_vm14, %v8809_v58  ;;  %v3983_v25 = vsel %vm3958_vm12, %v3930_v32, %v3932_v27  ;;  %v3982_v58 = vsel %vm3958_vm12, %v3933_v52, %v3935_v16  ;;  %v3999_v16 = vadd.s32 4294967295, %v12561_v38 }
 0xa93   : > { %6338 = vmatprep.subr.bf16.mxu0 %v9852_v60  ;;  %v4089_v60 = vpack.c.bf16 %v3983_v25, %v3985_v53  ;;  %v4092_v24 = vpack.c.bf16 %v3980_v40, %v3982_v58  ;;  %v3945_v25 = vrot.slane %v12564_v15, 7  ;;  %v3938_v40 = vrot.slane %v12572_v47, 7  ;;  %v9873_v53 = vld [vmem:[%s11019_s11 + $0x364] ss:$8 sps:$4 sm:$0xff]   ;;  %v9871_v58 = vld [vmem:[%s11019_s11 + $0x360] ss:$8 sps:$4 sm:$0xff]  }
 0xa94   : > { %vm4015_vm15 = vcmp.ge.s32.totalorder %v3999_v16, 0 }
 0xa95   : > { %vm12983_vm0 = vmpackc.low %vm10654_vm3, %vm4015_vm15 }
 0xa96   : > { %6339 = vmatpush1.bf16.msra.mxu0 %v9850_v39  ;;  %v9864_v39 = vld [vmem:[%s11019_s11 + $0x334] ss:$8 sps:$4 sm:$0xff]  }
 0xa97   : > { %6421 = vmatprep.subr.bf16.mxu0 %v9855_v62  ;;  %v3936_v62 = vrot.slane %v12512_v61, 7 }
 0xa99   : > { %8813 = vmatmul.mubr.msk.bf16.vlgmr.msra.gmra.mrb[16].mxu0 %vm12906_vm14, %v8812_v59  ;;  %v3979_v52 = vsel %vm3958_vm12, %v3934_v20, %v3936_v62  ;;  %v3981_v59 = vsel %vm3958_vm12, %v3932_v27, %v3934_v20  ;;  %v9868_v27 = vld [vmem:[%s11019_s11 + $0x350] ss:$8 sps:$4 sm:$0xff]   ;;  %v9876_v20 = vld [vmem:[%s11019_s11 + $0x374] ss:$8 sps:$4 sm:$0xff]  }
 0xa9a   : > { %6350 = vmatprep.mubr.bf16.mxu0 %v4090_v57  ;;  %6422 = vmatpush1.bf16.msra.mxu0 %v9853_v33  ;;  %v3976_v33 = vsel %vm3958_vm12, %v3939_v48, %v3941_v41  ;;  %v3978_v57 = vsel %vm3958_vm12, %v3937_v4, %v3939_v48  ;;  %v3943_v4 = vrot.slane %v12582_v13, 7  ;;  %v3944_v48 = vrot.slane %v12600_v63, 7 }
 0xa9b   : > { %6423 = vmatprep.subr.bf16.mxu0 %v9858_v50  ;;  %v4091_v50 = vpack.c.bf16 %v3979_v52, %v3981_v59  ;;  %v4094_v32 = vpack.c.bf16 %v3976_v33, %v3978_v57  ;;  %v9874_v52 = vld [vmem:[%s11019_s11 + $0x370] ss:$8 sps:$4 sm:$0xff]   ;;  %v9879_v33 = vld [vmem:[%s11019_s11 + $0x384] ss:$8 sps:$4 sm:$0xff]   ;;  %v3947_v59 = vrot.slane %v12623_v17, 7 }
 0xa9c   : > { %v3972_v38 = vsel %vm3958_vm12, %v3943_v4, %v3945_v25 }
 0xa9d   : > { %v3970_v16 = vsel %vm3958_vm12, %v3945_v25, %v3947_v59  ;;  %v3951_v25 = vrot.slane %v12667_v28, 7 }
 0xa9e   : > { %6424 = vmatpush1.bf16.msra.mxu0 %v9856_v1  ;;  %v9870_v1 = vld [vmem:[%s11019_s11 + $0x354] ss:$8 sps:$4 sm:$0xff]  }
 0xa9f   : > { %6425 = vmatprep.subr.bf16.mxu0 %v9861_v5  ;;  %v3940_v5 = vrot.slane %v12554_v43, 7 }
 0xaa1   : > { %6351 = vmatmul.mubr.bf16.gmra.mrb[20].mxu0 %v4089_v60  ;;  %v3977_v60 = vsel %vm3958_vm12, %v3936_v62, %v3938_v40  ;;  %v3949_v62 = vrot.slane %v12606_v7, 7 }
 0xaa2   : > { %6360 = vmatprep.mubr.bf16.mxu0 %v4092_v24  ;;  %6426 = vmatpush1.bf16.msra.mxu0 %v9859_v36  ;;  %v3975_v36 = vsel %vm3958_vm12, %v3938_v40, %v3940_v5  ;;  %v3974_v24 = vsel %vm3958_vm12, %v3941_v41, %v3943_v4  ;;  %v3942_v41 = vrot.slane %v12614_v30, 7  ;;  %v3953_v4 = vrot.slane %v12655_v18, 7 }
 0xaa3   : > { %6427 = vmatprep.subr.bf16.mxu0 %v9864_v39  ;;  %v4093_v39 = vpack.c.bf16 %v3975_v36, %v3977_v60  ;;  %v3946_v36 = vrot.slane %v12660_v46, 7 }
 0xaa4   : > { %v3973_v57 = vsel %vm3958_vm12, %v3940_v5, %v3942_v41  ;;  %v9880_v5 = vld [vmem:[%s11019_s11 + $0x390] ss:$8 sps:$4 sm:$0xff]  }
 0xaa6   : > { %6428 = vmatpush1.bf16.msra.mxu0 %v9862_v21 }
 0xaa7   : > { %6429 = vmatprep.subr.bf16.mxu0 %v9867_v54  ;;  %v8815_v54 = vpack.c.bf16 %v3972_v38, %v3974_v24  ;;  %v9885_v38 = vld [vmem:[%s11019_s11 + $0x3a4] ss:$8 sps:$4 sm:$0xff]   ;;  %v9883_v24 = vld [vmem:[%s11019_s11 + $0x3a0] ss:$8 sps:$4 sm:$0xff]  }
 0xaa9   : > { %6361 = vmatmul.mubr.bf16.gmra.mrb[24].mxu0 %v4091_v50  ;;  %v3968_v50 = vsel %vm3958_vm12, %v3947_v59, %v3949_v62  ;;  %v3950_v59 = vrot.slane %v12694_v23, 7 }
 0xaaa   : > { %6370 = vmatprep.mubr.bf16.mxu0 %v4094_v32  ;;  %6430 = vmatpush1.bf16.msra.mxu0 %v9865_v22  ;;  %v3971_v22 = vsel %vm3958_vm12, %v3942_v41, %v3944_v48  ;;  %v4098_v40 = vpack.c.bf16 %v3968_v50, %v3970_v16  ;;  %v3952_v41 = vrot.slane %v12687_v42, 7 }
 0xaab   : > { %6431 = vmatprep.subr.bf16.mxu0 %v9870_v1  ;;  %v9877_v1 = vld [vmem:[%s11019_s11 + $0x380] ss:$8 sps:$4 sm:$0xff]   ;;  %v8818_v32 = vpack.c.bf16 %v3971_v22, %v3973_v57  ;;  %v3955_v22 = vrot.slane %v12701_v26, 7 }
 0xaad   : > { %v3962_v50 = vsel %vm3958_vm12, %v3953_v4, %v3955_v22  ;;  %v3960_v16 = vsel %vm3958_vm12, %v3955_v22, %v3957_v14  ;;  %v4188_v22 = vpack.c.bf16 %v12487_v0, %v12463_v34 }
 0xaae   : > { %6432 = vmatpush1.bf16.msra.mxu0 %v9868_v27  ;;  %v9882_v27 = vld [vmem:[%s11019_s11 + $0x394] ss:$8 sps:$4 sm:$0xff]  }
 0xaaf   : > { %6433 = vmatprep.subr.bf16.mxu0 %v9873_v53  ;;  %v3948_v53 = vrot.slane %v12649_v12, 7 }
 0xab1   : > { %6371 = vmatmul.mubr.bf16.gmra.mrb[28].mxu0 %v4093_v39  ;;  %v3967_v60 = vsel %vm3958_vm12, %v3946_v36, %v3948_v53  ;;  %v3969_v39 = vsel %vm3958_vm12, %v3944_v48, %v3946_v36  ;;  %v9891_v48 = vld [vmem:[%s11019_s11 + $0x3c4] ss:$8 sps:$4 sm:$0xff]   ;;  %v3965_v57 = vsel %vm3958_vm12, %v3948_v53, %v3950_v59 }
 0xab2   : > { %8816 = vmatprep.mubr.msk.bf16.mxu0 %vm12983_vm0, %v8815_v54  ;;  %6434 = vmatpush1.bf16.msra.mxu0 %v9871_v58  ;;  %v3964_v58 = vsel %vm3958_vm12, %v3951_v25, %v3953_v4  ;;  %v4097_v21 = vpack.c.bf16 %v3967_v60, %v3969_v39  ;;  %v9888_v54 = vld [vmem:[%s11019_s11 + $0x3b4] ss:$8 sps:$4 sm:$0xff]   ;;  %v9892_v4 = vld [vmem:[%s11019_s11 + $0x3d0] ss:$8 sps:$4 sm:$0xff]   ;;  %v9897_v53 = vld [vmem:[%s11019_s11 + $0x3e4] ss:$8 sps:$4 sm:$0xff]  }
 0xab3   : > { %6435 = vmatprep.subr.bf16.mxu0 %v9876_v20  ;;  %v3966_v20 = vsel %vm3958_vm12, %v3949_v62, %v3951_v25  ;;  %v3963_v62 = vsel %vm3958_vm12, %v3950_v59, %v3952_v41  ;;  %v9900_v60 = vld [vmem:[%s11019_s11 + $0x3f4] ss:$8 sps:$4 sm:$0xff]   ;;  %v9898_v39 = vld [vmem:[%s11019_s11 + $0x3f0] ss:$8 sps:$4 sm:$0xff]   ;;  %v4185_v59 = vpack.c.bf16 %v12454_v3, %v12446_v2 }
 0xab6   : > { %6436 = vmatpush1.bf16.msra.mxu0 %v9874_v52  ;;  %v4100_v52 = vpack.c.bf16 %v3964_v58, %v3966_v20  ;;  %v4184_v58 = vpack.c.bf16 %v12399_v56, %v12403_v37  ;;  %v9906_v20 = vld [vmem:[%s11019_s11 + $0x414] ss:$8 sps:$4 sm:$0xff]  }
 0xab7   : > { %6437 = vmatprep.subr.bf16.mxu0 %v9879_v33  ;;  %v9886_v33 = vld [vmem:[%s11019_s11 + $0x3b0] ss:$8 sps:$4 sm:$0xff]  }
 0xab9   : > { %8819 = vmatmul.mubr.msk.bf16.gmra.mrb[32].mxu0 %vm12983_vm0, %v8818_v32  ;;  %v4099_v32 = vpack.c.bf16 %v3963_v62, %v3965_v57  ;;  %v9910_v62 = vld [vmem:[%s11019_s11 + $0x430] ss:$8 sps:$4 sm:$0xff]   ;;  %v9913_v57 = vld [vmem:[%s11019_s11 + $0x440] ss:$8 sps:$4 sm:$0xff]  }
 0xaba   : > { %6390 = vmatprep.mubr.bf16.mxu0 %v4098_v40  ;;  %6438 = vmatpush1.bf16.msra.mxu0 %v9877_v1  ;;  %v9889_v1 = vld [vmem:[%s11019_s11 + $0x3c0] ss:$8 sps:$4 sm:$0xff]   ;;  %v4102_v40 = vpack.c.bf16 %v3960_v16, %v3962_v50  ;;  %v9915_v50 = vld [vmem:[%s11019_s11 + $0x444] ss:$8 sps:$4 sm:$0xff]   ;;  %v4190_v16 = vpack.c.bf16 %v12520_v44, %v12536_v19 }
 0xabb   : > { %6439 = vmatprep.subr.bf16.mxu0 %v9882_v27  ;;  %v9894_v27 = vld [vmem:[%s11019_s11 + $0x3d4] ss:$8 sps:$4 sm:$0xff]  }
 0xabe   : > { %6440 = vmatpush1.bf16.msra.mxu0 %v9880_v5  ;;  %v3954_v5 = vrot.slane %v12717_v35, 7 }
 0xabf   : > { %6441 = vmatprep.subr.bf16.mxu0 %v9885_v38  ;;  %v9895_v38 = vld [vmem:[%s11019_s11 + $0x3e0] ss:$8 sps:$4 sm:$0xff]  }
 0xac0   : > { %v3961_v36 = vsel %vm3958_vm12, %v3952_v41, %v3954_v5  ;;  %v3959_v14 = vsel %vm3958_vm12, %v3954_v5, %v3956_v29  ;;  %v9901_v29 = vld [vmem:[%s11019_s11 + $0x400] ss:$8 sps:$4 sm:$0xff]   ;;  %v9909_v41 = vld [vmem:[%s11019_s11 + $0x424] ss:$8 sps:$4 sm:$0xff]   ;;  %v4189_v5 = vpack.c.bf16 %v12554_v43, %v12572_v47  ;;  %vm4585_vm12 = vcmp.lt.s32.totalorder %v11307_v8, 5 }
 0xac1   : > { %6391 = vmatmul.mubr.bf16.gmra.mrb[36].mxu0 %v4097_v21  ;;  %v4101_v25 = vpack.c.bf16 %v3959_v14, %v3961_v36  ;;  %v4183_v21 = vpack.c.bf16 %v12410_v51, %v12406_v31  ;;  %v4192_v36 = vpack.c.bf16 %v12564_v15, %v12582_v13  ;;  %v9922_v14 = vld [vmem:[%s11019_s11 + $0x470] ss:$8 sps:$4 sm:$0xff]  }
 0xac2   : > { %6400 = vmatprep.mubr.bf16.mxu0 %v4100_v52  ;;  %6442 = vmatpush1.bf16.msra.mxu0 %v9883_v24  ;;  %v9903_v24 = vld [vmem:[%s11019_s11 + $0x404] ss:$8 sps:$4 sm:$0xff]   ;;  %v9904_v52 = vld [vmem:[%s11019_s11 + $0x410] ss:$8 sps:$4 sm:$0xff]  }
 0xac3   : > { %6443 = vmatprep.subr.bf16.mxu0 %v9888_v54  ;;  %v4186_v54 = vpack.c.bf16 %v12457_v9, %v12426_v49 }
 0xac6   : > { %6444 = vmatpush1.bf16.msra.mxu0 %v9886_v33  ;;  %v9907_v33 = vld [vmem:[%s11019_s11 + $0x420] ss:$8 sps:$4 sm:$0xff]  }
 0xac7   : > { %6445 = vmatprep.subr.bf16.mxu0 %v9891_v48  ;;  %v9912_v48 = vld [vmem:[%s11019_s11 + $0x434] ss:$8 sps:$4 sm:$0xff]  }
 0xac9   : > { %6401 = vmatmul.mubr.bf16.gmra.mrb[40].mxu0 %v4099_v32  ;;  %v9918_v32 = vld [vmem:[%s11019_s11 + $0x454] ss:$8 sps:$4 sm:$0xff]  }
 0xaca   : > { %6410 = vmatprep.mubr.bf16.mxu0 %v4102_v40  ;;  %6446 = vmatpush1.bf16.msra.mxu0 %v9889_v1  ;;  %v4187_v1 = vpack.c.bf16 %v12512_v61, %v12527_v55  ;;  %v9921_v40 = vld [vmem:[%s11019_s11 + $0x464] ss:$8 sps:$4 sm:$0xff]  }
 0xacb   : > { %6447 = vmatprep.subr.bf16.mxu0 %v9894_v27  ;;  %v9916_v27 = vld [vmem:[%s11019_s11 + $0x450] ss:$8 sps:$4 sm:$0xff]  }
 0xace   : > { %6448 = vmatpush1.bf16.msra.mxu0 %v9892_v4  ;;  %v9919_v4 = vld [vmem:[%s11019_s11 + $0x460] ss:$8 sps:$4 sm:$0xff]  }
 0xacf   : > { %6449 = vmatprep.subr.bf16.mxu0 %v9897_v53  ;;  %v9924_v53 = vld [vmem:[%s11019_s11 + $0x474] ss:$8 sps:$4 sm:$0xff]  }
 0xad1   : > { %6411 = vmatmul.mubr.bf16.gmra.mrb[44].mxu0 %v4101_v25  ;;  %v9925_v25 = vld [vmem:[%s11019_s11 + $0x480] ss:$8 sps:$4 sm:$0xff]  }
 0xad2   : > { %6450 = vmatpush1.bf16.msra.mxu0 %v9895_v38  ;;  %6453 = vmatprep.mubr.bf16.mxu0 %v4184_v58  ;;  %v9927_v38 = vld [vmem:[%s11019_s11 + $0x484] ss:$8 sps:$4 sm:$0xff]   ;;  %v9930_v58 = vld [vmem:[%s11019_s11 + $0x494] ss:$8 sps:$4 sm:$0xff]  }
 0xad3   : > { %6451 = vmatprep.subr.bf16.mxu0 %v9900_v60  ;;  %v4191_v60 = vpack.c.bf16 %v12600_v63, %v12614_v30 }
 0xad6   : > { %6452 = vmatpush1.bf16.msra.mxu0 %v9898_v39  ;;  %v4194_v39 = vpack.c.bf16 %v12606_v7, %v12623_v17 }
 0xad7   : > { %6534 = vmatprep.subr.bf16.mxu0 %v9903_v24  ;;  %v9928_v24 = vld [vmem:[%s11019_s11 + $0x490] ss:$8 sps:$4 sm:$0xff]  }
 0xad9   : > { %6454 = vmatmul.mubr.bf16.vlgmr.msra.gmra.mrb[16].mxu0 %v4183_v21  ;;  %v9931_v21 = vld [vmem:[%s11019_s11 + $0x4a0] ss:$8 sps:$4 sm:$0xff]  }
 0xada   : > { %6463 = vmatprep.mubr.bf16.mxu0 %v4186_v54  ;;  %6535 = vmatpush1.bf16.msra.mxu0 %v9901_v29  ;;  %v9933_v29 = vld [vmem:[%s11019_s11 + $0x4a4] ss:$8 sps:$4 sm:$0xff]   ;;  %v9936_v54 = vld [vmem:[%s11019_s11 + $0x4b4] ss:$8 sps:$4 sm:$0xff]  }
 0xadb   : > { %6536 = vmatprep.subr.bf16.mxu0 %v9906_v20  ;;  %v4193_v20 = vpack.c.bf16 %v12649_v12, %v12660_v46 }
 0xade   : > { %6537 = vmatpush1.bf16.msra.mxu0 %v9904_v52  ;;  %v4196_v52 = vpack.c.bf16 %v12655_v18, %v12667_v28 }
 0xadf   : > { %6538 = vmatprep.subr.bf16.mxu0 %v9909_v41  ;;  %v9934_v41 = vld [vmem:[%s11019_s11 + $0x4b0] ss:$8 sps:$4 sm:$0xff]  }
 0xae1   : > { %6464 = vmatmul.mubr.bf16.gmra.mrb[20].mxu0 %v4185_v59  ;;  %v9937_v59 = vld [vmem:[%s11019_s11 + $0x4c0] ss:$8 sps:$4 sm:$0xff]  }
 0xae2   : > { %6473 = vmatprep.mubr.bf16.mxu0 %v4188_v22  ;;  %6539 = vmatpush1.bf16.msra.mxu0 %v9907_v33  ;;  %v9939_v33 = vld [vmem:[%s11019_s11 + $0x4c4] ss:$8 sps:$4 sm:$0xff]   ;;  %v9942_v22 = vld [vmem:[%s11019_s11 + $0x4d4] ss:$8 sps:$4 sm:$0xff]  }
 0xae3   : > { %6540 = vmatprep.subr.bf16.mxu0 %v9912_v48  ;;  %v4195_v48 = vpack.c.bf16 %v12687_v42, %v12694_v23 }
 0xae6   : > { %6541 = vmatpush1.bf16.msra.mxu0 %v9910_v62  ;;  %v4198_v62 = vpack.c.bf16 %v12436_v11, %v12701_v26 }
 0xae7   : > { %6542 = vmatprep.subr.bf16.mxu0 %v9915_v50  ;;  %v4204_v50 = vrot.slane %v12426_v49, 1 }
 0xae9   : > { %6474 = vmatmul.mubr.bf16.gmra.mrb[24].mxu0 %v4187_v1  ;;  %v9945_v1 = vld [vmem:[%s11019_s11 + $0x4e4] ss:$8 sps:$4 sm:$0xff]  }
 0xaea   : > { %6483 = vmatprep.mubr.bf16.mxu0 %v4190_v16  ;;  %6543 = vmatpush1.bf16.msra.mxu0 %v9913_v57  ;;  %v9940_v57 = vld [vmem:[%s11019_s11 + $0x4d0] ss:$8 sps:$4 sm:$0xff]   ;;  %v4200_v16 = vrot.slane %v12403_v37, 1 }
 0xaeb   : > { %6544 = vmatprep.subr.bf16.mxu0 %v9918_v32  ;;  %v4202_v32 = vrot.slane %v12399_v56, 1 }
 0xaee   : > { %6545 = vmatpush1.bf16.msra.mxu0 %v9916_v27  ;;  %v4259_v27 = vsel %vm4231_vm1, %v4202_v32, %v4204_v50 }
 0xaef   : > { %6546 = vmatprep.subr.bf16.mxu0 %v9921_v40  ;;  %v9943_v40 = vld [vmem:[%s11019_s11 + $0x4e0] ss:$8 sps:$4 sm:$0xff]  }
 0xaf1   : > { %6484 = vmatmul.mubr.bf16.gmra.mrb[28].mxu0 %v4189_v5  ;;  %v4261_v5 = vsel %vm4231_vm1, %v4200_v16, %v4202_v32  ;;  %v4212_v32 = vrot.slane %v12536_v19, 1 }
 0xaf2   : > { %6493 = vmatprep.mubr.bf16.mxu0 %v4192_v36  ;;  %6547 = vmatpush1.bf16.msra.mxu0 %v9919_v4  ;;  %v4197_v4 = vpack.c.bf16 %v12433_v45, %v12717_v35  ;;  %v4361_v36 = vpack.c.bf16 %v4259_v27, %v4261_v5 }
 0xaf3   : > { %6548 = vmatprep.subr.bf16.mxu0 %v9924_v53  ;;  %v9948_v53 = vld [vmem:[%s11019_s11 + $0x4f4] ss:$8 sps:$4 sm:$0xff]  }
 0xaf6   : > { %6549 = vmatpush1.bf16.msra.mxu0 %v9922_v14  ;;  %v4203_v14 = vrot.slane %v12446_v2, 1 }
 0xaf7   : > { %6550 = vmatprep.subr.bf16.mxu0 %v9927_v38  ;;  %v4206_v38 = vrot.slane %v12457_v9, 1 }
 0xaf9   : > { %6494 = vmatmul.mubr.bf16.gmra.mrb[32].mxu0 %v4191_v60  ;;  %v4201_v60 = vrot.slane %v12410_v51, 1 }
 0xafa   : > { %6503 = vmatprep.mubr.bf16.mxu0 %v4194_v39  ;;  %6551 = vmatpush1.bf16.msra.mxu0 %v9925_v25  ;;  %v9946_v25 = vld [vmem:[%s11019_s11 + $0x4f0] ss:$8 sps:$4 sm:$0xff]   ;;  %v4208_v39 = vrot.slane %v12463_v34, 1 }
 0xafb   : > { %6552 = vmatprep.subr.bf16.mxu0 %v9930_v58  ;;  %v9951_v58 = vld [vmem:[%s11019_s11 + $0x504] ss:$8 sps:$4 sm:$0xff]  }
 0xafe   : > { %6553 = vmatpush1.bf16.msra.mxu0 %v9928_v24  ;;  %v4199_v24 = vrot.slane %v12406_v31, 1 }
 0xaff   : > { %6554 = vmatprep.subr.bf16.mxu0 %v9933_v29  ;;  %v4258_v29 = vsel %vm4231_vm1, %v4201_v60, %v4203_v14 }
 0xb01   : > { %6504 = vmatmul.mubr.bf16.gmra.mrb[36].mxu0 %v4193_v20  ;;  %v4257_v20 = vsel %vm4231_vm1, %v4204_v50, %v4206_v38  ;;  %v9952_v50 = vld [vmem:[%s11019_s11 + $0x510] ss:$8 sps:$4 sm:$0xff]  }
 0xb02   : > { %6513 = vmatprep.mubr.bf16.mxu0 %v4196_v52  ;;  %6555 = vmatpush1.bf16.msra.mxu0 %v9931_v21  ;;  %v4255_v21 = vsel %vm4231_vm1, %v4206_v38, %v4208_v39  ;;  %v9949_v52 = vld [vmem:[%s11019_s11 + $0x500] ss:$8 sps:$4 sm:$0xff]  }
 0xb03   : > { %6556 = vmatprep.subr.bf16.mxu0 %v9936_v54  ;;  %v4260_v54 = vsel %vm4231_vm1, %v4199_v24, %v4201_v60 }
 0xb06   : > { %6557 = vmatpush1.bf16.msra.mxu0 %v9934_v41  ;;  %v4360_v41 = vpack.c.bf16 %v4258_v29, %v4260_v54  ;;  %v4214_v29 = vrot.slane %v12520_v44, 1  ;;  %v4216_v54 = vrot.slane %v12582_v13, 1 }
 0xb07   : > { %6558 = vmatprep.subr.bf16.mxu0 %v9939_v33  ;;  %v9954_v33 = vld [vmem:[%s11019_s11 + $0x514] ss:$8 sps:$4 sm:$0xff]  }
 0xb09   : > { %6514 = vmatmul.mubr.bf16.gmra.mrb[40].mxu0 %v4195_v48  ;;  %v4205_v48 = vrot.slane %v12454_v3, 1 }
 0xb0a   : > { %6523 = vmatprep.mubr.bf16.mxu0 %v4198_v62  ;;  %6559 = vmatpush1.bf16.msra.mxu0 %v9937_v59  ;;  %v4363_v59 = vpack.c.bf16 %v4255_v21, %v4257_v20  ;;  %v4210_v62 = vrot.slane %v12487_v0, 1  ;;  %v9958_v21 = vld [vmem:[%s11019_s11 + $0x530] ss:$8 sps:$4 sm:$0xff]   ;;  %v9963_v20 = vld [vmem:[%s11019_s11 + $0x544] ss:$8 sps:$4 sm:$0xff]  }
 0xb0b   : > { %6560 = vmatprep.subr.bf16.mxu0 %v9942_v22  ;;  %v3371_v22 = vadd.s32 56, %v11307_v8 }
 0xb0c   : > { %v4251_v5 = vsel %vm4231_vm1, %v4210_v62, %v4212_v32 }
 0xb0e   : > { %6561 = vmatpush1.bf16.msra.mxu0 %v9940_v57  ;;  %v4207_v57 = vrot.slane %v12527_v55, 1 }
 0xb0f   : > { %6562 = vmatprep.subr.bf16.mxu0 %v9945_v1  ;;  %v9957_v1 = vld [vmem:[%s11019_s11 + $0x524] ss:$8 sps:$4 sm:$0xff]  }
 0xb10   : > { %v4254_v27 = vsel %vm4231_vm1, %v4205_v48, %v4207_v57 }
 0xb11   : > { %6524 = vmatmul.mubr.bf16.gmra.mrb[44].mxu0 %v4197_v4  ;;  %v13156_v4 = vand.u32 63, %v3371_v22 }
 0xb12   : > { %6563 = vmatpush1.bf16.msra.mxu0 %v9943_v40  ;;  %6566 = vmatprep.mubr.bf16.mxu0 %v4361_v36  ;;  %v4256_v40 = vsel %vm4231_vm1, %v4203_v14, %v4205_v48  ;;  %v9955_v36 = vld [vmem:[%s11019_s11 + $0x520] ss:$8 sps:$4 sm:$0xff]  }
 0xb13   : > { %6564 = vmatprep.subr.bf16.mxu0 %v9948_v53  ;;  %v4253_v53 = vsel %vm4231_vm1, %v4208_v39, %v4210_v62  ;;  %v4362_v38 = vpack.c.bf16 %v4254_v27, %v4256_v40  ;;  %v4271_v14 = vadd.s32 1, %v13156_v4  ;;  %v4211_v39 = vrot.slane %v12572_v47, 1  ;;  %v9961_v48 = vld [vmem:[%s11019_s11 + $0x540] ss:$8 sps:$4 sm:$0xff]  }
 0xb14   : > { %v4365_v60 = vpack.c.bf16 %v4251_v5, %v4253_v53  ;;  %v4218_v27 = vrot.slane %v12564_v15, 1  ;;  %v4215_v40 = vrot.slane %v12614_v30, 1  ;;  %v9969_v5 = vld [vmem:[%s11019_s11 + $0x564] ss:$8 sps:$4 sm:$0xff]   ;;  %v4220_v53 = vrot.slane %v12623_v17, 1 }
 0xb15   : > { %vm4303_vm2 = vcmp.lt.s32.totalorder %v4271_v14, 64 }
 0xb16   : > { %6565 = vmatpush1.bf16.msra.mxu0 %v9946_v25  ;;  %v9960_v25 = vld [vmem:[%s11019_s11 + $0x534] ss:$8 sps:$4 sm:$0xff]   ;;  %vm13181_vm4 = vmpackc.low %vm4303_vm2, %vm10654_vm3 }
 0xb17   : > { %6647 = vmatprep.subr.bf16.mxu0 %v9951_v58  ;;  %v4209_v58 = vrot.slane %v12512_v61, 1 }
 0xb19   : > { %6567 = vmatmul.mubr.bf16.vlgmr.msra.gmra.mrb[16].mxu0 %v4360_v41  ;;  %v4252_v41 = vsel %vm4231_vm1, %v4207_v57, %v4209_v58 }
 0xb1a   : > { %6576 = vmatprep.mubr.bf16.mxu0 %v4363_v59  ;;  %6648 = vmatpush1.bf16.msra.mxu0 %v9949_v52  ;;  %v4250_v52 = vsel %vm4231_vm1, %v4209_v58, %v4211_v39  ;;  %v4249_v59 = vsel %vm4231_vm1, %v4212_v32, %v4214_v29  ;;  %v9964_v32 = vld [vmem:[%s11019_s11 + $0x550] ss:$8 sps:$4 sm:$0xff]   ;;  %v9967_v58 = vld [vmem:[%s11019_s11 + $0x560] ss:$8 sps:$4 sm:$0xff]  }
 0xb1b   : > { %6649 = vmatprep.subr.bf16.mxu0 %v9954_v33  ;;  %v4247_v33 = vsel %vm4231_vm1, %v4214_v29, %v4216_v54  ;;  %v4364_v22 = vpack.c.bf16 %v4250_v52, %v4252_v41  ;;  %v9972_v29 = vld [vmem:[%s11019_s11 + $0x574] ss:$8 sps:$4 sm:$0xff]   ;;  %v9970_v52 = vld [vmem:[%s11019_s11 + $0x570] ss:$8 sps:$4 sm:$0xff]   ;;  %v9975_v41 = vld [vmem:[%s11019_s11 + $0x584] ss:$8 sps:$4 sm:$0xff]  }
 0xb1c   : > { %v8821_v57 = vpack.c.bf16 %v4247_v33, %v4249_v59  ;;  %v4224_v33 = vrot.slane %v12667_v28, 1 }
 0xb1e   : > { %6650 = vmatpush1.bf16.msra.mxu0 %v9952_v50  ;;  %v9966_v50 = vld [vmem:[%s11019_s11 + $0x554] ss:$8 sps:$4 sm:$0xff]  }
 0xb1f   : > { %6651 = vmatprep.subr.bf16.mxu0 %v9957_v1  ;;  %v4213_v1 = vrot.slane %v12554_v43, 1 }
 0xb21   : > { %6577 = vmatmul.mubr.bf16.gmra.mrb[20].mxu0 %v4362_v38  ;;  %v4248_v38 = vsel %vm4231_vm1, %v4211_v39, %v4213_v1  ;;  %v4222_v39 = vrot.slane %v12606_v7, 1 }
 0xb22   : > { %6586 = vmatprep.mubr.bf16.mxu0 %v4365_v60  ;;  %6652 = vmatpush1.bf16.msra.mxu0 %v9955_v36  ;;  %v4246_v36 = vsel %vm4231_vm1, %v4213_v1, %v4215_v40  ;;  %v4245_v60 = vsel %vm4231_vm1, %v4216_v54, %v4218_v27  ;;  %v4219_v54 = vrot.slane %v12660_v46, 1  ;;  %v9978_v1 = vld [vmem:[%s11019_s11 + $0x594] ss:$8 sps:$4 sm:$0xff]  }
 0xb23   : > { %6653 = vmatprep.subr.bf16.mxu0 %v9960_v25  ;;  %v4243_v25 = vsel %vm4231_vm1, %v4218_v27, %v4220_v53  ;;  %v8824_v14 = vpack.c.bf16 %v4246_v36, %v4248_v38  ;;  %v4241_v62 = vsel %vm4231_vm1, %v4220_v53, %v4222_v39  ;;  %v9976_v36 = vld [vmem:[%s11019_s11 + $0x590] ss:$8 sps:$4 sm:$0xff]   ;;  %v4223_v53 = vrot.slane %v12694_v23, 1  ;;  %v9981_v38 = vld [vmem:[%s11019_s11 + $0x5a4] ss:$8 sps:$4 sm:$0xff]  }
 0xb26   : > { %6654 = vmatpush1.bf16.msra.mxu0 %v9958_v21  ;;  %v4369_v21 = vpack.c.bf16 %v4243_v25, %v4245_v60  ;;  %v4228_v25 = vrot.slane %v12701_v26, 1 }
 0xb27   : > { %6655 = vmatprep.subr.bf16.mxu0 %v9963_v20  ;;  %v4217_v20 = vrot.slane %v12600_v63, 1 }
 0xb29   : > { %6587 = vmatmul.mubr.bf16.gmra.mrb[24].mxu0 %v4364_v22  ;;  %v4242_v59 = vsel %vm4231_vm1, %v4217_v20, %v4219_v54  ;;  %v4239_v22 = vsel %vm4231_vm1, %v4222_v39, %v4224_v33 }
 0xb2a   : > { %8822 = vmatprep.mubr.msk.bf16.mxu0 %vm13181_vm4, %v8821_v57  ;;  %6656 = vmatpush1.bf16.msra.mxu0 %v9961_v48  ;;  %v4244_v48 = vsel %vm4231_vm1, %v4215_v40, %v4217_v20  ;;  %v4371_v27 = vpack.c.bf16 %v4239_v22, %v4241_v62  ;;  %v4226_v40 = vrot.slane %v12655_v18, 1  ;;  %v9979_v20 = vld [vmem:[%s11019_s11 + $0x5a0] ss:$8 sps:$4 sm:$0xff]   ;;  %v9982_v22 = vld [vmem:[%s11019_s11 + $0x5b0] ss:$8 sps:$4 sm:$0xff]  }
 0xb2b   : > { %6657 = vmatprep.subr.bf16.mxu0 %v9966_v50  ;;  %v9973_v50 = vld [vmem:[%s11019_s11 + $0x580] ss:$8 sps:$4 sm:$0xff]   ;;  %v4368_v57 = vpack.c.bf16 %v4242_v59, %v4244_v48  ;;  %v4225_v59 = vrot.slane %v12687_v42, 1  ;;  %v4230_v48 = vrot.slane %v12436_v11, 1  ;;  %v9987_v62 = vld [vmem:[%s11019_s11 + $0x5c4] ss:$8 sps:$4 sm:$0xff]  }
 0xb2e   : > { %6658 = vmatpush1.bf16.msra.mxu0 %v9964_v32  ;;  %v4221_v32 = vrot.slane %v12649_v12, 1 }
 0xb2f   : > { %6659 = vmatprep.subr.bf16.mxu0 %v9969_v5  ;;  %v3379_v5 = vadd.s32 120, %v11307_v8 }
 0xb30   : > { %v4238_v60 = vsel %vm4231_vm1, %v4221_v32, %v4223_v53 }
 0xb31   : > { %8825 = vmatmul.mubr.msk.bf16.gmra.mrb[28].mxu0 %vm13181_vm4, %v8824_v14  ;;  %v13233_v14 = vand.u32 63, %v3379_v5 }
 0xb32   : > { %6606 = vmatprep.mubr.bf16.mxu0 %v4369_v21  ;;  %6660 = vmatpush1.bf16.msra.mxu0 %v9967_v58  ;;  %v4240_v58 = vsel %vm4231_vm1, %v4219_v54, %v4221_v32  ;;  %v4237_v21 = vsel %vm4231_vm1, %v4224_v33, %v4226_v40  ;;  %v4227_v33 = vrot.slane %v12717_v35, 1  ;;  %v9985_v32 = vld [vmem:[%s11019_s11 + $0x5c0] ss:$8 sps:$4 sm:$0xff]  }
 0xb33   : > { %6661 = vmatprep.subr.bf16.mxu0 %v9972_v29  ;;  %v4235_v29 = vsel %vm4231_vm1, %v4226_v40, %v4228_v25  ;;  %v4370_v39 = vpack.c.bf16 %v4238_v60, %v4240_v58  ;;  %v4279_v54 = vadd.s32 1, %v13233_v14  ;;  %v9993_v60 = vld [vmem:[%s11019_s11 + $0x5e4] ss:$8 sps:$4 sm:$0xff]   ;;  %v4379_v58 = vrot.slane %v12399_v56, 2 }
 0xb35   : > { %vm4311_vm5 = vcmp.lt.s32.totalorder %v4279_v54, 64 }
 0xb36   : > { %6662 = vmatpush1.bf16.msra.mxu0 %v9970_v52  ;;  %v9984_v52 = vld [vmem:[%s11019_s11 + $0x5b4] ss:$8 sps:$4 sm:$0xff]   ;;  %vm13259_vm6 = vmpackc.low %vm4311_vm5, %vm10654_vm3 }
 0xb37   : > { %6663 = vmatprep.subr.bf16.mxu0 %v9975_v41  ;;  %v4373_v41 = vpack.c.bf16 %v4235_v29, %v4237_v21 }
 0xb39   : > { %6607 = vmatmul.mubr.bf16.gmra.mrb[32].mxu0 %v4368_v57  ;;  %v4236_v57 = vsel %vm4231_vm1, %v4223_v53, %v4225_v59 }
 0xb3a   : > { %6616 = vmatprep.mubr.bf16.mxu0 %v4371_v27  ;;  %6664 = vmatpush1.bf16.msra.mxu0 %v9973_v50  ;;  %v4234_v50 = vsel %vm4231_vm1, %v4225_v59, %v4227_v33  ;;  %v4263_v27 = vsel %vm4231_vm1, %v4230_v48, %v4200_v16  ;;  %v9988_v16 = vld [vmem:[%s11019_s11 + $0x5d0] ss:$8 sps:$4 sm:$0xff]  }
 0xb3b   : > { %6665 = vmatprep.subr.bf16.mxu0 %v9978_v1  ;;  %v4233_v1 = vsel %vm4231_vm1, %v4228_v25, %v4230_v48  ;;  %v4372_v5 = vpack.c.bf16 %v4234_v50, %v4236_v57  ;;  %v4381_v25 = vrot.slane %v12426_v49, 2  ;;  %v4380_v48 = vrot.slane %v12446_v2, 2  ;;  %v9994_v50 = vld [vmem:[%s11019_s11 + $0x5f0] ss:$8 sps:$4 sm:$0xff]  }
 0xb3c   : > { %v8827_v53 = vpack.c.bf16 %v4263_v27, %v4233_v1  ;;  %v4378_v57 = vrot.slane %v12410_v51, 2  ;;  %v10050_v1 = vld [vmem:[%s11021_s30 + $0x14] ss:$8 sps:$4 sm:$0xff]   ;;  %v9999_v27 = vld [vmem:[%s11019_s11 + $0x604] ss:$8 sps:$4 sm:$0xff]  }
 0xb3e   : > { %6666 = vmatpush1.bf16.msra.mxu0 %v9976_v36  ;;  %v9990_v36 = vld [vmem:[%s11019_s11 + $0x5d4] ss:$8 sps:$4 sm:$0xff]   ;;  %v4435_v40 = vsel %vm4408_vm7, %v4378_v57, %v4380_v48 }
 0xb3f   : > { %6667 = vmatprep.subr.bf16.mxu0 %v9981_v38  ;;  %v4229_v38 = vrot.slane %v12433_v45, 1 }
 0xb41   : > { %6617 = vmatmul.mubr.bf16.gmra.mrb[36].mxu0 %v4370_v39  ;;  %v4232_v29 = vsel %vm4231_vm1, %v4227_v33, %v4229_v38  ;;  %v4262_v21 = vsel %vm4231_vm1, %v4229_v38, %v4199_v24  ;;  %v4436_v39 = vsel %vm4408_vm7, %v4379_v58, %v4381_v25  ;;  %v9996_v24 = vld [vmem:[%s11019_s11 + $0x5f4] ss:$8 sps:$4 sm:$0xff]   ;;  %v10045_v33 = vld [vmem:[%s11021_s30] ss:$8 sps:$4 sm:$0xff]  }
 0xb42   : > { %6626 = vmatprep.mubr.bf16.mxu0 %v4373_v41  ;;  %6668 = vmatpush1.bf16.msra.mxu0 %v9979_v20  ;;  %v4377_v20 = vrot.slane %v12403_v37, 2  ;;  %v8830_v41 = vpack.c.bf16 %v4262_v21, %v4232_v29  ;;  %v10002_v21 = vld [vmem:[%s11019_s11 + $0x614] ss:$8 sps:$4 sm:$0xff]  }
 0xb43   : > { %6669 = vmatprep.subr.bf16.mxu0 %v9984_v52  ;;  %v9991_v52 = vld [vmem:[%s11019_s11 + $0x5e0] ss:$8 sps:$4 sm:$0xff]  }
 0xb44   : > { %v4438_v59 = vsel %vm4408_vm7, %v4377_v20, %v4379_v58  ;;  %v9997_v58 = vld [vmem:[%s11019_s11 + $0x600] ss:$8 sps:$4 sm:$0xff]  }
 0xb45   : > { %v4538_v54 = vpack.c.bf16 %v4436_v39, %v4438_v59  ;;  %v10056_v59 = vld [vmem:[%s11021_s30 + $0x34] ss:$8 sps:$4 sm:$0xff]  }
 0xb46   : > { %6670 = vmatpush1.bf16.msra.mxu0 %v9982_v22  ;;  %v4383_v22 = vrot.slane %v12457_v9, 2 }
 0xb47   : > { %6671 = vmatprep.subr.bf16.mxu0 %v9987_v62  ;;  %v10047_v62 = vld [vmem:[%s11021_s30 + $0x4] ss:$8 sps:$4 sm:$0xff]  }
 0xb48   : > { %7121 = vmatprep.subr.bf16.mxu1 %v10047_v62  ;;  %v4434_v38 = vsel %vm4408_vm7, %v4381_v25, %v4383_v22  ;;  %v10051_v25 = vld [vmem:[%s11021_s30 + $0x20] ss:$8 sps:$4 sm:$0xff]  }
 0xb49   : > { %6627 = vmatmul.mubr.bf16.gmra.mrb[40].mxu0 %v4372_v5  ;;  %v4376_v5 = vrot.slane %v12406_v31, 2  ;;  %7122 = vmatpush1.bf16.msra.mxu1 %v10045_v33  ;;  %v4389_v33 = vrot.slane %v12536_v19, 2 }
 0xb4a   : > { %8828 = vmatprep.mubr.msk.bf16.mxu0 %vm13259_vm6, %v8827_v53  ;;  %6672 = vmatpush1.bf16.msra.mxu0 %v9985_v32  ;;  %v4385_v32 = vrot.slane %v12463_v34, 2 }
 0xb4b   : > { %6673 = vmatprep.subr.bf16.mxu0 %v9990_v36  ;;  %v10048_v36 = vld [vmem:[%s11021_s30 + $0x10] ss:$8 sps:$4 sm:$0xff]   ;;  %7123 = vmatprep.subr.bf16.mxu1 %v10050_v1 }
 0xb4c   : > { %v4432_v53 = vsel %vm4408_vm7, %v4383_v22, %v4385_v32  ;;  %v10005_v22 = vld [vmem:[%s11019_s11 + $0x624] ss:$8 sps:$4 sm:$0xff]  }
 0xb4d   : > { %v4540_v39 = vpack.c.bf16 %v4432_v53, %v4434_v38  ;;  %7124 = vmatpush1.bf16.msra.mxu1 %v10048_v36  ;;  %v10003_v36 = vld [vmem:[%s11019_s11 + $0x620] ss:$8 sps:$4 sm:$0xff]   ;;  %v10008_v38 = vld [vmem:[%s11019_s11 + $0x634] ss:$8 sps:$4 sm:$0xff]  }
 0xb4e   : > { %6674 = vmatpush1.bf16.msra.mxu0 %v9988_v16  ;;  %v10053_v16 = vld [vmem:[%s11021_s30 + $0x24] ss:$8 sps:$4 sm:$0xff]  }
 0xb4f   : > { %6675 = vmatprep.subr.bf16.mxu0 %v9993_v60  ;;  %v4437_v60 = vsel %vm4408_vm7, %v4376_v5, %v4378_v57  ;;  %7125 = vmatprep.subr.bf16.mxu1 %v10053_v16  ;;  %v10054_v57 = vld [vmem:[%s11021_s30 + $0x30] ss:$8 sps:$4 sm:$0xff]   ;;  %v4386_v16 = vrot.slane %v12512_v61, 2 }
 0xb50   : > { %v4537_v29 = vpack.c.bf16 %v4435_v40, %v4437_v60  ;;  %v10059_v40 = vld [vmem:[%s11021_s30 + $0x44] ss:$8 sps:$4 sm:$0xff]   ;;  %v4448_v60 = vadd.s32 2, %v13156_v4 }
 0xb51   : > { %8831 = vmatmul.mubr.msk.bf16.gmra.mrb[44].mxu0 %vm13259_vm6, %v8830_v41  ;;  %v4387_v41 = vrot.slane %v12487_v0, 2  ;;  %7126 = vmatpush1.bf16.msra.mxu1 %v10051_v25  ;;  %v4393_v25 = vrot.slane %v12582_v13, 2 }
 0xb52   : > { %6676 = vmatpush1.bf16.msra.mxu0 %v9991_v52  ;;  %6679 = vmatprep.mubr.bf16.mxu0 %v4538_v54  ;;  %v4382_v52 = vrot.slane %v12454_v3, 2  ;;  %v4384_v54 = vrot.slane %v12527_v55, 2  ;;  %vm4480_vm8 = vcmp.lt.s32.totalorder %v4448_v60, 64  ;;  %v10017_v60 = vld [vmem:[%s11019_s11 + $0x664] ss:$8 sps:$4 sm:$0xff]  }
 0xb53   : > { %6677 = vmatprep.subr.bf16.mxu0 %v9996_v24  ;;  %v10000_v24 = vld [vmem:[%s11019_s11 + $0x610] ss:$8 sps:$4 sm:$0xff]   ;;  %v4428_v1 = vsel %vm4408_vm7, %v4387_v41, %v4389_v33  ;;  %7127 = vmatprep.subr.bf16.mxu1 %v10056_v59  ;;  %vm13354_vm9 = vmpackc.low %vm4480_vm8, %vm10654_vm3 }
 0xb54   : > { %v4431_v62 = vsel %vm4408_vm7, %v4382_v52, %v4384_v54  ;;  %v4429_v59 = vsel %vm4408_vm7, %v4384_v54, %v4386_v16 }
 0xb55   : > { %7128 = vmatpush1.bf16.msra.mxu1 %v10054_v57  ;;  %v10009_v57 = vld [vmem:[%s11019_s11 + $0x640] ss:$8 sps:$4 sm:$0xff]  }
 0xb56   : > { %6678 = vmatpush1.bf16.msra.mxu0 %v9994_v50  ;;  %v4433_v50 = vsel %vm4408_vm7, %v4380_v48, %v4382_v52  ;;  %7129 = vmatprep.subr.bf16.mxu1 %v10059_v40  ;;  %v10011_v52 = vld [vmem:[%s11019_s11 + $0x644] ss:$8 sps:$4 sm:$0xff]  }
 0xb57   : > { %6760 = vmatprep.subr.bf16.mxu0 %v9999_v27  ;;  %v4430_v27 = vsel %vm4408_vm7, %v4385_v32, %v4387_v41  ;;  %v4539_v53 = vpack.c.bf16 %v4431_v62, %v4433_v50  ;;  %v4391_v32 = vrot.slane %v12520_v44, 2  ;;  %v10065_v50 = vld [vmem:[%s11021_s30 + $0x64] ss:$8 sps:$4 sm:$0xff]  }
 0xb58   : > { %v4542_v48 = vpack.c.bf16 %v4428_v1, %v4430_v27  ;;  %v10014_v27 = vld [vmem:[%s11019_s11 + $0x654] ss:$8 sps:$4 sm:$0xff]  }
 0xb59   : > { %6680 = vmatmul.mubr.bf16.vlgmr.msra.gmra.mrb[16].mxu0 %v4537_v29  ;;  %v10062_v29 = vld [vmem:[%s11021_s30 + $0x54] ss:$8 sps:$4 sm:$0xff]   ;;  %v4426_v62 = vsel %vm4408_vm7, %v4389_v33, %v4391_v32  ;;  %v10063_v33 = vld [vmem:[%s11021_s30 + $0x60] ss:$8 sps:$4 sm:$0xff]  }
 0xb5a   : > { %6689 = vmatprep.mubr.bf16.mxu0 %v4540_v39  ;;  %6761 = vmatpush1.bf16.msra.mxu0 %v9997_v58  ;;  %v10057_v58 = vld [vmem:[%s11021_s30 + $0x40] ss:$8 sps:$4 sm:$0xff]   ;;  %v4388_v39 = vrot.slane %v12572_v47, 2 }
 0xb5b   : > { %6762 = vmatprep.subr.bf16.mxu0 %v10002_v21  ;;  %v10006_v21 = vld [vmem:[%s11019_s11 + $0x630] ss:$8 sps:$4 sm:$0xff]   ;;  %7130 = vmatpush1.bf16.msra.mxu1 %v10057_v58  ;;  %v4397_v58 = vrot.slane %v12623_v17, 2 }
 0xb5c   : > { %v4427_v41 = vsel %vm4408_vm7, %v4386_v16, %v4388_v39  ;;  %7131 = vmatprep.subr.bf16.mxu1 %v10062_v29  ;;  %v4392_v16 = vrot.slane %v12614_v30, 2 }
 0xb5d   : > { %v4541_v1 = vpack.c.bf16 %v4427_v41, %v4429_v59  ;;  %v10071_v59 = vld [vmem:[%s11021_s30 + $0x84] ss:$8 sps:$4 sm:$0xff]  }
 0xb5e   : > { %6763 = vmatpush1.bf16.msra.mxu0 %v10000_v24  ;;  %v10060_v24 = vld [vmem:[%s11021_s30 + $0x50] ss:$8 sps:$4 sm:$0xff]  }
 0xb5f   : > { %6764 = vmatprep.subr.bf16.mxu0 %v10005_v22  ;;  %v4424_v22 = vsel %vm4408_vm7, %v4391_v32, %v4393_v25  ;;  %7132 = vmatpush1.bf16.msra.mxu1 %v10060_v24  ;;  %v10015_v24 = vld [vmem:[%s11019_s11 + $0x660] ss:$8 sps:$4 sm:$0xff]  }
 0xb60   : > { %v8833_v40 = vpack.c.bf16 %v4424_v22, %v4426_v62  ;;  %7133 = vmatprep.subr.bf16.mxu1 %v10065_v50  ;;  %v10020_v62 = vld [vmem:[%s11019_s11 + $0x674] ss:$8 sps:$4 sm:$0xff]  }
 0xb61   : > { %6690 = vmatmul.mubr.bf16.gmra.mrb[20].mxu0 %v4539_v53  ;;  %v4395_v53 = vrot.slane %v12564_v15, 2 }
 0xb62   : > { %6699 = vmatprep.mubr.bf16.mxu0 %v4542_v48  ;;  %6765 = vmatpush1.bf16.msra.mxu0 %v10003_v36  ;;  %v4390_v36 = vrot.slane %v12554_v43, 2  ;;  %v10012_v48 = vld [vmem:[%s11019_s11 + $0x650] ss:$8 sps:$4 sm:$0xff]  }
 0xb63   : > { %6766 = vmatprep.subr.bf16.mxu0 %v10008_v38  ;;  %v10068_v38 = vld [vmem:[%s11021_s30 + $0x74] ss:$8 sps:$4 sm:$0xff]   ;;  %7134 = vmatpush1.bf16.msra.mxu1 %v10063_v33  ;;  %v4422_v41 = vsel %vm4408_vm7, %v4393_v25, %v4395_v53  ;;  %v4399_v25 = vrot.slane %v12606_v7, 2  ;;  %v4401_v33 = vrot.slane %v12667_v28, 2 }
 0xb64   : > { %v4423_v32 = vsel %vm4408_vm7, %v4390_v36, %v4392_v16  ;;  %v4425_v29 = vsel %vm4408_vm7, %v4388_v39, %v4390_v36  ;;  %7135 = vmatprep.subr.bf16.mxu1 %v10068_v38  ;;  %v4394_v39 = vrot.slane %v12600_v63, 2  ;;  %v10023_v36 = vld [vmem:[%s11019_s11 + $0x684] ss:$8 sps:$4 sm:$0xff]   ;;  %v10072_v38 = vld [vmem:[%s11021_s30 + $0x90] ss:$8 sps:$4 sm:$0xff]  }
 0xb65   : > { %v8836_v22 = vpack.c.bf16 %v4423_v32, %v4425_v29  ;;  %v10077_v32 = vld [vmem:[%s11021_s30 + $0xa4] ss:$8 sps:$4 sm:$0xff]   ;;  %v10021_v29 = vld [vmem:[%s11019_s11 + $0x680] ss:$8 sps:$4 sm:$0xff]  }
 0xb66   : > { %6767 = vmatpush1.bf16.msra.mxu0 %v10006_v21  ;;  %v10066_v21 = vld [vmem:[%s11021_s30 + $0x70] ss:$8 sps:$4 sm:$0xff]  }
 0xb67   : > { %6768 = vmatprep.subr.bf16.mxu0 %v10011_v52  ;;  %v4420_v52 = vsel %vm4408_vm7, %v4395_v53, %v4397_v58  ;;  %7136 = vmatpush1.bf16.msra.mxu1 %v10066_v21  ;;  %v4421_v53 = vsel %vm4408_vm7, %v4392_v16, %v4394_v39  ;;  %v4398_v16 = vrot.slane %v12649_v12, 2 }
 0xb68   : > { %v4546_v50 = vpack.c.bf16 %v4420_v52, %v4422_v41  ;;  %7137 = vmatprep.subr.bf16.mxu1 %v10071_v59  ;;  %v10026_v52 = vld [vmem:[%s11019_s11 + $0x694] ss:$8 sps:$4 sm:$0xff]   ;;  %v10075_v59 = vld [vmem:[%s11021_s30 + $0xa0] ss:$8 sps:$4 sm:$0xff]  }
 0xb69   : > { %6700 = vmatmul.mubr.bf16.gmra.mrb[24].mxu0 %v4541_v1  ;;  %v10074_v1 = vld [vmem:[%s11021_s30 + $0x94] ss:$8 sps:$4 sm:$0xff]  }
 0xb6a   : > { %8834 = vmatprep.mubr.msk.bf16.mxu0 %vm13354_vm9, %v8833_v40  ;;  %6769 = vmatpush1.bf16.msra.mxu0 %v10009_v57  ;;  %v10069_v57 = vld [vmem:[%s11021_s30 + $0x80] ss:$8 sps:$4 sm:$0xff]   ;;  %v4396_v40 = vrot.slane %v12660_v46, 2 }
 0xb6b   : > { %6770 = vmatprep.subr.bf16.mxu0 %v10014_v27  ;;  %v10018_v27 = vld [vmem:[%s11019_s11 + $0x670] ss:$8 sps:$4 sm:$0xff]   ;;  %7138 = vmatpush1.bf16.msra.mxu1 %v10069_v57 }
 0xb6c   : > { %v4419_v54 = vsel %vm4408_vm7, %v4394_v39, %v4396_v40  ;;  %7139 = vmatprep.subr.bf16.mxu1 %v10074_v1  ;;  %v4405_v39 = vrot.slane %v12701_v26, 2  ;;  %v10078_v1 = vld [vmem:[%s11021_s30 + $0xb0] ss:$8 sps:$4 sm:$0xff]  }
 0xb6d   : > { %v4545_v21 = vpack.c.bf16 %v4419_v54, %v4421_v53  ;;  %v10083_v54 = vld [vmem:[%s11021_s30 + $0xc4] ss:$8 sps:$4 sm:$0xff]   ;;  %v10027_v53 = vld [vmem:[%s11019_s11 + $0x6a0] ss:$8 sps:$4 sm:$0xff]  }
 0xb6e   : > { %6771 = vmatpush1.bf16.msra.mxu0 %v10012_v48  ;;  %v4416_v48 = vsel %vm4408_vm7, %v4399_v25, %v4401_v33 }
 0xb6f   : > { %6772 = vmatprep.subr.bf16.mxu0 %v10017_v60  ;;  %v4418_v60 = vsel %vm4408_vm7, %v4397_v58, %v4399_v25  ;;  %7140 = vmatpush1.bf16.msra.mxu1 %v10072_v38  ;;  %v10080_v58 = vld [vmem:[%s11021_s30 + $0xb4] ss:$8 sps:$4 sm:$0xff]   ;;  %v4417_v25 = vsel %vm4408_vm7, %v4396_v40, %v4398_v16 }
 0xb70   : > { %v4548_v41 = vpack.c.bf16 %v4416_v48, %v4418_v60  ;;  %7141 = vmatprep.subr.bf16.mxu1 %v10077_v32  ;;  %v10032_v48 = vld [vmem:[%s11019_s11 + $0x6b4] ss:$8 sps:$4 sm:$0xff]   ;;  %v4402_v60 = vrot.slane %v12687_v42, 2  ;;  %v4456_v32 = vadd.s32 2, %v13233_v14 }
 0xb71   : > { %8837 = vmatmul.mubr.msk.bf16.gmra.mrb[28].mxu0 %vm13354_vm9, %v8836_v22  ;;  %v10024_v22 = vld [vmem:[%s11019_s11 + $0x690] ss:$8 sps:$4 sm:$0xff]  }
 0xb72   : > { %6719 = vmatprep.mubr.bf16.mxu0 %v4546_v50  ;;  %6773 = vmatpush1.bf16.msra.mxu0 %v10015_v24  ;;  %v4403_v24 = vrot.slane %v12655_v18, 2  ;;  %v10029_v50 = vld [vmem:[%s11019_s11 + $0x6a4] ss:$8 sps:$4 sm:$0xff]   ;;  %vm4488_vm10 = vcmp.lt.s32.totalorder %v4456_v32, 64  ;;  %v10039_v32 = vld [vmem:[%s11019_s11 + $0x6e0] ss:$8 sps:$4 sm:$0xff]  }
 0xb73   : > { %6774 = vmatprep.subr.bf16.mxu0 %v10020_v62  ;;  %v4400_v62 = vrot.slane %v12694_v23, 2  ;;  %7142 = vmatpush1.bf16.msra.mxu1 %v10075_v59  ;;  %vm13444_vm11 = vmpackc.low %vm4488_vm10, %vm10654_vm3 }
 0xb74   : > { %7143 = vmatprep.subr.bf16.mxu1 %v10080_v58  ;;  %v10084_v58 = vld [vmem:[%s11021_s30 + $0xd0] ss:$8 sps:$4 sm:$0xff]  }
 0xb75   : > { %v4415_v57 = vsel %vm4408_vm7, %v4398_v16, %v4400_v62  ;;  %v10035_v16 = vld [vmem:[%s11019_s11 + $0x6c4] ss:$8 sps:$4 sm:$0xff]  }
 0xb76   : > { %6775 = vmatpush1.bf16.msra.mxu0 %v10018_v27  ;;  %v4412_v27 = vsel %vm4408_vm7, %v4403_v24, %v4405_v39  ;;  %v4547_v38 = vpack.c.bf16 %v4415_v57, %v4417_v25  ;;  %v10033_v57 = vld [vmem:[%s11019_s11 + $0x6c0] ss:$8 sps:$4 sm:$0xff]  }
 0xb77   : > { %6776 = vmatprep.subr.bf16.mxu0 %v10023_v36  ;;  %v4414_v36 = vsel %vm4408_vm7, %v4401_v33, %v4403_v24  ;;  %7144 = vmatpush1.bf16.msra.mxu1 %v10078_v1  ;;  %v4407_v33 = vrot.slane %v12436_v11, 2  ;;  %v4413_v24 = vsel %vm4408_vm7, %v4400_v62, %v4402_v60  ;;  %v10038_v1 = vld [vmem:[%s11019_s11 + $0x6d4] ss:$8 sps:$4 sm:$0xff]  }
 0xb78   : > { %v4550_v40 = vpack.c.bf16 %v4412_v27, %v4414_v36  ;;  %7145 = vmatprep.subr.bf16.mxu1 %v10083_v54  ;;  %v10036_v36 = vld [vmem:[%s11019_s11 + $0x6d0] ss:$8 sps:$4 sm:$0xff]   ;;  %v10041_v54 = vld [vmem:[%s11019_s11 + $0x6e4] ss:$8 sps:$4 sm:$0xff]  }
 0xb79   : > { %6720 = vmatmul.mubr.bf16.gmra.mrb[32].mxu0 %v4545_v21  ;;  %v10086_v21 = vld [vmem:[%s11021_s30 + $0xd4] ss:$8 sps:$4 sm:$0xff]  }
 0xb7a   : > { %6729 = vmatprep.mubr.bf16.mxu0 %v4548_v41  ;;  %6777 = vmatpush1.bf16.msra.mxu0 %v10021_v29  ;;  %v10081_v29 = vld [vmem:[%s11021_s30 + $0xc0] ss:$8 sps:$4 sm:$0xff]   ;;  %v4404_v41 = vrot.slane %v12717_v35, 2 }
 0xb7b   : > { %6778 = vmatprep.subr.bf16.mxu0 %v10026_v52  ;;  %v10030_v52 = vld [vmem:[%s11019_s11 + $0x6b0] ss:$8 sps:$4 sm:$0xff]   ;;  %7146 = vmatpush1.bf16.msra.mxu1 %v10081_v29 }
 0xb7c   : > { %v4411_v59 = vsel %vm4408_vm7, %v4402_v60, %v4404_v41  ;;  %7147 = vmatprep.subr.bf16.mxu1 %v10086_v21  ;;  %v10044_v21 = vld [vmem:[%s11019_s11 + $0x6f4] ss:$8 sps:$4 sm:$0xff]  }
 0xb7d   : > { %v4549_v25 = vpack.c.bf16 %v4411_v59, %v4413_v24  ;;  %v4555_v59 = vrot.slane %v12410_v51, 3  ;;  %v4562_v24 = vrot.slane %v12463_v34, 3 }
 0xb7e   : > { %6779 = vmatpush1.bf16.msra.mxu0 %v10024_v22  ;;  %v4410_v22 = vsel %vm4408_vm7, %v4405_v39, %v4407_v33  ;;  %v4406_v39 = vrot.slane %v12433_v45, 2 }
 0xb7f   : > { %6780 = vmatprep.subr.bf16.mxu0 %v10029_v50  ;;  %v4440_v50 = vsel %vm4408_vm7, %v4407_v33, %v4377_v20  ;;  %7148 = vmatpush1.bf16.msra.mxu1 %v10084_v58  ;;  %v4558_v20 = vrot.slane %v12426_v49, 3  ;;  %v4553_v58 = vrot.slane %v12406_v31, 3 }
 0xb80   : > { %v8839_v27 = vpack.c.bf16 %v4440_v50, %v4410_v22 }
 0xb81   : > { %6730 = vmatmul.mubr.bf16.gmra.mrb[36].mxu0 %v4547_v38  ;;  %v4409_v38 = vsel %vm4408_vm7, %v4404_v41, %v4406_v39  ;;  %v4560_v41 = vrot.slane %v12457_v9, 3 }
 0xb82   : > { %6739 = vmatprep.mubr.bf16.mxu0 %v4550_v40  ;;  %6781 = vmatpush1.bf16.msra.mxu0 %v10027_v53  ;;  %v4556_v53 = vrot.slane %v12399_v56, 3  ;;  %v4554_v40 = vrot.slane %v12403_v37, 3 }
 0xb83   : > { %6782 = vmatprep.subr.bf16.mxu0 %v10032_v48  ;;  %v4439_v48 = vsel %vm4408_vm7, %v4406_v39, %v4376_v5  ;;  %v4557_v5 = vrot.slane %v12446_v2, 3  ;;  %v4609_v50 = vsel %vm4585_vm12, %v4560_v41, %v4562_v24  ;;  %v4564_v39 = vrot.slane %v12487_v0, 3 }
 0xb84   : > { %v4613_v60 = vsel %vm4585_vm12, %v4556_v53, %v4558_v20  ;;  %v8842_v29 = vpack.c.bf16 %v4439_v48, %v4409_v38  ;;  %v4615_v33 = vsel %vm4585_vm12, %v4554_v40, %v4556_v53 }
 0xb85   : > { %v4612_v22 = vsel %vm4585_vm12, %v4555_v59, %v4557_v5  ;;  %v4607_v48 = vsel %vm4585_vm12, %v4562_v24, %v4564_v39 }
 0xb86   : > { %6783 = vmatpush1.bf16.msra.mxu0 %v10030_v52  ;;  %v4715_v52 = vpack.c.bf16 %v4613_v60, %v4615_v33  ;;  %v4625_v33 = vadd.s32 3, %v13156_v4 }
 0xb87   : > { %6784 = vmatprep.subr.bf16.mxu0 %v10035_v16  ;;  %v10042_v16 = vld [vmem:[%s11019_s11 + $0x6f0] ss:$8 sps:$4 sm:$0xff]  }
 0xb88   : > { %vm4657_vm13 = vcmp.lt.s32.totalorder %v4625_v33, 64 }
 0xb89   : > { %6740 = vmatmul.mubr.bf16.gmra.mrb[40].mxu0 %v4549_v25  ;;  %v4614_v25 = vsel %vm4585_vm12, %v4553_v58, %v4555_v59  ;;  %vm8844_vm14 = vmpackc.low %vm4657_vm13, %vm10654_vm3 }
 0xb8a   : > { %8840 = vmatprep.mubr.msk.bf16.mxu0 %vm13444_vm11, %v8839_v27  ;;  %6785 = vmatpush1.bf16.msra.mxu0 %v10033_v57  ;;  %v4611_v57 = vsel %vm4585_vm12, %v4558_v20, %v4560_v41  ;;  %v4714_v62 = vpack.c.bf16 %v4612_v22, %v4614_v25  ;;  %v4559_v27 = vrot.slane %v12454_v3, 3  ;;  %v4569_v25 = vrot.slane %v12614_v30, 3 }
 0xb8b   : > { %6786 = vmatprep.subr.bf16.mxu0 %v10038_v1  ;;  %v4717_v1 = vpack.c.bf16 %v4609_v50, %v4611_v57  ;;  %v4567_v50 = vrot.slane %v12554_v43, 3  ;;  %v4572_v57 = vrot.slane %v12564_v15, 3 }
 0xb8c   : > { %v4610_v53 = vsel %vm4585_vm12, %v4557_v5, %v4559_v27  ;;  %v4570_v5 = vrot.slane %v12582_v13, 3 }
 0xb8e   : > { %6787 = vmatpush1.bf16.msra.mxu0 %v10036_v36  ;;  %v4561_v36 = vrot.slane %v12527_v55, 3 }
 0xb8f   : > { %6788 = vmatprep.subr.bf16.mxu0 %v10041_v54  ;;  %v4566_v54 = vrot.slane %v12536_v19, 3 }
 0xb90   : > { %v4608_v20 = vsel %vm4585_vm12, %v4559_v27, %v4561_v36 }
 0xb91   : > { %8843 = vmatmul.mubr.msk.bf16.gmra.mrb[44].mxu0 %vm13444_vm11, %v8842_v29  ;;  %v4605_v38 = vsel %vm4585_vm12, %v4564_v39, %v4566_v54  ;;  %v4716_v60 = vpack.c.bf16 %v4608_v20, %v4610_v53  ;;  %v4563_v29 = vrot.slane %v12512_v61, 3  ;;  %v4571_v53 = vrot.slane %v12600_v63, 3 }
 0xb92   : > { %6789 = vmatpush1.bf16.msra.mxu0 %v10039_v32  ;;  %6792 = vmatprep.mubr.bf16.mxu0 %v4715_v52  ;;  %v4719_v32 = vpack.c.bf16 %v4605_v38, %v4607_v48  ;;  %v4565_v52 = vrot.slane %v12572_v47, 3  ;;  %v4576_v38 = vrot.slane %v12606_v7, 3  ;;  %v4573_v48 = vrot.slane %v12660_v46, 3 }
 0xb93   : > { %6790 = vmatprep.subr.bf16.mxu0 %v10044_v21  ;;  %v4568_v21 = vrot.slane %v12520_v44, 3 }
 0xb94   : > { %v4604_v41 = vsel %vm4585_vm12, %v4563_v29, %v4565_v52  ;;  %v4602_v27 = vsel %vm4585_vm12, %v4565_v52, %v4567_v50 }
 0xb95   : > { %v4601_v59 = vsel %vm4585_vm12, %v4568_v21, %v4570_v5  ;;  %v4603_v4 = vsel %vm4585_vm12, %v4566_v54, %v4568_v21 }
 0xb96   : > { %6791 = vmatpush1.bf16.msra.mxu0 %v10042_v16  ;;  %v4606_v16 = vsel %vm4585_vm12, %v4561_v36, %v4563_v29  ;;  %v8845_v22 = vpack.c.bf16 %v4601_v59, %v4603_v4  ;;  %v4599_v36 = vsel %vm4585_vm12, %v4570_v5, %v4572_v57  ;;  %v4598_v29 = vsel %vm4585_vm12, %v4569_v25, %v4571_v53 }
 0xb97   : > { %v4718_v24 = vpack.c.bf16 %v4604_v41, %v4606_v16  ;;  %v4575_v41 = vrot.slane %v12649_v12, 3  ;;  %v4580_v16 = vrot.slane %v12655_v18, 3  ;;  %v4577_v59 = vrot.slane %v12694_v23, 3 }
 0xb98   : > { %v4582_v4 = vrot.slane %v12701_v26, 3 }
 0xb99   : > { %6793 = vmatmul.mubr.bf16.vlgmr.msra.gmra.mrb[16].mxu0 %v4714_v62  ;;  %v4574_v62 = vrot.slane %v12623_v17, 3 }
 0xb9a   : > { %6802 = vmatprep.mubr.bf16.mxu0 %v4717_v1  ;;  %v4600_v1 = vsel %vm4585_vm12, %v4567_v50, %v4569_v25  ;;  %v4589_v50 = vsel %vm4585_vm12, %v4580_v16, %v4582_v4 }
 0xb9b   : > { %v4597_v39 = vsel %vm4585_vm12, %v4572_v57, %v4574_v62  ;;  %v8848_v54 = vpack.c.bf16 %v4600_v1, %v4602_v27  ;;  %v4595_v21 = vsel %vm4585_vm12, %v4574_v62, %v4576_v38  ;;  %v4579_v1 = vrot.slane %v12687_v42, 3 }
 0xb9c   : > { %v4723_v20 = vpack.c.bf16 %v4597_v39, %v4599_v36  ;;  %v4633_v27 = vadd.s32 3, %v13233_v14  ;;  %v4584_v39 = vrot.slane %v12436_v11, 3  ;;  %v4581_v36 = vrot.slane %v12717_v35, 3 }
 0xb9e   : > { %vm4665_vm15 = vcmp.lt.s32.totalorder %v4633_v27, 64  ;;  %v4617_v14 = vsel %vm4585_vm12, %v4584_v39, %v4554_v40 }
 0xb9f   : > { %vm8850_vm0 = vmpackc.low %vm4665_vm15, %vm10654_vm3 }
 0xba1   : > { %6803 = vmatmul.mubr.bf16.gmra.mrb[20].mxu0 %v4716_v60  ;;  %v4578_v60 = vrot.slane %v12667_v28, 3 }
 0xba2   : > { %6812 = vmatprep.mubr.bf16.mxu0 %v4719_v32  ;;  %v4596_v32 = vsel %vm4585_vm12, %v4571_v53, %v4573_v48  ;;  %v4587_v53 = vsel %vm4585_vm12, %v4582_v4, %v4584_v39  ;;  %v13586_v4 = vld [vmem:[%s11027_s21 + $0x8] sm:$0xff] }
 0xba3   : > { %v4593_v33 = vsel %vm4585_vm12, %v4576_v38, %v4578_v60  ;;  %v4722_v52 = vpack.c.bf16 %v4596_v32, %v4598_v29  ;;  %v4591_v57 = vsel %vm4585_vm12, %v4578_v60, %v4580_v16  ;;  %v4583_v60 = vrot.slane %v12433_v45, 3  ;;  %v13580_v16 = vld [vmem:[%s11027_s21] sm:$0xff] }
 0xba4   : > { %v4725_v5 = vpack.c.bf16 %v4593_v33, %v4595_v21  ;;  %v4727_v62 = vpack.c.bf16 %v4589_v50, %v4591_v57  ;;  %v10087_v33 = vld [vmem:[%s11021_s30 + $0xe0] ss:$8 sps:$4 sm:$0xff]   ;;  %v10089_v21 = vld [vmem:[%s11021_s30 + $0xe4] ss:$8 sps:$4 sm:$0xff]  }
 0xba5   : > { %v4586_v32 = vsel %vm4585_vm12, %v4581_v36, %v4583_v60  ;;  %v4616_v29 = vsel %vm4585_vm12, %v4583_v60, %v4553_v58  ;;  %7149 = vmatprep.subr.bf16.mxu1 %v10089_v21 }
 0xba6   : > { %v8854_v40 = vpack.c.bf16 %v4616_v29, %v4586_v32  ;;  %7150 = vmatpush1.bf16.msra.mxu1 %v10087_v33 }
 0xba9   : > { %6813 = vmatmul.mubr.bf16.gmra.mrb[24].mxu0 %v4718_v24  ;;  %v4592_v24 = vsel %vm4585_vm12, %v4575_v41, %v4577_v59 }
 0xbaa   : > { %8846 = vmatprep.mubr.msk.bf16.mxu0 %vm8844_vm14, %v8845_v22  ;;  %v4594_v22 = vsel %vm4585_vm12, %v4573_v48, %v4575_v41  ;;  %v8851_v48 = vpack.c.bf16 %v4617_v14, %v4587_v53  ;;  %v4956_v41 = vsub.s32 4, %v11307_v8 }
 0xbab   : > { %v4724_v25 = vpack.c.bf16 %v4592_v24, %v4594_v22 }
 0xbac   : > { %v13589_v58 = vrot.slane %v13586_v4, %v4956_v41 }
 0xbb1   : > { %8849 = vmatmul.mubr.msk.bf16.gmra.mrb[28].mxu0 %vm8844_vm14, %v8848_v54  ;;  %v4588_v54 = vsel %vm4585_vm12, %v4579_v1, %v4581_v36 }
 0xbb2   : > { %6832 = vmatprep.mubr.bf16.mxu0 %v4723_v20  ;;  %v4590_v20 = vsel %vm4585_vm12, %v4577_v59, %v4579_v1  ;;  %v13583_v59 = vrot.slane %v13580_v16, %v4956_v41 }
 0xbb3   : > { %v4726_v38 = vpack.c.bf16 %v4588_v54, %v4590_v20 }
 0xbb9   : > { %6833 = vmatmul.mubr.bf16.gmra.mrb[32].mxu0 %v4722_v52  ;;  %v10092_v52 = vld [vmem:[%s11021_s30 + $0xf4] ss:$8 sps:$4 sm:$0xff]  }
 0xbba   : > { %6842 = vmatprep.mubr.bf16.mxu0 %v4725_v5  ;;  %v10090_v5 = vld [vmem:[%s11021_s30 + $0xf0] ss:$8 sps:$4 sm:$0xff]   ;;  %7151 = vmatprep.subr.bf16.mxu1 %v10092_v52 }
 0xbbb   : > { %7152 = vmatpush1.bf16.msra.mxu1 %v10090_v5 }
 0xbc1   : > { %6843 = vmatmul.mubr.bf16.gmra.mrb[36].mxu0 %v4724_v25 }
 0xbc2   : > { %6852 = vmatprep.mubr.bf16.mxu0 %v4727_v62 }
 0xbc9   : > { %6853 = vmatmul.mubr.bf16.gmra.mrb[40].mxu0 %v4726_v38 }
 0xbca   : > { %8852 = vmatprep.mubr.msk.bf16.mxu0 %vm8850_vm0, %v8851_v48 }
 0xbd1   : > { %8855 = vmatmul.mubr.msk.bf16.gmra.mrb[44].mxu0 %vm8850_vm0, %v8854_v40 }
 0xc6c   : > { %v6794_v24 = vpop.f32.mrb[16].mxu0 }
 0xc6d   : > { %v9198_v22 = vadd.f32 %v6794_v24, %v13583_v59  ;;  %v6796_v50 = vpop.f32.mrb[17].mxu0 }
 0xc6e   : > { %v9199_v57 = vadd.f32 %v6796_v50, %v13589_v58  ;;  %v6798_v25 = vpop.f32.mrb[18].mxu0 }
 0xc6f   : > { %v9200_v62 = vadd.f32 %v6798_v25, %v13583_v59  ;;  %v6800_v1 = vpop.f32.mrb[19].mxu0  ;;  %v6873_v39 = vmax.f32 %v9198_v22, 0.0 }
 0xc70   : > { %v9201_v27 = vadd.f32 %v6800_v1, %v13589_v58  ;;  %v6874_v54 = vmax.f32 %v9199_v57, 0.0 }
 0xc71   : > { %v6875_v36 = vmax.f32 %v9200_v62, 0.0 }
 0xc72   : > { %v6876_v20 = vmax.f32 %v9201_v27, 0.0 }
 0xc73   : > { %v6905_v53 = vpack.c.bf16 %v6875_v36, %v6873_v39 }
 0xc74   : > { %v6906_v14 = vpack.c.bf16 %v6876_v20, %v6874_v54  ;;  %v6804_v38 = vpop.f32.mrb[20].mxu0 }
 0xc75   : > { %v9202_v48 = vadd.f32 %v6804_v38, %v13583_v59  ;;  %v6806_v60 = vpop.f32.mrb[21].mxu0 }
 0xc76   : > { %v9203_v32 = vadd.f32 %v6806_v60, %v13589_v58  ;;  %v6808_v29 = vpop.f32.mrb[22].mxu0  ;;  %7153 = vmatprep.mubr.bf16.mxu1 %v6906_v14 }
 0xc77   : > { %v9204_v40 = vadd.f32 %v6808_v29, %v13583_v59  ;;  %v6810_v33 = vpop.f32.mrb[23].mxu0  ;;  %7154 = vmatmul.mubr.bf16.vlgmr.msra.gmra.mrb[176].mxu1 %v6905_v53  ;;  %v6877_v52 = vmax.f32 %v9202_v48, 0.0 }
 0xc78   : > { %v9205_v21 = vadd.f32 %v6810_v33, %v13589_v58  ;;  %v6878_v41 = vmax.f32 %v9203_v32, 0.0 }
 0xc79   : > { %v6879_v5 = vmax.f32 %v9204_v40, 0.0 }
 0xc7a   : > { %v6880_v24 = vmax.f32 %v9205_v21, 0.0 }
 0xc7b   : > { %v6907_v22 = vpack.c.bf16 %v6879_v5, %v6877_v52 }
 0xc7c   : > { %v6908_v50 = vpack.c.bf16 %v6880_v24, %v6878_v41  ;;  %v6814_v57 = vpop.f32.mrb[24].mxu0 }
 0xc7d   : > { %v9206_v25 = vadd.f32 %v6814_v57, %v13583_v59  ;;  %v6816_v62 = vpop.f32.mrb[25].mxu0 }
 0xc7e   : > { %v9207_v1 = vadd.f32 %v6816_v62, %v13589_v58  ;;  %v6818_v27 = vpop.f32.mrb[26].mxu0  ;;  %7163 = vmatprep.mubr.bf16.mxu1 %v6908_v50 }
 0xc7f   : > { %v9208_v39 = vadd.f32 %v6818_v27, %v13583_v59  ;;  %v6820_v36 = vpop.f32.mrb[27].mxu0  ;;  %7164 = vmatmul.mubr.bf16.gmra.mrb[180].mxu1 %v6907_v22  ;;  %v6881_v20 = vmax.f32 %v9206_v25, 0.0 }
 0xc80   : > { %v9209_v54 = vadd.f32 %v6820_v36, %v13589_v58  ;;  %v6882_v14 = vmax.f32 %v9207_v1, 0.0 }
 0xc81   : > { %v6883_v53 = vmax.f32 %v9208_v39, 0.0 }
 0xc82   : > { %v6884_v38 = vmax.f32 %v9209_v54, 0.0 }
 0xc83   : > { %v6909_v48 = vpack.c.bf16 %v6883_v53, %v6881_v20 }
 0xc84   : > { %v6910_v60 = vpack.c.bf16 %v6884_v38, %v6882_v14  ;;  %v6824_v32 = vpop.f32.mrb[28].mxu0 }
 0xc85   : > { %v9210_v29 = vadd.f32 %v6824_v32, %v13583_v59  ;;  %v6826_v40 = vpop.f32.mrb[29].mxu0 }
 0xc86   : > { %v9211_v33 = vadd.f32 %v6826_v40, %v13589_v58  ;;  %v6828_v21 = vpop.f32.mrb[30].mxu0  ;;  %7173 = vmatprep.mubr.bf16.mxu1 %v6910_v60 }
 0xc87   : > { %v9212_v52 = vadd.f32 %v6828_v21, %v13583_v59  ;;  %v6830_v5 = vpop.f32.mrb[31].mxu0  ;;  %7174 = vmatmul.mubr.bf16.gmra.mrb[184].mxu1 %v6909_v48  ;;  %v6885_v24 = vmax.f32 %v9210_v29, 0.0 }
 0xc88   : > { %v9213_v41 = vadd.f32 %v6830_v5, %v13589_v58  ;;  %v6886_v50 = vmax.f32 %v9211_v33, 0.0 }
 0xc89   : > { %v6887_v22 = vmax.f32 %v9212_v52, 0.0 }
 0xc8a   : > { %v6888_v57 = vmax.f32 %v9213_v41, 0.0 }
 0xc8b   : > { %v6911_v25 = vpack.c.bf16 %v6887_v22, %v6885_v24 }
 0xc8c   : > { %v6912_v62 = vpack.c.bf16 %v6888_v57, %v6886_v50  ;;  %v6834_v1 = vpop.f32.mrb[32].mxu0 }
 0xc8d   : > { %v9214_v27 = vadd.f32 %v6834_v1, %v13583_v59  ;;  %v6836_v39 = vpop.f32.mrb[33].mxu0 }
 0xc8e   : > { %v9215_v36 = vadd.f32 %v6836_v39, %v13589_v58  ;;  %v6838_v54 = vpop.f32.mrb[34].mxu0  ;;  %7183 = vmatprep.mubr.bf16.mxu1 %v6912_v62 }
 0xc8f   : > { %v9216_v20 = vadd.f32 %v6838_v54, %v13583_v59  ;;  %v6840_v53 = vpop.f32.mrb[35].mxu0  ;;  %7184 = vmatmul.mubr.bf16.gmra.mrb[188].mxu1 %v6911_v25  ;;  %v6889_v38 = vmax.f32 %v9214_v27, 0.0 }
 0xc90   : > { %v9217_v14 = vadd.f32 %v6840_v53, %v13589_v58  ;;  %v6890_v60 = vmax.f32 %v9215_v36, 0.0 }
 0xc91   : > { %v6891_v48 = vmax.f32 %v9216_v20, 0.0 }
 0xc92   : > { %v6892_v32 = vmax.f32 %v9217_v14, 0.0 }
 0xc93   : > { %v6913_v29 = vpack.c.bf16 %v6891_v48, %v6889_v38 }
 0xc94   : > { %v6914_v40 = vpack.c.bf16 %v6892_v32, %v6890_v60  ;;  %v6844_v33 = vpop.f32.mrb[36].mxu0 }
 0xc95   : > { %v9218_v21 = vadd.f32 %v6844_v33, %v13583_v59  ;;  %v6846_v52 = vpop.f32.mrb[37].mxu0 }
 0xc96   : > { %v9219_v5 = vadd.f32 %v6846_v52, %v13589_v58  ;;  %v6848_v41 = vpop.f32.mrb[38].mxu0  ;;  %7193 = vmatprep.mubr.bf16.mxu1 %v6914_v40 }
 0xc97   : > { %v9220_v24 = vadd.f32 %v6848_v41, %v13583_v59  ;;  %v6850_v22 = vpop.f32.mrb[39].mxu0  ;;  %7194 = vmatmul.mubr.bf16.gmra.mrb[192].mxu1 %v6913_v29  ;;  %v6893_v57 = vmax.f32 %v9218_v21, 0.0 }
 0xc98   : > { %v9221_v50 = vadd.f32 %v6850_v22, %v13589_v58  ;;  %v6894_v62 = vmax.f32 %v9219_v5, 0.0 }
 0xc99   : > { %v6895_v25 = vmax.f32 %v9220_v24, 0.0 }
 0xc9a   : > { %v6896_v1 = vmax.f32 %v9221_v50, 0.0 }
 0xc9b   : > { %v6915_v27 = vpack.c.bf16 %v6895_v25, %v6893_v57 }
 0xc9c   : > { %v6916_v39 = vpack.c.bf16 %v6896_v1, %v6894_v62  ;;  %v6854_v36 = vpop.f32.mrb[40].mxu0 }
 0xc9d   : > { %v9222_v54 = vadd.f32 %v6854_v36, %v13583_v59  ;;  %v6856_v20 = vpop.f32.mrb[41].mxu0 }
 0xc9e   : > { %v9223_v53 = vadd.f32 %v6856_v20, %v13589_v58  ;;  %v6858_v14 = vpop.f32.mrb[42].mxu0  ;;  %7203 = vmatprep.mubr.bf16.mxu1 %v6916_v39 }
 0xc9f   : > { %v9224_v38 = vadd.f32 %v6858_v14, %v13583_v59  ;;  %v6860_v48 = vpop.f32.mrb[43].mxu0  ;;  %7204 = vmatmul.mubr.bf16.gmra.mrb[196].mxu1 %v6915_v27  ;;  %v6897_v32 = vmax.f32 %v9222_v54, 0.0 }
 0xca0   : > { %v9225_v60 = vadd.f32 %v6860_v48, %v13589_v58  ;;  %v6898_v40 = vmax.f32 %v9223_v53, 0.0  ;;  %v6955_v53 = vsub.s32 5, %v11307_v8 }
 0xca1   : > { %v6899_v29 = vmax.f32 %v9224_v38, 0.0 }
 0xca2   : > { %v6900_v33 = vmax.f32 %v9225_v60, 0.0  ;;  %v13625_v14 = vrot.slane %v13580_v16, %v6955_v53  ;;  %v13628_v38 = vrot.slane %v13586_v4, %v6955_v53 }
 0xca3   : > { %v6917_v21 = vpack.c.bf16 %v6899_v29, %v6897_v32 }
 0xca4   : > { %v6918_v52 = vpack.c.bf16 %v6900_v33, %v6898_v40  ;;  %v6864_v5 = vpop.f32.mrb[44].mxu0 }
 0xca5   : > { %v9226_v41 = vadd.f32 %v6864_v5, %v13583_v59  ;;  %v6866_v24 = vpop.f32.mrb[45].mxu0 }
 0xca6   : > { %v9227_v22 = vadd.f32 %v6866_v24, %v13589_v58  ;;  %v6868_v50 = vpop.f32.mrb[46].mxu0  ;;  %7213 = vmatprep.mubr.bf16.mxu1 %v6918_v52 }
 0xca7   : > { %v9228_v57 = vadd.f32 %v6868_v50, %v13583_v59  ;;  %v6870_v25 = vpop.f32.mrb[47].mxu0  ;;  %7214 = vmatmul.mubr.bf16.gmra.mrb[200].mxu1 %v6917_v21  ;;  %v6901_v1 = vmax.f32 %v9226_v41, 0.0 }
 0xca8   : > { %v9229_v62 = vadd.f32 %v6870_v25, %v13589_v58  ;;  %v6902_v39 = vmax.f32 %v9227_v22, 0.0 }
 0xca9   : > { %v6903_v27 = vmax.f32 %v9228_v57, 0.0 }
 0xcaa   : > { %v6904_v36 = vmax.f32 %v9229_v62, 0.0 }
 0xcab   : > { %v6919_v54 = vpack.c.bf16 %v6903_v27, %v6901_v1 }
 0xcac   : > { %v6920_v20 = vpack.c.bf16 %v6904_v36, %v6902_v39 }
 0xcae   : > { %7223 = vmatprep.mubr.bf16.mxu1 %v6920_v20 }
 0xcaf   : > { %7224 = vmatmul.mubr.bf16.gmra.mrb[204].mxu1 %v6919_v54 }
 0xd4a   : > { %v7155_v59 = vpop.f32.mrb[176].mxu1 }
 0xd4b   : > { %v7156_v48 = vadd.f32 %v7155_v59, %v13625_v14  ;;  %v7157_v58 = vpop.f32.mrb[177].mxu1 }
 0xd4c   : > { %v7158_v60 = vadd.f32 %v7157_v58, %v13628_v38  ;;  %v7159_v32 = vpop.f32.mrb[178].mxu1 }
 0xd4d   : > { %v13633_v29 = vadd.f32 %v7156_v48, %v12406_v31  ;;  %v7160_v40 = vadd.f32 %v7159_v32, %v13625_v14  ;;  %v7161_v33 = vpop.f32.mrb[179].mxu1 }
 0xd4e   : > { %v13637_v8 = vadd.f32 %v7158_v60, %v12403_v37  ;;  %v7162_v16 = vadd.f32 %v7161_v33, %v13628_v38 }
 0xd4f   : > { %v13641_v4 = vadd.f32 %v7160_v40, %v12410_v51 }
 0xd50   : > { %v13644_v21 = vadd.f32 %v7162_v16, %v12399_v56  ;;  %v7266_v52 = vadd.f32 %v13637_v8, %v13633_v29 }
 0xd52   : > { %v7165_v5 = vpop.f32.mrb[180].mxu1  ;;  %7267 = vadd.xlane.f32.xlu0 %v7266_v52  ;;  %v7269_v31 = vadd.f32 %v13644_v21, %v13641_v4 }
 0xd53   : > { %v7166_v41 = vadd.f32 %v7165_v5, %v13625_v14  ;;  %v7167_v37 = vpop.f32.mrb[181].mxu1 }
 0xd54   : > { %v7168_v24 = vadd.f32 %v7167_v37, %v13628_v38  ;;  %v7169_v22 = vpop.f32.mrb[182].mxu1  ;;  %7270 = vadd.xlane.f32.xlu1 %v7269_v31 }
 0xd55   : > { %v13653_v51 = vadd.f32 %v7166_v41, %v12446_v2  ;;  %v7170_v56 = vadd.f32 %v7169_v22, %v13625_v14  ;;  %v7171_v50 = vpop.f32.mrb[183].mxu1 }
 0xd56   : > { %v13657_v57 = vadd.f32 %v7168_v24, %v12426_v49  ;;  %v7172_v25 = vadd.f32 %v7171_v50, %v13628_v38 }
 0xd57   : > { %v13661_v62 = vadd.f32 %v7170_v56, %v12454_v3 }
 0xd58   : > { %v13664_v1 = vadd.f32 %v7172_v25, %v12457_v9  ;;  %v7272_v27 = vadd.f32 %v13657_v57, %v13653_v51 }
 0xd5a   : > { %v7175_v39 = vpop.f32.mrb[184].mxu1  ;;  %7273 = vadd.xlane.f32.xlu0 %v7272_v27  ;;  %v7275_v2 = vadd.f32 %v13664_v1, %v13661_v62 }
 0xd5b   : > { %v7176_v36 = vadd.f32 %v7175_v39, %v13625_v14  ;;  %v7177_v49 = vpop.f32.mrb[185].mxu1 }
 0xd5c   : > { %v7178_v54 = vadd.f32 %v7177_v49, %v13628_v38  ;;  %v7179_v20 = vpop.f32.mrb[186].mxu1  ;;  %7276 = vadd.xlane.f32.xlu1 %v7275_v2 }
 0xd5d   : > { %v13673_v3 = vadd.f32 %v7176_v36, %v12527_v55  ;;  %v7180_v9 = vadd.f32 %v7179_v20, %v13625_v14  ;;  %v7181_v53 = vpop.f32.mrb[187].mxu1 }
 0xd5e   : > { %v13677_v59 = vadd.f32 %v7178_v54, %v12463_v34  ;;  %v7182_v48 = vadd.f32 %v7181_v53, %v13628_v38 }
 0xd5f   : > { %v13681_v58 = vadd.f32 %v7180_v9, %v12512_v61 }
 0xd60   : > { %v13684_v60 = vadd.f32 %v7182_v48, %v12487_v0  ;;  %v7278_v32 = vadd.f32 %v13677_v59, %v13673_v3 }
 0xd62   : > { %v7185_v40 = vpop.f32.mrb[188].mxu1  ;;  %7279 = vadd.xlane.f32.xlu0 %v7278_v32  ;;  %v7281_v55 = vadd.f32 %v13684_v60, %v13681_v58 }
 0xd63   : > { %v7186_v33 = vadd.f32 %v7185_v40, %v13625_v14  ;;  %v7187_v34 = vpop.f32.mrb[189].mxu1 }
 0xd64   : > { %v7188_v16 = vadd.f32 %v7187_v34, %v13628_v38  ;;  %v7189_v52 = vpop.f32.mrb[190].mxu1  ;;  %7282 = vadd.xlane.f32.xlu1 %v7281_v55 }
 0xd65   : > { %v13693_v61 = vadd.f32 %v7186_v33, %v12572_v47  ;;  %v7190_v0 = vadd.f32 %v7189_v52, %v13625_v14  ;;  %v7191_v5 = vpop.f32.mrb[191].mxu1 }
 0xd66   : > { %v13697_v31 = vadd.f32 %v7188_v16, %v12536_v19  ;;  %v7192_v41 = vadd.f32 %v7191_v5, %v13628_v38 }
 0xd67   : > { %v13701_v37 = vadd.f32 %v7190_v0, %v12554_v43 }
 0xd68   : > { %v13704_v24 = vadd.f32 %v7192_v41, %v12520_v44  ;;  %v7284_v22 = vadd.f32 %v13697_v31, %v13693_v61 }
 0xd6a   : > { %v7195_v56 = vpop.f32.mrb[192].mxu1  ;;  %7285 = vadd.xlane.f32.xlu0 %v7284_v22  ;;  %v7287_v47 = vadd.f32 %v13704_v24, %v13701_v37 }
 0xd6b   : > { %v7196_v50 = vadd.f32 %v7195_v56, %v13625_v14  ;;  %v7197_v19 = vpop.f32.mrb[193].mxu1 }
 0xd6c   : > { %v7198_v25 = vadd.f32 %v7197_v19, %v13628_v38  ;;  %v7199_v27 = vpop.f32.mrb[194].mxu1  ;;  %7288 = vadd.xlane.f32.xlu1 %v7287_v47 }
 0xd6d   : > { %v13713_v43 = vadd.f32 %v7196_v50, %v12614_v30  ;;  %v7200_v44 = vadd.f32 %v7199_v27, %v13625_v14  ;;  %v7201_v39 = vpop.f32.mrb[195].mxu1 }
 0xd6e   : > { %v13717_v2 = vadd.f32 %v7198_v25, %v12582_v13  ;;  %v7202_v36 = vadd.f32 %v7201_v39, %v13628_v38 }
 0xd6f   : > { %v13721_v49 = vadd.f32 %v7200_v44, %v12600_v63 }
 0xd70   : > { %v13724_v54 = vadd.f32 %v7202_v36, %v12564_v15  ;;  %v7290_v20 = vadd.f32 %v13717_v2, %v13713_v43 }
 0xd72   : > { %v7205_v9 = vpop.f32.mrb[196].mxu1  ;;  %7291 = vadd.xlane.f32.xlu0 %v7290_v20  ;;  %v7293_v30 = vadd.f32 %v13724_v54, %v13721_v49 }
 0xd73   : > { %v7206_v53 = vadd.f32 %v7205_v9, %v13625_v14  ;;  %v7207_v13 = vpop.f32.mrb[197].mxu1 }
 0xd74   : > { %v7208_v48 = vadd.f32 %v7207_v13, %v13628_v38  ;;  %v7209_v32 = vpop.f32.mrb[198].mxu1  ;;  %7294 = vadd.xlane.f32.xlu1 %v7293_v30 }
 0xd75   : > { %v13733_v63 = vadd.f32 %v7206_v53, %v12660_v46  ;;  %v7210_v15 = vadd.f32 %v7209_v32, %v13625_v14  ;;  %v7211_v40 = vpop.f32.mrb[199].mxu1 }
 0xd76   : > { %v13737_v55 = vadd.f32 %v7208_v48, %v12623_v17  ;;  %v7212_v33 = vadd.f32 %v7211_v40, %v13628_v38 }
 0xd77   : > { %v13741_v34 = vadd.f32 %v7210_v15, %v12649_v12 }
 0xd78   : > { %v13744_v16 = vadd.f32 %v7212_v33, %v12606_v7  ;;  %v7296_v52 = vadd.f32 %v13737_v55, %v13733_v63 }
 0xd7a   : > { %v7215_v0 = vpop.f32.mrb[200].mxu1  ;;  %7297 = vadd.xlane.f32.xlu0 %v7296_v52  ;;  %v7299_v46 = vadd.f32 %v13744_v16, %v13741_v34 }
 0xd7b   : > { %v7216_v5 = vadd.f32 %v7215_v0, %v13625_v14  ;;  %v7217_v17 = vpop.f32.mrb[201].mxu1 }
 0xd7c   : > { %v7218_v41 = vadd.f32 %v7217_v17, %v13628_v38  ;;  %v7219_v22 = vpop.f32.mrb[202].mxu1  ;;  %7300 = vadd.xlane.f32.xlu1 %v7299_v46 }
 0xd7d   : > { %v13753_v12 = vadd.f32 %v7216_v5, %v12694_v23  ;;  %v7220_v7 = vadd.f32 %v7219_v22, %v13625_v14  ;;  %v7221_v56 = vpop.f32.mrb[203].mxu1 }
 0xd7e   : > { %v13757_v47 = vadd.f32 %v7218_v41, %v12667_v28  ;;  %v7222_v50 = vadd.f32 %v7221_v56, %v13628_v38 }
 0xd7f   : > { %v13761_v19 = vadd.f32 %v7220_v7, %v12687_v42 }
 0xd80   : > { %v13764_v25 = vadd.f32 %v7222_v50, %v12655_v18  ;;  %v7302_v27 = vadd.f32 %v13757_v47, %v13753_v12 }
 0xd82   : > { %v7225_v44 = vpop.f32.mrb[204].mxu1  ;;  %7303 = vadd.xlane.f32.xlu0 %v7302_v27  ;;  %v7305_v23 = vadd.f32 %v13764_v25, %v13761_v19 }
 0xd83   : > { %v7226_v39 = vadd.f32 %v7225_v44, %v13625_v14  ;;  %v7227_v28 = vpop.f32.mrb[205].mxu1 }
 0xd84   : > { %v7228_v36 = vadd.f32 %v7227_v28, %v13628_v38  ;;  %v7229_v20 = vpop.f32.mrb[206].mxu1  ;;  %7306 = vadd.xlane.f32.xlu1 %v7305_v23 }
 0xd85   : > { %v13773_v42 = vadd.f32 %v7226_v39, %v12717_v35  ;;  %v7230_v18 = vadd.f32 %v7229_v20, %v13625_v14  ;;  %v7231_v9 = vpop.f32.mrb[207].mxu1 }
 0xd86   : > { %v13777_v30 = vadd.f32 %v7228_v36, %v12701_v26  ;;  %v7232_v53 = vadd.f32 %v7231_v9, %v13628_v38 }
 0xd87   : > { %v13781_v13 = vadd.f32 %v7230_v18, %v12433_v45 }
 0xd88   : > { %v13784_v48 = vadd.f32 %v7232_v53, %v12436_v11  ;;  %v7308_v32 = vadd.f32 %v13777_v30, %v13773_v42 }
 0xd8a   : > { %7309 = vadd.xlane.f32.xlu0 %v7308_v32  ;;  %v7311_v35 = vadd.f32 %v13784_v48, %v13781_v13 }
 0xd8c   : > { %7312 = vadd.xlane.f32.xlu1 %v7311_v35 }
 0xddf   : > { %v7268_v14 = vpop.xlane.xlu0 %7267 }
 0xde0   : > { %v7314_v15 = vmul.f32 0.00390625, %v7268_v14 }
 0xde1   : > { %v7271_v26 = vpop.xlane.xlu1 %7270 }
 0xde2   : > { %v13791_v40 = vsub.f32 %v13633_v29, %v7314_v15  ;;  %v13794_v45 = vsub.f32 %v13637_v8, %v7314_v15  ;;  %v7315_v38 = vmul.f32 0.00390625, %v7271_v26 }
 0xde4   : > { %v7362_v11 = vmul.f32 %v13791_v40, %v13791_v40  ;;  %v7363_v33 = vmul.f32 %v13794_v45, %v13794_v45  ;;  %v13801_v52 = vsub.f32 %v13641_v4, %v7315_v38  ;;  %v13804_v0 = vsub.f32 %v13644_v21, %v7315_v38 }
 0xde6   : > { %v7364_v29 = vmul.f32 %v13801_v52, %v13801_v52  ;;  %v7365_v8 = vmul.f32 %v13804_v0, %v13804_v0  ;;  %v7394_v46 = vadd.f32 %v7363_v33, %v7362_v11 }
 0xde7   : > { %v7274_v5 = vpop.xlane.xlu0 %7273 }
 0xde8   : > { %v7316_v17 = vmul.f32 0.00390625, %v7274_v5  ;;  %7395 = vadd.xlane.f32.xlu0 %v7394_v46  ;;  %v7397_v41 = vadd.f32 %v7365_v8, %v7364_v29 }
 0xde9   : > { %v7277_v22 = vpop.xlane.xlu1 %7276 }
 0xdea   : > { %v13811_v7 = vsub.f32 %v13653_v51, %v7316_v17  ;;  %v13814_v4 = vsub.f32 %v13657_v57, %v7316_v17  ;;  %v7317_v21 = vmul.f32 0.00390625, %v7277_v22  ;;  %7398 = vadd.xlane.f32.xlu1 %v7397_v41 }
 0xdec   : > { %v7366_v56 = vmul.f32 %v13811_v7, %v13811_v7  ;;  %v7367_v50 = vmul.f32 %v13814_v4, %v13814_v4  ;;  %v13821_v27 = vsub.f32 %v13661_v62, %v7317_v21  ;;  %v13824_v44 = vsub.f32 %v13664_v1, %v7317_v21 }
 0xdee   : > { %v7368_v51 = vmul.f32 %v13821_v27, %v13821_v27  ;;  %v7369_v57 = vmul.f32 %v13824_v44, %v13824_v44  ;;  %v7400_v23 = vadd.f32 %v7367_v50, %v7366_v56 }
 0xdef   : > { %v7280_v39 = vpop.xlane.xlu0 %7279 }
 0xdf0   : > { %v7318_v28 = vmul.f32 0.00390625, %v7280_v39  ;;  %7401 = vadd.xlane.f32.xlu0 %v7400_v23  ;;  %v7403_v36 = vadd.f32 %v7369_v57, %v7368_v51 }
 0xdf1   : > { %v7283_v20 = vpop.xlane.xlu1 %7282 }
 0xdf2   : > { %v13831_v18 = vsub.f32 %v13673_v3, %v7318_v28  ;;  %v13834_v62 = vsub.f32 %v13677_v59, %v7318_v28  ;;  %v7319_v1 = vmul.f32 0.00390625, %v7283_v20  ;;  %7404 = vadd.xlane.f32.xlu1 %v7403_v36 }
 0xdf4   : > { %v7370_v9 = vmul.f32 %v13831_v18, %v13831_v18  ;;  %v7371_v53 = vmul.f32 %v13834_v62, %v13834_v62  ;;  %v13841_v32 = vsub.f32 %v13681_v58, %v7319_v1  ;;  %v13844_v35 = vsub.f32 %v13684_v60, %v7319_v1 }
 0xdf6   : > { %v7372_v3 = vmul.f32 %v13841_v32, %v13841_v32  ;;  %v7373_v59 = vmul.f32 %v13844_v35, %v13844_v35  ;;  %v7406_v14 = vadd.f32 %v7371_v53, %v7370_v9 }
 0xdf7   : > { %v7286_v15 = vpop.xlane.xlu0 %7285 }
 0xdf8   : > { %v7320_v26 = vmul.f32 0.00390625, %v7286_v15  ;;  %7407 = vadd.xlane.f32.xlu0 %v7406_v14  ;;  %v7409_v38 = vadd.f32 %v7373_v59, %v7372_v3 }
 0xdf9   : > { %v7289_v11 = vpop.xlane.xlu1 %7288 }
 0xdfa   : > { %v13851_v33 = vsub.f32 %v13693_v61, %v7320_v26  ;;  %v13854_v58 = vsub.f32 %v13697_v31, %v7320_v26  ;;  %v7321_v60 = vmul.f32 0.00390625, %v7289_v11  ;;  %7410 = vadd.xlane.f32.xlu1 %v7409_v38 }
 0xdfc   : > { %v7374_v29 = vmul.f32 %v13851_v33, %v13851_v33  ;;  %v7375_v8 = vmul.f32 %v13854_v58, %v13854_v58  ;;  %v13861_v46 = vsub.f32 %v13701_v37, %v7321_v60  ;;  %v13864_v5 = vsub.f32 %v13704_v24, %v7321_v60 }
 0xdfe   : > { %v7376_v61 = vmul.f32 %v13861_v46, %v13861_v46  ;;  %v7377_v31 = vmul.f32 %v13864_v5, %v13864_v5  ;;  %v7412_v17 = vadd.f32 %v7375_v8, %v7374_v29 }
 0xdff   : > { %v7292_v41 = vpop.xlane.xlu0 %7291 }
 0xe00   : > { %v7322_v22 = vmul.f32 0.00390625, %v7292_v41  ;;  %7413 = vadd.xlane.f32.xlu0 %v7412_v17  ;;  %v7415_v21 = vadd.f32 %v7377_v31, %v7376_v61 }
 0xe01   : > { %v7295_v56 = vpop.xlane.xlu1 %7294 }
 0xe02   : > { %v13871_v50 = vsub.f32 %v13713_v43, %v7322_v22  ;;  %v13874_v37 = vsub.f32 %v13717_v2, %v7322_v22  ;;  %v7323_v24 = vmul.f32 0.00390625, %v7295_v56  ;;  %7416 = vadd.xlane.f32.xlu1 %v7415_v21 }
 0xe04   : > { %v7378_v51 = vmul.f32 %v13871_v50, %v13871_v50  ;;  %v7379_v57 = vmul.f32 %v13874_v37, %v13874_v37  ;;  %v13881_v23 = vsub.f32 %v13721_v49, %v7323_v24  ;;  %v13884_v39 = vsub.f32 %v13724_v54, %v7323_v24 }
 0xe06   : > { %v7380_v43 = vmul.f32 %v13881_v23, %v13881_v23  ;;  %v7381_v2 = vmul.f32 %v13884_v39, %v13884_v39  ;;  %v7418_v28 = vadd.f32 %v7379_v57, %v7378_v51 }
 0xe07   : > { %v7298_v36 = vpop.xlane.xlu0 %7297 }
 0xe08   : > { %v7324_v20 = vmul.f32 0.00390625, %v7298_v36  ;;  %7419 = vadd.xlane.f32.xlu0 %v7418_v28  ;;  %v7421_v1 = vadd.f32 %v7381_v2, %v7380_v43 }
 0xe09   : > { %v7301_v9 = vpop.xlane.xlu1 %7300 }
 0xe0a   : > { %v13891_v53 = vsub.f32 %v13733_v63, %v7324_v20  ;;  %v13894_v49 = vsub.f32 %v13737_v55, %v7324_v20  ;;  %v7325_v54 = vmul.f32 0.00390625, %v7301_v9  ;;  %7422 = vadd.xlane.f32.xlu1 %v7421_v1 }
 0xe0c   : > { %v7382_v3 = vmul.f32 %v13891_v53, %v13891_v53  ;;  %v7383_v59 = vmul.f32 %v13894_v49, %v13894_v49  ;;  %v13901_v14 = vsub.f32 %v13741_v34, %v7325_v54  ;;  %v13904_v15 = vsub.f32 %v13744_v16, %v7325_v54 }
 0xe0e   : > { %v7384_v63 = vmul.f32 %v13901_v14, %v13901_v14  ;;  %v7385_v55 = vmul.f32 %v13904_v15, %v13904_v15  ;;  %v7424_v26 = vadd.f32 %v7383_v59, %v7382_v3 }
 0xe0f   : > { %v7304_v38 = vpop.xlane.xlu0 %7303 }
 0xe10   : > { %v7326_v11 = vmul.f32 0.00390625, %v7304_v38  ;;  %7425 = vadd.xlane.f32.xlu0 %v7424_v26  ;;  %v7427_v60 = vadd.f32 %v7385_v55, %v7384_v63  ;;  %v611_v38 = vld [vmem:[%s11027_s21 + $0x10] sm:$0xff] }
 0xe11   : > { %v7307_v29 = vpop.xlane.xlu1 %7306 }
 0xe12   : > { %v13911_v8 = vsub.f32 %v13753_v12, %v7326_v11  ;;  %v13914_v34 = vsub.f32 %v13757_v47, %v7326_v11  ;;  %v7327_v16 = vmul.f32 0.00390625, %v7307_v29  ;;  %7428 = vadd.xlane.f32.xlu1 %v7427_v60  ;;  %v612_v11 = vld [vmem:[%s11027_s21 + $0x18] sm:$0xff] }
 0xe14   : > { %v7386_v61 = vmul.f32 %v13911_v8, %v13911_v8  ;;  %v7387_v31 = vmul.f32 %v13914_v34, %v13914_v34  ;;  %v13921_v17 = vsub.f32 %v13761_v19, %v7327_v16  ;;  %v13924_v41 = vsub.f32 %v13764_v25, %v7327_v16 }
 0xe16   : > { %v7388_v12 = vmul.f32 %v13921_v17, %v13921_v17  ;;  %v7389_v47 = vmul.f32 %v13924_v41, %v13924_v41  ;;  %v7430_v22 = vadd.f32 %v7387_v31, %v7386_v61  ;;  %v13953_v61 = vrot.slane %v611_v38, %v11310_v10 }
 0xe17   : > { %v7310_v21 = vpop.xlane.xlu0 %7309  ;;  %v13956_v31 = vrot.slane %v612_v11, %v11310_v10 }
 0xe18   : > { %v7328_v56 = vmul.f32 0.00390625, %v7310_v21  ;;  %7431 = vadd.xlane.f32.xlu0 %v7430_v22  ;;  %v7433_v24 = vadd.f32 %v7389_v47, %v7388_v12  ;;  %v13959_v47 = vrot.slane %v611_v38, %v11429_v6  ;;  %v13962_v22 = vrot.slane %v612_v11, %v11429_v6 }
 0xe19   : > { %v7313_v51 = vpop.xlane.xlu1 %7312 }
 0xe1a   : > { %v13931_v57 = vsub.f32 %v13773_v42, %v7328_v56  ;;  %v13934_v19 = vsub.f32 %v13777_v30, %v7328_v56  ;;  %v7329_v25 = vmul.f32 0.00390625, %v7313_v51  ;;  %7434 = vadd.xlane.f32.xlu1 %v7433_v24 }
 0xe1c   : > { %v7390_v43 = vmul.f32 %v13931_v57, %v13931_v57  ;;  %v7391_v2 = vmul.f32 %v13934_v19, %v13934_v19  ;;  %v13941_v28 = vsub.f32 %v13781_v13, %v7329_v25  ;;  %v13944_v36 = vsub.f32 %v13784_v48, %v7329_v25 }
 0xe1e   : > { %v7392_v42 = vmul.f32 %v13941_v28, %v13941_v28  ;;  %v7393_v30 = vmul.f32 %v13944_v36, %v13944_v36  ;;  %v7436_v20 = vadd.f32 %v7391_v2, %v7390_v43 }
 0xe20   : > { %7437 = vadd.xlane.f32.xlu0 %v7436_v20  ;;  %v7439_v1 = vadd.f32 %v7393_v30, %v7392_v42 }
 0xe22   : > { %7440 = vadd.xlane.f32.xlu1 %v7439_v1 }
 0xe75   : > { %v7396_v9 = vpop.xlane.xlu0 %7395 }
 0xe76   : > { %v7442_v54 = vmul.f32 0.00390625, %v7396_v9 }
 0xe77   : > { %v7399_v3 = vpop.xlane.xlu1 %7398 }
 0xe78   : > { %v7458_v13 = vadd.f32 1e-05, %v7442_v54  ;;  %v7443_v59 = vmul.f32 0.00390625, %v7399_v3 }
 0xe7a   : > { %10253 = vrsqrt.f32 %v7458_v13  ;;  %v7459_v48 = vadd.f32 1e-05, %v7443_v59 }
 0xe7c   : > { %10255 = vrsqrt.f32 %v7459_v48 }
 0xe7d   : > { %v7402_v63 = vpop.xlane.xlu0 %7401 }
 0xe7e   : > { %v7444_v55 = vmul.f32 0.00390625, %v7402_v63 }
 0xe7f   : > { %v7405_v26 = vpop.xlane.xlu1 %7404 }
 0xe80   : > { %v7460_v60 = vadd.f32 1e-05, %v7444_v55  ;;  %v7445_v29 = vmul.f32 0.00390625, %v7405_v26 }
 0xe82   : > { %10257 = vrsqrt.f32 %v7460_v60  ;;  %v7461_v16 = vadd.f32 1e-05, %v7445_v29 }
 0xe84   : > { %v10254_v12 = vpop.eup %10253  ;;  %10259 = vrsqrt.f32 %v7461_v16 }
 0xe85   : > { %v7490_v21 = vmul.f32 %v10254_v12, %v13791_v40  ;;  %v7491_v56 = vmul.f32 %v10254_v12, %v13794_v45  ;;  %v7408_v24 = vpop.xlane.xlu0 %7407 }
 0xe86   : > { %v10256_v51 = vpop.eup %10255  ;;  %v7446_v25 = vmul.f32 0.00390625, %v7408_v24 }
 0xe87   : > { %v7530_v43 = vmul.f32 %v13953_v61, %v7490_v21  ;;  %v7531_v2 = vmul.f32 %v13956_v31, %v7491_v56  ;;  %v7492_v42 = vmul.f32 %v10256_v51, %v13801_v52  ;;  %v7493_v30 = vmul.f32 %v10256_v51, %v13804_v0  ;;  %v7411_v20 = vpop.xlane.xlu1 %7410 }
 0xe88   : > { %v7462_v1 = vadd.f32 1e-05, %v7446_v25  ;;  %v7447_v9 = vmul.f32 0.00390625, %v7411_v20 }
 0xe89   : > { %v13971_v54 = vadd.f32 %v13959_v47, %v7530_v43  ;;  %v13974_v40 = vadd.f32 %v13962_v22, %v7531_v2  ;;  %v7532_v45 = vmul.f32 %v13953_v61, %v7492_v42  ;;  %v7533_v3 = vmul.f32 %v13956_v31, %v7493_v30 }
 0xe8a   : > { %10261 = vrsqrt.f32 %v7462_v1  ;;  %v7463_v13 = vadd.f32 1e-05, %v7447_v9 }
 0xe8b   : > { %7602 = vst [vmem:[#allocation2] sm:$0xff] %v13971_v54  ;;  %7603 = vst [vmem:[#allocation2 + $0x8] sm:$0xff] %v13974_v40  ;;  %v13981_v52 = vadd.f32 %v13959_v47, %v7532_v45  ;;  %v13984_v0 = vadd.f32 %v13962_v22, %v7533_v3 }
 0xe8c   : > { %v10258_v59 = vpop.eup %10257  ;;  %10263 = vrsqrt.f32 %v7463_v13 }
 0xe8d   : > { %7604 = vst [vmem:[#allocation2 + $0x10] sm:$0xff] %v13981_v52  ;;  %7605 = vst [vmem:[#allocation2 + $0x18] sm:$0xff] %v13984_v0  ;;  %v7494_v48 = vmul.f32 %v10258_v59, %v13811_v7  ;;  %v7495_v63 = vmul.f32 %v10258_v59, %v13814_v4  ;;  %v7414_v55 = vpop.xlane.xlu0 %7413 }
 0xe8e   : > { %v10260_v26 = vpop.eup %10259  ;;  %v7448_v38 = vmul.f32 0.00390625, %v7414_v55 }
 0xe8f   : > { %v7534_v11 = vmul.f32 %v13953_v61, %v7494_v48  ;;  %v7535_v60 = vmul.f32 %v13956_v31, %v7495_v63  ;;  %v7496_v29 = vmul.f32 %v10260_v26, %v13821_v27  ;;  %v7497_v16 = vmul.f32 %v10260_v26, %v13824_v44  ;;  %v7417_v12 = vpop.xlane.xlu1 %7416 }
 0xe90   : > { %v7464_v21 = vadd.f32 1e-05, %v7448_v38  ;;  %v7449_v56 = vmul.f32 0.00390625, %v7417_v12 }
 0xe91   : > { %v13995_v24 = vadd.f32 %v13959_v47, %v7534_v11  ;;  %v13998_v7 = vadd.f32 %v13962_v22, %v7535_v60  ;;  %v7536_v4 = vmul.f32 %v13953_v61, %v7496_v29  ;;  %v7537_v51 = vmul.f32 %v13956_v31, %v7497_v16 }
 0xe92   : > { %10265 = vrsqrt.f32 %v7464_v21  ;;  %v7465_v25 = vadd.f32 1e-05, %v7449_v56 }
 0xe93   : > { %7606 = vst [vmem:[#allocation2 + $0x20] sm:$0xff] %v13995_v24  ;;  %7607 = vst [vmem:[#allocation2 + $0x28] sm:$0xff] %v13998_v7  ;;  %v14005_v27 = vadd.f32 %v13959_v47, %v7536_v4  ;;  %v14008_v44 = vadd.f32 %v13962_v22, %v7537_v51 }
 0xe94   : > { %v10262_v43 = vpop.eup %10261  ;;  %10267 = vrsqrt.f32 %v7465_v25 }
 0xe95   : > { %7608 = vst [vmem:[#allocation2 + $0x30] sm:$0xff] %v14005_v27  ;;  %7609 = vst [vmem:[#allocation2 + $0x38] sm:$0xff] %v14008_v44  ;;  %v7498_v2 = vmul.f32 %v10262_v43, %v13831_v18  ;;  %v7499_v42 = vmul.f32 %v10262_v43, %v13834_v62  ;;  %v7420_v30 = vpop.xlane.xlu0 %7419 }
 0xe96   : > { %v10264_v20 = vpop.eup %10263  ;;  %v7450_v1 = vmul.f32 0.00390625, %v7420_v30 }
 0xe97   : > { %v7538_v9 = vmul.f32 %v13953_v61, %v7498_v2  ;;  %v7539_v45 = vmul.f32 %v13956_v31, %v7499_v42  ;;  %v7500_v3 = vmul.f32 %v10264_v20, %v13841_v32  ;;  %v7501_v13 = vmul.f32 %v10264_v20, %v13844_v35  ;;  %v7423_v59 = vpop.xlane.xlu1 %7422 }
 0xe98   : > { %v7466_v48 = vadd.f32 1e-05, %v7450_v1  ;;  %v7451_v63 = vmul.f32 0.00390625, %v7423_v59 }
 0xe99   : > { %v14019_v55 = vadd.f32 %v13959_v47, %v7538_v9  ;;  %v14022_v18 = vadd.f32 %v13962_v22, %v7539_v45  ;;  %v7540_v62 = vmul.f32 %v13953_v61, %v7500_v3  ;;  %v7541_v26 = vmul.f32 %v13956_v31, %v7501_v13 }
 0xe9a   : > { %10269 = vrsqrt.f32 %v7466_v48  ;;  %v7467_v38 = vadd.f32 1e-05, %v7451_v63 }
 0xe9b   : > { %7610 = vst [vmem:[#allocation2 + $0x40] sm:$0xff] %v14019_v55  ;;  %7611 = vst [vmem:[#allocation2 + $0x48] sm:$0xff] %v14022_v18  ;;  %v14029_v32 = vadd.f32 %v13959_v47, %v7540_v62  ;;  %v14032_v35 = vadd.f32 %v13962_v22, %v7541_v26 }
 0xe9c   : > { %v10266_v11 = vpop.eup %10265  ;;  %10271 = vrsqrt.f32 %v7467_v38 }
 0xe9d   : > { %7612 = vst [vmem:[#allocation2 + $0x50] sm:$0xff] %v14029_v32  ;;  %7613 = vst [vmem:[#allocation2 + $0x58] sm:$0xff] %v14032_v35  ;;  %v7502_v60 = vmul.f32 %v10266_v11, %v13851_v33  ;;  %v7503_v29 = vmul.f32 %v10266_v11, %v13854_v58  ;;  %v7426_v16 = vpop.xlane.xlu0 %7425 }
 0xe9e   : > { %v10268_v12 = vpop.eup %10267  ;;  %v7452_v21 = vmul.f32 0.00390625, %v7426_v16 }
 0xe9f   : > { %v7542_v56 = vmul.f32 %v13953_v61, %v7502_v60  ;;  %v7543_v4 = vmul.f32 %v13956_v31, %v7503_v29  ;;  %v7504_v51 = vmul.f32 %v10268_v12, %v13861_v46  ;;  %v7505_v25 = vmul.f32 %v10268_v12, %v13864_v5  ;;  %v7429_v43 = vpop.xlane.xlu1 %7428 }
 0xea0   : > { %v7468_v2 = vadd.f32 1e-05, %v7452_v21  ;;  %v7453_v42 = vmul.f32 0.00390625, %v7429_v43 }
 0xea1   : > { %v14043_v30 = vadd.f32 %v13959_v47, %v7542_v56  ;;  %v14046_v33 = vadd.f32 %v13962_v22, %v7543_v4  ;;  %v7544_v58 = vmul.f32 %v13953_v61, %v7504_v51  ;;  %v7545_v20 = vmul.f32 %v13956_v31, %v7505_v25 }
 0xea2   : > { %10273 = vrsqrt.f32 %v7468_v2  ;;  %v7469_v1 = vadd.f32 1e-05, %v7453_v42 }
 0xea3   : > { %7614 = vst [vmem:[#allocation2 + $0x60] sm:$0xff] %v14043_v30  ;;  %7615 = vst [vmem:[#allocation2 + $0x68] sm:$0xff] %v14046_v33  ;;  %v14053_v46 = vadd.f32 %v13959_v47, %v7544_v58  ;;  %v14056_v5 = vadd.f32 %v13962_v22, %v7545_v20 }
 0xea4   : > { %v10270_v9 = vpop.eup %10269  ;;  %10275 = vrsqrt.f32 %v7469_v1 }
 0xea5   : > { %7616 = vst [vmem:[#allocation2 + $0x70] sm:$0xff] %v14053_v46  ;;  %7617 = vst [vmem:[#allocation2 + $0x78] sm:$0xff] %v14056_v5  ;;  %v7506_v45 = vmul.f32 %v10270_v9, %v13871_v50  ;;  %v7507_v3 = vmul.f32 %v10270_v9, %v13874_v37  ;;  %v7432_v13 = vpop.xlane.xlu0 %7431 }
 0xea6   : > { %v10272_v59 = vpop.eup %10271  ;;  %v7454_v48 = vmul.f32 0.00390625, %v7432_v13 }
 0xea7   : > { %v7546_v63 = vmul.f32 %v13953_v61, %v7506_v45  ;;  %v7547_v62 = vmul.f32 %v13956_v31, %v7507_v3  ;;  %v7508_v26 = vmul.f32 %v10272_v59, %v13881_v23  ;;  %v7509_v38 = vmul.f32 %v10272_v59, %v13884_v39  ;;  %v7435_v11 = vpop.xlane.xlu1 %7434 }
 0xea8   : > { %v7470_v60 = vadd.f32 1e-05, %v7454_v48  ;;  %v7455_v29 = vmul.f32 0.00390625, %v7435_v11 }
 0xea9   : > { %v14067_v16 = vadd.f32 %v13959_v47, %v7546_v63  ;;  %v14070_v50 = vadd.f32 %v13962_v22, %v7547_v62  ;;  %v7548_v37 = vmul.f32 %v13953_v61, %v7508_v26  ;;  %v7549_v12 = vmul.f32 %v13956_v31, %v7509_v38 }
 0xeaa   : > { %10277 = vrsqrt.f32 %v7470_v60  ;;  %v7471_v21 = vadd.f32 1e-05, %v7455_v29 }
 0xeab   : > { %7618 = vst [vmem:[#allocation2 + $0x80] sm:$0xff] %v14067_v16  ;;  %7619 = vst [vmem:[#allocation2 + $0x88] sm:$0xff] %v14070_v50  ;;  %v14077_v23 = vadd.f32 %v13959_v47, %v7548_v37  ;;  %v14080_v39 = vadd.f32 %v13962_v22, %v7549_v12 }
 0xeac   : > { %v10274_v56 = vpop.eup %10273  ;;  %10279 = vrsqrt.f32 %v7471_v21 }
 0xead   : > { %7620 = vst [vmem:[#allocation2 + $0x90] sm:$0xff] %v14077_v23  ;;  %7621 = vst [vmem:[#allocation2 + $0x98] sm:$0xff] %v14080_v39  ;;  %v7510_v4 = vmul.f32 %v10274_v56, %v13891_v53  ;;  %v7511_v51 = vmul.f32 %v10274_v56, %v13894_v49  ;;  %v7438_v25 = vpop.xlane.xlu0 %7437 }
 0xeae   : > { %v10276_v43 = vpop.eup %10275  ;;  %v7456_v2 = vmul.f32 0.00390625, %v7438_v25 }
 0xeaf   : > { %v7550_v42 = vmul.f32 %v13953_v61, %v7510_v4  ;;  %v7551_v58 = vmul.f32 %v13956_v31, %v7511_v51  ;;  %v7512_v20 = vmul.f32 %v10276_v43, %v13901_v14  ;;  %v7513_v1 = vmul.f32 %v10276_v43, %v13904_v15  ;;  %v7441_v9 = vpop.xlane.xlu1 %7440 }
 0xeb0   : > { %v7472_v45 = vadd.f32 1e-05, %v7456_v2  ;;  %v7457_v3 = vmul.f32 0.00390625, %v7441_v9 }
 0xeb1   : > { %v14091_v13 = vadd.f32 %v13959_v47, %v7550_v42  ;;  %v14094_v53 = vadd.f32 %v13962_v22, %v7551_v58  ;;  %v7552_v49 = vmul.f32 %v13953_v61, %v7512_v20  ;;  %v7553_v59 = vmul.f32 %v13956_v31, %v7513_v1 }
 0xeb2   : > { %10281 = vrsqrt.f32 %v7472_v45  ;;  %v7473_v48 = vadd.f32 1e-05, %v7457_v3  ;;  %v10324_v45 = vld [vmem:[#allocation11 + $0x1c] ss:$12 sps:$4 sm:$0xff] (!%p8888_p13)  }
 0xeb3   : > { %7622 = vst [vmem:[#allocation2 + $0xa0] sm:$0xff] %v14091_v13  ;;  %7623 = vst [vmem:[#allocation2 + $0xa8] sm:$0xff] %v14094_v53  ;;  %v14101_v14 = vadd.f32 %v13959_v47, %v7552_v49  ;;  %v14104_v15 = vadd.f32 %v13962_v22, %v7553_v59  ;;  %v10329_v3 = vld [vmem:[#allocation11 + $0x30] ss:$12 sps:$4 sm:$0xff] (!%p8888_p13)   ;;  %v10330_v49 = vld [vmem:[#allocation11 + $0x4c] ss:$12 sps:$4 sm:$0xff] (!%p8888_p13)  }
 0xeb4   : > { %v10278_v63 = vpop.eup %10277  ;;  %10283 = vrsqrt.f32 %v7473_v48  ;;  %v10342_v59 = vld [vmem:[#allocation11 + $0xc8] ss:$12 sps:$4 sm:$0xff] (!%p8888_p13)  }
 0xeb5   : > { %7624 = vst [vmem:[#allocation2 + $0xb0] sm:$0xff] %v14101_v14  ;;  %7625 = vst [vmem:[#allocation2 + $0xb8] sm:$0xff] %v14104_v15  ;;  %v7514_v62 = vmul.f32 %v10278_v63, %v13911_v8  ;;  %v7515_v26 = vmul.f32 %v10278_v63, %v13914_v34  ;;  %v10332_v48 = vld [vmem:[#allocation11 + $0x48] ss:$12 sps:$4 sm:$0xff] (!%p8888_p13)   ;;  %v10333_v63 = vld [vmem:[#allocation11 + $0x64] ss:$12 sps:$4 sm:$0xff] (!%p8888_p13)   ;;  %9006 = vmatprep.subr.bf16.mxu1 (!%p8888_p13), %v10342_v59  ;;  %v7638_v59 = vpack.c.bf16 (!%p8888_p13), %v13981_v52, %v13971_v54 }
 0xeb6   : > { %v10280_v38 = vpop.eup %10279  ;;  %v7643_v54 = vpack.c.bf16 (!%p8888_p13), %v14032_v35, %v14022_v18  ;;  %v10376_v52 = vld [vmem:[#allocation11 + $0x138] ss:$12 sps:$4 sm:$0xff] (!%p8888_p13)   ;;  %v7647_v18 = vpack.c.bf16 (!%p8888_p13), %v14080_v39, %v14070_v50  ;;  %v7648_v35 = vpack.c.bf16 (!%p8888_p13), %v14101_v14, %v14091_v13 }
 0xeb7   : > { %v7554_v11 = vmul.f32 %v13953_v61, %v7514_v62  ;;  %v7555_v60 = vmul.f32 %v13956_v31, %v7515_v26  ;;  %v7516_v29 = vmul.f32 %v10280_v38, %v13921_v17  ;;  %v7517_v37 = vmul.f32 %v10280_v38, %v13924_v41  ;;  %v10335_v62 = vld [vmem:[#allocation11 + $0x60] ss:$12 sps:$4 sm:$0xff] (!%p8888_p13)   ;;  %v10336_v26 = vld [vmem:[#allocation11 + $0x7c] ss:$12 sps:$4 sm:$0xff] (!%p8888_p13)  }
 0xeb8   : > { %v10350_v38 = vld [vmem:[#allocation11 + $0x20] ss:$12 sps:$4 sm:$0xff] (!%p8888_p13)  }
 0xeb9   : > { %v14115_v12 = vadd.f32 %v13959_v47, %v7554_v11  ;;  %v14118_v21 = vadd.f32 %v13962_v22, %v7555_v60  ;;  %v7556_v56 = vmul.f32 %v13953_v61, %v7516_v29  ;;  %v7557_v8 = vmul.f32 %v13956_v31, %v7517_v37  ;;  %v10352_v11 = vld [vmem:[#allocation11 + $0xf8] ss:$12 sps:$4 sm:$0xff] (!%p8888_p13)   ;;  %v10339_v37 = vld [vmem:[#allocation11 + $0x94] ss:$12 sps:$4 sm:$0xff] (!%p8888_p13)  }
 0xeba   : > { %v10338_v60 = vld [vmem:[#allocation11 + $0x78] ss:$12 sps:$4 sm:$0xff] (!%p8888_p13)  }
 0xebb   : > { %7626 = vst [vmem:[#allocation2 + $0xc0] sm:$0xff] %v14115_v12  ;;  %7627 = vst [vmem:[#allocation2 + $0xc8] sm:$0xff] %v14118_v21  ;;  %v14125_v34 = vadd.f32 %v13959_v47, %v7556_v56  ;;  %v14128_v17 = vadd.f32 %v13962_v22, %v7557_v8  ;;  %v10355_v29 = vld [vmem:[#allocation11 + $0x38] ss:$12 sps:$4 sm:$0xff] (!%p8888_p13)   ;;  %v10357_v56 = vld [vmem:[#allocation11 + $0x110] ss:$12 sps:$4 sm:$0xff] (!%p8888_p13)  }
 0xebc   : > { %v10282_v41 = vpop.eup %10281  ;;  %v10341_v8 = vld [vmem:[#allocation11 + $0x90] ss:$12 sps:$4 sm:$0xff] (!%p8888_p13)  }
 0xebd   : > { %7628 = vst [vmem:[#allocation2 + $0xd0] sm:$0xff] %v14125_v34  ;;  %7629 = vst [vmem:[#allocation2 + $0xd8] sm:$0xff] %v14128_v17  ;;  %v7518_v4 = vmul.f32 %v10282_v41, %v13931_v57  ;;  %v7519_v51 = vmul.f32 %v10282_v41, %v13934_v19  ;;  %v10360_v41 = vld [vmem:[#allocation11 + $0x50] ss:$12 sps:$4 sm:$0xff] (!%p8888_p13)  }
 0xebe   : > { %v10284_v25 = vpop.eup %10283 }
 0xebf   : > { %v7558_v43 = vmul.f32 %v13953_v61, %v7518_v4  ;;  %v7559_v2 = vmul.f32 %v13956_v31, %v7519_v51  ;;  %v7520_v42 = vmul.f32 %v10284_v25, %v13941_v28  ;;  %v7521_v58 = vmul.f32 %v10284_v25, %v13944_v36  ;;  %7637 = sbr.rel (%p8888_p13) target bundleno = 4115 (0x1013), region = 88  ;;  %v10321_v36 = vld [vmem:[#allocation11 + $0x4] ss:$12 sps:$4 sm:$0xff] (!%p8888_p13)   ;;  %v10362_v4 = vld [vmem:[#allocation11 + $0x128] ss:$12 sps:$4 sm:$0xff] (!%p8888_p13)  }
 0xec0   : > { %7991 = vmatprep.subr.bf16.mxu0 (!%p8888_p13), %v10321_v36  ;;  %v10343_v51 = vld [vmem:[#allocation11 + $0xac] ss:$12 sps:$4 sm:$0xff] (!%p8888_p13)   ;;  %v10346_v25 = vld [vmem:[#allocation11 + $0xa8] ss:$12 sps:$4 sm:$0xff] (!%p8888_p13)  }
 0xec1   : > { %v14139_v20 = vadd.f32 %v13959_v47, %v7558_v43  ;;  %v14142_v1 = vadd.f32 %v13962_v22, %v7559_v2  ;;  %v7560_v9 = vmul.f32 %v13953_v61, %v7520_v42  ;;  %v7561_v57 = vmul.f32 %v13956_v31, %v7521_v58  ;;  %v10323_v31 = vld [vmem:[#allocation11] ss:$12 sps:$4 sm:$0xff] (!%p8888_p13)   ;;  %v10365_v43 = vld [vmem:[#allocation11 + $0x68] ss:$12 sps:$4 sm:$0xff] (!%p8888_p13)   ;;  %v10348_v42 = vld [vmem:[#allocation11 + $0xc4] ss:$12 sps:$4 sm:$0xff] (!%p8888_p13)  }
 0xec2   : > { %v7639_v61 = vpack.c.bf16 (!%p8888_p13), %v13984_v0, %v13974_v40  ;;  %7992 = vmatpush1.bf16.msra.mxu0 (!%p8888_p13), %v10323_v31  ;;  %v10345_v40 = vld [vmem:[#allocation11 + $0x8] ss:$12 sps:$4 sm:$0xff] (!%p8888_p13)   ;;  %v10347_v0 = vld [vmem:[#allocation11 + $0xe0] ss:$12 sps:$4 sm:$0xff] (!%p8888_p13)   ;;  %v10356_v31 = vld [vmem:[#allocation11 + $0xd8] ss:$12 sps:$4 sm:$0xff] (!%p8888_p13)  }
 0xec3   : > { %7630 = vst [vmem:[#allocation2 + $0xe0] sm:$0xff] %v14139_v20  ;;  %7631 = vst [vmem:[#allocation2 + $0xe8] sm:$0xff] %v14142_v1  ;;  %v14149_v19 = vadd.f32 %v13959_v47, %v7560_v9  ;;  %v14152_v28 = vadd.f32 %v13962_v22, %v7561_v57  ;;  %v10326_v47 = vld [vmem:[#allocation11 + $0x18] ss:$12 sps:$4 sm:$0xff] (!%p8888_p13)   ;;  %7993 = vmatprep.subr.bf16.mxu0 (!%p8888_p13), %v10324_v45  ;;  %v10327_v22 = vld [vmem:[#allocation11 + $0x34] ss:$12 sps:$4 sm:$0xff] (!%p8888_p13)   ;;  %9007 = vmatpush3.bf16.msra.mxu1 (!%p8888_p13), %v10345_v40 }
 0xec4   : > { %8136 = vmatprep.mubr.bf16.mxu1 (!%p8888_p13), %v7639_v61  ;;  %8023 = vmatprep.mubr.bf16.mxu0 (!%p8888_p13), %v7639_v61  ;;  %v10367_v2 = vld [vmem:[#allocation11 + $0x140] ss:$12 sps:$4 sm:$0xff] (!%p8888_p13)   ;;  %v10372_v57 = vld [vmem:[#allocation11 + $0x158] ss:$12 sps:$4 sm:$0xff] (!%p8888_p13)   ;;  %v10353_v36 = vld [vmem:[#allocation11 + $0xdc] ss:$12 sps:$4 sm:$0xff] (!%p8888_p13)  }
 0xec5   : > { %7632 = vst [vmem:[#allocation2 + $0xf0] sm:$0xff] %v14149_v19  ;;  %7633 = vst [vmem:[#allocation2 + $0xf8] sm:$0xff] %v14152_v28  ;;  %9008 = vmatprep.subr.bf16.mxu1 (!%p8888_p13), %v10347_v0  ;;  %v10351_v58 = vld [vmem:[#allocation11 + $0xc0] ss:$12 sps:$4 sm:$0xff] (!%p8888_p13)   ;;  %v10375_v61 = vld [vmem:[#allocation11 + $0x98] ss:$12 sps:$4 sm:$0xff] (!%p8888_p13)  }
 0xec6   : > { %7994 = vmatpush1.bf16.msra.mxu0 %v10326_v47  ;;  %v10370_v9 = vld [vmem:[#allocation11 + $0x80] ss:$12 sps:$4 sm:$0xff]   ;;  %v10377_v45 = vld [vmem:[#allocation11 + $0x170] ss:$12 sps:$4 sm:$0xff]  }
 0xec7   : > { %7995 = vmatprep.subr.bf16.mxu0 %v10327_v22  ;;  %9009 = vmatpush3.bf16.msra.mxu1 %v10350_v38  ;;  %v10358_v47 = vld [vmem:[#allocation11 + $0xf4] ss:$12 sps:$4 sm:$0xff]   ;;  %v10380_v22 = vld [vmem:[#allocation11 + $0xb0] ss:$12 sps:$4 sm:$0xff]   ;;  %v10382_v38 = vld [vmem:[#allocation11 + $0x16c] ss:$12 sps:$4 sm:$0xff]  }
 0xec8   : > { %9010 = vmatprep.subr.bf16.mxu1 %v10352_v11  ;;  %v10368_v40 = vld [vmem:[#allocation11 + $0x124] ss:$12 sps:$4 sm:$0xff]   ;;  %v10371_v0 = vld [vmem:[#allocation11 + $0x120] ss:$12 sps:$4 sm:$0xff]   ;;  %v7642_v11 = vpack.c.bf16 %v14029_v32, %v14019_v55  ;;  %v7646_v55 = vpack.c.bf16 %v14077_v23, %v14067_v16  ;;  %v7649_v32 = vpack.c.bf16 %v14104_v15, %v14094_v53 }
 0xec9   : > { %v7718_v16 = vld [vmem:[#allocation13] sm:$0x7]  ;;  %v14492_v23 = vld [vmem:[#allocation21_spill] sm:$0xff] }
 0xeca   : > { %7996 = vmatpush1.bf16.msra.mxu0 %v10329_v3  ;;  %v10361_v3 = vld [vmem:[#allocation11 + $0xf0] ss:$12 sps:$4 sm:$0xff]   ;;  %v14190_v39 = vrot.slane %v7718_v16, %v14492_v23 }
 0xecb   : > { %7997 = vmatprep.subr.bf16.mxu0 %v10330_v49  ;;  %9011 = vmatpush3.bf16.msra.mxu1 %v10355_v29  ;;  %v10363_v49 = vld [vmem:[#allocation11 + $0x10c] ss:$12 sps:$4 sm:$0xff]  }
 0xecc   : > { %9012 = vmatprep.subr.bf16.mxu1 %v10357_v56 }
 0xece   : > { %7998 = vmatpush1.bf16.msra.mxu0 %v10332_v48  ;;  %v7641_v48 = vpack.c.bf16 %v14008_v44, %v13998_v7  ;;  %v10378_v7 = vld [vmem:[#allocation11 + $0x154] ss:$12 sps:$4 sm:$0xff]   ;;  %v10381_v44 = vld [vmem:[#allocation11 + $0x150] ss:$12 sps:$4 sm:$0xff]  }
 0xecf   : > { %7999 = vmatprep.subr.bf16.mxu0 %v10333_v63  ;;  %9013 = vmatpush3.bf16.msra.mxu1 %v10360_v41  ;;  %v10366_v63 = vld [vmem:[#allocation11 + $0x108] ss:$12 sps:$4 sm:$0xff]  }
 0xed0   : > { %9014 = vmatprep.subr.bf16.mxu1 %v10362_v4  ;;  %v14209_v4 = vrot.slane %v7718_v16, %v11310_v10 }
 0xed2   : > { %8000 = vmatpush1.bf16.msra.mxu0 %v10335_v62  ;;  %v10373_v62 = vld [vmem:[#allocation11 + $0x13c] ss:$12 sps:$4 sm:$0xff]  }
 0xed3   : > { %8001 = vmatprep.subr.bf16.mxu0 %v10336_v26  ;;  %9015 = vmatpush3.bf16.msra.mxu1 %v10365_v43  ;;  %v7640_v26 = vpack.c.bf16 %v14005_v27, %v13995_v24  ;;  %v10384_v24 = vld [vmem:[#allocation11 + $0x168] ss:$12 sps:$4 sm:$0xff]   ;;  %v7644_v27 = vpack.c.bf16 %v14053_v46, %v14043_v30  ;;  %v7651_v30 = vpack.c.bf16 %v14128_v17, %v14118_v21 }
 0xed4   : > { %9016 = vmatprep.subr.bf16.mxu1 %v10367_v2  ;;  %v7653_v46 = vpack.c.bf16 %v14152_v28, %v14142_v1  ;;  %v14212_v43 = vrot.slane %v7718_v16, %v11429_v6 }
 0xed6   : > { %8002 = vmatpush1.bf16.msra.mxu0 %v10338_v60  ;;  %v7645_v60 = vpack.c.bf16 %v14056_v5, %v14046_v33  ;;  %v7650_v33 = vpack.c.bf16 %v14125_v34, %v14115_v12  ;;  %v7652_v5 = vpack.c.bf16 %v14149_v19, %v14139_v20 }
 0xed7   : > { %8003 = vmatprep.subr.bf16.mxu0 %v10339_v37  ;;  %9017 = vmatpush3.bf16.msra.mxu1 %v10370_v9 }
 0xed8   : > { %9018 = vmatprep.subr.bf16.mxu1 %v10372_v57 }
 0xeda   : > { %8004 = vmatpush1.bf16.msra.mxu0 %v10341_v8 }
 0xedb   : > { %8005 = vmatprep.subr.bf16.mxu0 %v10343_v51  ;;  %9019 = vmatpush3.bf16.msra.mxu1 %v10375_v61 }
 0xedc   : > { %9020 = vmatprep.subr.bf16.mxu1 %v10377_v45 }
 0xede   : > { %8006 = vmatpush1.bf16.msra.mxu0 %v10346_v25 }
 0xedf   : > { %8007 = vmatprep.subr.bf16.mxu0 %v10348_v42  ;;  %9021 = vmatpush3.bf16.msra.mxu1 %v10380_v22 }
 0xee2   : > { %8008 = vmatpush1.bf16.msra.mxu0 %v10351_v58  ;;  %8137 = vmatmul.mubr.bf16.vlgmr.msra.gmra.mrb[0].mxu1 %v7638_v59 }
 0xee3   : > { %8009 = vmatprep.subr.bf16.mxu0 %v10353_v36  ;;  %8144 = vmatprep.mubr.bf16.mxu1 %v7641_v48 }
 0xee6   : > { %8010 = vmatpush1.bf16.msra.mxu0 %v10356_v31 }
 0xee7   : > { %8011 = vmatprep.subr.bf16.mxu0 %v10358_v47 }
 0xeea   : > { %8012 = vmatpush1.bf16.msra.mxu0 %v10361_v3  ;;  %8145 = vmatmul.mubr.bf16.gmra.mrb[4].mxu1 %v7640_v26 }
 0xeeb   : > { %8013 = vmatprep.subr.bf16.mxu0 %v10363_v49  ;;  %8152 = vmatprep.mubr.bf16.mxu1 %v7643_v54 }
 0xeee   : > { %8014 = vmatpush1.bf16.msra.mxu0 %v10366_v63 }
 0xeef   : > { %8015 = vmatprep.subr.bf16.mxu0 %v10368_v40 }
 0xef2   : > { %8016 = vmatpush1.bf16.msra.mxu0 %v10371_v0  ;;  %8153 = vmatmul.mubr.bf16.gmra.mrb[8].mxu1 %v7642_v11 }
 0xef3   : > { %8017 = vmatprep.subr.bf16.mxu0 %v10373_v62  ;;  %8160 = vmatprep.mubr.bf16.mxu1 %v7645_v60 }
 0xef6   : > { %8018 = vmatpush1.bf16.msra.mxu0 %v10376_v52 }
 0xef7   : > { %8019 = vmatprep.subr.bf16.mxu0 %v10378_v7 }
 0xefa   : > { %8020 = vmatpush1.bf16.msra.mxu0 %v10381_v44  ;;  %8161 = vmatmul.mubr.bf16.gmra.mrb[12].mxu1 %v7644_v27 }
 0xefb   : > { %8021 = vmatprep.subr.bf16.mxu0 %v10382_v38  ;;  %8168 = vmatprep.mubr.bf16.mxu1 %v7647_v18 }
 0xefe   : > { %8022 = vmatpush1.bf16.msra.mxu0 %v10384_v24 }
 0xf01   : > { %8024 = vmatmul.mubr.bf16.vlgmr.msra.gmra.mrb[0].mxu0 %v7638_v59 }
 0xf02   : > { %8033 = vmatprep.mubr.bf16.mxu0 %v7641_v48  ;;  %8169 = vmatmul.mubr.bf16.gmra.mrb[16].mxu1 %v7646_v55 }
 0xf03   : > { %8176 = vmatprep.mubr.bf16.mxu1 %v7649_v32 }
 0xf09   : > { %8034 = vmatmul.mubr.bf16.gmra.mrb[4].mxu0 %v7640_v26 }
 0xf0a   : > { %8043 = vmatprep.mubr.bf16.mxu0 %v7643_v54  ;;  %8177 = vmatmul.mubr.bf16.gmra.mrb[20].mxu1 %v7648_v35 }
 0xf0b   : > { %8184 = vmatprep.mubr.bf16.mxu1 %v7651_v30 }
 0xf11   : > { %8044 = vmatmul.mubr.bf16.gmra.mrb[8].mxu0 %v7642_v11 }
 0xf12   : > { %8053 = vmatprep.mubr.bf16.mxu0 %v7645_v60  ;;  %8185 = vmatmul.mubr.bf16.gmra.mrb[24].mxu1 %v7650_v33 }
 0xf13   : > { %8192 = vmatprep.mubr.bf16.mxu1 %v7653_v46 }
 0xf19   : > { %8054 = vmatmul.mubr.bf16.gmra.mrb[12].mxu0 %v7644_v27 }
 0xf1a   : > { %8063 = vmatprep.mubr.bf16.mxu0 %v7647_v18  ;;  %8193 = vmatmul.mubr.bf16.gmra.mrb[28].mxu1 %v7652_v5 }
 0xf21   : > { %8064 = vmatmul.mubr.bf16.gmra.mrb[16].mxu0 %v7646_v55 }
 0xf22   : > { %8073 = vmatprep.mubr.bf16.mxu0 %v7649_v32 }
 0xf29   : > { %8074 = vmatmul.mubr.bf16.gmra.mrb[20].mxu0 %v7648_v35 }
 0xf2a   : > { %8083 = vmatprep.mubr.bf16.mxu0 %v7651_v30 }
 0xf31   : > { %8084 = vmatmul.mubr.bf16.gmra.mrb[24].mxu0 %v7650_v33 }
 0xf32   : > { %8093 = vmatprep.mubr.bf16.mxu0 %v7653_v46 }
 0xf39   : > { %8094 = vmatmul.mubr.bf16.gmra.mrb[28].mxu0 %v7652_v5 }
 0xfb5   : > { %v9022_v50 = vpop.f32.mrb[0].mxu1 }
 0xfb6   : > { %v9023_v13 = vpop.f32.mrb[1].mxu1 }
 0xfb7   : > { %v9024_v53 = vadd.f32 %v9023_v13, %v9022_v50  ;;  %v9025_v14 = vpop.f32.mrb[2].mxu1 }
 0xfb8   : > { %v9026_v15 = vpop.f32.mrb[3].mxu1 }
 0xfb9   : > { %v8139_v12 = vadd.f32 %v9024_v53, %v14190_v39  ;;  %v9027_v21 = vadd.f32 %v9026_v15, %v9025_v14 }
 0xfbb   : > { %8203 = vst [vmem:[%s14411_s8 + $0x10] sm:$0xff] %v8139_v12  ;;  %v8142_v34 = vadd.f32 %v9027_v21, %v14190_v39 }
 0xfbd   : > { %8206 = vst [vmem:[%s14411_s8 + $0x28] sm:$0xff] %v8142_v34  ;;  %v9028_v17 = vpop.f32.mrb[4].mxu1 }
 0xfbe   : > { %v9029_v20 = vpop.f32.mrb[5].mxu1 }
 0xfbf   : > { %v9030_v1 = vadd.f32 %v9029_v20, %v9028_v17  ;;  %v9031_v19 = vpop.f32.mrb[6].mxu1 }
 0xfc0   : > { %v9032_v28 = vpop.f32.mrb[7].mxu1 }
 0xfc1   : > { %v8147_v29 = vadd.f32 %v9030_v1, %v14190_v39  ;;  %v9033_v37 = vadd.f32 %v9032_v28, %v9031_v19 }
 0xfc3   : > { %8209 = vst [vmem:[%s14411_s8 + $0x40] sm:$0xff] %v8147_v29  ;;  %v8150_v56 = vadd.f32 %v9033_v37, %v14190_v39 }
 0xfc5   : > { %8212 = vst [vmem:[%s14411_s8 + $0x58] sm:$0xff] %v8150_v56  ;;  %v9034_v8 = vpop.f32.mrb[8].mxu1 }
 0xfc6   : > { %v9035_v41 = vpop.f32.mrb[9].mxu1 }
 0xfc7   : > { %v9036_v51 = vadd.f32 %v9035_v41, %v9034_v8  ;;  %v9037_v25 = vpop.f32.mrb[10].mxu1 }
 0xfc8   : > { %v9038_v2 = vpop.f32.mrb[11].mxu1 }
 0xfc9   : > { %v8155_v42 = vadd.f32 %v9036_v51, %v14190_v39  ;;  %v9039_v58 = vadd.f32 %v9038_v2, %v9037_v25 }
 0xfcb   : > { %8215 = vst [vmem:[%s14411_s8 + $0x70] sm:$0xff] %v8155_v42  ;;  %v8158_v10 = vadd.f32 %v9039_v58, %v14190_v39 }
 0xfcd   : > { %8218 = vst [vmem:[%s14411_s8 + $0x88] sm:$0xff] %v8158_v10  ;;  %v9040_v47 = vpop.f32.mrb[12].mxu1 }
 0xfce   : > { %v9041_v3 = vpop.f32.mrb[13].mxu1 }
 0xfcf   : > { %v9042_v49 = vadd.f32 %v9041_v3, %v9040_v47  ;;  %v9043_v59 = vpop.f32.mrb[14].mxu1 }
 0xfd0   : > { %v9044_v48 = vpop.f32.mrb[15].mxu1 }
 0xfd1   : > { %v8163_v63 = vadd.f32 %v9042_v49, %v14190_v39  ;;  %v9045_v40 = vadd.f32 %v9044_v48, %v9043_v59 }
 0xfd3   : > { %8221 = vst [vmem:[%s14411_s8 + $0xa0] sm:$0xff] %v8163_v63  ;;  %v8166_v54 = vadd.f32 %v9045_v40, %v14190_v39 }
 0xfd4   : > { %v8025_v9 = vpop.f32.mrb[0].mxu0 }
 0xfd5   : > { %v8026_v57 = vadd.f32 %v8025_v9, %v14209_v4  ;;  %v8027_v36 = vpop.f32.mrb[1].mxu0  ;;  %8224 = vst [vmem:[%s14411_s8 + $0xb8] sm:$0xff] %v8166_v54  ;;  %v9046_v11 = vpop.f32.mrb[16].mxu1 }
 0xfd6   : > { %v8028_v61 = vadd.f32 %v8027_v36, %v14212_v43  ;;  %v8029_v31 = vpop.f32.mrb[2].mxu0  ;;  %v9047_v24 = vpop.f32.mrb[17].mxu1 }
 0xfd7   : > { %8201 = vst [vmem:[%s14411_s8] sm:$0xff] %v8026_v57  ;;  %v8030_v6 = vadd.f32 %v8029_v31, %v14209_v4  ;;  %v8031_v45 = vpop.f32.mrb[3].mxu0  ;;  %v9048_v27 = vadd.f32 %v9047_v24, %v9046_v11  ;;  %v9049_v18 = vpop.f32.mrb[18].mxu1 }
 0xfd8   : > { %8202 = vst [vmem:[%s14411_s8 + $0x8] sm:$0xff] %v8028_v61  ;;  %v8032_v22 = vadd.f32 %v8031_v45, %v14212_v43  ;;  %v9050_v55 = vpop.f32.mrb[19].mxu1 }
 0xfd9   : > { %8204 = vst [vmem:[%s14411_s8 + $0x18] sm:$0xff] %v8030_v6  ;;  %v8171_v32 = vadd.f32 %v9048_v27, %v14190_v39  ;;  %v9051_v35 = vadd.f32 %v9050_v55, %v9049_v18 }
 0xfda   : > { %8205 = vst [vmem:[%s14411_s8 + $0x20] sm:$0xff] %v8032_v22 }
 0xfdb   : > { %8227 = vst [vmem:[%s14411_s8 + $0xd0] sm:$0xff] %v8171_v32  ;;  %v8174_v5 = vadd.f32 %v9051_v35, %v14190_v39 }
 0xfdc   : > { %v8035_v0 = vpop.f32.mrb[4].mxu0 }
 0xfdd   : > { %v8036_v62 = vadd.f32 %v8035_v0, %v14209_v4  ;;  %v8037_v26 = vpop.f32.mrb[5].mxu0  ;;  %8230 = vst [vmem:[%s14411_s8 + $0xe8] sm:$0xff] %v8174_v5  ;;  %v9052_v53 = vpop.f32.mrb[20].mxu1 }
 0xfde   : > { %v8038_v52 = vadd.f32 %v8037_v26, %v14212_v43  ;;  %v8039_v7 = vpop.f32.mrb[6].mxu0  ;;  %v9053_v15 = vpop.f32.mrb[21].mxu1 }
 0xfdf   : > { %8207 = vst [vmem:[%s14411_s8 + $0x30] sm:$0xff] %v8036_v62  ;;  %v8040_v44 = vadd.f32 %v8039_v7, %v14209_v4  ;;  %v8041_v38 = vpop.f32.mrb[7].mxu0  ;;  %v9054_v12 = vadd.f32 %v9053_v15, %v9052_v53  ;;  %v9055_v21 = vpop.f32.mrb[22].mxu1 }
 0xfe0   : > { %8208 = vst [vmem:[%s14411_s8 + $0x38] sm:$0xff] %v8038_v52  ;;  %v8042_v60 = vadd.f32 %v8041_v38, %v14212_v43  ;;  %v9056_v34 = vpop.f32.mrb[23].mxu1 }
 0xfe1   : > { %8210 = vst [vmem:[%s14411_s8 + $0x48] sm:$0xff] %v8040_v44  ;;  %v8179_v17 = vadd.f32 %v9054_v12, %v14190_v39  ;;  %v9057_v20 = vadd.f32 %v9056_v34, %v9055_v21 }
 0xfe2   : > { %8211 = vst [vmem:[%s14411_s8 + $0x50] sm:$0xff] %v8042_v60 }
 0xfe3   : > { %8233 = vst [vmem:[%s14411_s8 + $0x100] sm:$0xff] %v8179_v17  ;;  %v8182_v29 = vadd.f32 %v9057_v20, %v14190_v39 }
 0xfe4   : > { %v8045_v30 = vpop.f32.mrb[8].mxu0 }
 0xfe5   : > { %v8046_v33 = vadd.f32 %v8045_v30, %v14209_v4  ;;  %v8047_v46 = vpop.f32.mrb[9].mxu0  ;;  %8236 = vst [vmem:[%s14411_s8 + $0x118] sm:$0xff] %v8182_v29  ;;  %v9058_v51 = vpop.f32.mrb[24].mxu1 }
 0xfe6   : > { %v8048_v16 = vadd.f32 %v8047_v46, %v14212_v43  ;;  %v8049_v50 = vpop.f32.mrb[10].mxu0  ;;  %v9059_v2 = vpop.f32.mrb[25].mxu1 }
 0xfe7   : > { %8213 = vst [vmem:[%s14411_s8 + $0x60] sm:$0xff] %v8046_v33  ;;  %v8050_v23 = vadd.f32 %v8049_v50, %v14209_v4  ;;  %v8051_v13 = vpop.f32.mrb[11].mxu0  ;;  %v9060_v42 = vadd.f32 %v9059_v2, %v9058_v51  ;;  %v9061_v58 = vpop.f32.mrb[26].mxu1 }
 0xfe8   : > { %8214 = vst [vmem:[%s14411_s8 + $0x68] sm:$0xff] %v8048_v16  ;;  %v8052_v14 = vadd.f32 %v8051_v13, %v14212_v43  ;;  %v9062_v9 = vpop.f32.mrb[27].mxu1 }
 0xfe9   : > { %8216 = vst [vmem:[%s14411_s8 + $0x78] sm:$0xff] %v8050_v23  ;;  %v8187_v57 = vadd.f32 %v9060_v42, %v14190_v39  ;;  %v9063_v36 = vadd.f32 %v9062_v9, %v9061_v58 }
 0xfea   : > { %8217 = vst [vmem:[%s14411_s8 + $0x80] sm:$0xff] %v8052_v14 }
 0xfeb   : > { %8239 = vst [vmem:[%s14411_s8 + $0x130] sm:$0xff] %v8187_v57  ;;  %v8190_v6 = vadd.f32 %v9063_v36, %v14190_v39 }
 0xfec   : > { %v8055_v1 = vpop.f32.mrb[12].mxu0 }
 0xfed   : > { %v8056_v19 = vadd.f32 %v8055_v1, %v14209_v4  ;;  %v8057_v28 = vpop.f32.mrb[13].mxu0  ;;  %8242 = vst [vmem:[%s14411_s8 + $0x148] sm:$0xff] %v8190_v6  ;;  %v9064_v49 = vpop.f32.mrb[28].mxu1 }
 0xfee   : > { %v8058_v37 = vadd.f32 %v8057_v28, %v14212_v43  ;;  %v8059_v56 = vpop.f32.mrb[14].mxu0  ;;  %v9065_v48 = vpop.f32.mrb[29].mxu1 }
 0xfef   : > { %8219 = vst [vmem:[%s14411_s8 + $0x90] sm:$0xff] %v8056_v19  ;;  %v8060_v8 = vadd.f32 %v8059_v56, %v14209_v4  ;;  %v8061_v41 = vpop.f32.mrb[15].mxu0  ;;  %v9066_v63 = vadd.f32 %v9065_v48, %v9064_v49  ;;  %v9067_v40 = vpop.f32.mrb[30].mxu1 }
 0xff0   : > { %8220 = vst [vmem:[%s14411_s8 + $0x98] sm:$0xff] %v8058_v37  ;;  %v8062_v25 = vadd.f32 %v8061_v41, %v14212_v43  ;;  %v9068_v0 = vpop.f32.mrb[31].mxu1 }
 0xff1   : > { %8222 = vst [vmem:[%s14411_s8 + $0xa8] sm:$0xff] %v8060_v8  ;;  %v8195_v62 = vadd.f32 %v9066_v63, %v14190_v39  ;;  %v9069_v26 = vadd.f32 %v9068_v0, %v9067_v40 }
 0xff2   : > { %8223 = vst [vmem:[%s14411_s8 + $0xb0] sm:$0xff] %v8062_v25 }
 0xff3   : > { %8245 = vst [vmem:[%s14411_s8 + $0x160] sm:$0xff] %v8195_v62  ;;  %v8198_v44 = vadd.f32 %v9069_v26, %v14190_v39 }
 0xff4   : > { %v8065_v10 = vpop.f32.mrb[16].mxu0 }
 0xff5   : > { %v8066_v61 = vadd.f32 %v8065_v10, %v14209_v4  ;;  %v8067_v31 = vpop.f32.mrb[17].mxu0  ;;  %8248 = vst [vmem:[%s14411_s8 + $0x178] sm:$0xff] %v8198_v44 }
 0xff6   : > { %v8068_v45 = vadd.f32 %v8067_v31, %v14212_v43  ;;  %v8069_v47 = vpop.f32.mrb[18].mxu0 }
 0xff7   : > { %8225 = vst [vmem:[%s14411_s8 + $0xc0] sm:$0xff] %v8066_v61  ;;  %v8070_v22 = vadd.f32 %v8069_v47, %v14209_v4  ;;  %v8071_v3 = vpop.f32.mrb[19].mxu0 }
 0xff8   : > { %8226 = vst [vmem:[%s14411_s8 + $0xc8] sm:$0xff] %v8068_v45  ;;  %v8072_v59 = vadd.f32 %v8071_v3, %v14212_v43 }
 0xff9   : > { %8228 = vst [vmem:[%s14411_s8 + $0xd8] sm:$0xff] %v8070_v22 }
 0xffa   : > { %8229 = vst [vmem:[%s14411_s8 + $0xe0] sm:$0xff] %v8072_v59 }
 0xffc   : > { %v8075_v54 = vpop.f32.mrb[20].mxu0 }
 0xffd   : > { %v8076_v52 = vadd.f32 %v8075_v54, %v14209_v4  ;;  %v8077_v7 = vpop.f32.mrb[21].mxu0 }
 0xffe   : > { %v8078_v38 = vadd.f32 %v8077_v7, %v14212_v43  ;;  %v8079_v11 = vpop.f32.mrb[22].mxu0 }
 0xfff   : > { %8231 = vst [vmem:[%s14411_s8 + $0xf0] sm:$0xff] %v8076_v52  ;;  %v8080_v60 = vadd.f32 %v8079_v11, %v14209_v4  ;;  %v8081_v24 = vpop.f32.mrb[23].mxu0 }
0x1000   : > { %8232 = vst [vmem:[%s14411_s8 + $0xf8] sm:$0xff] %v8078_v38  ;;  %v8082_v39 = vadd.f32 %v8081_v24, %v14212_v43 }
0x1001   : > { %8234 = vst [vmem:[%s14411_s8 + $0x108] sm:$0xff] %v8080_v60 }
0x1002   : > { %8235 = vst [vmem:[%s14411_s8 + $0x110] sm:$0xff] %v8082_v39 }
0x1004   : > { %v8085_v27 = vpop.f32.mrb[24].mxu0 }
0x1005   : > { %v8086_v18 = vadd.f32 %v8085_v27, %v14209_v4  ;;  %v8087_v55 = vpop.f32.mrb[25].mxu0 }
0x1006   : > { %v8088_v32 = vadd.f32 %v8087_v55, %v14212_v43  ;;  %v8089_v35 = vpop.f32.mrb[26].mxu0 }
0x1007   : > { %8237 = vst [vmem:[%s14411_s8 + $0x120] sm:$0xff] %v8086_v18  ;;  %v8090_v30 = vadd.f32 %v8089_v35, %v14209_v4  ;;  %v8091_v33 = vpop.f32.mrb[27].mxu0 }
0x1008   : > { %8238 = vst [vmem:[%s14411_s8 + $0x128] sm:$0xff] %v8088_v32  ;;  %v8092_v46 = vadd.f32 %v8091_v33, %v14212_v43 }
0x1009   : > { %8240 = vst [vmem:[%s14411_s8 + $0x138] sm:$0xff] %v8090_v30 }
0x100a   : > { %8241 = vst [vmem:[%s14411_s8 + $0x140] sm:$0xff] %v8092_v46 }
0x100c   : > { %v8095_v5 = vpop.f32.mrb[28].mxu0 }
0x100d   : > { %v8096_v16 = vadd.f32 %v8095_v5, %v14209_v4  ;;  %v8097_v50 = vpop.f32.mrb[29].mxu0 }
0x100e   : > { %v8098_v23 = vadd.f32 %v8097_v50, %v14212_v43  ;;  %v8099_v13 = vpop.f32.mrb[30].mxu0 }
0x100f   : > { %8243 = vst [vmem:[%s14411_s8 + $0x150] sm:$0xff] %v8096_v16  ;;  %v8100_v53 = vadd.f32 %v8099_v13, %v14209_v4  ;;  %v8101_v14 = vpop.f32.mrb[31].mxu0 }
0x1010   : > { %8244 = vst [vmem:[%s14411_s8 + $0x158] sm:$0xff] %v8098_v23  ;;  %v8102_v15 = vadd.f32 %v8101_v14, %v14212_v43 }
0x1011   : > { %8246 = vst [vmem:[%s14411_s8 + $0x168] sm:$0xff] %v8100_v53 }
0x1012   : > { %8247 = vst [vmem:[%s14411_s8 + $0x170] sm:$0xff] %v8102_v15 }
0x1013 PF: > { %s14493_s30 = sld [smem:[#allocation19_spill]]  ;;  %s14494_s9 = sld [smem:[#allocation18_spill]] }
0x1014   : > { %s14495_s29 = sld [smem:[#allocation20_spill]]  ;;  %s14496_s27 = smov %s10629_s28 }
0x1019   : > { %p25_p5 = scmp.ge.s32.totalorder %s14493_s30, 10   ;;  %s14497_s28 = smov %s14494_s9 }
0x101b   :  { %27 = sbr.rel (!%p25_p5) target bundleno = 12 (0xc), region = 152 }
0x1022   :  { %8260 = vsyncpa [#allocation4], 1 }
0x1023   :  { %8262 = vsyncpa [#allocation4 + $0x1], 1 }
0x1024   :  { %8263 = vsyncpa [#allocation6], 1 }
0x1025   :  { %8265 = vsyncpa [#allocation6 + $0x1], 1 }
0x1026   :  { %8266 = vsyncpa [#allocation9], 1 }
0x1027   :  { %8268 = vsyncpa [#allocation9 + $0x1], 1 }
0x1028   :  { %8269 = vsyncpa [#allocation12], 1 }

</bundles_post_ra>
